<compile_context>
chip_gen: v7x
topology: tpu7x:2x2x1
jax: 0.10.0
libtpu: 0.0.40
codegen_flags: <defaults>
</compile_context>

<pallas_src>
import functools

import jax
import jax.numpy as jnp
from jax.experimental import pallas as pl
from jax.experimental.pallas import tpu as pltpu

LANE = 128            # all matmul output widths are padded to a multiple of this
MAX_ROW_TILE = 512    # large row tiles -> ~85% of HBM roofline on streaming kernels
MAX_K_TILE = 512      # K tile used once K exceeds 1024
VMEM_LIMIT = 32 * 1024 * 1024
BN_EPS = 1e-5


def _round_up(x, m):
    return ((x + m - 1) // m) * m


# ----------------------------------------------------------------------------
# Pallas kernels
# ----------------------------------------------------------------------------
def _conv_mm_kernel(*refs, nk, act, has_bias):
    """Fused conv matmul: bf16 A/B on the MXU, f32 VMEM accumulator over K tiles.

    Epilogue (last K step): optional bias add, optional tanh, store the (TM, Npad)
    output tile and accumulate BatchNorm batch statistics (per-channel sum and
    sum-of-squares) so no separate stats pass over the activation is needed."""
    if has_bias:
        a_ref, b_ref, bias_ref, o_ref, sum_ref, sq_ref, acc_ref = refs
    else:
        a_ref, b_ref, o_ref, sum_ref, sq_ref, acc_ref = refs
        bias_ref = None

    i = pl.program_id(0)
    k = pl.program_id(1)

    @pl.when(jnp.logical_and(i == 0, k == 0))
    def _():
        sum_ref[...] = jnp.zeros_like(sum_ref)
        sq_ref[...] = jnp.zeros_like(sq_ref)

    @pl.when(k == 0)
    def _():
        acc_ref[...] = jnp.zeros_like(acc_ref)

    acc_ref[...] += jnp.dot(a_ref[...], b_ref[...],
                            preferred_element_type=jnp.float32)

    @pl.when(k == nk - 1)
    def _():
        y = acc_ref[...]
        if has_bias:
            y = y + bias_ref[...]
        if act == "tanh":
            y = jnp.tanh(y)
        o_ref[...] = y.astype(o_ref.dtype)
        sum_ref[...] += jnp.sum(y, axis=0, keepdims=True)
        sq_ref[...] += jnp.sum(y * y, axis=0, keepdims=True)


def _bn_relu_kernel(x_ref, scale_ref, shift_ref, o_ref):
    y = x_ref[...].astype(jnp.float32) * scale_ref[...] + shift_ref[...]
    o_ref[...] = jnp.maximum(y, 0.0).astype(o_ref.dtype)


def _inst_mean_kernel(ic_ref, ir_ref, x_ref, o_ref, sums_ref, cnt_ref, *, nk):
    """Tiled instance-wise mean: accumulate (C, PC) sums and (1, PC) counts over
    PK-sized column blocks of the same-instance mask (never materializes P x P)."""
    k = pl.program_id(2)

    @pl.when(k == 0)
    def _():
        sums_ref[...] = jnp.zeros_like(sums_ref)
        cnt_ref[...] = jnp.zeros_like(cnt_ref)

    ic = ic_ref[0]                                  # (PK, 1) int32
    ir = ir_ref[0]                                  # (1, PC) int32
    eq = (ic == ir).astype(jnp.float32)             # (PK, PC) same-instance mask block
    cnt_ref[...] += jnp.sum(eq, axis=0, keepdims=True)
    sums_ref[...] += jnp.dot(x_ref[0], eq, preferred_element_type=jnp.float32)

    @pl.when(k == nk - 1)
    def _():
        o_ref[0] = sums_ref[...] / cnt_ref[...]


# ----------------------------------------------------------------------------
# Pallas wrappers
# ----------------------------------------------------------------------------
def _pallas_conv_mm(col, w2, bias, act, out_dtype):
    """col: (M, K), w2: (K, N).  Returns the padded (Mpad, Npad) output plus the
    per-column sum / sum-of-squares stats from a single fused Pallas kernel."""
    m, k = col.shape
    n = w2.shape[1]
    n_pad = _round_up(n, LANE)
    tm = MAX_ROW_TILE if m >= MAX_ROW_TILE else _round_up(m, 8)
    m_pad = _round_up(m, tm)
    if k >= 2 * MAX_K_TILE:
        tk = MAX_K_TILE
        k_pad = _round_up(k, tk)
    else:
        tk, k_pad = k, k
    nk = k_pad // tk

    a = col
    if (m_pad, k_pad) != (m, k):
        a = jnp.pad(a, ((0, m_pad - m), (0, k_pad - k)))
    a = a.astype(jnp.bfloat16)
    b = jnp.pad(w2, ((0, k_pad - k), (0, n_pad - n))).astype(jnp.bfloat16)

    has_bias = bias is not None
    in_specs = [
        pl.BlockSpec((tm, tk), lambda i, kk: (i, kk)),
        pl.BlockSpec((tk, n_pad), lambda i, kk: (kk, 0)),
    ]
    args = [a, b]
    if has_bias:
        in_specs.append(pl.BlockSpec((1, n_pad), lambda i, kk: (0, 0)))
        args.append(jnp.pad(bias.astype(jnp.float32).reshape(1, n),
                            ((0, 0), (0, n_pad - n))))

    out, sums, sqs = pl.pallas_call(
        functools.partial(_conv_mm_kernel, nk=nk, act=act, has_bias=has_bias),
        out_shape=(
            jax.ShapeDtypeStruct((m_pad, n_pad), out_dtype),
            jax.ShapeDtypeStruct((1, n_pad), jnp.float32),
            jax.ShapeDtypeStruct((1, n_pad), jnp.float32),
        ),
        grid=(m_pad // tm, nk),
        in_specs=in_specs,
        out_specs=(
            pl.BlockSpec((tm, n_pad), lambda i, kk: (i, 0)),
            pl.BlockSpec((1, n_pad), lambda i, kk: (0, 0)),
            pl.BlockSpec((1, n_pad), lambda i, kk: (0, 0)),
        ),
        scratch_shapes=[pltpu.VMEM((tm, n_pad), jnp.float32)],
        compiler_params=pltpu.CompilerParams(
            # The row axis also carries the fused BN-stats accumulator, so both grid
            # axes are sequential ("arbitrary"); K is the innermost reduction axis.
            dimension_semantics=("arbitrary", "arbitrary"),
            vmem_limit_bytes=VMEM_LIMIT,
        ),
    )(*args)
    return out, sums, sqs, (m, n, n_pad, tm)


def _pallas_bn_relu(flat_pad, scale_pad, shift_pad, tm):
    m_pad, n_pad = flat_pad.shape
    return pl.pallas_call(
        _bn_relu_kernel,
        out_shape=jax.ShapeDtypeStruct((m_pad, n_pad), jnp.bfloat16),
        grid=(m_pad // tm,),
        in_specs=[
            pl.BlockSpec((tm, n_pad), lambda i: (i, 0)),
            pl.BlockSpec((1, n_pad), lambda i: (0, 0)),
            pl.BlockSpec((1, n_pad), lambda i: (0, 0)),
        ],
        out_specs=pl.BlockSpec((tm, n_pad), lambda i: (i, 0)),
        compiler_params=pltpu.CompilerParams(
            dimension_semantics=("parallel",),
            vmem_limit_bytes=VMEM_LIMIT,
        ),
    )(flat_pad, scale_pad.reshape(1, n_pad), shift_pad.reshape(1, n_pad))


def pallas_instance_mean(out_nhwc, inst_nchw):
    n, ho, wo, c = out_nhwc.shape
    p = ho * wo
    tile = MAX_ROW_TILE if p >= MAX_ROW_TILE else _round_up(p, LANE)
    p_pad = _round_up(p, tile)
    x = jnp.transpose(out_nhwc, (0, 3, 1, 2)).reshape(n, c, p).astype(jnp.float32)
    inst = inst_nchw.reshape(n, p).astype(jnp.int32)
    if p_pad != p:
        x = jnp.pad(x, ((0, 0), (0, 0), (0, p_pad - p)))
        inst = jnp.pad(inst, ((0, 0), (0, p_pad - p)), constant_values=-1)
    ic = inst.reshape(n, p_pad, 1)
    ir = inst.reshape(n, 1, p_pad)
    nk = p_pad // tile
    out = pl.pallas_call(
        functools.partial(_inst_mean_kernel, nk=nk),
        out_shape=jax.ShapeDtypeStruct((n, c, p_pad), jnp.float32),
        grid=(n, nk, nk),
        in_specs=[
            pl.BlockSpec((1, tile, 1), lambda b, j, k: (b, k, 0)),
            pl.BlockSpec((1, 1, tile), lambda b, j, k: (b, 0, j)),
            pl.BlockSpec((1, c, tile), lambda b, j, k: (b, 0, k)),
        ],
        out_specs=pl.BlockSpec((1, c, tile), lambda b, j, k: (b, 0, j)),
        scratch_shapes=[
            pltpu.VMEM((c, tile), jnp.float32),
            pltpu.VMEM((1, tile), jnp.float32),
        ],
        compiler_params=pltpu.CompilerParams(
            dimension_semantics=("parallel", "parallel", "arbitrary"),
            vmem_limit_bytes=VMEM_LIMIT,
        ),
    )(ic, ir, x)
    return out[:, :, :p].reshape(n, c, ho, wo)


# ----------------------------------------------------------------------------
# Convolution layers (im2col glue in XLA, all heavy math in the Pallas kernels)
# ----------------------------------------------------------------------------
def _im2col(x, kh, kw, stride):
    n, h, w, c = x.shape
    ho = (h - kh) // stride + 1
    wo = (w - kw) // stride + 1
    taps = []
    for i in range(kh):
        for j in range(kw):
            taps.append(x[:, i:i + stride * (ho - 1) + 1:stride,
                          j:j + stride * (wo - 1) + 1:stride, :])
    col = jnp.stack(taps, axis=3).reshape(n * ho * wo, kh * kw * c)
    return col, (n, ho, wo)


def _bn_scale_shift(mean, var, gamma, beta):
    # biased batch variance, as in BatchNorm2d training forward
    scale = gamma * jax.lax.rsqrt(var + BN_EPS)
    shift = beta - mean * scale
    return scale, shift


def conv_bn_relu(x, w, gamma, beta, *, stride=1, zero_pad=0, reflect_pad=0):
    """Conv2d (bias dropped; BN absorbs it) + BatchNorm (batch stats) + ReLU. NHWC bf16."""
    if reflect_pad:
        x = jnp.pad(x, ((0, 0), (reflect_pad,) * 2, (reflect_pad,) * 2, (0, 0)),
                    mode="reflect")
    if zero_pad:
        x = jnp.pad(x, ((0, 0), (zero_pad,) * 2, (zero_pad,) * 2, (0, 0)))
    cout, cin, kh, kw = w.shape
    # TODO(synk): move the im2col tap gather into the Pallas kernel (VMEM-resident
    # input tile + per-tap pl.ds slices) to remove the kh*kw-expanded HBM copy.
    col, (n, ho, wo) = _im2col(x, kh, kw, stride)
    w2 = jnp.transpose(w, (2, 3, 1, 0)).reshape(kh * kw * cin, cout)
    out, sums, sqs, (m, _, n_pad, tm) = _pallas_conv_mm(col, w2, None, "none",
                                                        jnp.bfloat16)
    cnt = float(m)
    mean = sums[0, :cout] / cnt
    var = sqs[0, :cout] / cnt - mean * mean
    scale, shift = _bn_scale_shift(mean, var, gamma, beta)
    scale = jnp.pad(scale, (0, n_pad - cout), constant_values=1.0)
    shift = jnp.pad(shift, (0, n_pad - cout))
    act = _pallas_bn_relu(out, scale, shift, tm)
    return act[:m, :cout].reshape(n, ho, wo, cout)


def up_convt_bn_relu(x, w, gamma, beta):
    """ConvTranspose2d(k=3, s=2, p=1, output_padding=1) as a fused sub-pixel 2x2 conv
    producing 4*Cout phase channels, then BN + ReLU + depth-to-space (bias dropped)."""
    cin, cout, _, _ = w.shape
    # dense-correlation-equivalent weights: w_eq[co, ci, a, b] = w[ci, co, 2-a, 2-b]
    w_eq = jnp.transpose(w[:, :, ::-1, ::-1], (1, 0, 2, 3))

    def tap(a, b):
        return jnp.transpose(w_eq[:, :, a, b], (1, 0))        # (Cin, Cout)

    w_sub = jnp.zeros((2, 2, cin, 4, cout), jnp.float32)
    w_sub = w_sub.at[0, 0, :, 0, :].set(tap(1, 1))             # phase (0,0)
    w_sub = w_sub.at[0, 0, :, 1, :].set(tap(1, 0))             # phase (0,1)
    w_sub = w_sub.at[0, 1, :, 1, :].set(tap(1, 2))
    w_sub = w_sub.at[0, 0, :, 2, :].set(tap(0, 1))             # phase (1,0)
    w_sub = w_sub.at[1, 0, :, 2, :].set(tap(2, 1))
    w_sub = w_sub.at[0, 0, :, 3, :].set(tap(0, 0))             # phase (1,1)
    w_sub = w_sub.at[0, 1, :, 3, :].set(tap(0, 2))
    w_sub = w_sub.at[1, 0, :, 3, :].set(tap(2, 0))
    w_sub = w_sub.at[1, 1, :, 3, :].set(tap(2, 2))
    w2 = w_sub.reshape(2 * 2 * cin, 4 * cout)

    xp = jnp.pad(x, ((0, 0), (0, 1), (0, 1), (0, 0)))          # output_padding side
    col, (n, ho, wo) = _im2col(xp, 2, 2, 1)                    # ho = H, wo = W
    out, sums, sqs, (m, nreal, n_pad, tm) = _pallas_conv_mm(col, w2, None, "none",
                                                            jnp.bfloat16)
    cnt = float(4 * m)                                         # 4 output phases / pixel
    mean = jnp.sum(sums[0, :nreal].reshape(4, cout), axis=0) / cnt
    var = jnp.sum(sqs[0, :nreal].reshape(4, cout), axis=0) / cnt - mean * mean
    scale, shift = _bn_scale_shift(mean, var, gamma, beta)
    scale = jnp.pad(jnp.tile(scale, 4), (0, n_pad - nreal), constant_values=1.0)
    shift = jnp.pad(jnp.tile(shift, 4), (0, n_pad - nreal))
    act = _pallas_bn_relu(out, scale, shift, tm)
    y = act[:m, :nreal].reshape(n, ho, wo, 2, 2, cout)         # (..., di, dj, co)
    return jnp.transpose(y, (0, 1, 3, 2, 4, 5)).reshape(n, 2 * ho, 2 * wo, cout)


def conv_tanh(x, w, b):
    """Final ReflectionPad(3) + Conv7x7 + bias + tanh (tanh fused in matmul epilogue)."""
    x = jnp.pad(x, ((0, 0), (3, 3), (3, 3), (0, 0)), mode="reflect")
    cout, cin, kh, kw = w.shape
    col, (n, ho, wo) = _im2col(x, kh, kw, 1)
    w2 = jnp.transpose(w, (2, 3, 1, 0)).reshape(kh * kw * cin, cout)
    out, _, _, (m, _, _, _) = _pallas_conv_mm(col, w2, b, "tanh", jnp.float32)
    return out[:m, :cout].reshape(n, ho, wo, cout)


# ----------------------------------------------------------------------------
# Encoder parameters + forward
# ----------------------------------------------------------------------------
def init_params(key, input_nc, output_nc, ngf, n_down):
    params = {}

    def nrm(k, shape, scale=0.1):
        return scale * jax.random.normal(k, shape, jnp.float32)

    keys = iter(jax.random.split(key, 3 + 2 * n_down))
    params["conv0_w"] = nrm(next(keys), (ngf, input_nc, 7, 7))
    params["conv0_g"] = jnp.ones((ngf,), jnp.float32)
    params["conv0_be"] = jnp.zeros((ngf,), jnp.float32)
    for i in range(n_down):
        mult = 2 ** i
        params[f"down{i}_w"] = nrm(next(keys), (ngf * mult * 2, ngf * mult, 3, 3))
        params[f"down{i}_g"] = jnp.ones((ngf * mult * 2,), jnp.float32)
        params[f"down{i}_be"] = jnp.zeros((ngf * mult * 2,), jnp.float32)
    for i in range(n_down):
        mult = 2 ** (n_down - i)
        params[f"up{i}_w"] = nrm(next(keys), (ngf * mult, ngf * mult // 2, 3, 3))
        params[f"up{i}_g"] = jnp.ones((ngf * mult // 2,), jnp.float32)
        params[f"up{i}_be"] = jnp.zeros((ngf * mult // 2,), jnp.float32)
    params["convF_w"] = nrm(next(keys), (output_nc, ngf, 7, 7))
    params["convF_b"] = nrm(next(keys), (output_nc,), 0.01)
    return params


def encoder_forward(params, x_nchw, inst_nchw, n_down):
    x = jnp.transpose(x_nchw, (0, 2, 3, 1)).astype(jnp.bfloat16)   # NCHW -> NHWC bf16

    # ReflectionPad(3) + Conv7x7 + BN + ReLU
    x = conv_bn_relu(x, params["conv0_w"], params["conv0_g"], params["conv0_be"],
                     stride=1, reflect_pad=3)
    # downsampling blocks
    for i in range(n_down):
        x = conv_bn_relu(x, params[f"down{i}_w"], params[f"down{i}_g"],
                         params[f"down{i}_be"], stride=2, zero_pad=1)
    # upsampling blocks (ConvTranspose as sub-pixel conv)
    for i in range(n_down):
        x = up_convt_bn_relu(x, params[f"up{i}_w"], params[f"up{i}_g"],
                             params[f"up{i}_be"])
    # ReflectionPad(3) + Conv7x7 + Tanh
    out_nhwc = conv_tanh(x, params["convF_w"], params["convF_b"])
    # instance-wise average pooling, returned NCHW like PyTorch
    return pallas_instance_mean(out_nhwc, inst_nchw)


# ----------------------------------------------------------------------------
if __name__ == "__main__":
    B, input_nc, output_nc = 2, 3, 3
    ngf, n_down = 8, 2
    H = W = 16

    key = jax.random.PRNGKey(0)
    kx, ki, kp = jax.random.split(key, 3)

    x = jax.random.normal(kx, (B, input_nc, H, W), jnp.float32)
    # integer instance map with a handful of instance ids (stored as float, pix2pixHD-style)
    inst = jax.random.randint(ki, (B, 1, H, W), 0, 4).astype(jnp.float32)

    params = init_params(kp, input_nc, output_nc, ngf, n_down)

    fwd = jax.jit(functools.partial(encoder_forward, n_down=n_down))
    out = fwd(params, x, inst)
    jax.block_until_ready(out)
    assert out.shape == (B, output_nc, H, W)
    print("KERNEL_OK")
</pallas_src>

<mosaic_0001>
module attributes {stable_mosaic.version = 11 : i64} {
  func.func @_conv_mm_kernel(%arg0: i32, %arg1: i32, %arg2: memref<512x147xbf16, #tpu.memory_space<vmem>>, %arg3: memref<147x128xbf16, #tpu.memory_space<vmem>>, %arg4: memref<512x128xbf16, #tpu.memory_space<vmem>>, %arg5: memref<1x128xf32, #tpu.memory_space<vmem>>, %arg6: memref<1x128xf32, #tpu.memory_space<vmem>>, %arg7: memref<512x128xf32, #tpu.memory_space<vmem>>) attributes {dimension_semantics = [#tpu.dimension_semantics<arbitrary>, #tpu.dimension_semantics<arbitrary>], iteration_bounds = array<i64: 1, 1>, scalar_prefetch = 0 : i64, scratch_operands = 1 : i64, tpu.core_type = #tpu.core_type<tc>, window_params = [{transform_indices = @transform_0, window_bounds = array<i64: 512, 147>}, {transform_indices = @transform_1, window_bounds = array<i64: 147, 128>}, {transform_indices = @transform_2, window_bounds = array<i64: 512, 128>}, {pipeline_mode = #tpu.pipeline_mode<synchronous>, transform_indices = @transform_3, window_bounds = array<i64: 1, 128>}, {pipeline_mode = #tpu.pipeline_mode<synchronous>, transform_indices = @transform_4, window_bounds = array<i64: 1, 128>}]} {
    %c0_i32 = arith.constant 0 : i32
    %0 = arith.cmpi eq, %arg0, %c0_i32 : i32
    %c0_i32_0 = arith.constant 0 : i32
    %1 = arith.cmpi eq, %arg1, %c0_i32_0 : i32
    %2 = arith.andi %0, %1 : i1
    %3 = arith.extui %2 : i1 to i32
    %c0_i32_1 = arith.constant 0 : i32
    %4 = arith.cmpi ne, %3, %c0_i32_1 : i32
    scf.if %4 {
      %cst_13 = arith.constant 0.000000e+00 : f32
      %17 = vector.broadcast %cst_13 : f32 to vector<1x128xf32>
      %c0_14 = arith.constant 0 : index
      %c0_15 = arith.constant 0 : index
      %18 = vector.load %arg5[%c0_14, %c0_15] : memref<1x128xf32, #tpu.memory_space<vmem>>, vector<1x128xf32>
      tpu.vector_store %arg5[%c0_14, %c0_15], %17 {strides = array<i32>} : memref<1x128xf32, #tpu.memory_space<vmem>>, vector<1x128xf32>,
      %cst_16 = arith.constant 0.000000e+00 : f32
      %19 = vector.broadcast %cst_16 : f32 to vector<1x128xf32>
      %c0_17 = arith.constant 0 : index
      %c0_18 = arith.constant 0 : index
      %20 = vector.load %arg6[%c0_17, %c0_18] : memref<1x128xf32, #tpu.memory_space<vmem>>, vector<1x128xf32>
      tpu.vector_store %arg6[%c0_17, %c0_18], %19 {strides = array<i32>} : memref<1x128xf32, #tpu.memory_space<vmem>>, vector<1x128xf32>,
    } else {
    }
    %c0_i32_2 = arith.constant 0 : i32
    %5 = arith.cmpi eq, %arg1, %c0_i32_2 : i32
    %6 = arith.extui %5 : i1 to i32
    %c0_i32_3 = arith.constant 0 : i32
    %7 = arith.cmpi ne, %6, %c0_i32_3 : i32
    scf.if %7 {
      %cst_13 = arith.constant 0.000000e+00 : f32
      %17 = vector.broadcast %cst_13 : f32 to vector<512x128xf32>
      %c0_14 = arith.constant 0 : index
      %c0_15 = arith.constant 0 : index
      %18 = vector.load %arg7[%c0_14, %c0_15] : memref<512x128xf32, #tpu.memory_space<vmem>>, vector<512x128xf32>
      tpu.vector_store %arg7[%c0_14, %c0_15], %17 {strides = array<i32>} : memref<512x128xf32, #tpu.memory_space<vmem>>, vector<512x128xf32>,
    } else {
    }
    %c0 = arith.constant 0 : index
    %c0_4 = arith.constant 0 : index
    %8 = vector.load %arg7[%c0, %c0_4] : memref<512x128xf32, #tpu.memory_space<vmem>>, vector<512x128xf32>
    %c0_5 = arith.constant 0 : index
    %c0_6 = arith.constant 0 : index
    %9 = vector.load %arg2[%c0_5, %c0_6] : memref<512x147xbf16, #tpu.memory_space<vmem>>, vector<512x147xbf16>
    %c0_7 = arith.constant 0 : index
    %c0_8 = arith.constant 0 : index
    %10 = vector.load %arg3[%c0_7, %c0_8] : memref<147x128xbf16, #tpu.memory_space<vmem>>, vector<147x128xbf16>
    %cst = arith.constant dense<0.000000e+00> : vector<512x128xf32>
    %11 = tpu.matmul %9, %10, %cst {dimension_numbers = #tpu.dot_dimension_numbers<[1], [0], [0], [1], [0, 0, 1, 1], [], []>} : vector<512x147xbf16>, vector<147x128xbf16>, vector<512x128xf32> -> vector<512x128xf32>
    %12 = arith.addf %8, %11 : vector<512x128xf32>
    %c0_9 = arith.constant 0 : index
    %c0_10 = arith.constant 0 : index
    %13 = vector.load %arg7[%c0_9, %c0_10] : memref<512x128xf32, #tpu.memory_space<vmem>>, vector<512x128xf32>
    tpu.vector_store %arg7[%c0_9, %c0_10], %12 {strides = array<i32>} : memref<512x128xf32, #tpu.memory_space<vmem>>, vector<512x128xf32>,
    %c0_i32_11 = arith.constant 0 : i32
    %14 = arith.cmpi eq, %arg1, %c0_i32_11 : i32
    %15 = arith.extui %14 : i1 to i32
    %c0_i32_12 = arith.constant 0 : i32
    %16 = arith.cmpi ne, %15, %c0_i32_12 : i32
    scf.if %16 {
      %c0_13 = arith.constant 0 : index
      %c0_14 = arith.constant 0 : index
      %17 = vector.load %arg7[%c0_13, %c0_14] : memref<512x128xf32, #tpu.memory_space<vmem>>, vector<512x128xf32>
      %18 = arith.truncf %17 : vector<512x128xf32> to vector<512x128xbf16>
      %c0_15 = arith.constant 0 : index
      %c0_16 = arith.constant 0 : index
      %19 = vector.load %arg4[%c0_15, %c0_16] : memref<512x128xbf16, #tpu.memory_space<vmem>>, vector<512x128xbf16>
      tpu.vector_store %arg4[%c0_15, %c0_16], %18 {strides = array<i32>} : memref<512x128xbf16, #tpu.memory_space<vmem>>, vector<512x128xbf16>,
      %c0_17 = arith.constant 0 : index
      %c0_18 = arith.constant 0 : index
      %20 = vector.load %arg5[%c0_17, %c0_18] : memref<1x128xf32, #tpu.memory_space<vmem>>, vector<1x128xf32>
      %cst_19 = arith.constant dense<0.000000e+00> : vector<128xf32>
      %21 = vector.multi_reduction <add>, %17, %cst_19 [0] : vector<512x128xf32> to vector<128xf32>
      %22 = vector.shape_cast %21 : vector<128xf32> to vector<1x128xf32>
      %23 = arith.addf %20, %22 : vector<1x128xf32>
      %c0_20 = arith.constant 0 : index
      %c0_21 = arith.constant 0 : index
      %24 = vector.load %arg5[%c0_20, %c0_21] : memref<1x128xf32, #tpu.memory_space<vmem>>, vector<1x128xf32>
      tpu.vector_store %arg5[%c0_20, %c0_21], %23 {strides = array<i32>} : memref<1x128xf32, #tpu.memory_space<vmem>>, vector<1x128xf32>,
      %c0_22 = arith.constant 0 : index
      %c0_23 = arith.constant 0 : index
      %25 = vector.load %arg6[%c0_22, %c0_23] : memref<1x128xf32, #tpu.memory_space<vmem>>, vector<1x128xf32>
      %26 = arith.mulf %17, %17 : vector<512x128xf32>
      %cst_24 = arith.constant dense<0.000000e+00> : vector<128xf32>
      %27 = vector.multi_reduction <add>, %26, %cst_24 [0] : vector<512x128xf32> to vector<128xf32>
      %28 = vector.shape_cast %27 : vector<128xf32> to vector<1x128xf32>
      %29 = arith.addf %25, %28 : vector<1x128xf32>
      %c0_25 = arith.constant 0 : index
      %c0_26 = arith.constant 0 : index
      %30 = vector.load %arg6[%c0_25, %c0_26] : memref<1x128xf32, #tpu.memory_space<vmem>>, vector<1x128xf32>
      tpu.vector_store %arg6[%c0_25, %c0_26], %29 {strides = array<i32>} : memref<1x128xf32, #tpu.memory_space<vmem>>, vector<1x128xf32>,
    } else {
    }
    return
  }
  func.func @transform_0(%arg0: i32, %arg1: i32) -> (i32, i32) {
    %c0_i32 = arith.constant 0 : i32
    return %arg0, %arg1 : i32, i32
  }
  func.func @transform_1(%arg0: i32, %arg1: i32) -> (i32, i32) {
    %c0_i32 = arith.constant 0 : i32
    %c0_i32_0 = arith.constant 0 : i32
    return %arg1, %c0_i32 : i32, i32
  }
  func.func @transform_2(%arg0: i32, %arg1: i32) -> (i32, i32) {
    %c0_i32 = arith.constant 0 : i32
    %c0_i32_0 = arith.constant 0 : i32
    return %arg0, %c0_i32 : i32, i32
  }
  func.func @transform_3(%arg0: i32, %arg1: i32) -> (i32, i32) {
    %c0_i32 = arith.constant 0 : i32
    %c0_i32_0 = arith.constant 0 : i32
    %c0_i32_1 = arith.constant 0 : i32
    return %c0_i32, %c0_i32_0 : i32, i32
  }
  func.func @transform_4(%arg0: i32, %arg1: i32) -> (i32, i32) {
    %c0_i32 = arith.constant 0 : i32
    %c0_i32_0 = arith.constant 0 : i32
    %c0_i32_1 = arith.constant 0 : i32
    return %c0_i32, %c0_i32_0 : i32, i32
  }
}

module attributes {stable_mosaic.version = 11 : i64} {
  func.func @_bn_relu_kernel(%arg0: i32, %arg1: memref<512x128xbf16, #tpu.memory_space<vmem>>, %arg2: memref<1x128xf32, #tpu.memory_space<vmem>>, %arg3: memref<1x128xf32, #tpu.memory_space<vmem>>, %arg4: memref<512x128xbf16, #tpu.memory_space<vmem>>) attributes {dimension_semantics = [#tpu.dimension_semantics<parallel>], iteration_bounds = array<i64: 1>, scalar_prefetch = 0 : i64, scratch_operands = 0 : i64, tpu.core_type = #tpu.core_type<tc>, window_params = [{transform_indices = @transform_0, window_bounds = array<i64: 512, 128>}, {pipeline_mode = #tpu.pipeline_mode<synchronous>, transform_indices = @transform_1, window_bounds = array<i64: 1, 128>}, {pipeline_mode = #tpu.pipeline_mode<synchronous>, transform_indices = @transform_2, window_bounds = array<i64: 1, 128>}, {transform_indices = @transform_3, window_bounds = array<i64: 512, 128>}]} {
    %c0 = arith.constant 0 : index
    %c0_0 = arith.constant 0 : index
    %0 = vector.load %arg1[%c0, %c0_0] : memref<512x128xbf16, #tpu.memory_space<vmem>>, vector<512x128xbf16>
    %1 = arith.extf %0 : vector<512x128xbf16> to vector<512x128xf32>
    %c0_1 = arith.constant 0 : index
    %c0_2 = arith.constant 0 : index
    %2 = vector.load %arg2[%c0_1, %c0_2] : memref<1x128xf32, #tpu.memory_space<vmem>>, vector<1x128xf32>
    %3 = vector.broadcast %2 : vector<1x128xf32> to vector<512x128xf32>
    %4 = arith.mulf %1, %3 : vector<512x128xf32>
    %c0_3 = arith.constant 0 : index
    %c0_4 = arith.constant 0 : index
    %5 = vector.load %arg3[%c0_3, %c0_4] : memref<1x128xf32, #tpu.memory_space<vmem>>, vector<1x128xf32>
    %6 = vector.broadcast %5 : vector<1x128xf32> to vector<512x128xf32>
    %7 = arith.addf %4, %6 : vector<512x128xf32>
    %cst = arith.constant 0.000000e+00 : f32
    %8 = vector.broadcast %cst : f32 to vector<512x128xf32>
    %9 = arith.maximumf %7, %8 : vector<512x128xf32>
    %10 = arith.truncf %9 : vector<512x128xf32> to vector<512x128xbf16>
    %c0_5 = arith.constant 0 : index
    %c0_6 = arith.constant 0 : index
    %11 = vector.load %arg4[%c0_5, %c0_6] : memref<512x128xbf16, #tpu.memory_space<vmem>>, vector<512x128xbf16>
    tpu.vector_store %arg4[%c0_5, %c0_6], %10 {strides = array<i32>} : memref<512x128xbf16, #tpu.memory_space<vmem>>, vector<512x128xbf16>,
    return
  }
  func.func @transform_0(%arg0: i32) -> (i32, i32) {
    %c0_i32 = arith.constant 0 : i32
    %c0_i32_0 = arith.constant 0 : i32
    return %arg0, %c0_i32 : i32, i32
  }
  func.func @transform_1(%arg0: i32) -> (i32, i32) {
    %c0_i32 = arith.constant 0 : i32
    %c0_i32_0 = arith.constant 0 : i32
    %c0_i32_1 = arith.constant 0 : i32
    return %c0_i32, %c0_i32_0 : i32, i32
  }
  func.func @transform_2(%arg0: i32) -> (i32, i32) {
    %c0_i32 = arith.constant 0 : i32
    %c0_i32_0 = arith.constant 0 : i32
    %c0_i32_1 = arith.constant 0 : i32
    return %c0_i32, %c0_i32_0 : i32, i32
  }
  func.func @transform_3(%arg0: i32) -> (i32, i32) {
    %c0_i32 = arith.constant 0 : i32
    %c0_i32_0 = arith.constant 0 : i32
    return %arg0, %c0_i32 : i32, i32
  }
}

module attributes {stable_mosaic.version = 11 : i64} {
  func.func @_conv_mm_kernel(%arg0: i32, %arg1: i32, %arg2: memref<128x72xbf16, #tpu.memory_space<vmem>>, %arg3: memref<72x128xbf16, #tpu.memory_space<vmem>>, %arg4: memref<128x128xbf16, #tpu.memory_space<vmem>>, %arg5: memref<1x128xf32, #tpu.memory_space<vmem>>, %arg6: memref<1x128xf32, #tpu.memory_space<vmem>>, %arg7: memref<128x128xf32, #tpu.memory_space<vmem>>) attributes {dimension_semantics = [#tpu.dimension_semantics<arbitrary>, #tpu.dimension_semantics<arbitrary>], iteration_bounds = array<i64: 1, 1>, scalar_prefetch = 0 : i64, scratch_operands = 1 : i64, tpu.core_type = #tpu.core_type<tc>, window_params = [{transform_indices = @transform_0, window_bounds = array<i64: 128, 72>}, {transform_indices = @transform_1, window_bounds = array<i64: 72, 128>}, {transform_indices = @transform_2, window_bounds = array<i64: 128, 128>}, {pipeline_mode = #tpu.pipeline_mode<synchronous>, transform_indices = @transform_3, window_bounds = array<i64: 1, 128>}, {pipeline_mode = #tpu.pipeline_mode<synchronous>, transform_indices = @transform_4, window_bounds = array<i64: 1, 128>}]} {
    %c0_i32 = arith.constant 0 : i32
    %0 = arith.cmpi eq, %arg0, %c0_i32 : i32
    %c0_i32_0 = arith.constant 0 : i32
    %1 = arith.cmpi eq, %arg1, %c0_i32_0 : i32
    %2 = arith.andi %0, %1 : i1
    %3 = arith.extui %2 : i1 to i32
    %c0_i32_1 = arith.constant 0 : i32
    %4 = arith.cmpi ne, %3, %c0_i32_1 : i32
    scf.if %4 {
      %cst_13 = arith.constant 0.000000e+00 : f32
      %17 = vector.broadcast %cst_13 : f32 to vector<1x128xf32>
      %c0_14 = arith.constant 0 : index
      %c0_15 = arith.constant 0 : index
      %18 = vector.load %arg5[%c0_14, %c0_15] : memref<1x128xf32, #tpu.memory_space<vmem>>, vector<1x128xf32>
      tpu.vector_store %arg5[%c0_14, %c0_15], %17 {strides = array<i32>} : memref<1x128xf32, #tpu.memory_space<vmem>>, vector<1x128xf32>,
      %cst_16 = arith.constant 0.000000e+00 : f32
      %19 = vector.broadcast %cst_16 : f32 to vector<1x128xf32>
      %c0_17 = arith.constant 0 : index
      %c0_18 = arith.constant 0 : index
      %20 = vector.load %arg6[%c0_17, %c0_18] : memref<1x128xf32, #tpu.memory_space<vmem>>, vector<1x128xf32>
      tpu.vector_store %arg6[%c0_17, %c0_18], %19 {strides = array<i32>} : memref<1x128xf32, #tpu.memory_space<vmem>>, vector<1x128xf32>,
    } else {
    }
    %c0_i32_2 = arith.constant 0 : i32
    %5 = arith.cmpi eq, %arg1, %c0_i32_2 : i32
    %6 = arith.extui %5 : i1 to i32
    %c0_i32_3 = arith.constant 0 : i32
    %7 = arith.cmpi ne, %6, %c0_i32_3 : i32
    scf.if %7 {
      %cst_13 = arith.constant 0.000000e+00 : f32
      %17 = vector.broadcast %cst_13 : f32 to vector<128x128xf32>
      %c0_14 = arith.constant 0 : index
      %c0_15 = arith.constant 0 : index
      %18 = vector.load %arg7[%c0_14, %c0_15] : memref<128x128xf32, #tpu.memory_space<vmem>>, vector<128x128xf32>
      tpu.vector_store %arg7[%c0_14, %c0_15], %17 {strides = array<i32>} : memref<128x128xf32, #tpu.memory_space<vmem>>, vector<128x128xf32>,
    } else {
    }
    %c0 = arith.constant 0 : index
    %c0_4 = arith.constant 0 : index
    %8 = vector.load %arg7[%c0, %c0_4] : memref<128x128xf32, #tpu.memory_space<vmem>>, vector<128x128xf32>
    %c0_5 = arith.constant 0 : index
    %c0_6 = arith.constant 0 : index
    %9 = vector.load %arg2[%c0_5, %c0_6] : memref<128x72xbf16, #tpu.memory_space<vmem>>, vector<128x72xbf16>
    %c0_7 = arith.constant 0 : index
    %c0_8 = arith.constant 0 : index
    %10 = vector.load %arg3[%c0_7, %c0_8] : memref<72x128xbf16, #tpu.memory_space<vmem>>, vector<72x128xbf16>
    %cst = arith.constant dense<0.000000e+00> : vector<128x128xf32>
    %11 = tpu.matmul %9, %10, %cst {dimension_numbers = #tpu.dot_dimension_numbers<[1], [0], [0], [1], [0, 0, 1, 1], [], []>} : vector<128x72xbf16>, vector<72x128xbf16>, vector<128x128xf32> -> vector<128x128xf32>
    %12 = arith.addf %8, %11 : vector<128x128xf32>
    %c0_9 = arith.constant 0 : index
    %c0_10 = arith.constant 0 : index
    %13 = vector.load %arg7[%c0_9, %c0_10] : memref<128x128xf32, #tpu.memory_space<vmem>>, vector<128x128xf32>
    tpu.vector_store %arg7[%c0_9, %c0_10], %12 {strides = array<i32>} : memref<128x128xf32, #tpu.memory_space<vmem>>, vector<128x128xf32>,
    %c0_i32_11 = arith.constant 0 : i32
    %14 = arith.cmpi eq, %arg1, %c0_i32_11 : i32
    %15 = arith.extui %14 : i1 to i32
    %c0_i32_12 = arith.constant 0 : i32
    %16 = arith.cmpi ne, %15, %c0_i32_12 : i32
    scf.if %16 {
      %c0_13 = arith.constant 0 : index
      %c0_14 = arith.constant 0 : index
      %17 = vector.load %arg7[%c0_13, %c0_14] : memref<128x128xf32, #tpu.memory_space<vmem>>, vector<128x128xf32>
      %18 = arith.truncf %17 : vector<128x128xf32> to vector<128x128xbf16>
      %c0_15 = arith.constant 0 : index
      %c0_16 = arith.constant 0 : index
      %19 = vector.load %arg4[%c0_15, %c0_16] : memref<128x128xbf16, #tpu.memory_space<vmem>>, vector<128x128xbf16>
      tpu.vector_store %arg4[%c0_15, %c0_16], %18 {strides = array<i32>} : memref<128x128xbf16, #tpu.memory_space<vmem>>, vector<128x128xbf16>,
      %c0_17 = arith.constant 0 : index
      %c0_18 = arith.constant 0 : index
      %20 = vector.load %arg5[%c0_17, %c0_18] : memref<1x128xf32, #tpu.memory_space<vmem>>, vector<1x128xf32>
      %cst_19 = arith.constant dense<0.000000e+00> : vector<128xf32>
      %21 = vector.multi_reduction <add>, %17, %cst_19 [0] : vector<128x128xf32> to vector<128xf32>
      %22 = vector.shape_cast %21 : vector<128xf32> to vector<1x128xf32>
      %23 = arith.addf %20, %22 : vector<1x128xf32>
      %c0_20 = arith.constant 0 : index
      %c0_21 = arith.constant 0 : index
      %24 = vector.load %arg5[%c0_20, %c0_21] : memref<1x128xf32, #tpu.memory_space<vmem>>, vector<1x128xf32>
      tpu.vector_store %arg5[%c0_20, %c0_21], %23 {strides = array<i32>} : memref<1x128xf32, #tpu.memory_space<vmem>>, vector<1x128xf32>,
      %c0_22 = arith.constant 0 : index
      %c0_23 = arith.constant 0 : index
      %25 = vector.load %arg6[%c0_22, %c0_23] : memref<1x128xf32, #tpu.memory_space<vmem>>, vector<1x128xf32>
      %26 = arith.mulf %17, %17 : vector<128x128xf32>
      %cst_24 = arith.constant dense<0.000000e+00> : vector<128xf32>
      %27 = vector.multi_reduction <add>, %26, %cst_24 [0] : vector<128x128xf32> to vector<128xf32>
      %28 = vector.shape_cast %27 : vector<128xf32> to vector<1x128xf32>
      %29 = arith.addf %25, %28 : vector<1x128xf32>
      %c0_25 = arith.constant 0 : index
      %c0_26 = arith.constant 0 : index
      %30 = vector.load %arg6[%c0_25, %c0_26] : memref<1x128xf32, #tpu.memory_space<vmem>>, vector<1x128xf32>
      tpu.vector_store %arg6[%c0_25, %c0_26], %29 {strides = array<i32>} : memref<1x128xf32, #tpu.memory_space<vmem>>, vector<1x128xf32>,
    } else {
    }
    return
  }
  func.func @transform_0(%arg0: i32, %arg1: i32) -> (i32, i32) {
    %c0_i32 = arith.constant 0 : i32
    return %arg0, %arg1 : i32, i32
  }
  func.func @transform_1(%arg0: i32, %arg1: i32) -> (i32, i32) {
    %c0_i32 = arith.constant 0 : i32
    %c0_i32_0 = arith.constant 0 : i32
    return %arg1, %c0_i32 : i32, i32
  }
  func.func @transform_2(%arg0: i32, %arg1: i32) -> (i32, i32) {
    %c0_i32 = arith.constant 0 : i32
    %c0_i32_0 = arith.constant 0 : i32
    return %arg0, %c0_i32 : i32, i32
  }
  func.func @transform_3(%arg0: i32, %arg1: i32) -> (i32, i32) {
    %c0_i32 = arith.constant 0 : i32
    %c0_i32_0 = arith.constant 0 : i32
    %c0_i32_1 = arith.constant 0 : i32
    return %c0_i32, %c0_i32_0 : i32, i32
  }
  func.func @transform_4(%arg0: i32, %arg1: i32) -> (i32, i32) {
    %c0_i32 = arith.constant 0 : i32
    %c0_i32_0 = arith.constant 0 : i32
    %c0_i32_1 = arith.constant 0 : i32
    return %c0_i32, %c0_i32_0 : i32, i32
  }
}

module attributes {stable_mosaic.version = 11 : i64} {
  func.func @_bn_relu_kernel(%arg0: i32, %arg1: memref<128x128xbf16, #tpu.memory_space<vmem>>, %arg2: memref<1x128xf32, #tpu.memory_space<vmem>>, %arg3: memref<1x128xf32, #tpu.memory_space<vmem>>, %arg4: memref<128x128xbf16, #tpu.memory_space<vmem>>) attributes {dimension_semantics = [#tpu.dimension_semantics<parallel>], iteration_bounds = array<i64: 1>, scalar_prefetch = 0 : i64, scratch_operands = 0 : i64, tpu.core_type = #tpu.core_type<tc>, window_params = [{transform_indices = @transform_0, window_bounds = array<i64: 128, 128>}, {pipeline_mode = #tpu.pipeline_mode<synchronous>, transform_indices = @transform_1, window_bounds = array<i64: 1, 128>}, {pipeline_mode = #tpu.pipeline_mode<synchronous>, transform_indices = @transform_2, window_bounds = array<i64: 1, 128>}, {transform_indices = @transform_3, window_bounds = array<i64: 128, 128>}]} {
    %c0 = arith.constant 0 : index
    %c0_0 = arith.constant 0 : index
    %0 = vector.load %arg1[%c0, %c0_0] : memref<128x128xbf16, #tpu.memory_space<vmem>>, vector<128x128xbf16>
    %1 = arith.extf %0 : vector<128x128xbf16> to vector<128x128xf32>
    %c0_1 = arith.constant 0 : index
    %c0_2 = arith.constant 0 : index
    %2 = vector.load %arg2[%c0_1, %c0_2] : memref<1x128xf32, #tpu.memory_space<vmem>>, vector<1x128xf32>
    %3 = vector.broadcast %2 : vector<1x128xf32> to vector<128x128xf32>
    %4 = arith.mulf %1, %3 : vector<128x128xf32>
    %c0_3 = arith.constant 0 : index
    %c0_4 = arith.constant 0 : index
    %5 = vector.load %arg3[%c0_3, %c0_4] : memref<1x128xf32, #tpu.memory_space<vmem>>, vector<1x128xf32>
    %6 = vector.broadcast %5 : vector<1x128xf32> to vector<128x128xf32>
    %7 = arith.addf %4, %6 : vector<128x128xf32>
    %cst = arith.constant 0.000000e+00 : f32
    %8 = vector.broadcast %cst : f32 to vector<128x128xf32>
    %9 = arith.maximumf %7, %8 : vector<128x128xf32>
    %10 = arith.truncf %9 : vector<128x128xf32> to vector<128x128xbf16>
    %c0_5 = arith.constant 0 : index
    %c0_6 = arith.constant 0 : index
    %11 = vector.load %arg4[%c0_5, %c0_6] : memref<128x128xbf16, #tpu.memory_space<vmem>>, vector<128x128xbf16>
    tpu.vector_store %arg4[%c0_5, %c0_6], %10 {strides = array<i32>} : memref<128x128xbf16, #tpu.memory_space<vmem>>, vector<128x128xbf16>,
    return
  }
  func.func @transform_0(%arg0: i32) -> (i32, i32) {
    %c0_i32 = arith.constant 0 : i32
    %c0_i32_0 = arith.constant 0 : i32
    return %arg0, %c0_i32 : i32, i32
  }
  func.func @transform_1(%arg0: i32) -> (i32, i32) {
    %c0_i32 = arith.constant 0 : i32
    %c0_i32_0 = arith.constant 0 : i32
    %c0_i32_1 = arith.constant 0 : i32
    return %c0_i32, %c0_i32_0 : i32, i32
  }
  func.func @transform_2(%arg0: i32) -> (i32, i32) {
    %c0_i32 = arith.constant 0 : i32
    %c0_i32_0 = arith.constant 0 : i32
    %c0_i32_1 = arith.constant 0 : i32
    return %c0_i32, %c0_i32_0 : i32, i32
  }
  func.func @transform_3(%arg0: i32) -> (i32, i32) {
    %c0_i32 = arith.constant 0 : i32
    %c0_i32_0 = arith.constant 0 : i32
    return %arg0, %c0_i32 : i32, i32
  }
}

module attributes {stable_mosaic.version = 11 : i64} {
  func.func @_bn_relu_kernel(%arg0: i32, %arg1: memref<32x128xbf16, #tpu.memory_space<vmem>>, %arg2: memref<1x128xf32, #tpu.memory_space<vmem>>, %arg3: memref<1x128xf32, #tpu.memory_space<vmem>>, %arg4: memref<32x128xbf16, #tpu.memory_space<vmem>>) attributes {dimension_semantics = [#tpu.dimension_semantics<parallel>], iteration_bounds = array<i64: 1>, scalar_prefetch = 0 : i64, scratch_operands = 0 : i64, tpu.core_type = #tpu.core_type<tc>, window_params = [{transform_indices = @transform_0, window_bounds = array<i64: 32, 128>}, {pipeline_mode = #tpu.pipeline_mode<synchronous>, transform_indices = @transform_1, window_bounds = array<i64: 1, 128>}, {pipeline_mode = #tpu.pipeline_mode<synchronous>, transform_indices = @transform_2, window_bounds = array<i64: 1, 128>}, {transform_indices = @transform_3, window_bounds = array<i64: 32, 128>}]} {
    %c0 = arith.constant 0 : index
    %c0_0 = arith.constant 0 : index
    %0 = vector.load %arg1[%c0, %c0_0] : memref<32x128xbf16, #tpu.memory_space<vmem>>, vector<32x128xbf16>
    %1 = arith.extf %0 : vector<32x128xbf16> to vector<32x128xf32>
    %c0_1 = arith.constant 0 : index
    %c0_2 = arith.constant 0 : index
    %2 = vector.load %arg2[%c0_1, %c0_2] : memref<1x128xf32, #tpu.memory_space<vmem>>, vector<1x128xf32>
    %3 = vector.broadcast %2 : vector<1x128xf32> to vector<32x128xf32>
    %4 = arith.mulf %1, %3 : vector<32x128xf32>
    %c0_3 = arith.constant 0 : index
    %c0_4 = arith.constant 0 : index
    %5 = vector.load %arg3[%c0_3, %c0_4] : memref<1x128xf32, #tpu.memory_space<vmem>>, vector<1x128xf32>
    %6 = vector.broadcast %5 : vector<1x128xf32> to vector<32x128xf32>
    %7 = arith.addf %4, %6 : vector<32x128xf32>
    %cst = arith.constant 0.000000e+00 : f32
    %8 = vector.broadcast %cst : f32 to vector<32x128xf32>
    %9 = arith.maximumf %7, %8 : vector<32x128xf32>
    %10 = arith.truncf %9 : vector<32x128xf32> to vector<32x128xbf16>
    %c0_5 = arith.constant 0 : index
    %c0_6 = arith.constant 0 : index
    %11 = vector.load %arg4[%c0_5, %c0_6] : memref<32x128xbf16, #tpu.memory_space<vmem>>, vector<32x128xbf16>
    tpu.vector_store %arg4[%c0_5, %c0_6], %10 {strides = array<i32>} : memref<32x128xbf16, #tpu.memory_space<vmem>>, vector<32x128xbf16>,
    return
  }
  func.func @transform_0(%arg0: i32) -> (i32, i32) {
    %c0_i32 = arith.constant 0 : i32
    %c0_i32_0 = arith.constant 0 : i32
    return %arg0, %c0_i32 : i32, i32
  }
  func.func @transform_1(%arg0: i32) -> (i32, i32) {
    %c0_i32 = arith.constant 0 : i32
    %c0_i32_0 = arith.constant 0 : i32
    %c0_i32_1 = arith.constant 0 : i32
    return %c0_i32, %c0_i32_0 : i32, i32
  }
  func.func @transform_2(%arg0: i32) -> (i32, i32) {
    %c0_i32 = arith.constant 0 : i32
    %c0_i32_0 = arith.constant 0 : i32
    %c0_i32_1 = arith.constant 0 : i32
    return %c0_i32, %c0_i32_0 : i32, i32
  }
  func.func @transform_3(%arg0: i32) -> (i32, i32) {
    %c0_i32 = arith.constant 0 : i32
    %c0_i32_0 = arith.constant 0 : i32
    return %arg0, %c0_i32 : i32, i32
  }
}

module attributes {stable_mosaic.version = 11 : i64} {
  func.func @_conv_mm_kernel(%arg0: i32, %arg1: i32, %arg2: memref<32x144xbf16, #tpu.memory_space<vmem>>, %arg3: memref<144x128xbf16, #tpu.memory_space<vmem>>, %arg4: memref<32x128xbf16, #tpu.memory_space<vmem>>, %arg5: memref<1x128xf32, #tpu.memory_space<vmem>>, %arg6: memref<1x128xf32, #tpu.memory_space<vmem>>, %arg7: memref<32x128xf32, #tpu.memory_space<vmem>>) attributes {dimension_semantics = [#tpu.dimension_semantics<arbitrary>, #tpu.dimension_semantics<arbitrary>], iteration_bounds = array<i64: 1, 1>, scalar_prefetch = 0 : i64, scratch_operands = 1 : i64, tpu.core_type = #tpu.core_type<tc>, window_params = [{transform_indices = @transform_0, window_bounds = array<i64: 32, 144>}, {transform_indices = @transform_1, window_bounds = array<i64: 144, 128>}, {transform_indices = @transform_2, window_bounds = array<i64: 32, 128>}, {pipeline_mode = #tpu.pipeline_mode<synchronous>, transform_indices = @transform_3, window_bounds = array<i64: 1, 128>}, {pipeline_mode = #tpu.pipeline_mode<synchronous>, transform_indices = @transform_4, window_bounds = array<i64: 1, 128>}]} {
    %c0_i32 = arith.constant 0 : i32
    %0 = arith.cmpi eq, %arg0, %c0_i32 : i32
    %c0_i32_0 = arith.constant 0 : i32
    %1 = arith.cmpi eq, %arg1, %c0_i32_0 : i32
    %2 = arith.andi %0, %1 : i1
    %3 = arith.extui %2 : i1 to i32
    %c0_i32_1 = arith.constant 0 : i32
    %4 = arith.cmpi ne, %3, %c0_i32_1 : i32
    scf.if %4 {
      %cst_13 = arith.constant 0.000000e+00 : f32
      %17 = vector.broadcast %cst_13 : f32 to vector<1x128xf32>
      %c0_14 = arith.constant 0 : index
      %c0_15 = arith.constant 0 : index
      %18 = vector.load %arg5[%c0_14, %c0_15] : memref<1x128xf32, #tpu.memory_space<vmem>>, vector<1x128xf32>
      tpu.vector_store %arg5[%c0_14, %c0_15], %17 {strides = array<i32>} : memref<1x128xf32, #tpu.memory_space<vmem>>, vector<1x128xf32>,
      %cst_16 = arith.constant 0.000000e+00 : f32
      %19 = vector.broadcast %cst_16 : f32 to vector<1x128xf32>
      %c0_17 = arith.constant 0 : index
      %c0_18 = arith.constant 0 : index
      %20 = vector.load %arg6[%c0_17, %c0_18] : memref<1x128xf32, #tpu.memory_space<vmem>>, vector<1x128xf32>
      tpu.vector_store %arg6[%c0_17, %c0_18], %19 {strides = array<i32>} : memref<1x128xf32, #tpu.memory_space<vmem>>, vector<1x128xf32>,
    } else {
    }
    %c0_i32_2 = arith.constant 0 : i32
    %5 = arith.cmpi eq, %arg1, %c0_i32_2 : i32
    %6 = arith.extui %5 : i1 to i32
    %c0_i32_3 = arith.constant 0 : i32
    %7 = arith.cmpi ne, %6, %c0_i32_3 : i32
    scf.if %7 {
      %cst_13 = arith.constant 0.000000e+00 : f32
      %17 = vector.broadcast %cst_13 : f32 to vector<32x128xf32>
      %c0_14 = arith.constant 0 : index
      %c0_15 = arith.constant 0 : index
      %18 = vector.load %arg7[%c0_14, %c0_15] : memref<32x128xf32, #tpu.memory_space<vmem>>, vector<32x128xf32>
      tpu.vector_store %arg7[%c0_14, %c0_15], %17 {strides = array<i32>} : memref<32x128xf32, #tpu.memory_space<vmem>>, vector<32x128xf32>,
    } else {
    }
    %c0 = arith.constant 0 : index
    %c0_4 = arith.constant 0 : index
    %8 = vector.load %arg7[%c0, %c0_4] : memref<32x128xf32, #tpu.memory_space<vmem>>, vector<32x128xf32>
    %c0_5 = arith.constant 0 : index
    %c0_6 = arith.constant 0 : index
    %9 = vector.load %arg2[%c0_5, %c0_6] : memref<32x144xbf16, #tpu.memory_space<vmem>>, vector<32x144xbf16>
    %c0_7 = arith.constant 0 : index
    %c0_8 = arith.constant 0 : index
    %10 = vector.load %arg3[%c0_7, %c0_8] : memref<144x128xbf16, #tpu.memory_space<vmem>>, vector<144x128xbf16>
    %cst = arith.constant dense<0.000000e+00> : vector<32x128xf32>
    %11 = tpu.matmul %9, %10, %cst {dimension_numbers = #tpu.dot_dimension_numbers<[1], [0], [0], [1], [0, 0, 1, 1], [], []>} : vector<32x144xbf16>, vector<144x128xbf16>, vector<32x128xf32> -> vector<32x128xf32>
    %12 = arith.addf %8, %11 : vector<32x128xf32>
    %c0_9 = arith.constant 0 : index
    %c0_10 = arith.constant 0 : index
    %13 = vector.load %arg7[%c0_9, %c0_10] : memref<32x128xf32, #tpu.memory_space<vmem>>, vector<32x128xf32>
    tpu.vector_store %arg7[%c0_9, %c0_10], %12 {strides = array<i32>} : memref<32x128xf32, #tpu.memory_space<vmem>>, vector<32x128xf32>,
    %c0_i32_11 = arith.constant 0 : i32
    %14 = arith.cmpi eq, %arg1, %c0_i32_11 : i32
    %15 = arith.extui %14 : i1 to i32
    %c0_i32_12 = arith.constant 0 : i32
    %16 = arith.cmpi ne, %15, %c0_i32_12 : i32
    scf.if %16 {
      %c0_13 = arith.constant 0 : index
      %c0_14 = arith.constant 0 : index
      %17 = vector.load %arg7[%c0_13, %c0_14] : memref<32x128xf32, #tpu.memory_space<vmem>>, vector<32x128xf32>
      %18 = arith.truncf %17 : vector<32x128xf32> to vector<32x128xbf16>
      %c0_15 = arith.constant 0 : index
      %c0_16 = arith.constant 0 : index
      %19 = vector.load %arg4[%c0_15, %c0_16] : memref<32x128xbf16, #tpu.memory_space<vmem>>, vector<32x128xbf16>
      tpu.vector_store %arg4[%c0_15, %c0_16], %18 {strides = array<i32>} : memref<32x128xbf16, #tpu.memory_space<vmem>>, vector<32x128xbf16>,
      %c0_17 = arith.constant 0 : index
      %c0_18 = arith.constant 0 : index
      %20 = vector.load %arg5[%c0_17, %c0_18] : memref<1x128xf32, #tpu.memory_space<vmem>>, vector<1x128xf32>
      %cst_19 = arith.constant dense<0.000000e+00> : vector<128xf32>
      %21 = vector.multi_reduction <add>, %17, %cst_19 [0] : vector<32x128xf32> to vector<128xf32>
      %22 = vector.shape_cast %21 : vector<128xf32> to vector<1x128xf32>
      %23 = arith.addf %20, %22 : vector<1x128xf32>
      %c0_20 = arith.constant 0 : index
      %c0_21 = arith.constant 0 : index
      %24 = vector.load %arg5[%c0_20, %c0_21] : memref<1x128xf32, #tpu.memory_space<vmem>>, vector<1x128xf32>
      tpu.vector_store %arg5[%c0_20, %c0_21], %23 {strides = array<i32>} : memref<1x128xf32, #tpu.memory_space<vmem>>, vector<1x128xf32>,
      %c0_22 = arith.constant 0 : index
      %c0_23 = arith.constant 0 : index
      %25 = vector.load %arg6[%c0_22, %c0_23] : memref<1x128xf32, #tpu.memory_space<vmem>>, vector<1x128xf32>
      %26 = arith.mulf %17, %17 : vector<32x128xf32>
      %cst_24 = arith.constant dense<0.000000e+00> : vector<128xf32>
      %27 = vector.multi_reduction <add>, %26, %cst_24 [0] : vector<32x128xf32> to vector<128xf32>
      %28 = vector.shape_cast %27 : vector<128xf32> to vector<1x128xf32>
      %29 = arith.addf %25, %28 : vector<1x128xf32>
      %c0_25 = arith.constant 0 : index
      %c0_26 = arith.constant 0 : index
      %30 = vector.load %arg6[%c0_25, %c0_26] : memref<1x128xf32, #tpu.memory_space<vmem>>, vector<1x128xf32>
      tpu.vector_store %arg6[%c0_25, %c0_26], %29 {strides = array<i32>} : memref<1x128xf32, #tpu.memory_space<vmem>>, vector<1x128xf32>,
    } else {
    }
    return
  }
  func.func @transform_0(%arg0: i32, %arg1: i32) -> (i32, i32) {
    %c0_i32 = arith.constant 0 : i32
    return %arg0, %arg1 : i32, i32
  }
  func.func @transform_1(%arg0: i32, %arg1: i32) -> (i32, i32) {
    %c0_i32 = arith.constant 0 : i32
    %c0_i32_0 = arith.constant 0 : i32
    return %arg1, %c0_i32 : i32, i32
  }
  func.func @transform_2(%arg0: i32, %arg1: i32) -> (i32, i32) {
    %c0_i32 = arith.constant 0 : i32
    %c0_i32_0 = arith.constant 0 : i32
    return %arg0, %c0_i32 : i32, i32
  }
  func.func @transform_3(%arg0: i32, %arg1: i32) -> (i32, i32) {
    %c0_i32 = arith.constant 0 : i32
    %c0_i32_0 = arith.constant 0 : i32
    %c0_i32_1 = arith.constant 0 : i32
    return %c0_i32, %c0_i32_0 : i32, i32
  }
  func.func @transform_4(%arg0: i32, %arg1: i32) -> (i32, i32) {
    %c0_i32 = arith.constant 0 : i32
    %c0_i32_0 = arith.constant 0 : i32
    %c0_i32_1 = arith.constant 0 : i32
    return %c0_i32, %c0_i32_0 : i32, i32
  }
}

module attributes {stable_mosaic.version = 11 : i64} {
  func.func @_conv_mm_kernel(%arg0: i32, %arg1: i32, %arg2: memref<32x128xbf16, #tpu.memory_space<vmem>>, %arg3: memref<128x128xbf16, #tpu.memory_space<vmem>>, %arg4: memref<32x128xbf16, #tpu.memory_space<vmem>>, %arg5: memref<1x128xf32, #tpu.memory_space<vmem>>, %arg6: memref<1x128xf32, #tpu.memory_space<vmem>>, %arg7: memref<32x128xf32, #tpu.memory_space<vmem>>) attributes {dimension_semantics = [#tpu.dimension_semantics<arbitrary>, #tpu.dimension_semantics<arbitrary>], iteration_bounds = array<i64: 1, 1>, scalar_prefetch = 0 : i64, scratch_operands = 1 : i64, tpu.core_type = #tpu.core_type<tc>, window_params = [{transform_indices = @transform_0, window_bounds = array<i64: 32, 128>}, {transform_indices = @transform_1, window_bounds = array<i64: 128, 128>}, {transform_indices = @transform_2, window_bounds = array<i64: 32, 128>}, {pipeline_mode = #tpu.pipeline_mode<synchronous>, transform_indices = @transform_3, window_bounds = array<i64: 1, 128>}, {pipeline_mode = #tpu.pipeline_mode<synchronous>, transform_indices = @transform_4, window_bounds = array<i64: 1, 128>}]} {
    %c0_i32 = arith.constant 0 : i32
    %0 = arith.cmpi eq, %arg0, %c0_i32 : i32
    %c0_i32_0 = arith.constant 0 : i32
    %1 = arith.cmpi eq, %arg1, %c0_i32_0 : i32
    %2 = arith.andi %0, %1 : i1
    %3 = arith.extui %2 : i1 to i32
    %c0_i32_1 = arith.constant 0 : i32
    %4 = arith.cmpi ne, %3, %c0_i32_1 : i32
    scf.if %4 {
      %cst_13 = arith.constant 0.000000e+00 : f32
      %17 = vector.broadcast %cst_13 : f32 to vector<1x128xf32>
      %c0_14 = arith.constant 0 : index
      %c0_15 = arith.constant 0 : index
      %18 = vector.load %arg5[%c0_14, %c0_15] : memref<1x128xf32, #tpu.memory_space<vmem>>, vector<1x128xf32>
      tpu.vector_store %arg5[%c0_14, %c0_15], %17 {strides = array<i32>} : memref<1x128xf32, #tpu.memory_space<vmem>>, vector<1x128xf32>,
      %cst_16 = arith.constant 0.000000e+00 : f32
      %19 = vector.broadcast %cst_16 : f32 to vector<1x128xf32>
      %c0_17 = arith.constant 0 : index
      %c0_18 = arith.constant 0 : index
      %20 = vector.load %arg6[%c0_17, %c0_18] : memref<1x128xf32, #tpu.memory_space<vmem>>, vector<1x128xf32>
      tpu.vector_store %arg6[%c0_17, %c0_18], %19 {strides = array<i32>} : memref<1x128xf32, #tpu.memory_space<vmem>>, vector<1x128xf32>,
    } else {
    }
    %c0_i32_2 = arith.constant 0 : i32
    %5 = arith.cmpi eq, %arg1, %c0_i32_2 : i32
    %6 = arith.extui %5 : i1 to i32
    %c0_i32_3 = arith.constant 0 : i32
    %7 = arith.cmpi ne, %6, %c0_i32_3 : i32
    scf.if %7 {
      %cst_13 = arith.constant 0.000000e+00 : f32
      %17 = vector.broadcast %cst_13 : f32 to vector<32x128xf32>
      %c0_14 = arith.constant 0 : index
      %c0_15 = arith.constant 0 : index
      %18 = vector.load %arg7[%c0_14, %c0_15] : memref<32x128xf32, #tpu.memory_space<vmem>>, vector<32x128xf32>
      tpu.vector_store %arg7[%c0_14, %c0_15], %17 {strides = array<i32>} : memref<32x128xf32, #tpu.memory_space<vmem>>, vector<32x128xf32>,
    } else {
    }
    %c0 = arith.constant 0 : index
    %c0_4 = arith.constant 0 : index
    %8 = vector.load %arg7[%c0, %c0_4] : memref<32x128xf32, #tpu.memory_space<vmem>>, vector<32x128xf32>
    %c0_5 = arith.constant 0 : index
    %c0_6 = arith.constant 0 : index
    %9 = vector.load %arg2[%c0_5, %c0_6] : memref<32x128xbf16, #tpu.memory_space<vmem>>, vector<32x128xbf16>
    %c0_7 = arith.constant 0 : index
    %c0_8 = arith.constant 0 : index
    %10 = vector.load %arg3[%c0_7, %c0_8] : memref<128x128xbf16, #tpu.memory_space<vmem>>, vector<128x128xbf16>
    %cst = arith.constant dense<0.000000e+00> : vector<32x128xf32>
    %11 = tpu.matmul %9, %10, %cst {dimension_numbers = #tpu.dot_dimension_numbers<[1], [0], [0], [1], [0, 0, 1, 1], [], []>} : vector<32x128xbf16>, vector<128x128xbf16>, vector<32x128xf32> -> vector<32x128xf32>
    %12 = arith.addf %8, %11 : vector<32x128xf32>
    %c0_9 = arith.constant 0 : index
    %c0_10 = arith.constant 0 : index
    %13 = vector.load %arg7[%c0_9, %c0_10] : memref<32x128xf32, #tpu.memory_space<vmem>>, vector<32x128xf32>
    tpu.vector_store %arg7[%c0_9, %c0_10], %12 {strides = array<i32>} : memref<32x128xf32, #tpu.memory_space<vmem>>, vector<32x128xf32>,
    %c0_i32_11 = arith.constant 0 : i32
    %14 = arith.cmpi eq, %arg1, %c0_i32_11 : i32
    %15 = arith.extui %14 : i1 to i32
    %c0_i32_12 = arith.constant 0 : i32
    %16 = arith.cmpi ne, %15, %c0_i32_12 : i32
    scf.if %16 {
      %c0_13 = arith.constant 0 : index
      %c0_14 = arith.constant 0 : index
      %17 = vector.load %arg7[%c0_13, %c0_14] : memref<32x128xf32, #tpu.memory_space<vmem>>, vector<32x128xf32>
      %18 = arith.truncf %17 : vector<32x128xf32> to vector<32x128xbf16>
      %c0_15 = arith.constant 0 : index
      %c0_16 = arith.constant 0 : index
      %19 = vector.load %arg4[%c0_15, %c0_16] : memref<32x128xbf16, #tpu.memory_space<vmem>>, vector<32x128xbf16>
      tpu.vector_store %arg4[%c0_15, %c0_16], %18 {strides = array<i32>} : memref<32x128xbf16, #tpu.memory_space<vmem>>, vector<32x128xbf16>,
      %c0_17 = arith.constant 0 : index
      %c0_18 = arith.constant 0 : index
      %20 = vector.load %arg5[%c0_17, %c0_18] : memref<1x128xf32, #tpu.memory_space<vmem>>, vector<1x128xf32>
      %cst_19 = arith.constant dense<0.000000e+00> : vector<128xf32>
      %21 = vector.multi_reduction <add>, %17, %cst_19 [0] : vector<32x128xf32> to vector<128xf32>
      %22 = vector.shape_cast %21 : vector<128xf32> to vector<1x128xf32>
      %23 = arith.addf %20, %22 : vector<1x128xf32>
      %c0_20 = arith.constant 0 : index
      %c0_21 = arith.constant 0 : index
      %24 = vector.load %arg5[%c0_20, %c0_21] : memref<1x128xf32, #tpu.memory_space<vmem>>, vector<1x128xf32>
      tpu.vector_store %arg5[%c0_20, %c0_21], %23 {strides = array<i32>} : memref<1x128xf32, #tpu.memory_space<vmem>>, vector<1x128xf32>,
      %c0_22 = arith.constant 0 : index
      %c0_23 = arith.constant 0 : index
      %25 = vector.load %arg6[%c0_22, %c0_23] : memref<1x128xf32, #tpu.memory_space<vmem>>, vector<1x128xf32>
      %26 = arith.mulf %17, %17 : vector<32x128xf32>
      %cst_24 = arith.constant dense<0.000000e+00> : vector<128xf32>
      %27 = vector.multi_reduction <add>, %26, %cst_24 [0] : vector<32x128xf32> to vector<128xf32>
      %28 = vector.shape_cast %27 : vector<128xf32> to vector<1x128xf32>
      %29 = arith.addf %25, %28 : vector<1x128xf32>
      %c0_25 = arith.constant 0 : index
      %c0_26 = arith.constant 0 : index
      %30 = vector.load %arg6[%c0_25, %c0_26] : memref<1x128xf32, #tpu.memory_space<vmem>>, vector<1x128xf32>
      tpu.vector_store %arg6[%c0_25, %c0_26], %29 {strides = array<i32>} : memref<1x128xf32, #tpu.memory_space<vmem>>, vector<1x128xf32>,
    } else {
    }
    return
  }
  func.func @transform_0(%arg0: i32, %arg1: i32) -> (i32, i32) {
    %c0_i32 = arith.constant 0 : i32
    return %arg0, %arg1 : i32, i32
  }
  func.func @transform_1(%arg0: i32, %arg1: i32) -> (i32, i32) {
    %c0_i32 = arith.constant 0 : i32
    %c0_i32_0 = arith.constant 0 : i32
    return %arg1, %c0_i32 : i32, i32
  }
  func.func @transform_2(%arg0: i32, %arg1: i32) -> (i32, i32) {
    %c0_i32 = arith.constant 0 : i32
    %c0_i32_0 = arith.constant 0 : i32
    return %arg0, %c0_i32 : i32, i32
  }
  func.func @transform_3(%arg0: i32, %arg1: i32) -> (i32, i32) {
    %c0_i32 = arith.constant 0 : i32
    %c0_i32_0 = arith.constant 0 : i32
    %c0_i32_1 = arith.constant 0 : i32
    return %c0_i32, %c0_i32_0 : i32, i32
  }
  func.func @transform_4(%arg0: i32, %arg1: i32) -> (i32, i32) {
    %c0_i32 = arith.constant 0 : i32
    %c0_i32_0 = arith.constant 0 : i32
    %c0_i32_1 = arith.constant 0 : i32
    return %c0_i32, %c0_i32_0 : i32, i32
  }
}

module attributes {stable_mosaic.version = 11 : i64} {
  func.func @_conv_mm_kernel(%arg0: i32, %arg1: i32, %arg2: memref<128x64xbf16, #tpu.memory_space<vmem>>, %arg3: memref<64x128xbf16, #tpu.memory_space<vmem>>, %arg4: memref<128x128xbf16, #tpu.memory_space<vmem>>, %arg5: memref<1x128xf32, #tpu.memory_space<vmem>>, %arg6: memref<1x128xf32, #tpu.memory_space<vmem>>, %arg7: memref<128x128xf32, #tpu.memory_space<vmem>>) attributes {dimension_semantics = [#tpu.dimension_semantics<arbitrary>, #tpu.dimension_semantics<arbitrary>], iteration_bounds = array<i64: 1, 1>, scalar_prefetch = 0 : i64, scratch_operands = 1 : i64, tpu.core_type = #tpu.core_type<tc>, window_params = [{transform_indices = @transform_0, window_bounds = array<i64: 128, 64>}, {transform_indices = @transform_1, window_bounds = array<i64: 64, 128>}, {transform_indices = @transform_2, window_bounds = array<i64: 128, 128>}, {pipeline_mode = #tpu.pipeline_mode<synchronous>, transform_indices = @transform_3, window_bounds = array<i64: 1, 128>}, {pipeline_mode = #tpu.pipeline_mode<synchronous>, transform_indices = @transform_4, window_bounds = array<i64: 1, 128>}]} {
    %c0_i32 = arith.constant 0 : i32
    %0 = arith.cmpi eq, %arg0, %c0_i32 : i32
    %c0_i32_0 = arith.constant 0 : i32
    %1 = arith.cmpi eq, %arg1, %c0_i32_0 : i32
    %2 = arith.andi %0, %1 : i1
    %3 = arith.extui %2 : i1 to i32
    %c0_i32_1 = arith.constant 0 : i32
    %4 = arith.cmpi ne, %3, %c0_i32_1 : i32
    scf.if %4 {
      %cst_13 = arith.constant 0.000000e+00 : f32
      %17 = vector.broadcast %cst_13 : f32 to vector<1x128xf32>
      %c0_14 = arith.constant 0 : index
      %c0_15 = arith.constant 0 : index
      %18 = vector.load %arg5[%c0_14, %c0_15] : memref<1x128xf32, #tpu.memory_space<vmem>>, vector<1x128xf32>
      tpu.vector_store %arg5[%c0_14, %c0_15], %17 {strides = array<i32>} : memref<1x128xf32, #tpu.memory_space<vmem>>, vector<1x128xf32>,
      %cst_16 = arith.constant 0.000000e+00 : f32
      %19 = vector.broadcast %cst_16 : f32 to vector<1x128xf32>
      %c0_17 = arith.constant 0 : index
      %c0_18 = arith.constant 0 : index
      %20 = vector.load %arg6[%c0_17, %c0_18] : memref<1x128xf32, #tpu.memory_space<vmem>>, vector<1x128xf32>
      tpu.vector_store %arg6[%c0_17, %c0_18], %19 {strides = array<i32>} : memref<1x128xf32, #tpu.memory_space<vmem>>, vector<1x128xf32>,
    } else {
    }
    %c0_i32_2 = arith.constant 0 : i32
    %5 = arith.cmpi eq, %arg1, %c0_i32_2 : i32
    %6 = arith.extui %5 : i1 to i32
    %c0_i32_3 = arith.constant 0 : i32
    %7 = arith.cmpi ne, %6, %c0_i32_3 : i32
    scf.if %7 {
      %cst_13 = arith.constant 0.000000e+00 : f32
      %17 = vector.broadcast %cst_13 : f32 to vector<128x128xf32>
      %c0_14 = arith.constant 0 : index
      %c0_15 = arith.constant 0 : index
      %18 = vector.load %arg7[%c0_14, %c0_15] : memref<128x128xf32, #tpu.memory_space<vmem>>, vector<128x128xf32>
      tpu.vector_store %arg7[%c0_14, %c0_15], %17 {strides = array<i32>} : memref<128x128xf32, #tpu.memory_space<vmem>>, vector<128x128xf32>,
    } else {
    }
    %c0 = arith.constant 0 : index
    %c0_4 = arith.constant 0 : index
    %8 = vector.load %arg7[%c0, %c0_4] : memref<128x128xf32, #tpu.memory_space<vmem>>, vector<128x128xf32>
    %c0_5 = arith.constant 0 : index
    %c0_6 = arith.constant 0 : index
    %9 = vector.load %arg2[%c0_5, %c0_6] : memref<128x64xbf16, #tpu.memory_space<vmem>>, vector<128x64xbf16>
    %c0_7 = arith.constant 0 : index
    %c0_8 = arith.constant 0 : index
    %10 = vector.load %arg3[%c0_7, %c0_8] : memref<64x128xbf16, #tpu.memory_space<vmem>>, vector<64x128xbf16>
    %cst = arith.constant dense<0.000000e+00> : vector<128x128xf32>
    %11 = tpu.matmul %9, %10, %cst {dimension_numbers = #tpu.dot_dimension_numbers<[1], [0], [0], [1], [0, 0, 1, 1], [], []>} : vector<128x64xbf16>, vector<64x128xbf16>, vector<128x128xf32> -> vector<128x128xf32>
    %12 = arith.addf %8, %11 : vector<128x128xf32>
    %c0_9 = arith.constant 0 : index
    %c0_10 = arith.constant 0 : index
    %13 = vector.load %arg7[%c0_9, %c0_10] : memref<128x128xf32, #tpu.memory_space<vmem>>, vector<128x128xf32>
    tpu.vector_store %arg7[%c0_9, %c0_10], %12 {strides = array<i32>} : memref<128x128xf32, #tpu.memory_space<vmem>>, vector<128x128xf32>,
    %c0_i32_11 = arith.constant 0 : i32
    %14 = arith.cmpi eq, %arg1, %c0_i32_11 : i32
    %15 = arith.extui %14 : i1 to i32
    %c0_i32_12 = arith.constant 0 : i32
    %16 = arith.cmpi ne, %15, %c0_i32_12 : i32
    scf.if %16 {
      %c0_13 = arith.constant 0 : index
      %c0_14 = arith.constant 0 : index
      %17 = vector.load %arg7[%c0_13, %c0_14] : memref<128x128xf32, #tpu.memory_space<vmem>>, vector<128x128xf32>
      %18 = arith.truncf %17 : vector<128x128xf32> to vector<128x128xbf16>
      %c0_15 = arith.constant 0 : index
      %c0_16 = arith.constant 0 : index
      %19 = vector.load %arg4[%c0_15, %c0_16] : memref<128x128xbf16, #tpu.memory_space<vmem>>, vector<128x128xbf16>
      tpu.vector_store %arg4[%c0_15, %c0_16], %18 {strides = array<i32>} : memref<128x128xbf16, #tpu.memory_space<vmem>>, vector<128x128xbf16>,
      %c0_17 = arith.constant 0 : index
      %c0_18 = arith.constant 0 : index
      %20 = vector.load %arg5[%c0_17, %c0_18] : memref<1x128xf32, #tpu.memory_space<vmem>>, vector<1x128xf32>
      %cst_19 = arith.constant dense<0.000000e+00> : vector<128xf32>
      %21 = vector.multi_reduction <add>, %17, %cst_19 [0] : vector<128x128xf32> to vector<128xf32>
      %22 = vector.shape_cast %21 : vector<128xf32> to vector<1x128xf32>
      %23 = arith.addf %20, %22 : vector<1x128xf32>
      %c0_20 = arith.constant 0 : index
      %c0_21 = arith.constant 0 : index
      %24 = vector.load %arg5[%c0_20, %c0_21] : memref<1x128xf32, #tpu.memory_space<vmem>>, vector<1x128xf32>
      tpu.vector_store %arg5[%c0_20, %c0_21], %23 {strides = array<i32>} : memref<1x128xf32, #tpu.memory_space<vmem>>, vector<1x128xf32>,
      %c0_22 = arith.constant 0 : index
      %c0_23 = arith.constant 0 : index
      %25 = vector.load %arg6[%c0_22, %c0_23] : memref<1x128xf32, #tpu.memory_space<vmem>>, vector<1x128xf32>
      %26 = arith.mulf %17, %17 : vector<128x128xf32>
      %cst_24 = arith.constant dense<0.000000e+00> : vector<128xf32>
      %27 = vector.multi_reduction <add>, %26, %cst_24 [0] : vector<128x128xf32> to vector<128xf32>
      %28 = vector.shape_cast %27 : vector<128xf32> to vector<1x128xf32>
      %29 = arith.addf %25, %28 : vector<1x128xf32>
      %c0_25 = arith.constant 0 : index
      %c0_26 = arith.constant 0 : index
      %30 = vector.load %arg6[%c0_25, %c0_26] : memref<1x128xf32, #tpu.memory_space<vmem>>, vector<1x128xf32>
      tpu.vector_store %arg6[%c0_25, %c0_26], %29 {strides = array<i32>} : memref<1x128xf32, #tpu.memory_space<vmem>>, vector<1x128xf32>,
    } else {
    }
    return
  }
  func.func @transform_0(%arg0: i32, %arg1: i32) -> (i32, i32) {
    %c0_i32 = arith.constant 0 : i32
    return %arg0, %arg1 : i32, i32
  }
  func.func @transform_1(%arg0: i32, %arg1: i32) -> (i32, i32) {
    %c0_i32 = arith.constant 0 : i32
    %c0_i32_0 = arith.constant 0 : i32
    return %arg1, %c0_i32 : i32, i32
  }
  func.func @transform_2(%arg0: i32, %arg1: i32) -> (i32, i32) {
    %c0_i32 = arith.constant 0 : i32
    %c0_i32_0 = arith.constant 0 : i32
    return %arg0, %c0_i32 : i32, i32
  }
  func.func @transform_3(%arg0: i32, %arg1: i32) -> (i32, i32) {
    %c0_i32 = arith.constant 0 : i32
    %c0_i32_0 = arith.constant 0 : i32
    %c0_i32_1 = arith.constant 0 : i32
    return %c0_i32, %c0_i32_0 : i32, i32
  }
  func.func @transform_4(%arg0: i32, %arg1: i32) -> (i32, i32) {
    %c0_i32 = arith.constant 0 : i32
    %c0_i32_0 = arith.constant 0 : i32
    %c0_i32_1 = arith.constant 0 : i32
    return %c0_i32, %c0_i32_0 : i32, i32
  }
}

module attributes {stable_mosaic.version = 11 : i64} {
  func.func @_conv_mm_kernel(%arg0: i32, %arg1: i32, %arg2: memref<512x392xbf16, #tpu.memory_space<vmem>>, %arg3: memref<392x128xbf16, #tpu.memory_space<vmem>>, %arg4: memref<1x128xf32, #tpu.memory_space<vmem>>, %arg5: memref<512x128xf32, #tpu.memory_space<vmem>>, %arg6: memref<1x128xf32, #tpu.memory_space<vmem>>, %arg7: memref<1x128xf32, #tpu.memory_space<vmem>>, %arg8: memref<512x128xf32, #tpu.memory_space<vmem>>) attributes {dimension_semantics = [#tpu.dimension_semantics<arbitrary>, #tpu.dimension_semantics<arbitrary>], iteration_bounds = array<i64: 1, 1>, scalar_prefetch = 0 : i64, scratch_operands = 1 : i64, tpu.core_type = #tpu.core_type<tc>, window_params = [{transform_indices = @transform_0, window_bounds = array<i64: 512, 392>}, {transform_indices = @transform_1, window_bounds = array<i64: 392, 128>}, {pipeline_mode = #tpu.pipeline_mode<synchronous>, transform_indices = @transform_2, window_bounds = array<i64: 1, 128>}, {transform_indices = @transform_3, window_bounds = array<i64: 512, 128>}, {pipeline_mode = #tpu.pipeline_mode<synchronous>, transform_indices = @transform_4, window_bounds = array<i64: 1, 128>}, {pipeline_mode = #tpu.pipeline_mode<synchronous>, transform_indices = @transform_5, window_bounds = array<i64: 1, 128>}]} {
    %c0_i32 = arith.constant 0 : i32
    %0 = arith.cmpi eq, %arg0, %c0_i32 : i32
    %c0_i32_0 = arith.constant 0 : i32
    %1 = arith.cmpi eq, %arg1, %c0_i32_0 : i32
    %2 = arith.andi %0, %1 : i1
    %3 = arith.extui %2 : i1 to i32
    %c0_i32_1 = arith.constant 0 : i32
    %4 = arith.cmpi ne, %3, %c0_i32_1 : i32
    scf.if %4 {
      %cst_13 = arith.constant 0.000000e+00 : f32
      %17 = vector.broadcast %cst_13 : f32 to vector<1x128xf32>
      %c0_14 = arith.constant 0 : index
      %c0_15 = arith.constant 0 : index
      %18 = vector.load %arg6[%c0_14, %c0_15] : memref<1x128xf32, #tpu.memory_space<vmem>>, vector<1x128xf32>
      tpu.vector_store %arg6[%c0_14, %c0_15], %17 {strides = array<i32>} : memref<1x128xf32, #tpu.memory_space<vmem>>, vector<1x128xf32>,
      %cst_16 = arith.constant 0.000000e+00 : f32
      %19 = vector.broadcast %cst_16 : f32 to vector<1x128xf32>
      %c0_17 = arith.constant 0 : index
      %c0_18 = arith.constant 0 : index
      %20 = vector.load %arg7[%c0_17, %c0_18] : memref<1x128xf32, #tpu.memory_space<vmem>>, vector<1x128xf32>
      tpu.vector_store %arg7[%c0_17, %c0_18], %19 {strides = array<i32>} : memref<1x128xf32, #tpu.memory_space<vmem>>, vector<1x128xf32>,
    } else {
    }
    %c0_i32_2 = arith.constant 0 : i32
    %5 = arith.cmpi eq, %arg1, %c0_i32_2 : i32
    %6 = arith.extui %5 : i1 to i32
    %c0_i32_3 = arith.constant 0 : i32
    %7 = arith.cmpi ne, %6, %c0_i32_3 : i32
    scf.if %7 {
      %cst_13 = arith.constant 0.000000e+00 : f32
      %17 = vector.broadcast %cst_13 : f32 to vector<512x128xf32>
      %c0_14 = arith.constant 0 : index
      %c0_15 = arith.constant 0 : index
      %18 = vector.load %arg8[%c0_14, %c0_15] : memref<512x128xf32, #tpu.memory_space<vmem>>, vector<512x128xf32>
      tpu.vector_store %arg8[%c0_14, %c0_15], %17 {strides = array<i32>} : memref<512x128xf32, #tpu.memory_space<vmem>>, vector<512x128xf32>,
    } else {
    }
    %c0 = arith.constant 0 : index
    %c0_4 = arith.constant 0 : index
    %8 = vector.load %arg8[%c0, %c0_4] : memref<512x128xf32, #tpu.memory_space<vmem>>, vector<512x128xf32>
    %c0_5 = arith.constant 0 : index
    %c0_6 = arith.constant 0 : index
    %9 = vector.load %arg2[%c0_5, %c0_6] : memref<512x392xbf16, #tpu.memory_space<vmem>>, vector<512x392xbf16>
    %c0_7 = arith.constant 0 : index
    %c0_8 = arith.constant 0 : index
    %10 = vector.load %arg3[%c0_7, %c0_8] : memref<392x128xbf16, #tpu.memory_space<vmem>>, vector<392x128xbf16>
    %cst = arith.constant dense<0.000000e+00> : vector<512x128xf32>
    %11 = tpu.matmul %9, %10, %cst {dimension_numbers = #tpu.dot_dimension_numbers<[1], [0], [0], [1], [0, 0, 1, 1], [], []>} : vector<512x392xbf16>, vector<392x128xbf16>, vector<512x128xf32> -> vector<512x128xf32>
    %12 = arith.addf %8, %11 : vector<512x128xf32>
    %c0_9 = arith.constant 0 : index
    %c0_10 = arith.constant 0 : index
    %13 = vector.load %arg8[%c0_9, %c0_10] : memref<512x128xf32, #tpu.memory_space<vmem>>, vector<512x128xf32>
    tpu.vector_store %arg8[%c0_9, %c0_10], %12 {strides = array<i32>} : memref<512x128xf32, #tpu.memory_space<vmem>>, vector<512x128xf32>,
    %c0_i32_11 = arith.constant 0 : i32
    %14 = arith.cmpi eq, %arg1, %c0_i32_11 : i32
    %15 = arith.extui %14 : i1 to i32
    %c0_i32_12 = arith.constant 0 : i32
    %16 = arith.cmpi ne, %15, %c0_i32_12 : i32
    scf.if %16 {
      %c0_13 = arith.constant 0 : index
      %c0_14 = arith.constant 0 : index
      %17 = vector.load %arg8[%c0_13, %c0_14] : memref<512x128xf32, #tpu.memory_space<vmem>>, vector<512x128xf32>
      %c0_15 = arith.constant 0 : index
      %c0_16 = arith.constant 0 : index
      %18 = vector.load %arg4[%c0_15, %c0_16] : memref<1x128xf32, #tpu.memory_space<vmem>>, vector<1x128xf32>
      %19 = vector.broadcast %18 : vector<1x128xf32> to vector<512x128xf32>
      %20 = arith.addf %17, %19 : vector<512x128xf32>
      %21 = math.tanh %20 : vector<512x128xf32>
      %c0_17 = arith.constant 0 : index
      %c0_18 = arith.constant 0 : index
      %22 = vector.load %arg5[%c0_17, %c0_18] : memref<512x128xf32, #tpu.memory_space<vmem>>, vector<512x128xf32>
      tpu.vector_store %arg5[%c0_17, %c0_18], %21 {strides = array<i32>} : memref<512x128xf32, #tpu.memory_space<vmem>>, vector<512x128xf32>,
      %c0_19 = arith.constant 0 : index
      %c0_20 = arith.constant 0 : index
      %23 = vector.load %arg6[%c0_19, %c0_20] : memref<1x128xf32, #tpu.memory_space<vmem>>, vector<1x128xf32>
      %cst_21 = arith.constant dense<0.000000e+00> : vector<128xf32>
      %24 = vector.multi_reduction <add>, %21, %cst_21 [0] : vector<512x128xf32> to vector<128xf32>
      %25 = vector.shape_cast %24 : vector<128xf32> to vector<1x128xf32>
      %26 = arith.addf %23, %25 : vector<1x128xf32>
      %c0_22 = arith.constant 0 : index
      %c0_23 = arith.constant 0 : index
      %27 = vector.load %arg6[%c0_22, %c0_23] : memref<1x128xf32, #tpu.memory_space<vmem>>, vector<1x128xf32>
      tpu.vector_store %arg6[%c0_22, %c0_23], %26 {strides = array<i32>} : memref<1x128xf32, #tpu.memory_space<vmem>>, vector<1x128xf32>,
      %c0_24 = arith.constant 0 : index
      %c0_25 = arith.constant 0 : index
      %28 = vector.load %arg7[%c0_24, %c0_25] : memref<1x128xf32, #tpu.memory_space<vmem>>, vector<1x128xf32>
      %29 = arith.mulf %21, %21 : vector<512x128xf32>
      %cst_26 = arith.constant dense<0.000000e+00> : vector<128xf32>
      %30 = vector.multi_reduction <add>, %29, %cst_26 [0] : vector<512x128xf32> to vector<128xf32>
      %31 = vector.shape_cast %30 : vector<128xf32> to vector<1x128xf32>
      %32 = arith.addf %28, %31 : vector<1x128xf32>
      %c0_27 = arith.constant 0 : index
      %c0_28 = arith.constant 0 : index
      %33 = vector.load %arg7[%c0_27, %c0_28] : memref<1x128xf32, #tpu.memory_space<vmem>>, vector<1x128xf32>
      tpu.vector_store %arg7[%c0_27, %c0_28], %32 {strides = array<i32>} : memref<1x128xf32, #tpu.memory_space<vmem>>, vector<1x128xf32>,
    } else {
    }
    return
  }
  func.func @transform_0(%arg0: i32, %arg1: i32) -> (i32, i32) {
    %c0_i32 = arith.constant 0 : i32
    return %arg0, %arg1 : i32, i32
  }
  func.func @transform_1(%arg0: i32, %arg1: i32) -> (i32, i32) {
    %c0_i32 = arith.constant 0 : i32
    %c0_i32_0 = arith.constant 0 : i32
    return %arg1, %c0_i32 : i32, i32
  }
  func.func @transform_2(%arg0: i32, %arg1: i32) -> (i32, i32) {
    %c0_i32 = arith.constant 0 : i32
    %c0_i32_0 = arith.constant 0 : i32
    %c0_i32_1 = arith.constant 0 : i32
    return %c0_i32, %c0_i32_0 : i32, i32
  }
  func.func @transform_3(%arg0: i32, %arg1: i32) -> (i32, i32) {
    %c0_i32 = arith.constant 0 : i32
    %c0_i32_0 = arith.constant 0 : i32
    return %arg0, %c0_i32 : i32, i32
  }
  func.func @transform_4(%arg0: i32, %arg1: i32) -> (i32, i32) {
    %c0_i32 = arith.constant 0 : i32
    %c0_i32_0 = arith.constant 0 : i32
    %c0_i32_1 = arith.constant 0 : i32
    return %c0_i32, %c0_i32_0 : i32, i32
  }
  func.func @transform_5(%arg0: i32, %arg1: i32) -> (i32, i32) {
    %c0_i32 = arith.constant 0 : i32
    %c0_i32_0 = arith.constant 0 : i32
    %c0_i32_1 = arith.constant 0 : i32
    return %c0_i32, %c0_i32_0 : i32, i32
  }
}

module attributes {stable_mosaic.version = 11 : i64} {
  func.func @_inst_mean_kernel(%arg0: i32, %arg1: i32, %arg2: i32, %arg3: memref<1x256x1xi32, #tpu.memory_space<vmem>>, %arg4: memref<1x1x256xi32, #tpu.memory_space<vmem>>, %arg5: memref<1x3x256xf32, #tpu.memory_space<vmem>>, %arg6: memref<1x3x256xf32, #tpu.memory_space<vmem>>, %arg7: memref<3x256xf32, #tpu.memory_space<vmem>>, %arg8: memref<1x256xf32, #tpu.memory_space<vmem>>) attributes {dimension_semantics = [#tpu.dimension_semantics<parallel>, #tpu.dimension_semantics<parallel>, #tpu.dimension_semantics<arbitrary>], iteration_bounds = array<i64: 2, 1, 1>, scalar_prefetch = 0 : i64, scratch_operands = 2 : i64, tpu.core_type = #tpu.core_type<tc>, window_params = [{transform_indices = @transform_0, window_bounds = array<i64: 1, 256, 1>}, {transform_indices = @transform_1, window_bounds = array<i64: 1, 1, 256>}, {transform_indices = @transform_2, window_bounds = array<i64: 1, 3, 256>}, {transform_indices = @transform_3, window_bounds = array<i64: 1, 3, 256>}]} {
    %c0_i32 = arith.constant 0 : i32
    %0 = arith.cmpi eq, %arg2, %c0_i32 : i32
    %1 = arith.extui %0 : i1 to i32
    %c0_i32_0 = arith.constant 0 : i32
    %2 = arith.cmpi ne, %1, %c0_i32_0 : i32
    scf.if %2 {
      %cst_20 = arith.constant 0.000000e+00 : f32
      %26 = vector.broadcast %cst_20 : f32 to vector<3x256xf32>
      %c0_21 = arith.constant 0 : index
      %c0_22 = arith.constant 0 : index
      %27 = vector.load %arg7[%c0_21, %c0_22] : memref<3x256xf32, #tpu.memory_space<vmem>>, vector<3x256xf32>
      tpu.vector_store %arg7[%c0_21, %c0_22], %26 {strides = array<i32>} : memref<3x256xf32, #tpu.memory_space<vmem>>, vector<3x256xf32>,
      %cst_23 = arith.constant 0.000000e+00 : f32
      %28 = vector.broadcast %cst_23 : f32 to vector<1x256xf32>
      %c0_24 = arith.constant 0 : index
      %c0_25 = arith.constant 0 : index
      %29 = vector.load %arg8[%c0_24, %c0_25] : memref<1x256xf32, #tpu.memory_space<vmem>>, vector<1x256xf32>
      tpu.vector_store %arg8[%c0_24, %c0_25], %28 {strides = array<i32>} : memref<1x256xf32, #tpu.memory_space<vmem>>, vector<1x256xf32>,
    } else {
    }
    %c0 = arith.constant 0 : index
    %c0_1 = arith.constant 0 : index
    %c0_2 = arith.constant 0 : index
    %3 = vector.load %arg3[%c0, %c0_1, %c0_2] : memref<1x256x1xi32, #tpu.memory_space<vmem>>, vector<1x256x1xi32>
    %4 = vector.shape_cast %3 : vector<1x256x1xi32> to vector<256x1xi32>
    %c0_3 = arith.constant 0 : index
    %c0_4 = arith.constant 0 : index
    %c0_5 = arith.constant 0 : index
    %5 = vector.load %arg4[%c0_3, %c0_4, %c0_5] : memref<1x1x256xi32, #tpu.memory_space<vmem>>, vector<1x1x256xi32>
    %6 = vector.shape_cast %5 : vector<1x1x256xi32> to vector<1x256xi32>
    %7 = vector.broadcast %4 : vector<256x1xi32> to vector<256x256xi32>
    %8 = vector.broadcast %6 : vector<1x256xi32> to vector<256x256xi32>
    %9 = arith.cmpi eq, %7, %8 : vector<256x256xi32>
    %10 = arith.extui %9 : vector<256x256xi1> to vector<256x256xi32>
    %11 = arith.sitofp %10 : vector<256x256xi32> to vector<256x256xf32>
    %c0_6 = arith.constant 0 : index
    %c0_7 = arith.constant 0 : index
    %12 = vector.load %arg8[%c0_6, %c0_7] : memref<1x256xf32, #tpu.memory_space<vmem>>, vector<1x256xf32>
    %cst = arith.constant dense<0.000000e+00> : vector<256xf32>
    %13 = vector.multi_reduction <add>, %11, %cst [0] : vector<256x256xf32> to vector<256xf32>
    %14 = vector.shape_cast %13 : vector<256xf32> to vector<1x256xf32>
    %15 = arith.addf %12, %14 : vector<1x256xf32>
    %c0_8 = arith.constant 0 : index
    %c0_9 = arith.constant 0 : index
    %16 = vector.load %arg8[%c0_8, %c0_9] : memref<1x256xf32, #tpu.memory_space<vmem>>, vector<1x256xf32>
    tpu.vector_store %arg8[%c0_8, %c0_9], %15 {strides = array<i32>} : memref<1x256xf32, #tpu.memory_space<vmem>>, vector<1x256xf32>,
    %c0_10 = arith.constant 0 : index
    %c0_11 = arith.constant 0 : index
    %17 = vector.load %arg7[%c0_10, %c0_11] : memref<3x256xf32, #tpu.memory_space<vmem>>, vector<3x256xf32>
    %c0_12 = arith.constant 0 : index
    %c0_13 = arith.constant 0 : index
    %c0_14 = arith.constant 0 : index
    %18 = vector.load %arg5[%c0_12, %c0_13, %c0_14] : memref<1x3x256xf32, #tpu.memory_space<vmem>>, vector<1x3x256xf32>
    %19 = vector.shape_cast %18 : vector<1x3x256xf32> to vector<3x256xf32>
    %cst_15 = arith.constant dense<0.000000e+00> : vector<3x256xf32>
    %20 = tpu.matmul %19, %11, %cst_15 {dimension_numbers = #tpu.dot_dimension_numbers<[1], [0], [0], [1], [0, 0, 1, 1], [], []>} : vector<3x256xf32>, vector<256x256xf32>, vector<3x256xf32> -> vector<3x256xf32>
    %21 = arith.addf %17, %20 : vector<3x256xf32>
    %c0_16 = arith.constant 0 : index
    %c0_17 = arith.constant 0 : index
    %22 = vector.load %arg7[%c0_16, %c0_17] : memref<3x256xf32, #tpu.memory_space<vmem>>, vector<3x256xf32>
    tpu.vector_store %arg7[%c0_16, %c0_17], %21 {strides = array<i32>} : memref<3x256xf32, #tpu.memory_space<vmem>>, vector<3x256xf32>,
    %c0_i32_18 = arith.constant 0 : i32
    %23 = arith.cmpi eq, %arg2, %c0_i32_18 : i32
    %24 = arith.extui %23 : i1 to i32
    %c0_i32_19 = arith.constant 0 : i32
    %25 = arith.cmpi ne, %24, %c0_i32_19 : i32
    scf.if %25 {
      %c0_20 = arith.constant 0 : index
      %c0_21 = arith.constant 0 : index
      %26 = vector.load %arg7[%c0_20, %c0_21] : memref<3x256xf32, #tpu.memory_space<vmem>>, vector<3x256xf32>
      %c0_22 = arith.constant 0 : index
      %c0_23 = arith.constant 0 : index
      %27 = vector.load %arg8[%c0_22, %c0_23] : memref<1x256xf32, #tpu.memory_space<vmem>>, vector<1x256xf32>
      %28 = vector.broadcast %27 : vector<1x256xf32> to vector<3x256xf32>
      %29 = arith.divf %26, %28 : vector<3x256xf32>
      %c0_24 = arith.constant 0 : index
      %c0_25 = arith.constant 0 : index
      %c0_26 = arith.constant 0 : index
      %30 = vector.load %arg6[%c0_24, %c0_25, %c0_26] : memref<1x3x256xf32, #tpu.memory_space<vmem>>, vector<1x3x256xf32>
      %31 = vector.shape_cast %30 : vector<1x3x256xf32> to vector<3x256xf32>
      %32 = vector.shape_cast %29 : vector<3x256xf32> to vector<1x3x256xf32>
      tpu.vector_store %arg6[%c0_24, %c0_25, %c0_26], %32 {strides = array<i32>} : memref<1x3x256xf32, #tpu.memory_space<vmem>>, vector<1x3x256xf32>,
    } else {
    }
    return
  }
  func.func @transform_0(%arg0: i32, %arg1: i32, %arg2: i32) -> (i32, i32, i32) {
    %c0_i32 = arith.constant 0 : i32
    %c0_i32_0 = arith.constant 0 : i32
    return %arg0, %arg2, %c0_i32 : i32, i32, i32
  }
  func.func @transform_1(%arg0: i32, %arg1: i32, %arg2: i32) -> (i32, i32, i32) {
    %c0_i32 = arith.constant 0 : i32
    %c0_i32_0 = arith.constant 0 : i32
    return %arg0, %c0_i32, %arg1 : i32, i32, i32
  }
  func.func @transform_2(%arg0: i32, %arg1: i32, %arg2: i32) -> (i32, i32, i32) {
    %c0_i32 = arith.constant 0 : i32
    %c0_i32_0 = arith.constant 0 : i32
    return %arg0, %c0_i32, %arg2 : i32, i32, i32
  }
  func.func @transform_3(%arg0: i32, %arg1: i32, %arg2: i32) -> (i32, i32, i32) {
    %c0_i32 = arith.constant 0 : i32
    %c0_i32_0 = arith.constant 0 : i32
    return %arg0, %c0_i32, %arg1 : i32, i32, i32
  }
}

</mosaic_0001>

<bundles_post_ra>
// kernel: encoder_forward.13
= control target key start
LH: loop header
LB: loop body
LE: loop exit
PB: predicated region body
PF: predicated region fallthrough
CT: control target
= control target key end

     0   :  { %s1502_s0 = inlined_call_operand.vmem [shape: bf16[512,128], index: 0, kind: input, shape index: {}]   ;;  %s1503_s1 = inlined_call_operand.vmem [shape: f32[1,128], index: 1, kind: input, shape index: {}]   ;;  %s1504_s2 = inlined_call_operand.vmem [shape: f32[1,128], index: 2, kind: input, shape index: {}]   ;;  %s1505_s3 = inlined_call_operand.vmem [shape: bf16[512,128], index: 3, kind: output, shape index: {}]  }
   0x1   :  { %v803_v0 = vld [vmem:[%s1502_s0] sm:$0xff]   ;;  %v1090_v4 = vld [vmem:[%s1502_s0 + $0x8] sm:$0xff]   ;;  %v1091_v5 = vld [vmem:[%s1502_s0 + $0x10] sm:$0xff]  }
   0x2   :  { %v1178_v1 = vld [vmem:[%s1503_s1] ss:$0 sm:$0xff]  ;;  %v804_v2 = vunpack.c.l.bf16 %v803_v0  ;;  %v805_v3 = vunpack.c.h.bf16 %v803_v0  ;;  %v1092_v6 = vld [vmem:[%s1502_s0 + $0x18] sm:$0xff]   ;;  %v808_v8 = vunpack.c.l.bf16 %v1090_v4  ;;  %v809_v9 = vunpack.c.h.bf16 %v1090_v4  ;;  %v1094_v33 = vld [vmem:[%s1502_s0 + $0x28] sm:$0xff]  }
   0x3   :  { %v1192_v7 = vld [vmem:[%s1504_s2] ss:$0 sm:$0xff]  ;;  %v812_v10 = vunpack.c.l.bf16 %v1091_v5  ;;  %v813_v11 = vunpack.c.h.bf16 %v1091_v5  ;;  %v816_v14 = vunpack.c.l.bf16 %v1092_v6  ;;  %v817_v15 = vunpack.c.h.bf16 %v1092_v6  ;;  %v1095_v38 = vld [vmem:[%s1502_s0 + $0x30] sm:$0xff]   ;;  %v1096_v43 = vld [vmem:[%s1502_s0 + $0x38] sm:$0xff]  }
   0x4   :  { %v149_v12 = vmul.f32 %v804_v2, %v1178_v1  ;;  %v150_v13 = vmul.f32 %v805_v3, %v1178_v1  ;;  %v151_v16 = vmul.f32 %v808_v8, %v1178_v1  ;;  %v152_v17 = vmul.f32 %v809_v9, %v1178_v1  ;;  %v1093_v28 = vld [vmem:[%s1502_s0 + $0x20] sm:$0xff]  }
   0x5   :  { %v153_v18 = vmul.f32 %v812_v10, %v1178_v1  ;;  %v154_v19 = vmul.f32 %v813_v11, %v1178_v1  ;;  %v155_v22 = vmul.f32 %v816_v14, %v1178_v1  ;;  %v156_v23 = vmul.f32 %v817_v15, %v1178_v1  ;;  %v1097_v0 = vld [vmem:[%s1502_s0 + $0x40] sm:$0xff]   ;;  %v1098_v11 = vld [vmem:[%s1502_s0 + $0x48] sm:$0xff]  }
   0x6   :  { %v220_v20 = vadd.f32 %v1192_v7, %v149_v12  ;;  %v221_v21 = vadd.f32 %v1192_v7, %v150_v13  ;;  %v222_v24 = vadd.f32 %v1192_v7, %v151_v16  ;;  %v223_v25 = vadd.f32 %v1192_v7, %v152_v17  ;;  %v1099_v16 = vld [vmem:[%s1502_s0 + $0x50] sm:$0xff]  }
   0x7   :  { %v224_v26 = vadd.f32 %v1192_v7, %v153_v18  ;;  %v225_v27 = vadd.f32 %v1192_v7, %v154_v19  ;;  %v226_v31 = vadd.f32 %v1192_v7, %v155_v22  ;;  %v227_v32 = vadd.f32 %v1192_v7, %v156_v23 }
   0x8   :  { %v284_v29 = vmax.f32 %v220_v20, 0.0  ;;  %v285_v30 = vmax.f32 %v221_v21, 0.0  ;;  %v286_v34 = vmax.f32 %v222_v24, 0.0  ;;  %v287_v35 = vmax.f32 %v223_v25, 0.0  ;;  %v1100_v25 = vld [vmem:[%s1502_s0 + $0x58] sm:$0xff]  }
   0x9   :  { %v288_v36 = vmax.f32 %v224_v26, 0.0  ;;  %v289_v37 = vmax.f32 %v225_v27, 0.0  ;;  %v290_v40 = vmax.f32 %v226_v31, 0.0  ;;  %v291_v41 = vmax.f32 %v227_v32, 0.0 }
   0xa   :  { %v933_v39 = vpack.c.bf16 %v285_v30, %v284_v29  ;;  %v820_v42 = vunpack.c.l.bf16 %v1093_v28  ;;  %v938_v44 = vpack.c.bf16 %v287_v35, %v286_v34  ;;  %v821_v46 = vunpack.c.h.bf16 %v1093_v28 }
   0xb   :  { %v943_v45 = vpack.c.bf16 %v289_v37, %v288_v36  ;;  %v824_v47 = vunpack.c.l.bf16 %v1094_v33  ;;  %v948_v48 = vpack.c.bf16 %v291_v41, %v290_v40  ;;  %v825_v50 = vunpack.c.h.bf16 %v1094_v33 }
   0xc   :  { %934 = vst [vmem:[%s1505_s3] sm:$0xff] %v933_v39   ;;  %v157_v49 = vmul.f32 %v820_v42, %v1178_v1  ;;  %v828_v51 = vunpack.c.l.bf16 %v1095_v38  ;;  %1121 = vst [vmem:[%s1505_s3 + $0x8] sm:$0xff] %v938_v44   ;;  %v158_v52 = vmul.f32 %v821_v46, %v1178_v1  ;;  %v829_v54 = vunpack.c.h.bf16 %v1095_v38  ;;  %v1101_v38 = vld [vmem:[%s1502_s0 + $0x60] sm:$0xff]  }
   0xd   :  { %1122 = vst [vmem:[%s1505_s3 + $0x10] sm:$0xff] %v943_v45   ;;  %v159_v53 = vmul.f32 %v824_v47, %v1178_v1  ;;  %v832_v55 = vunpack.c.l.bf16 %v1096_v43  ;;  %1123 = vst [vmem:[%s1505_s3 + $0x18] sm:$0xff] %v948_v48   ;;  %v160_v57 = vmul.f32 %v825_v50, %v1178_v1  ;;  %v833_v59 = vunpack.c.h.bf16 %v1096_v43 }
   0xe   :  { %v228_v56 = vadd.f32 %v1192_v7, %v157_v49  ;;  %v161_v58 = vmul.f32 %v828_v51, %v1178_v1  ;;  %v229_v60 = vadd.f32 %v1192_v7, %v158_v52  ;;  %v162_v62 = vmul.f32 %v829_v54, %v1178_v1  ;;  %v1102_v51 = vld [vmem:[%s1502_s0 + $0x68] sm:$0xff]  }
   0xf   :  { %v230_v61 = vadd.f32 %v1192_v7, %v159_v53  ;;  %v163_v63 = vmul.f32 %v832_v55, %v1178_v1  ;;  %v231_v3 = vadd.f32 %v1192_v7, %v160_v57  ;;  %v164_v5 = vmul.f32 %v833_v59, %v1178_v1 }
  0x10   :  { %v292_v2 = vmax.f32 %v228_v56, 0.0  ;;  %v232_v4 = vadd.f32 %v1192_v7, %v161_v58  ;;  %v293_v6 = vmax.f32 %v229_v60, 0.0  ;;  %v233_v9 = vadd.f32 %v1192_v7, %v162_v62  ;;  %v1103_v60 = vld [vmem:[%s1502_s0 + $0x70] sm:$0xff]  }
  0x11   :  { %v294_v8 = vmax.f32 %v230_v61, 0.0  ;;  %v234_v10 = vadd.f32 %v1192_v7, %v163_v63  ;;  %v295_v12 = vmax.f32 %v231_v3, 0.0  ;;  %v235_v14 = vadd.f32 %v1192_v7, %v164_v5 }
  0x12   :  { %v296_v13 = vmax.f32 %v232_v4, 0.0  ;;  %v836_v15 = vunpack.c.l.bf16 %v1097_v0  ;;  %v953_v17 = vpack.c.bf16 %v293_v6, %v292_v2  ;;  %v297_v18 = vmax.f32 %v233_v9, 0.0  ;;  %v1104_v2 = vld [vmem:[%s1502_s0 + $0x78] sm:$0xff]  }
  0x13   :  { %v298_v19 = vmax.f32 %v234_v10, 0.0  ;;  %v837_v20 = vunpack.c.h.bf16 %v1097_v0  ;;  %v958_v21 = vpack.c.bf16 %v295_v12, %v294_v8  ;;  %v299_v22 = vmax.f32 %v235_v14, 0.0  ;;  %v1105_v12 = vld [vmem:[%s1502_s0 + $0x80] sm:$0xff]  }
  0x14   :  { %v165_v23 = vmul.f32 %v836_v15, %v1178_v1  ;;  %v840_v24 = vunpack.c.l.bf16 %v1098_v11  ;;  %1124 = vst [vmem:[%s1505_s3 + $0x20] sm:$0xff] %v953_v17   ;;  %v963_v26 = vpack.c.bf16 %v297_v18, %v296_v13  ;;  %v841_v28 = vunpack.c.h.bf16 %v1098_v11 }
  0x15   :  { %v166_v27 = vmul.f32 %v837_v20, %v1178_v1  ;;  %v844_v29 = vunpack.c.l.bf16 %v1099_v16  ;;  %1125 = vst [vmem:[%s1505_s3 + $0x28] sm:$0xff] %v958_v21   ;;  %v968_v30 = vpack.c.bf16 %v299_v22, %v298_v19  ;;  %v845_v33 = vunpack.c.h.bf16 %v1099_v16 }
  0x16   :  { %v236_v31 = vadd.f32 %v1192_v7, %v165_v23  ;;  %v167_v32 = vmul.f32 %v840_v24, %v1178_v1  ;;  %1126 = vst [vmem:[%s1505_s3 + $0x30] sm:$0xff] %v963_v26   ;;  %v168_v35 = vmul.f32 %v841_v28, %v1178_v1  ;;  %v848_v37 = vunpack.c.l.bf16 %v1100_v25 }
  0x17   :  { %v237_v34 = vadd.f32 %v1192_v7, %v166_v27  ;;  %v169_v36 = vmul.f32 %v844_v29, %v1178_v1  ;;  %1127 = vst [vmem:[%s1505_s3 + $0x38] sm:$0xff] %v968_v30   ;;  %v170_v41 = vmul.f32 %v845_v33, %v1178_v1  ;;  %v849_v42 = vunpack.c.h.bf16 %v1100_v25  ;;  %v1106_v29 = vld [vmem:[%s1502_s0 + $0x88] sm:$0xff]  }
  0x18   :  { %v300_v39 = vmax.f32 %v236_v31, 0.0  ;;  %v238_v40 = vadd.f32 %v1192_v7, %v167_v32  ;;  %v239_v44 = vadd.f32 %v1192_v7, %v168_v35  ;;  %v171_v46 = vmul.f32 %v848_v37, %v1178_v1 }
  0x19   :  { %v301_v43 = vmax.f32 %v237_v34, 0.0  ;;  %v240_v45 = vadd.f32 %v1192_v7, %v169_v36  ;;  %v241_v48 = vadd.f32 %v1192_v7, %v170_v41  ;;  %v172_v49 = vmul.f32 %v849_v42, %v1178_v1  ;;  %v1107_v34 = vld [vmem:[%s1502_s0 + $0x90] sm:$0xff]  }
  0x1a   :  { %v302_v47 = vmax.f32 %v238_v40, 0.0  ;;  %v852_v50 = vunpack.c.l.bf16 %v1101_v38  ;;  %v303_v53 = vmax.f32 %v239_v44, 0.0  ;;  %v242_v55 = vadd.f32 %v1192_v7, %v171_v46 }
  0x1b   :  { %v973_v52 = vpack.c.bf16 %v301_v43, %v300_v39  ;;  %v304_v54 = vmax.f32 %v240_v45, 0.0  ;;  %v305_v56 = vmax.f32 %v241_v48, 0.0  ;;  %v243_v57 = vadd.f32 %v1192_v7, %v172_v49  ;;  %v1108_v43 = vld [vmem:[%s1502_s0 + $0x98] sm:$0xff]  }
  0x1c   :  { %v853_v58 = vunpack.c.h.bf16 %v1101_v38  ;;  %v173_v59 = vmul.f32 %v852_v50, %v1178_v1  ;;  %v978_v61 = vpack.c.bf16 %v303_v53, %v302_v47  ;;  %v306_v62 = vmax.f32 %v242_v55, 0.0 }
  0x1d   :  { %1128 = vst [vmem:[%s1505_s3 + $0x40] sm:$0xff] %v973_v52   ;;  %v856_v63 = vunpack.c.l.bf16 %v1102_v51  ;;  %v857_v0 = vunpack.c.h.bf16 %v1102_v51  ;;  %v983_v3 = vpack.c.bf16 %v305_v56, %v304_v54  ;;  %v307_v4 = vmax.f32 %v243_v57, 0.0  ;;  %v1109_v56 = vld [vmem:[%s1502_s0 + $0xa0] sm:$0xff]  }
  0x1e   :  { %v174_v5 = vmul.f32 %v853_v58, %v1178_v1  ;;  %v244_v6 = vadd.f32 %v1192_v7, %v173_v59  ;;  %1129 = vst [vmem:[%s1505_s3 + $0x48] sm:$0xff] %v978_v61   ;;  %v860_v10 = vunpack.c.l.bf16 %v1103_v60  ;;  %v861_v11 = vunpack.c.h.bf16 %v1103_v60 }
  0x1f   :  { %v175_v8 = vmul.f32 %v856_v63, %v1178_v1  ;;  %v176_v9 = vmul.f32 %v857_v0, %v1178_v1  ;;  %1130 = vst [vmem:[%s1505_s3 + $0x50] sm:$0xff] %v983_v3   ;;  %v988_v13 = vpack.c.bf16 %v307_v4, %v306_v62  ;;  %v864_v16 = vunpack.c.l.bf16 %v1104_v2 }
  0x20   :  { %v245_v14 = vadd.f32 %v1192_v7, %v174_v5  ;;  %v308_v15 = vmax.f32 %v244_v6, 0.0  ;;  %v177_v19 = vmul.f32 %v860_v10, %v1178_v1  ;;  %v178_v20 = vmul.f32 %v861_v11, %v1178_v1 }
  0x21   :  { %v246_v17 = vadd.f32 %v1192_v7, %v175_v8  ;;  %v247_v18 = vadd.f32 %v1192_v7, %v176_v9  ;;  %1131 = vst [vmem:[%s1505_s3 + $0x58] sm:$0xff] %v988_v13   ;;  %v865_v22 = vunpack.c.h.bf16 %v1104_v2  ;;  %v179_v23 = vmul.f32 %v864_v16, %v1178_v1  ;;  %v1110_v2 = vld [vmem:[%s1502_s0 + $0xa8] sm:$0xff]   ;;  %v1111_v16 = vld [vmem:[%s1502_s0 + $0xb0] sm:$0xff]  }
  0x22   :  { %v309_v21 = vmax.f32 %v245_v14, 0.0  ;;  %v868_v24 = vunpack.c.l.bf16 %v1105_v12  ;;  %v248_v27 = vadd.f32 %v1192_v7, %v177_v19  ;;  %v249_v28 = vadd.f32 %v1192_v7, %v178_v20 }
  0x23   :  { %v310_v25 = vmax.f32 %v246_v17, 0.0  ;;  %v311_v26 = vmax.f32 %v247_v18, 0.0  ;;  %v180_v31 = vmul.f32 %v865_v22, %v1178_v1  ;;  %v250_v32 = vadd.f32 %v1192_v7, %v179_v23 }
  0x24   :  { %v993_v30 = vpack.c.bf16 %v309_v21, %v308_v15  ;;  %v869_v33 = vunpack.c.h.bf16 %v1105_v12  ;;  %v312_v36 = vmax.f32 %v248_v27, 0.0  ;;  %v313_v37 = vmax.f32 %v249_v28, 0.0  ;;  %v1112_v21 = vld [vmem:[%s1502_s0 + $0xb8] sm:$0xff]  }
  0x25   :  { %v998_v35 = vpack.c.bf16 %v311_v26, %v310_v25  ;;  %v181_v38 = vmul.f32 %v868_v24, %v1178_v1  ;;  %v251_v39 = vadd.f32 %v1192_v7, %v180_v31  ;;  %v314_v40 = vmax.f32 %v250_v32, 0.0 }
  0x26   :  { %1132 = vst [vmem:[%s1505_s3 + $0x60] sm:$0xff] %v993_v30   ;;  %v182_v41 = vmul.f32 %v869_v33, %v1178_v1  ;;  %v872_v42 = vunpack.c.l.bf16 %v1106_v29  ;;  %v1003_v44 = vpack.c.bf16 %v313_v37, %v312_v36  ;;  %v873_v46 = vunpack.c.h.bf16 %v1106_v29 }
  0x27   :  { %1133 = vst [vmem:[%s1505_s3 + $0x68] sm:$0xff] %v998_v35   ;;  %v252_v45 = vadd.f32 %v1192_v7, %v181_v38  ;;  %v876_v47 = vunpack.c.l.bf16 %v1107_v34  ;;  %v315_v48 = vmax.f32 %v251_v39, 0.0  ;;  %v877_v51 = vunpack.c.h.bf16 %v1107_v34  ;;  %v1113_v34 = vld [vmem:[%s1502_s0 + $0xc0] sm:$0xff]  }
  0x28   :  { %v253_v49 = vadd.f32 %v1192_v7, %v182_v41  ;;  %v183_v50 = vmul.f32 %v872_v42, %v1178_v1  ;;  %1134 = vst [vmem:[%s1505_s3 + $0x70] sm:$0xff] %v1003_v44   ;;  %v184_v53 = vmul.f32 %v873_v46, %v1178_v1  ;;  %v880_v55 = vunpack.c.l.bf16 %v1108_v43 }
  0x29   :  { %v316_v52 = vmax.f32 %v252_v45, 0.0  ;;  %v185_v54 = vmul.f32 %v876_v47, %v1178_v1  ;;  %v1008_v57 = vpack.c.bf16 %v315_v48, %v314_v40  ;;  %v186_v60 = vmul.f32 %v877_v51, %v1178_v1  ;;  %v1114_v47 = vld [vmem:[%s1502_s0 + $0xc8] sm:$0xff]  }
  0x2a   :  { %v317_v58 = vmax.f32 %v253_v49, 0.0  ;;  %v254_v59 = vadd.f32 %v1192_v7, %v183_v50  ;;  %v255_v61 = vadd.f32 %v1192_v7, %v184_v53  ;;  %v881_v63 = vunpack.c.h.bf16 %v1108_v43 }
  0x2b   :  { %v256_v62 = vadd.f32 %v1192_v7, %v185_v54  ;;  %v187_v0 = vmul.f32 %v880_v55, %v1178_v1  ;;  %1135 = vst [vmem:[%s1505_s3 + $0x78] sm:$0xff] %v1008_v57   ;;  %v257_v5 = vadd.f32 %v1192_v7, %v186_v60  ;;  %v884_v6 = vunpack.c.l.bf16 %v1109_v56 }
  0x2c   :  { %v1013_v3 = vpack.c.bf16 %v317_v58, %v316_v52  ;;  %v318_v4 = vmax.f32 %v254_v59, 0.0  ;;  %v319_v8 = vmax.f32 %v255_v61, 0.0  ;;  %v188_v10 = vmul.f32 %v881_v63, %v1178_v1  ;;  %v1115_v52 = vld [vmem:[%s1502_s0 + $0xd0] sm:$0xff]   ;;  %v1116_v61 = vld [vmem:[%s1502_s0 + $0xd8] sm:$0xff]  }
  0x2d   :  { %v320_v9 = vmax.f32 %v256_v62, 0.0  ;;  %v258_v11 = vadd.f32 %v1192_v7, %v187_v0  ;;  %v321_v12 = vmax.f32 %v257_v5, 0.0  ;;  %v885_v13 = vunpack.c.h.bf16 %v1109_v56 }
  0x2e   :  { %1136 = vst [vmem:[%s1505_s3 + $0x80] sm:$0xff] %v1013_v3   ;;  %v189_v14 = vmul.f32 %v884_v6, %v1178_v1  ;;  %v888_v15 = vunpack.c.l.bf16 %v1110_v2  ;;  %v1018_v17 = vpack.c.bf16 %v319_v8, %v318_v4  ;;  %v259_v18 = vadd.f32 %v1192_v7, %v188_v10 }
  0x2f   :  { %v322_v19 = vmax.f32 %v258_v11, 0.0  ;;  %v889_v20 = vunpack.c.h.bf16 %v1110_v2  ;;  %v1023_v22 = vpack.c.bf16 %v321_v12, %v320_v9  ;;  %v190_v23 = vmul.f32 %v885_v13, %v1178_v1  ;;  %v1117_v12 = vld [vmem:[%s1502_s0 + $0xe0] sm:$0xff]  }
  0x30   :  { %v260_v24 = vadd.f32 %v1192_v7, %v189_v14  ;;  %v191_v25 = vmul.f32 %v888_v15, %v1178_v1  ;;  %1137 = vst [vmem:[%s1505_s3 + $0x88] sm:$0xff] %v1018_v17   ;;  %v323_v26 = vmax.f32 %v259_v18, 0.0  ;;  %v892_v28 = vunpack.c.l.bf16 %v1111_v16 }
  0x31   :  { %v192_v27 = vmul.f32 %v889_v20, %v1178_v1  ;;  %v893_v29 = vunpack.c.h.bf16 %v1111_v16  ;;  %1138 = vst [vmem:[%s1505_s3 + $0x90] sm:$0xff] %v1023_v22   ;;  %v261_v30 = vadd.f32 %v1192_v7, %v190_v23  ;;  %v896_v33 = vunpack.c.l.bf16 %v1112_v21 }
  0x32   :  { %v324_v31 = vmax.f32 %v260_v24, 0.0  ;;  %v262_v32 = vadd.f32 %v1192_v7, %v191_v25  ;;  %v1028_v35 = vpack.c.bf16 %v323_v26, %v322_v19  ;;  %v193_v37 = vmul.f32 %v892_v28, %v1178_v1 }
  0x33   :  { %v263_v36 = vadd.f32 %v1192_v7, %v192_v27  ;;  %v194_v38 = vmul.f32 %v893_v29, %v1178_v1  ;;  %v325_v39 = vmax.f32 %v261_v30, 0.0  ;;  %v897_v41 = vunpack.c.h.bf16 %v1112_v21  ;;  %v1118_v21 = vld [vmem:[%s1502_s0 + $0xe8] sm:$0xff]  }
  0x34   :  { %v326_v40 = vmax.f32 %v262_v32, 0.0  ;;  %v195_v42 = vmul.f32 %v896_v33, %v1178_v1  ;;  %1139 = vst [vmem:[%s1505_s3 + $0x98] sm:$0xff] %v1028_v35   ;;  %v264_v44 = vadd.f32 %v1192_v7, %v193_v37  ;;  %v900_v46 = vunpack.c.l.bf16 %v1113_v34 }
  0x35   :  { %v327_v43 = vmax.f32 %v263_v36, 0.0  ;;  %v265_v45 = vadd.f32 %v1192_v7, %v194_v38  ;;  %v1033_v48 = vpack.c.bf16 %v325_v39, %v324_v31  ;;  %v196_v49 = vmul.f32 %v897_v41, %v1178_v1  ;;  %v1120_v39 = vld [vmem:[%s1502_s0 + $0xf8] sm:$0xff]  }
  0x36   :  { %v266_v50 = vadd.f32 %v1192_v7, %v195_v42  ;;  %v901_v51 = vunpack.c.h.bf16 %v1113_v34  ;;  %v328_v54 = vmax.f32 %v264_v44, 0.0  ;;  %v197_v56 = vmul.f32 %v900_v46, %v1178_v1  ;;  %v1119_v34 = vld [vmem:[%s1502_s0 + $0xf0] sm:$0xff]  }
  0x37   :  { %v1038_v53 = vpack.c.bf16 %v327_v43, %v326_v40  ;;  %v329_v55 = vmax.f32 %v265_v45, 0.0  ;;  %1140 = vst [vmem:[%s1505_s3 + $0xa0] sm:$0xff] %v1033_v48   ;;  %v267_v57 = vadd.f32 %v1192_v7, %v196_v49  ;;  %v904_v60 = vunpack.c.l.bf16 %v1114_v47 }
  0x38   :  { %v330_v58 = vmax.f32 %v266_v50, 0.0  ;;  %v198_v59 = vmul.f32 %v901_v51, %v1178_v1  ;;  %v268_v63 = vadd.f32 %v1192_v7, %v197_v56  ;;  %v905_v0 = vunpack.c.h.bf16 %v1114_v47 }
  0x39   :  { %1141 = vst [vmem:[%s1505_s3 + $0xa8] sm:$0xff] %v1038_v53   ;;  %v1043_v62 = vpack.c.bf16 %v329_v55, %v328_v54  ;;  %v908_v2 = vunpack.c.l.bf16 %v1115_v52  ;;  %v331_v3 = vmax.f32 %v267_v57, 0.0  ;;  %v199_v5 = vmul.f32 %v904_v60, %v1178_v1 }
  0x3a   :  { %v269_v4 = vadd.f32 %v1192_v7, %v198_v59  ;;  %v909_v6 = vunpack.c.h.bf16 %v1115_v52  ;;  %v332_v8 = vmax.f32 %v268_v63, 0.0  ;;  %v200_v9 = vmul.f32 %v905_v0, %v1178_v1 }
  0x3b   :  { %1142 = vst [vmem:[%s1505_s3 + $0xb0] sm:$0xff] %v1043_v62   ;;  %v201_v10 = vmul.f32 %v908_v2, %v1178_v1  ;;  %v912_v11 = vunpack.c.l.bf16 %v1116_v61  ;;  %v1048_v13 = vpack.c.bf16 %v331_v3, %v330_v58  ;;  %v270_v15 = vadd.f32 %v1192_v7, %v199_v5 }
  0x3c   :  { %v333_v14 = vmax.f32 %v269_v4, 0.0  ;;  %v202_v16 = vmul.f32 %v909_v6, %v1178_v1  ;;  %v271_v17 = vadd.f32 %v1192_v7, %v200_v9  ;;  %v913_v19 = vunpack.c.h.bf16 %v1116_v61 }
  0x3d   :  { %v272_v18 = vadd.f32 %v1192_v7, %v201_v10  ;;  %v203_v20 = vmul.f32 %v912_v11, %v1178_v1  ;;  %1143 = vst [vmem:[%s1505_s3 + $0xb8] sm:$0xff] %v1048_v13   ;;  %v334_v23 = vmax.f32 %v270_v15, 0.0  ;;  %v916_v25 = vunpack.c.l.bf16 %v1117_v12 }
  0x3e   :  { %v1053_v22 = vpack.c.bf16 %v333_v14, %v332_v8  ;;  %v273_v24 = vadd.f32 %v1192_v7, %v202_v16  ;;  %v335_v26 = vmax.f32 %v271_v17, 0.0  ;;  %v204_v28 = vmul.f32 %v913_v19, %v1178_v1 }
  0x3f   :  { %v336_v27 = vmax.f32 %v272_v18, 0.0  ;;  %v274_v29 = vadd.f32 %v1192_v7, %v203_v20  ;;  %v917_v31 = vunpack.c.h.bf16 %v1117_v12  ;;  %v205_v32 = vmul.f32 %v916_v25, %v1178_v1 }
  0x40   :  { %1144 = vst [vmem:[%s1505_s3 + $0xc0] sm:$0xff] %v1053_v22   ;;  %v337_v30 = vmax.f32 %v273_v24, 0.0  ;;  %v920_v33 = vunpack.c.l.bf16 %v1118_v21  ;;  %v1058_v35 = vpack.c.bf16 %v335_v26, %v334_v23  ;;  %v275_v36 = vadd.f32 %v1192_v7, %v204_v28 }
  0x41   :  { %v338_v37 = vmax.f32 %v274_v29, 0.0  ;;  %v921_v38 = vunpack.c.h.bf16 %v1118_v21  ;;  %v206_v41 = vmul.f32 %v917_v31, %v1178_v1  ;;  %v276_v42 = vadd.f32 %v1192_v7, %v205_v32 }
  0x42   :  { %v1063_v40 = vpack.c.bf16 %v337_v30, %v336_v27  ;;  %v207_v43 = vmul.f32 %v920_v33, %v1178_v1  ;;  %1145 = vst [vmem:[%s1505_s3 + $0xc8] sm:$0xff] %v1058_v35   ;;  %v339_v44 = vmax.f32 %v275_v36, 0.0  ;;  %v924_v46 = vunpack.c.l.bf16 %v1119_v34 }
  0x43   :  { %v208_v45 = vmul.f32 %v921_v38, %v1178_v1  ;;  %v925_v47 = vunpack.c.h.bf16 %v1119_v34  ;;  %v277_v48 = vadd.f32 %v1192_v7, %v206_v41  ;;  %v340_v49 = vmax.f32 %v276_v42, 0.0 }
  0x44   :  { %1146 = vst [vmem:[%s1505_s3 + $0xd0] sm:$0xff] %v1063_v40   ;;  %v278_v50 = vadd.f32 %v1192_v7, %v207_v43  ;;  %v928_v51 = vunpack.c.l.bf16 %v1120_v39  ;;  %v1068_v52 = vpack.c.bf16 %v339_v44, %v338_v37  ;;  %v209_v54 = vmul.f32 %v924_v46, %v1178_v1 }
  0x45   :  { %v279_v53 = vadd.f32 %v1192_v7, %v208_v45  ;;  %v210_v55 = vmul.f32 %v925_v47, %v1178_v1  ;;  %v341_v56 = vmax.f32 %v277_v48, 0.0  ;;  %v929_v58 = vunpack.c.h.bf16 %v1120_v39 }
  0x46   :  { %v342_v57 = vmax.f32 %v278_v50, 0.0  ;;  %v211_v59 = vmul.f32 %v928_v51, %v1178_v1  ;;  %1147 = vst [vmem:[%s1505_s3 + $0xd8] sm:$0xff] %v1068_v52   ;;  %v280_v61 = vadd.f32 %v1192_v7, %v209_v54 }
  0x47   :  { %v343_v60 = vmax.f32 %v279_v53, 0.0  ;;  %v281_v62 = vadd.f32 %v1192_v7, %v210_v55  ;;  %v1073_v63 = vpack.c.bf16 %v341_v56, %v340_v49  ;;  %v212_v0 = vmul.f32 %v929_v58, %v1178_v1 }
  0x48   :  { %v282_v2 = vadd.f32 %v1192_v7, %v211_v59  ;;  %v344_v4 = vmax.f32 %v280_v61, 0.0 }
  0x49   :  { %v1078_v3 = vpack.c.bf16 %v343_v60, %v342_v57  ;;  %v345_v5 = vmax.f32 %v281_v62, 0.0  ;;  %1148 = vst [vmem:[%s1505_s3 + $0xe0] sm:$0xff] %v1073_v63   ;;  %v283_v6 = vadd.f32 %v1192_v7, %v212_v0 }
  0x4a   :  { %v346_v8 = vmax.f32 %v282_v2, 0.0 }
  0x4b   :  { %1149 = vst [vmem:[%s1505_s3 + $0xe8] sm:$0xff] %v1078_v3   ;;  %v1083_v9 = vpack.c.bf16 %v345_v5, %v344_v4  ;;  %v347_v10 = vmax.f32 %v283_v6, 0.0 }
  0x4d   :  { %1150 = vst [vmem:[%s1505_s3 + $0xf0] sm:$0xff] %v1083_v9   ;;  %v1088_v1 = vpack.c.bf16 %v347_v10, %v346_v8 }
  0x4f   :  { %1151 = vst [vmem:[%s1505_s3 + $0xf8] sm:$0xff] %v1088_v1  }

// kernel: encoder_forward.12
= control target key start
LH: loop header
LB: loop body
LE: loop exit
PB: predicated region body
PF: predicated region fallthrough
CT: control target
= control target key end

     0   :  { %v2264_v0 = vmov 0   ;;  %vm582_vm0 = vcmask 154624   ;;  %vm679_vm1 = vcmask 1040384   ;;  %vm680_vm2 = vcmask 1041408   ;;  %s2852_s1 = inlined_call_operand.vmem [shape: bf16[147,128], index: 1, kind: input, shape index: {}]   ;;  %s2853_s0 = inlined_call_operand.vmem [shape: bf16[512,147], index: 0, kind: input, shape index: {}]   ;;  %s2854_s2 = inlined_call_operand.vmem [shape: bf16[512,128], index: 2, kind: output, shape index: {0}]   ;;  %s2855_s3 = inlined_call_operand.vmem [shape: f32[1,128], index: 3, kind: output, shape index: {1}]   ;;  %s2856_s4 = inlined_call_operand.vmem [shape: f32[1,128], index: 4, kind: output, shape index: {2}]  }
   0x1   :  { %686 = vmatprep.subr.bf16.mxu0 %v2264_v0  ;;  %v2158_v1 = vld [vmem:[%s2852_s1] sm:$0xff]   ;;  %2135 = vmatprep.subr.bf16.mxu1 %v2264_v0  ;;  %v2159_v2 = vld [vmem:[%s2852_s1 + $0x8] sm:$0xff]   ;;  %v2160_v3 = vld [vmem:[%s2852_s1 + $0x10] sm:$0xff]   ;;  %v2265_v11 = vmov 65535  }
   0x2   :  { %687 = vmatpush1.bf16.msra.mxu0 %v2158_v1  ;;  %2145 = vmatpush1.bf16.msra.mxu1 %v2158_v1  ;;  %v2161_v4 = vld [vmem:[%s2852_s1 + $0x18] sm:$0xff]   ;;  %v2170_v5 = vld [vmem:[%s2853_s0 + $0x4] ss:$8 sps:$4 sm:$0xff]   ;;  %v2164_v9 = vld [vmem:[%s2852_s1 + $0x30] sm:$0xff]   ;;  %v681_v12 = vsel %vm679_vm1, 4294967295, %v2265_v11 }
   0x3   :  { %688 = vmatprep.subr.bf16.mxu0 %v2264_v0  ;;  %2136 = vmatprep.subr.bf16.mxu1 %v2264_v0  ;;  %v2162_v6 = vld [vmem:[%s2852_s1 + $0x20] sm:$0xff]   ;;  %v2163_v7 = vld [vmem:[%s2852_s1 + $0x28] sm:$0xff]   ;;  %v2165_v10 = vld [vmem:[%s2852_s1 + $0x38] sm:$0xff]   ;;  %v682_v15 = vsel %vm680_vm2, %v681_v12, 0 }
   0x4   :  { %1784 = vmatprep.mubr.msk.bf16.mxu0 %vm582_vm0, %v2170_v5  ;;  %v2194_v8 = vld [vmem:[%s2853_s0 + $0x104] ss:$8 sps:$4 sm:$0xff]   ;;  %v2167_v14 = vld [vmem:[%s2852_s1 + $0x48] ss:$0 sps:$4 sm:$0x33]  }
   0x5   :  { %1800 = vmatprep.mubr.msk.bf16.mxu1 %vm582_vm0, %v2194_v8  ;;  %v2166_v13 = vld [vmem:[%s2852_s1 + $0x40] sm:$0xff]   ;;  %v684_v16 = vand.u32 %v2167_v14, %v682_v15  ;;  %v2171_v19 = vld [vmem:[%s2853_s0 + $0x14] ss:$8 sps:$4 sm:$0xff]   ;;  %v2173_v21 = vld [vmem:[%s2853_s0 + $0x10] ss:$8 sps:$4 sm:$0xff]  }
   0x6   :  { %689 = vmatpush1.bf16.msra.mxu0 %v2159_v2  ;;  %2146 = vmatpush1.bf16.msra.mxu1 %v2159_v2  ;;  %v2168_v17 = vld [vmem:[%s2853_s0] ss:$8 sps:$4 sm:$0xff]   ;;  %v2198_v20 = vld [vmem:[%s2853_s0 + $0x114] ss:$8 sps:$4 sm:$0xff]   ;;  %v2200_v22 = vld [vmem:[%s2853_s0 + $0x110] ss:$8 sps:$4 sm:$0xff]  }
   0x7   :  { %690 = vmatprep.subr.bf16.mxu0 %v2264_v0  ;;  %2137 = vmatprep.subr.bf16.mxu1 %v2264_v0  ;;  %v2192_v18 = vld [vmem:[%s2853_s0 + $0x100] ss:$8 sps:$4 sm:$0xff]   ;;  %v2174_v23 = vld [vmem:[%s2853_s0 + $0x24] ss:$8 sps:$4 sm:$0xff]   ;;  %v2177_v27 = vld [vmem:[%s2853_s0 + $0x34] ss:$8 sps:$4 sm:$0xff]  }
   0x8   :  { %v2204_v24 = vld [vmem:[%s2853_s0 + $0x124] ss:$8 sps:$4 sm:$0xff]   ;;  %v2176_v25 = vld [vmem:[%s2853_s0 + $0x20] ss:$8 sps:$4 sm:$0xff]   ;;  %v2210_v28 = vld [vmem:[%s2853_s0 + $0x134] ss:$8 sps:$4 sm:$0xff]  }
   0x9   :  { %v2206_v26 = vld [vmem:[%s2853_s0 + $0x120] ss:$8 sps:$4 sm:$0xff]   ;;  %v2179_v29 = vld [vmem:[%s2853_s0 + $0x30] ss:$8 sps:$4 sm:$0xff]   ;;  %v2180_v31 = vld [vmem:[%s2853_s0 + $0x44] ss:$8 sps:$4 sm:$0xff]  }
   0xa   :  { %691 = vmatpush1.bf16.msra.mxu0 %v2160_v3  ;;  %2147 = vmatpush1.bf16.msra.mxu1 %v2160_v3  ;;  %v2212_v30 = vld [vmem:[%s2853_s0 + $0x130] ss:$8 sps:$4 sm:$0xff]   ;;  %v2216_v32 = vld [vmem:[%s2853_s0 + $0x144] ss:$8 sps:$4 sm:$0xff]   ;;  %v2182_v33 = vld [vmem:[%s2853_s0 + $0x40] ss:$8 sps:$4 sm:$0xff]  }
   0xb   :  { %692 = vmatprep.subr.bf16.mxu0 %v2264_v0  ;;  %2138 = vmatprep.subr.bf16.mxu1 %v2264_v0  ;;  %v2218_v34 = vld [vmem:[%s2853_s0 + $0x140] ss:$8 sps:$4 sm:$0xff]   ;;  %v2183_v35 = vld [vmem:[%s2853_s0 + $0x54] ss:$8 sps:$4 sm:$0xff]   ;;  %v2185_v37 = vld [vmem:[%s2853_s0 + $0x50] ss:$8 sps:$4 sm:$0xff]  }
   0xc   :  { %v2222_v36 = vld [vmem:[%s2853_s0 + $0x154] ss:$8 sps:$4 sm:$0xff]   ;;  %v2224_v38 = vld [vmem:[%s2853_s0 + $0x150] ss:$8 sps:$4 sm:$0xff]   ;;  %v2186_v39 = vld [vmem:[%s2853_s0 + $0x64] ss:$8 sps:$4 sm:$0xff]  }
   0xd   :  { %v2228_v40 = vld [vmem:[%s2853_s0 + $0x164] ss:$8 sps:$4 sm:$0xff]   ;;  %v2188_v41 = vld [vmem:[%s2853_s0 + $0x60] ss:$8 sps:$4 sm:$0xff]   ;;  %v2189_v43 = vld [vmem:[%s2853_s0 + $0x74] ss:$8 sps:$4 sm:$0xff]  }
   0xe   :  { %693 = vmatpush1.bf16.msra.mxu0 %v2161_v4  ;;  %2148 = vmatpush1.bf16.msra.mxu1 %v2161_v4  ;;  %v2230_v42 = vld [vmem:[%s2853_s0 + $0x160] ss:$8 sps:$4 sm:$0xff]   ;;  %v2234_v44 = vld [vmem:[%s2853_s0 + $0x174] ss:$8 sps:$4 sm:$0xff]   ;;  %v2191_v45 = vld [vmem:[%s2853_s0 + $0x70] ss:$8 sps:$4 sm:$0xff]  }
   0xf   :  { %694 = vmatprep.subr.bf16.mxu0 %v2264_v0  ;;  %2139 = vmatprep.subr.bf16.mxu1 %v2264_v0  ;;  %v2236_v46 = vld [vmem:[%s2853_s0 + $0x170] ss:$8 sps:$4 sm:$0xff]   ;;  %v2195_v47 = vld [vmem:[%s2853_s0 + $0x84] ss:$8 sps:$4 sm:$0xff]   ;;  %v2197_v49 = vld [vmem:[%s2853_s0 + $0x80] ss:$8 sps:$4 sm:$0xff]  }
  0x10   :  { %v2240_v48 = vld [vmem:[%s2853_s0 + $0x184] ss:$8 sps:$4 sm:$0xff]   ;;  %v2242_v50 = vld [vmem:[%s2853_s0 + $0x180] ss:$8 sps:$4 sm:$0xff]   ;;  %v2201_v51 = vld [vmem:[%s2853_s0 + $0x94] ss:$8 sps:$4 sm:$0xff]  }
  0x11   :  { %v2243_v52 = vld [vmem:[%s2853_s0 + $0x194] ss:$8 sps:$4 sm:$0xff]   ;;  %v2203_v53 = vld [vmem:[%s2853_s0 + $0x90] ss:$8 sps:$4 sm:$0xff]   ;;  %v2207_v55 = vld [vmem:[%s2853_s0 + $0xa4] ss:$8 sps:$4 sm:$0xff]  }
  0x12   :  { %695 = vmatpush1.bf16.msra.mxu0 %v2162_v6  ;;  %2149 = vmatpush1.bf16.msra.mxu1 %v2162_v6  ;;  %v2245_v54 = vld [vmem:[%s2853_s0 + $0x190] ss:$8 sps:$4 sm:$0xff]   ;;  %v2246_v56 = vld [vmem:[%s2853_s0 + $0x1a4] ss:$8 sps:$4 sm:$0xff]   ;;  %v2209_v57 = vld [vmem:[%s2853_s0 + $0xa0] ss:$8 sps:$4 sm:$0xff]  }
  0x13   :  { %696 = vmatprep.subr.bf16.mxu0 %v2264_v0  ;;  %2140 = vmatprep.subr.bf16.mxu1 %v2264_v0  ;;  %v2248_v58 = vld [vmem:[%s2853_s0 + $0x1a0] ss:$8 sps:$4 sm:$0xff]   ;;  %v2213_v59 = vld [vmem:[%s2853_s0 + $0xb4] ss:$8 sps:$4 sm:$0xff]   ;;  %v2215_v61 = vld [vmem:[%s2853_s0 + $0xb0] ss:$8 sps:$4 sm:$0xff]  }
  0x14   :  { %v2249_v60 = vld [vmem:[%s2853_s0 + $0x1b4] ss:$8 sps:$4 sm:$0xff]   ;;  %v2251_v62 = vld [vmem:[%s2853_s0 + $0x1b0] ss:$8 sps:$4 sm:$0xff]   ;;  %v2219_v63 = vld [vmem:[%s2853_s0 + $0xc4] ss:$8 sps:$4 sm:$0xff]  }
  0x15   :  { %v2221_v1 = vld [vmem:[%s2853_s0 + $0xc0] ss:$8 sps:$4 sm:$0xff]   ;;  %v2225_v3 = vld [vmem:[%s2853_s0 + $0xd4] ss:$8 sps:$4 sm:$0xff]   ;;  %v2227_v5 = vld [vmem:[%s2853_s0 + $0xd0] ss:$8 sps:$4 sm:$0xff]  }
  0x16   :  { %697 = vmatpush1.bf16.msra.mxu0 %v2163_v7  ;;  %2150 = vmatpush1.bf16.msra.mxu1 %v2163_v7  ;;  %v2254_v2 = vld [vmem:[%s2853_s0 + $0x1c0] ss:$8 sps:$4 sm:$0xff]   ;;  %v2255_v4 = vld [vmem:[%s2853_s0 + $0x1d4] ss:$8 sps:$4 sm:$0xff]   ;;  %v2257_v6 = vld [vmem:[%s2853_s0 + $0x1d0] ss:$8 sps:$4 sm:$0xff]  }
  0x17   :  { %698 = vmatprep.subr.bf16.mxu0 %v2264_v0  ;;  %2141 = vmatprep.subr.bf16.mxu1 %v2264_v0  ;;  %v2231_v7 = vld [vmem:[%s2853_s0 + $0xe4] ss:$8 sps:$4 sm:$0xff]   ;;  %v2237_v11 = vld [vmem:[%s2853_s0 + $0xf4] ss:$8 sps:$4 sm:$0xff]   ;;  %v2263_v14 = vld [vmem:[%s2853_s0 + $0x1f0] ss:$8 sps:$4 sm:$0xff]  }
  0x18   :  { %v2258_v8 = vld [vmem:[%s2853_s0 + $0x1e4] ss:$8 sps:$4 sm:$0xff]   ;;  %v2261_v12 = vld [vmem:[%s2853_s0 + $0x1f4] ss:$8 sps:$4 sm:$0xff]  }
  0x1a   :  { %699 = vmatpush1.bf16.msra.mxu0 %v2164_v9  ;;  %2151 = vmatpush1.bf16.msra.mxu1 %v2164_v9  ;;  %v2233_v9 = vld [vmem:[%s2853_s0 + $0xe0] ss:$8 sps:$4 sm:$0xff]  }
  0x1b   :  { %700 = vmatprep.subr.bf16.mxu0 %v2264_v0  ;;  %2142 = vmatprep.subr.bf16.mxu1 %v2264_v0 }
  0x1e   :  { %701 = vmatpush1.bf16.msra.mxu0 %v2165_v10  ;;  %2152 = vmatpush1.bf16.msra.mxu1 %v2165_v10  ;;  %v2260_v10 = vld [vmem:[%s2853_s0 + $0x1e0] ss:$8 sps:$4 sm:$0xff]  }
  0x1f   :  { %702 = vmatprep.subr.bf16.mxu0 %v2264_v0  ;;  %2143 = vmatprep.subr.bf16.mxu1 %v2264_v0 }
  0x22   :  { %703 = vmatpush1.bf16.msra.mxu0 %v2166_v13  ;;  %2153 = vmatpush1.bf16.msra.mxu1 %v2166_v13  ;;  %v2239_v13 = vld [vmem:[%s2853_s0 + $0xf0] ss:$8 sps:$4 sm:$0xff]  }
  0x23   :  { %704 = vmatprep.subr.bf16.mxu0 %v2264_v0  ;;  %2144 = vmatprep.subr.bf16.mxu1 %v2264_v0  ;;  %v2252_v0 = vld [vmem:[%s2853_s0 + $0x1c4] ss:$8 sps:$4 sm:$0xff]  }
  0x26   :  { %705 = vmatpush1.bf16.msra.mxu0 %v684_v16  ;;  %2154 = vmatpush1.bf16.msra.mxu1 %v684_v16 }
  0x29   :  { %719 = vmatmul.mubr.bf16.vlgmr.msra.gmra.mrb[0].mxu0 %v2168_v17  ;;  %847 = vmatmul.mubr.bf16.vlgmr.msra.gmra.mrb[0].mxu1 %v2192_v18 }
  0x2a   :  { %1785 = vmatprep.mubr.msk.bf16.mxu0 %vm582_vm0, %v2171_v19  ;;  %1801 = vmatprep.mubr.msk.bf16.mxu1 %vm582_vm0, %v2198_v20 }
  0x31   :  { %727 = vmatmul.mubr.bf16.gmra.mrb[4].mxu0 %v2173_v21  ;;  %855 = vmatmul.mubr.bf16.gmra.mrb[4].mxu1 %v2200_v22 }
  0x32   :  { %1786 = vmatprep.mubr.msk.bf16.mxu0 %vm582_vm0, %v2174_v23  ;;  %1802 = vmatprep.mubr.msk.bf16.mxu1 %vm582_vm0, %v2204_v24 }
  0x39   :  { %735 = vmatmul.mubr.bf16.gmra.mrb[8].mxu0 %v2176_v25  ;;  %863 = vmatmul.mubr.bf16.gmra.mrb[8].mxu1 %v2206_v26 }
  0x3a   :  { %1787 = vmatprep.mubr.msk.bf16.mxu0 %vm582_vm0, %v2177_v27  ;;  %1803 = vmatprep.mubr.msk.bf16.mxu1 %vm582_vm0, %v2210_v28 }
  0x41   :  { %743 = vmatmul.mubr.bf16.gmra.mrb[12].mxu0 %v2179_v29  ;;  %871 = vmatmul.mubr.bf16.gmra.mrb[12].mxu1 %v2212_v30 }
  0x42   :  { %1788 = vmatprep.mubr.msk.bf16.mxu0 %vm582_vm0, %v2180_v31  ;;  %1804 = vmatprep.mubr.msk.bf16.mxu1 %vm582_vm0, %v2216_v32 }
  0x49   :  { %751 = vmatmul.mubr.bf16.gmra.mrb[16].mxu0 %v2182_v33  ;;  %879 = vmatmul.mubr.bf16.gmra.mrb[16].mxu1 %v2218_v34 }
  0x4a   :  { %1789 = vmatprep.mubr.msk.bf16.mxu0 %vm582_vm0, %v2183_v35  ;;  %1805 = vmatprep.mubr.msk.bf16.mxu1 %vm582_vm0, %v2222_v36 }
  0x51   :  { %759 = vmatmul.mubr.bf16.gmra.mrb[20].mxu0 %v2185_v37  ;;  %887 = vmatmul.mubr.bf16.gmra.mrb[20].mxu1 %v2224_v38 }
  0x52   :  { %1790 = vmatprep.mubr.msk.bf16.mxu0 %vm582_vm0, %v2186_v39  ;;  %1806 = vmatprep.mubr.msk.bf16.mxu1 %vm582_vm0, %v2228_v40 }
  0x59   :  { %767 = vmatmul.mubr.bf16.gmra.mrb[24].mxu0 %v2188_v41  ;;  %895 = vmatmul.mubr.bf16.gmra.mrb[24].mxu1 %v2230_v42 }
  0x5a   :  { %1791 = vmatprep.mubr.msk.bf16.mxu0 %vm582_vm0, %v2189_v43  ;;  %1807 = vmatprep.mubr.msk.bf16.mxu1 %vm582_vm0, %v2234_v44 }
  0x61   :  { %775 = vmatmul.mubr.bf16.gmra.mrb[28].mxu0 %v2191_v45  ;;  %903 = vmatmul.mubr.bf16.gmra.mrb[28].mxu1 %v2236_v46 }
  0x62   :  { %1792 = vmatprep.mubr.msk.bf16.mxu0 %vm582_vm0, %v2195_v47  ;;  %1808 = vmatprep.mubr.msk.bf16.mxu1 %vm582_vm0, %v2240_v48 }
  0x69   :  { %783 = vmatmul.mubr.bf16.gmra.mrb[32].mxu0 %v2197_v49  ;;  %911 = vmatmul.mubr.bf16.gmra.mrb[32].mxu1 %v2242_v50 }
  0x6a   :  { %1793 = vmatprep.mubr.msk.bf16.mxu0 %vm582_vm0, %v2201_v51  ;;  %1809 = vmatprep.mubr.msk.bf16.mxu1 %vm582_vm0, %v2243_v52 }
  0x71   :  { %791 = vmatmul.mubr.bf16.gmra.mrb[36].mxu0 %v2203_v53  ;;  %919 = vmatmul.mubr.bf16.gmra.mrb[36].mxu1 %v2245_v54 }
  0x72   :  { %1794 = vmatprep.mubr.msk.bf16.mxu0 %vm582_vm0, %v2207_v55  ;;  %1810 = vmatprep.mubr.msk.bf16.mxu1 %vm582_vm0, %v2246_v56 }
  0x79   :  { %799 = vmatmul.mubr.bf16.gmra.mrb[40].mxu0 %v2209_v57  ;;  %927 = vmatmul.mubr.bf16.gmra.mrb[40].mxu1 %v2248_v58 }
  0x7a   :  { %1795 = vmatprep.mubr.msk.bf16.mxu0 %vm582_vm0, %v2213_v59  ;;  %1811 = vmatprep.mubr.msk.bf16.mxu1 %vm582_vm0, %v2249_v60 }
  0x81   :  { %807 = vmatmul.mubr.bf16.gmra.mrb[44].mxu0 %v2215_v61  ;;  %935 = vmatmul.mubr.bf16.gmra.mrb[44].mxu1 %v2251_v62 }
  0x82   :  { %1796 = vmatprep.mubr.msk.bf16.mxu0 %vm582_vm0, %v2219_v63  ;;  %1812 = vmatprep.mubr.msk.bf16.mxu1 %vm582_vm0, %v2252_v0 }
  0x89   :  { %815 = vmatmul.mubr.bf16.gmra.mrb[48].mxu0 %v2221_v1  ;;  %943 = vmatmul.mubr.bf16.gmra.mrb[48].mxu1 %v2254_v2 }
  0x8a   :  { %1797 = vmatprep.mubr.msk.bf16.mxu0 %vm582_vm0, %v2225_v3  ;;  %1813 = vmatprep.mubr.msk.bf16.mxu1 %vm582_vm0, %v2255_v4 }
  0x91   :  { %823 = vmatmul.mubr.bf16.gmra.mrb[52].mxu0 %v2227_v5  ;;  %951 = vmatmul.mubr.bf16.gmra.mrb[52].mxu1 %v2257_v6 }
  0x92   :  { %1798 = vmatprep.mubr.msk.bf16.mxu0 %vm582_vm0, %v2231_v7  ;;  %1814 = vmatprep.mubr.msk.bf16.mxu1 %vm582_vm0, %v2258_v8 }
  0x99   :  { %831 = vmatmul.mubr.bf16.gmra.mrb[56].mxu0 %v2233_v9  ;;  %959 = vmatmul.mubr.bf16.gmra.mrb[56].mxu1 %v2260_v10 }
  0x9a   :  { %1799 = vmatprep.mubr.msk.bf16.mxu0 %vm582_vm0, %v2237_v11  ;;  %1815 = vmatprep.mubr.msk.bf16.mxu1 %vm582_vm0, %v2261_v12 }
  0xa1   :  { %839 = vmatmul.mubr.bf16.gmra.mrb[60].mxu0 %v2239_v13  ;;  %967 = vmatmul.mubr.bf16.gmra.mrb[60].mxu1 %v2263_v14 }
  0xfc   :  { %v720_v15 = vpop.f32.mrb[0].mxu0  ;;  %v2546_v16 = vpop.f32.mrb[0].mxu1 }
  0xfd   :  { %v722_v17 = vpop.f32.mrb[1].mxu0  ;;  %v850_v18 = vpop.f32.mrb[1].mxu1  ;;  %v1563_v19 = vmul.f32 %v720_v15, %v720_v15 }
  0xfe   :  { %v723_v20 = vpop.f32.mrb[2].mxu0  ;;  %v2548_v21 = vpop.f32.mrb[2].mxu1 }
  0xff   :  { %v1947_v22 = vpack.c.bf16 %v723_v20, %v720_v15  ;;  %v1491_v23 = vadd.f32 %v723_v20, %v720_v15  ;;  %v1564_v24 = vmul.f32 %v723_v20, %v723_v20  ;;  %v725_v25 = vpop.f32.mrb[3].mxu0  ;;  %v2027_v26 = vpack.c.bf16 %v2548_v21, %v2546_v16  ;;  %v853_v27 = vpop.f32.mrb[3].mxu1 }
 0x101   :  { %1948 = vst [vmem:[%s2854_s2] sm:$0xff] %v1947_v22   ;;  %v1627_v28 = vadd.f32 %v1564_v24, %v1563_v19  ;;  %2119 = vst [vmem:[%s2854_s2 + $0x80] sm:$0xff] %v2027_v26  }
 0x104   :  { %v728_v29 = vpop.f32.mrb[4].mxu0  ;;  %v2558_v30 = vpop.f32.mrb[4].mxu1 }
 0x105   :  { %v1492_v31 = vadd.f32 %v1491_v23, %v728_v29  ;;  %v1565_v32 = vmul.f32 %v728_v29, %v728_v29  ;;  %v730_v33 = vpop.f32.mrb[5].mxu0  ;;  %v858_v34 = vpop.f32.mrb[5].mxu1 }
 0x106   :  { %v731_v35 = vpop.f32.mrb[6].mxu0  ;;  %v2560_v36 = vpop.f32.mrb[6].mxu1 }
 0x107   :  { %v1628_v37 = vadd.f32 %v1627_v28, %v1565_v32  ;;  %v1952_v38 = vpack.c.bf16 %v731_v35, %v728_v29  ;;  %v1493_v39 = vadd.f32 %v1492_v31, %v731_v35  ;;  %v1566_v40 = vmul.f32 %v731_v35, %v731_v35  ;;  %v733_v41 = vpop.f32.mrb[7].mxu0  ;;  %v861_v42 = vpop.f32.mrb[7].mxu1 }
 0x108   :  { %v2032_v43 = vpack.c.bf16 %v2560_v36, %v2558_v30 }
 0x109   :  { %2104 = vst [vmem:[%s2854_s2 + $0x8] sm:$0xff] %v1952_v38   ;;  %v1629_v44 = vadd.f32 %v1628_v37, %v1566_v40 }
 0x10a   :  { %2120 = vst [vmem:[%s2854_s2 + $0x88] sm:$0xff] %v2032_v43  }
 0x10c   :  { %v736_v45 = vpop.f32.mrb[8].mxu0  ;;  %v2570_v46 = vpop.f32.mrb[8].mxu1 }
 0x10d   :  { %v1494_v47 = vadd.f32 %v1493_v39, %v736_v45  ;;  %v1567_v48 = vmul.f32 %v736_v45, %v736_v45  ;;  %v738_v49 = vpop.f32.mrb[9].mxu0  ;;  %v866_v50 = vpop.f32.mrb[9].mxu1 }
 0x10e   :  { %v739_v51 = vpop.f32.mrb[10].mxu0  ;;  %v2572_v52 = vpop.f32.mrb[10].mxu1 }
 0x10f   :  { %v1630_v53 = vadd.f32 %v1629_v44, %v1567_v48  ;;  %v1957_v54 = vpack.c.bf16 %v739_v51, %v736_v45  ;;  %v1495_v55 = vadd.f32 %v1494_v47, %v739_v51  ;;  %v1568_v56 = vmul.f32 %v739_v51, %v739_v51  ;;  %v741_v57 = vpop.f32.mrb[11].mxu0  ;;  %v869_v58 = vpop.f32.mrb[11].mxu1 }
 0x110   :  { %v2037_v59 = vpack.c.bf16 %v2572_v52, %v2570_v46 }
 0x111   :  { %2105 = vst [vmem:[%s2854_s2 + $0x10] sm:$0xff] %v1957_v54   ;;  %v1631_v60 = vadd.f32 %v1630_v53, %v1568_v56 }
 0x112   :  { %2121 = vst [vmem:[%s2854_s2 + $0x90] sm:$0xff] %v2037_v59  }
 0x114   :  { %v744_v61 = vpop.f32.mrb[12].mxu0  ;;  %v2582_v62 = vpop.f32.mrb[12].mxu1 }
 0x115   :  { %v1496_v63 = vadd.f32 %v1495_v55, %v744_v61  ;;  %v1569_v0 = vmul.f32 %v744_v61, %v744_v61  ;;  %v746_v1 = vpop.f32.mrb[13].mxu0  ;;  %v874_v2 = vpop.f32.mrb[13].mxu1 }
 0x116   :  { %v747_v3 = vpop.f32.mrb[14].mxu0  ;;  %v2584_v4 = vpop.f32.mrb[14].mxu1 }
 0x117   :  { %v1632_v5 = vadd.f32 %v1631_v60, %v1569_v0  ;;  %v1962_v6 = vpack.c.bf16 %v747_v3, %v744_v61  ;;  %v1497_v7 = vadd.f32 %v1496_v63, %v747_v3  ;;  %v1570_v8 = vmul.f32 %v747_v3, %v747_v3  ;;  %v749_v9 = vpop.f32.mrb[15].mxu0  ;;  %v877_v10 = vpop.f32.mrb[15].mxu1 }
 0x118   :  { %v2042_v11 = vpack.c.bf16 %v2584_v4, %v2582_v62 }
 0x119   :  { %2106 = vst [vmem:[%s2854_s2 + $0x18] sm:$0xff] %v1962_v6   ;;  %v1633_v12 = vadd.f32 %v1632_v5, %v1570_v8 }
 0x11a   :  { %2122 = vst [vmem:[%s2854_s2 + $0x98] sm:$0xff] %v2042_v11  }
 0x11c   :  { %v752_v13 = vpop.f32.mrb[16].mxu0  ;;  %v2594_v14 = vpop.f32.mrb[16].mxu1 }
 0x11d   :  { %v1498_v15 = vadd.f32 %v1497_v7, %v752_v13  ;;  %v1571_v17 = vmul.f32 %v752_v13, %v752_v13  ;;  %v754_v18 = vpop.f32.mrb[17].mxu0  ;;  %v882_v19 = vpop.f32.mrb[17].mxu1 }
 0x11e   :  { %v755_v20 = vpop.f32.mrb[18].mxu0  ;;  %v2596_v22 = vpop.f32.mrb[18].mxu1 }
 0x11f   :  { %v1634_v23 = vadd.f32 %v1633_v12, %v1571_v17  ;;  %v1967_v24 = vpack.c.bf16 %v755_v20, %v752_v13  ;;  %v1499_v25 = vadd.f32 %v1498_v15, %v755_v20  ;;  %v1572_v26 = vmul.f32 %v755_v20, %v755_v20  ;;  %v757_v27 = vpop.f32.mrb[19].mxu0  ;;  %v885_v28 = vpop.f32.mrb[19].mxu1 }
 0x120   :  { %v2047_v29 = vpack.c.bf16 %v2596_v22, %v2594_v14 }
 0x121   :  { %2107 = vst [vmem:[%s2854_s2 + $0x20] sm:$0xff] %v1967_v24   ;;  %v1635_v31 = vadd.f32 %v1634_v23, %v1572_v26 }
 0x122   :  { %2123 = vst [vmem:[%s2854_s2 + $0xa0] sm:$0xff] %v2047_v29  }
 0x124   :  { %v760_v32 = vpop.f32.mrb[20].mxu0  ;;  %v2606_v33 = vpop.f32.mrb[20].mxu1 }
 0x125   :  { %v1500_v34 = vadd.f32 %v1499_v25, %v760_v32  ;;  %v1573_v35 = vmul.f32 %v760_v32, %v760_v32  ;;  %v762_v37 = vpop.f32.mrb[21].mxu0  ;;  %v890_v38 = vpop.f32.mrb[21].mxu1  ;;  %v2266_v25 = vmov 0.0  }
 0x126   :  { %v763_v39 = vpop.f32.mrb[22].mxu0  ;;  %v2608_v40 = vpop.f32.mrb[22].mxu1  ;;  %21 = vst [vmem:[%s2855_s3] sm:$0x1] %v2266_v25  ;;  %22 = vst [vmem:[%s2856_s4] sm:$0x1] %v2266_v25 }
 0x127   :  { %v1636_v41 = vadd.f32 %v1635_v31, %v1573_v35  ;;  %v1972_v42 = vpack.c.bf16 %v763_v39, %v760_v32  ;;  %v1501_v43 = vadd.f32 %v1500_v34, %v763_v39  ;;  %v1574_v44 = vmul.f32 %v763_v39, %v763_v39  ;;  %v765_v45 = vpop.f32.mrb[23].mxu0  ;;  %v893_v47 = vpop.f32.mrb[23].mxu1 }
 0x128   :  { %v2052_v48 = vpack.c.bf16 %v2608_v40, %v2606_v33 }
 0x129   :  { %2108 = vst [vmem:[%s2854_s2 + $0x28] sm:$0xff] %v1972_v42   ;;  %v1637_v49 = vadd.f32 %v1636_v41, %v1574_v44 }
 0x12a   :  { %2124 = vst [vmem:[%s2854_s2 + $0xa8] sm:$0xff] %v2052_v48  }
 0x12c   :  { %v768_v50 = vpop.f32.mrb[24].mxu0  ;;  %v2618_v51 = vpop.f32.mrb[24].mxu1 }
 0x12d   :  { %v1502_v53 = vadd.f32 %v1501_v43, %v768_v50  ;;  %v1575_v54 = vmul.f32 %v768_v50, %v768_v50  ;;  %v770_v55 = vpop.f32.mrb[25].mxu0  ;;  %v898_v56 = vpop.f32.mrb[25].mxu1 }
 0x12e   :  { %v771_v57 = vpop.f32.mrb[26].mxu0  ;;  %v2620_v58 = vpop.f32.mrb[26].mxu1 }
 0x12f   :  { %v1638_v59 = vadd.f32 %v1637_v49, %v1575_v54  ;;  %v1977_v60 = vpack.c.bf16 %v771_v57, %v768_v50  ;;  %v1503_v61 = vadd.f32 %v1502_v53, %v771_v57  ;;  %v1576_v63 = vmul.f32 %v771_v57, %v771_v57  ;;  %v773_v0 = vpop.f32.mrb[27].mxu0  ;;  %v901_v1 = vpop.f32.mrb[27].mxu1 }
 0x130   :  { %v2057_v2 = vpack.c.bf16 %v2620_v58, %v2618_v51 }
 0x131   :  { %2109 = vst [vmem:[%s2854_s2 + $0x30] sm:$0xff] %v1977_v60   ;;  %v1639_v3 = vadd.f32 %v1638_v59, %v1576_v63 }
 0x132   :  { %2125 = vst [vmem:[%s2854_s2 + $0xb0] sm:$0xff] %v2057_v2  }
 0x134   :  { %v776_v5 = vpop.f32.mrb[28].mxu0  ;;  %v2630_v6 = vpop.f32.mrb[28].mxu1 }
 0x135   :  { %v1504_v7 = vadd.f32 %v1503_v61, %v776_v5  ;;  %v1577_v8 = vmul.f32 %v776_v5, %v776_v5  ;;  %v778_v9 = vpop.f32.mrb[29].mxu0  ;;  %v906_v10 = vpop.f32.mrb[29].mxu1 }
 0x136   :  { %v779_v11 = vpop.f32.mrb[30].mxu0  ;;  %v2632_v12 = vpop.f32.mrb[30].mxu1 }
 0x137   :  { %v1640_v13 = vadd.f32 %v1639_v3, %v1577_v8  ;;  %v1982_v15 = vpack.c.bf16 %v779_v11, %v776_v5  ;;  %v1505_v17 = vadd.f32 %v1504_v7, %v779_v11  ;;  %v1578_v18 = vmul.f32 %v779_v11, %v779_v11  ;;  %v781_v19 = vpop.f32.mrb[31].mxu0  ;;  %v909_v20 = vpop.f32.mrb[31].mxu1 }
 0x138   :  { %v2062_v23 = vpack.c.bf16 %v2632_v12, %v2630_v6 }
 0x139   :  { %2110 = vst [vmem:[%s2854_s2 + $0x38] sm:$0xff] %v1982_v15   ;;  %v1641_v24 = vadd.f32 %v1640_v13, %v1578_v18 }
 0x13a   :  { %2126 = vst [vmem:[%s2854_s2 + $0xb8] sm:$0xff] %v2062_v23  }
 0x13c   :  { %v784_v26 = vpop.f32.mrb[32].mxu0  ;;  %v2648_v27 = vpop.f32.mrb[32].mxu1 }
 0x13d   :  { %v1506_v28 = vadd.f32 %v1505_v17, %v784_v26  ;;  %v1579_v29 = vmul.f32 %v784_v26, %v784_v26  ;;  %v786_v31 = vpop.f32.mrb[33].mxu0  ;;  %v914_v32 = vpop.f32.mrb[33].mxu1 }
 0x13e   :  { %v787_v34 = vpop.f32.mrb[34].mxu0  ;;  %v2650_v35 = vpop.f32.mrb[34].mxu1 }
 0x13f   :  { %v1642_v37 = vadd.f32 %v1641_v24, %v1579_v29  ;;  %v1987_v38 = vpack.c.bf16 %v787_v34, %v784_v26  ;;  %v1507_v39 = vadd.f32 %v1506_v28, %v787_v34  ;;  %v1580_v41 = vmul.f32 %v787_v34, %v787_v34  ;;  %v789_v42 = vpop.f32.mrb[35].mxu0  ;;  %v917_v43 = vpop.f32.mrb[35].mxu1 }
 0x140   :  { %v2067_v44 = vpack.c.bf16 %v2650_v35, %v2648_v27 }
 0x141   :  { %2111 = vst [vmem:[%s2854_s2 + $0x40] sm:$0xff] %v1987_v38   ;;  %v1643_v45 = vadd.f32 %v1642_v37, %v1580_v41 }
 0x142   :  { %2127 = vst [vmem:[%s2854_s2 + $0xc0] sm:$0xff] %v2067_v44  }
 0x144   :  { %v792_v47 = vpop.f32.mrb[36].mxu0  ;;  %v2660_v48 = vpop.f32.mrb[36].mxu1 }
 0x145   :  { %v1508_v49 = vadd.f32 %v1507_v39, %v792_v47  ;;  %v1581_v50 = vmul.f32 %v792_v47, %v792_v47  ;;  %v794_v53 = vpop.f32.mrb[37].mxu0  ;;  %v922_v54 = vpop.f32.mrb[37].mxu1 }
 0x146   :  { %v795_v55 = vpop.f32.mrb[38].mxu0  ;;  %v2662_v56 = vpop.f32.mrb[38].mxu1 }
 0x147   :  { %v1644_v57 = vadd.f32 %v1643_v45, %v1581_v50  ;;  %v1992_v59 = vpack.c.bf16 %v795_v55, %v792_v47  ;;  %v1509_v60 = vadd.f32 %v1508_v49, %v795_v55  ;;  %v1582_v61 = vmul.f32 %v795_v55, %v795_v55  ;;  %v797_v63 = vpop.f32.mrb[39].mxu0  ;;  %v925_v0 = vpop.f32.mrb[39].mxu1 }
 0x148   :  { %v2072_v1 = vpack.c.bf16 %v2662_v56, %v2660_v48 }
 0x149   :  { %2112 = vst [vmem:[%s2854_s2 + $0x48] sm:$0xff] %v1992_v59   ;;  %v1645_v2 = vadd.f32 %v1644_v57, %v1582_v61 }
 0x14a   :  { %2128 = vst [vmem:[%s2854_s2 + $0xc8] sm:$0xff] %v2072_v1  }
 0x14c   :  { %v800_v3 = vpop.f32.mrb[40].mxu0  ;;  %v2672_v5 = vpop.f32.mrb[40].mxu1 }
 0x14d   :  { %v1510_v7 = vadd.f32 %v1509_v60, %v800_v3  ;;  %v1583_v8 = vmul.f32 %v800_v3, %v800_v3  ;;  %v802_v9 = vpop.f32.mrb[41].mxu0  ;;  %v930_v10 = vpop.f32.mrb[41].mxu1 }
 0x14e   :  { %v803_v11 = vpop.f32.mrb[42].mxu0  ;;  %v2674_v13 = vpop.f32.mrb[42].mxu1 }
 0x14f   :  { %v1646_v15 = vadd.f32 %v1645_v2, %v1583_v8  ;;  %v1997_v17 = vpack.c.bf16 %v803_v11, %v800_v3  ;;  %v1511_v18 = vadd.f32 %v1510_v7, %v803_v11  ;;  %v1584_v19 = vmul.f32 %v803_v11, %v803_v11  ;;  %v805_v20 = vpop.f32.mrb[43].mxu0  ;;  %v933_v23 = vpop.f32.mrb[43].mxu1 }
 0x150   :  { %v2077_v24 = vpack.c.bf16 %v2674_v13, %v2672_v5 }
 0x151   :  { %2113 = vst [vmem:[%s2854_s2 + $0x50] sm:$0xff] %v1997_v17   ;;  %v1647_v25 = vadd.f32 %v1646_v15, %v1584_v19 }
 0x152   :  { %2129 = vst [vmem:[%s2854_s2 + $0xd0] sm:$0xff] %v2077_v24  }
 0x154   :  { %v808_v26 = vpop.f32.mrb[44].mxu0  ;;  %v2684_v28 = vpop.f32.mrb[44].mxu1 }
 0x155   :  { %v1512_v29 = vadd.f32 %v1511_v18, %v808_v26  ;;  %v1585_v31 = vmul.f32 %v808_v26, %v808_v26  ;;  %v810_v32 = vpop.f32.mrb[45].mxu0  ;;  %v938_v34 = vpop.f32.mrb[45].mxu1 }
 0x156   :  { %v811_v37 = vpop.f32.mrb[46].mxu0  ;;  %v2686_v38 = vpop.f32.mrb[46].mxu1 }
 0x157   :  { %v1648_v39 = vadd.f32 %v1647_v25, %v1585_v31  ;;  %v2002_v41 = vpack.c.bf16 %v811_v37, %v808_v26  ;;  %v1513_v42 = vadd.f32 %v1512_v29, %v811_v37  ;;  %v1586_v43 = vmul.f32 %v811_v37, %v811_v37  ;;  %v813_v44 = vpop.f32.mrb[47].mxu0  ;;  %v941_v45 = vpop.f32.mrb[47].mxu1 }
 0x158   :  { %v2082_v47 = vpack.c.bf16 %v2686_v38, %v2684_v28 }
 0x159   :  { %2114 = vst [vmem:[%s2854_s2 + $0x58] sm:$0xff] %v2002_v41   ;;  %v1649_v49 = vadd.f32 %v1648_v39, %v1586_v43 }
 0x15a   :  { %2130 = vst [vmem:[%s2854_s2 + $0xd8] sm:$0xff] %v2082_v47  }
 0x15c   :  { %v816_v50 = vpop.f32.mrb[48].mxu0  ;;  %v2696_v53 = vpop.f32.mrb[48].mxu1 }
 0x15d   :  { %v1514_v54 = vadd.f32 %v1513_v42, %v816_v50  ;;  %v1587_v55 = vmul.f32 %v816_v50, %v816_v50  ;;  %v818_v57 = vpop.f32.mrb[49].mxu0  ;;  %v946_v59 = vpop.f32.mrb[49].mxu1 }
 0x15e   :  { %v819_v60 = vpop.f32.mrb[50].mxu0  ;;  %v2698_v61 = vpop.f32.mrb[50].mxu1 }
 0x15f   :  { %v1650_v63 = vadd.f32 %v1649_v49, %v1587_v55  ;;  %v2007_v0 = vpack.c.bf16 %v819_v60, %v816_v50  ;;  %v1515_v1 = vadd.f32 %v1514_v54, %v819_v60  ;;  %v1588_v2 = vmul.f32 %v819_v60, %v819_v60  ;;  %v821_v3 = vpop.f32.mrb[51].mxu0  ;;  %v949_v7 = vpop.f32.mrb[51].mxu1 }
 0x160   :  { %v2087_v8 = vpack.c.bf16 %v2698_v61, %v2696_v53 }
 0x161   :  { %2115 = vst [vmem:[%s2854_s2 + $0x60] sm:$0xff] %v2007_v0   ;;  %v1651_v9 = vadd.f32 %v1650_v63, %v1588_v2 }
 0x162   :  { %2131 = vst [vmem:[%s2854_s2 + $0xe0] sm:$0xff] %v2087_v8  }
 0x164   :  { %v824_v10 = vpop.f32.mrb[52].mxu0  ;;  %v2708_v11 = vpop.f32.mrb[52].mxu1 }
 0x165   :  { %v1516_v15 = vadd.f32 %v1515_v1, %v824_v10  ;;  %v1589_v17 = vmul.f32 %v824_v10, %v824_v10  ;;  %v826_v18 = vpop.f32.mrb[53].mxu0  ;;  %v954_v19 = vpop.f32.mrb[53].mxu1 }
 0x166   :  { %v827_v20 = vpop.f32.mrb[54].mxu0  ;;  %v2710_v23 = vpop.f32.mrb[54].mxu1 }
 0x167   :  { %v1652_v24 = vadd.f32 %v1651_v9, %v1589_v17  ;;  %v2012_v25 = vpack.c.bf16 %v827_v20, %v824_v10  ;;  %v1517_v26 = vadd.f32 %v1516_v15, %v827_v20  ;;  %v1590_v29 = vmul.f32 %v827_v20, %v827_v20  ;;  %v829_v31 = vpop.f32.mrb[55].mxu0  ;;  %v957_v32 = vpop.f32.mrb[55].mxu1 }
 0x168   :  { %v2092_v34 = vpack.c.bf16 %v2710_v23, %v2708_v11 }
 0x169   :  { %2116 = vst [vmem:[%s2854_s2 + $0x68] sm:$0xff] %v2012_v25   ;;  %v1653_v37 = vadd.f32 %v1652_v24, %v1590_v29  ;;  %v1595_v29 = vmul.f32 %v2546_v16, %v2546_v16 }
 0x16a   :  { %2132 = vst [vmem:[%s2854_s2 + $0xe8] sm:$0xff] %v2092_v34   ;;  %v1596_v34 = vmul.f32 %v2548_v21, %v2548_v21 }
 0x16c   :  { %v832_v39 = vpop.f32.mrb[56].mxu0  ;;  %v2720_v41 = vpop.f32.mrb[56].mxu1 }
 0x16d   :  { %v1518_v42 = vadd.f32 %v1517_v26, %v832_v39  ;;  %v1591_v43 = vmul.f32 %v832_v39, %v832_v39  ;;  %v834_v44 = vpop.f32.mrb[57].mxu0  ;;  %v962_v45 = vpop.f32.mrb[57].mxu1 }
 0x16e   :  { %v835_v47 = vpop.f32.mrb[58].mxu0  ;;  %v2722_v49 = vpop.f32.mrb[58].mxu1 }
 0x16f   :  { %v1654_v50 = vadd.f32 %v1653_v37, %v1591_v43  ;;  %v2017_v54 = vpack.c.bf16 %v835_v47, %v832_v39  ;;  %v1519_v55 = vadd.f32 %v1518_v42, %v835_v47  ;;  %v1592_v57 = vmul.f32 %v835_v47, %v835_v47  ;;  %v837_v59 = vpop.f32.mrb[59].mxu0  ;;  %v965_v60 = vpop.f32.mrb[59].mxu1 }
 0x170   :  { %v2097_v63 = vpack.c.bf16 %v2722_v49, %v2720_v41  ;;  %v1597_v42 = vmul.f32 %v2558_v30, %v2558_v30 }
 0x171   :  { %2117 = vst [vmem:[%s2854_s2 + $0x70] sm:$0xff] %v2017_v54   ;;  %v1655_v0 = vadd.f32 %v1654_v50, %v1592_v57  ;;  %v1599_v50 = vmul.f32 %v2570_v46, %v2570_v46 }
 0x172   :  { %2133 = vst [vmem:[%s2854_s2 + $0xf0] sm:$0xff] %v2097_v63  }
 0x174   :  { %v840_v1 = vpop.f32.mrb[60].mxu0  ;;  %v2732_v2 = vpop.f32.mrb[60].mxu1 }
 0x175   :  { %v1520_v3 = vadd.f32 %v1519_v55, %v840_v1  ;;  %v1593_v7 = vmul.f32 %v840_v1, %v840_v1  ;;  %v842_v8 = vpop.f32.mrb[61].mxu0  ;;  %v970_v9 = vpop.f32.mrb[61].mxu1 }
 0x176   :  { %v843_v10 = vpop.f32.mrb[62].mxu0  ;;  %v2734_v15 = vpop.f32.mrb[62].mxu1 }
 0x177   :  { %v1656_v17 = vadd.f32 %v1655_v0, %v1593_v7  ;;  %v2022_v18 = vpack.c.bf16 %v843_v10, %v840_v1  ;;  %v1521_v19 = vadd.f32 %v1520_v3, %v843_v10  ;;  %v1594_v20 = vmul.f32 %v843_v10, %v843_v10  ;;  %v845_v24 = vpop.f32.mrb[63].mxu0  ;;  %v973_v25 = vpop.f32.mrb[63].mxu1 }
 0x178   :  { %v2102_v26 = vpack.c.bf16 %v2734_v15, %v2732_v2 }
 0x179   :  { %2118 = vst [vmem:[%s2854_s2 + $0x78] sm:$0xff] %v2022_v18   ;;  %v1522_v31 = vadd.f32 %v1521_v19, %v2546_v16  ;;  %v1657_v32 = vadd.f32 %v1656_v17, %v1594_v20  ;;  %v1598_v16 = vmul.f32 %v2560_v36, %v2560_v36 }
 0x17a   :  { %2134 = vst [vmem:[%s2854_s2 + $0xf8] sm:$0xff] %v2102_v26  }
 0x17b   :  { %v1523_v37 = vadd.f32 %v1522_v31, %v2548_v21  ;;  %v1658_v39 = vadd.f32 %v1657_v32, %v1595_v29  ;;  %v1600_v21 = vmul.f32 %v2572_v52, %v2572_v52 }
 0x17d   :  { %v1524_v43 = vadd.f32 %v1523_v37, %v2558_v30  ;;  %v1659_v44 = vadd.f32 %v1658_v39, %v1596_v34  ;;  %v1601_v30 = vmul.f32 %v2582_v62, %v2582_v62  ;;  %v1611_v37 = vmul.f32 %v2648_v27, %v2648_v27 }
 0x17f   :  { %v1525_v45 = vadd.f32 %v1524_v43, %v2560_v36  ;;  %v1660_v47 = vadd.f32 %v1659_v44, %v1597_v42  ;;  %v1602_v36 = vmul.f32 %v2584_v4, %v2584_v4  ;;  %v1612_v43 = vmul.f32 %v2650_v35, %v2650_v35 }
 0x181   :  { %v1526_v54 = vadd.f32 %v1525_v45, %v2570_v46  ;;  %v1661_v55 = vadd.f32 %v1660_v47, %v1598_v16  ;;  %v1603_v46 = vmul.f32 %v2594_v14, %v2594_v14  ;;  %v1613_v16 = vmul.f32 %v2660_v48, %v2660_v48 }
 0x182   :  { %v1614_v47 = vmul.f32 %v2662_v56, %v2662_v56 }
 0x183   :  { %v1527_v57 = vadd.f32 %v1526_v54, %v2572_v52  ;;  %v1662_v59 = vadd.f32 %v1661_v55, %v1599_v50  ;;  %v1604_v52 = vmul.f32 %v2596_v22, %v2596_v22  ;;  %v1615_v54 = vmul.f32 %v2672_v5, %v2672_v5 }
 0x185   :  { %v1528_v60 = vadd.f32 %v1527_v57, %v2582_v62  ;;  %v1663_v63 = vadd.f32 %v1662_v59, %v1600_v21  ;;  %v1605_v62 = vmul.f32 %v2606_v33, %v2606_v33  ;;  %v1616_v21 = vmul.f32 %v2674_v13, %v2674_v13 }
 0x186   :  { %v1617_v59 = vmul.f32 %v2684_v28, %v2684_v28 }
 0x187   :  { %v1529_v0 = vadd.f32 %v1528_v60, %v2584_v4  ;;  %v1664_v1 = vadd.f32 %v1663_v63, %v1601_v30  ;;  %v1606_v4 = vmul.f32 %v2608_v40, %v2608_v40  ;;  %v1618_v60 = vmul.f32 %v2686_v38, %v2686_v38 }
 0x189   :  { %v1665_v3 = vadd.f32 %v1664_v1, %v1602_v36  ;;  %v1530_v7 = vadd.f32 %v1529_v0, %v2594_v14  ;;  %v1607_v14 = vmul.f32 %v2618_v51, %v2618_v51  ;;  %v1619_v36 = vmul.f32 %v2696_v53, %v2696_v53 }
 0x18a   :  { %v1620_v1 = vmul.f32 %v2698_v61, %v2698_v61 }
 0x18b   :  { %v1531_v8 = vadd.f32 %v1530_v7, %v2596_v22  ;;  %v1666_v9 = vadd.f32 %v1665_v3, %v1603_v46  ;;  %v1608_v22 = vmul.f32 %v2620_v58, %v2620_v58  ;;  %v1621_v3 = vmul.f32 %v2708_v11, %v2708_v11 }
 0x18d   :  { %v1532_v10 = vadd.f32 %v1531_v8, %v2606_v33  ;;  %v1667_v17 = vadd.f32 %v1666_v9, %v1604_v52  ;;  %v1609_v33 = vmul.f32 %v2630_v6, %v2630_v6  ;;  %v1622_v52 = vmul.f32 %v2710_v23, %v2710_v23 }
 0x18e   :  { %v1623_v9 = vmul.f32 %v2720_v41, %v2720_v41 }
 0x18f   :  { %v1533_v18 = vadd.f32 %v1532_v10, %v2608_v40  ;;  %v1668_v19 = vadd.f32 %v1667_v17, %v1605_v62  ;;  %v1610_v40 = vmul.f32 %v2632_v12, %v2632_v12  ;;  %v1624_v10 = vmul.f32 %v2722_v49, %v2722_v49 }
 0x191   :  { %v1534_v20 = vadd.f32 %v1533_v18, %v2618_v51  ;;  %v1669_v24 = vadd.f32 %v1668_v19, %v1606_v4  ;;  %v1626_v19 = vmul.f32 %v2734_v15, %v2734_v15 }
 0x193   :  { %v1535_v25 = vadd.f32 %v1534_v20, %v2620_v58  ;;  %v1670_v26 = vadd.f32 %v1669_v24, %v1607_v14 }
 0x195   :  { %v1536_v29 = vadd.f32 %v1535_v25, %v2630_v6  ;;  %v1671_v31 = vadd.f32 %v1670_v26, %v1608_v22 }
 0x197   :  { %v1537_v32 = vadd.f32 %v1536_v29, %v2632_v12  ;;  %v1672_v34 = vadd.f32 %v1671_v31, %v1609_v33 }
 0x199   :  { %v1538_v51 = vadd.f32 %v1537_v32, %v2648_v27  ;;  %v1673_v39 = vadd.f32 %v1672_v34, %v1610_v40 }
 0x19b   :  { %v1674_v58 = vadd.f32 %v1673_v39, %v1611_v37  ;;  %v1539_v42 = vadd.f32 %v1538_v51, %v2650_v35 }
 0x19d   :  { %v1675_v6 = vadd.f32 %v1674_v58, %v1612_v43  ;;  %v1540_v44 = vadd.f32 %v1539_v42, %v2660_v48 }
 0x19f   :  { %v1676_v12 = vadd.f32 %v1675_v6, %v1613_v16  ;;  %v1541_v45 = vadd.f32 %v1540_v44, %v2662_v56 }
 0x1a1   :  { %v1677_v27 = vadd.f32 %v1676_v12, %v1614_v47  ;;  %v1542_v50 = vadd.f32 %v1541_v45, %v2672_v5 }
 0x1a3   :  { %v1678_v55 = vadd.f32 %v1677_v27, %v1615_v54  ;;  %v1543_v35 = vadd.f32 %v1542_v50, %v2674_v13 }
 0x1a5   :  { %v1679_v57 = vadd.f32 %v1678_v55, %v1616_v21  ;;  %v1544_v48 = vadd.f32 %v1543_v35, %v2684_v28 }
 0x1a7   :  { %v1680_v30 = vadd.f32 %v1679_v57, %v1617_v59  ;;  %v1545_v56 = vadd.f32 %v1544_v48, %v2686_v38 }
 0x1a9   :  { %v1681_v63 = vadd.f32 %v1680_v30, %v1618_v60  ;;  %v1546_v5 = vadd.f32 %v1545_v56, %v2696_v53 }
 0x1ab   :  { %v1682_v0 = vadd.f32 %v1681_v63, %v1619_v36  ;;  %v1547_v13 = vadd.f32 %v1546_v5, %v2698_v61 }
 0x1ad   :  { %v1683_v46 = vadd.f32 %v1682_v0, %v1620_v1  ;;  %v1548_v28 = vadd.f32 %v1547_v13, %v2708_v11  ;;  %v1625_v11 = vmul.f32 %v2732_v2, %v2732_v2 }
 0x1af   :  { %v1684_v7 = vadd.f32 %v1683_v46, %v1621_v3  ;;  %v1549_v38 = vadd.f32 %v1548_v28, %v2710_v23 }
 0x1b1   :  { %v1685_v8 = vadd.f32 %v1684_v7, %v1622_v52  ;;  %v1550_v53 = vadd.f32 %v1549_v38, %v2720_v41 }
 0x1b3   :  { %v1686_v62 = vadd.f32 %v1685_v8, %v1623_v9  ;;  %v1551_v61 = vadd.f32 %v1550_v53, %v2722_v49 }
 0x1b5   :  { %v1687_v17 = vadd.f32 %v1686_v62, %v1624_v10  ;;  %v1552_v4 = vadd.f32 %v1551_v61, %v2732_v2  ;;  %v1490_v2 = vld [vmem:[%s2855_s3] sm:$0x1] }
 0x1b7   :  { %v1688_v18 = vadd.f32 %v1687_v17, %v1625_v11  ;;  %v1553_v23 = vadd.f32 %v1552_v4, %v2734_v15  ;;  %v1562_v15 = vld [vmem:[%s2856_s4] sm:$0x1] }
 0x1b9   :  { %v1554_v14 = vrot.slane %v1553_v23, 4  ;;  %v1689_v41 = vadd.f32 %v1688_v18, %v1626_v19 }
 0x1bb   :  { %v1555_v20 = vadd.f32 %v1554_v14, %v1553_v23  ;;  %v1690_v24 = vrot.slane %v1689_v41, 4 }
 0x1bd   :  { %v1556_v22 = vrot.slane %v1555_v20, 2  ;;  %v1691_v25 = vadd.f32 %v1690_v24, %v1689_v41 }
 0x1bf   :  { %v1557_v26 = vadd.f32 %v1556_v22, %v1555_v20  ;;  %v1692_v49 = vrot.slane %v1691_v25, 2 }
 0x1c1   :  { %v1558_v33 = vrot.slane %v1557_v26, 1  ;;  %v1693_v29 = vadd.f32 %v1692_v49, %v1691_v25 }
 0x1c3   :  { %v1559_v31 = vadd.f32 %v1558_v33, %v1557_v26  ;;  %v1694_v40 = vrot.slane %v1693_v29, 1 }
 0x1c5   :  { %v1560_v32 = vadd.f32 %v1559_v31, %v1490_v2  ;;  %v1695_v34 = vadd.f32 %v1694_v40, %v1693_v29 }
 0x1c7   :  { %1561 = vst [vmem:[%s2855_s3] sm:$0x1] %v1560_v32  ;;  %v1696_v51 = vadd.f32 %v1695_v34, %v1562_v15 }
 0x1c9   :  { %1697 = vst [vmem:[%s2856_s4] sm:$0x1] %v1696_v51 }

// kernel: encoder_forward.14
= control target key start
LH: loop header
LB: loop body
LE: loop exit
PB: predicated region body
PF: predicated region fallthrough
CT: control target
= control target key end

     0   :  { %vm150_vm0 = vcmask 588800   ;;  %vm175_vm1 = vcmask 1043456   ;;  %v648_v14 = vmov 0.0   ;;  %s763_s1 = inlined_call_operand.vmem [shape: bf16[72,128], index: 1, kind: input, shape index: {}]   ;;  %s764_s0 = inlined_call_operand.vmem [shape: bf16[128,72], index: 0, kind: input, shape index: {}]   ;;  %s765_s3 = inlined_call_operand.vmem [shape: f32[1,128], index: 3, kind: output, shape index: {1}]   ;;  %s766_s4 = inlined_call_operand.vmem [shape: f32[1,128], index: 4, kind: output, shape index: {2}]   ;;  %s767_s2 = inlined_call_operand.vmem [shape: bf16[128,128], index: 2, kind: output, shape index: {0}]  }
   0x1   :  { %v635_v0 = vld [vmem:[%s763_s1] sm:$0xff]   ;;  %v636_v1 = vld [vmem:[%s763_s1 + $0x8] sm:$0xff]   ;;  %v637_v2 = vld [vmem:[%s763_s1 + $0x10] sm:$0xff]   ;;  %21 = vst [vmem:[%s765_s3] sm:$0x1] %v648_v14 }
   0x2   :  { %596 = vmatprep.subr.bf16.mxu0 %v635_v0  ;;  %622 = vmatprep.subr.bf16.mxu1 %v635_v0  ;;  %v640_v3 = vld [vmem:[%s764_s0] sm:$0xff]   ;;  %v638_v4 = vld [vmem:[%s763_s1 + $0x18] sm:$0xff]   ;;  %v641_v8 = vld [vmem:[%s764_s0 + $0x8] sm:$0xff]   ;;  %22 = vst [vmem:[%s766_s4] sm:$0x1] %v648_v14 }
   0x3   :  { %597 = vmatpush3.bf16.msra.mxu0 %v635_v0  ;;  %627 = vmatpush3.bf16.msra.mxu1 %v635_v0  ;;  %v644_v5 = vld [vmem:[%s764_s0 + $0x20] sm:$0xff]   ;;  %v645_v9 = vld [vmem:[%s764_s0 + $0x28] sm:$0xff]   ;;  %v642_v10 = vld [vmem:[%s764_s0 + $0x10] sm:$0xff]  }
   0x4   :  { %598 = vmatprep.subr.bf16.mxu0 %v636_v1  ;;  %623 = vmatprep.subr.bf16.mxu1 %v636_v1  ;;  %v639_v6 = vld [vmem:[%s763_s1 + $0x20] ss:$0 sps:$4 sm:$0xff]   ;;  %v646_v11 = vld [vmem:[%s764_s0 + $0x30] sm:$0xff]   ;;  %v643_v12 = vld [vmem:[%s764_s0 + $0x18] sm:$0xff]  }
   0x5   :  { %606 = vmatprep.mubr.msk.bf16.mxu0 %vm150_vm0, %v640_v3  ;;  %614 = vmatprep.mubr.msk.bf16.mxu1 %vm150_vm0, %v644_v5  ;;  %v177_v7 = vsel %vm175_vm1, %v639_v6, 0  ;;  %v647_v13 = vld [vmem:[%s764_s0 + $0x38] sm:$0xff]  }
   0x7   :  { %599 = vmatpush3.bf16.msra.mxu0 %v636_v1  ;;  %628 = vmatpush3.bf16.msra.mxu1 %v636_v1 }
   0x8   :  { %600 = vmatprep.subr.bf16.mxu0 %v637_v2  ;;  %624 = vmatprep.subr.bf16.mxu1 %v637_v2 }
   0xb   :  { %601 = vmatpush3.bf16.msra.mxu0 %v637_v2  ;;  %629 = vmatpush3.bf16.msra.mxu1 %v637_v2 }
   0xc   :  { %602 = vmatprep.subr.bf16.mxu0 %v638_v4  ;;  %625 = vmatprep.subr.bf16.mxu1 %v638_v4 }
   0xf   :  { %603 = vmatpush3.bf16.msra.mxu0 %v638_v4  ;;  %630 = vmatpush3.bf16.msra.mxu1 %v638_v4 }
  0x10   :  { %632 = vmatprep.subr.msk.bf16.mxu0 %vm175_vm1, %v639_v6  ;;  %633 = vmatprep.subr.msk.bf16.mxu1 %vm175_vm1, %v639_v6 }
  0x13   :  { %605 = vmatpush3.bf16.msra.mxu0 %v177_v7  ;;  %631 = vmatpush3.bf16.msra.mxu1 %v177_v7 }
  0x16   :  { %607 = vmatmul.mubr.msk.bf16.vlgmr.msra.gmra.mrb[0].mxu0 %vm150_vm0, %v641_v8  ;;  %615 = vmatmul.mubr.msk.bf16.vlgmr.msra.gmra.mrb[0].mxu1 %vm150_vm0, %v645_v9 }
  0x17   :  { %610 = vmatprep.mubr.msk.bf16.mxu0 %vm150_vm0, %v642_v10  ;;  %618 = vmatprep.mubr.msk.bf16.mxu1 %vm150_vm0, %v646_v11 }
  0x1e   :  { %611 = vmatmul.mubr.msk.bf16.gmra.mrb[4].mxu0 %vm150_vm0, %v643_v12  ;;  %619 = vmatmul.mubr.msk.bf16.gmra.mrb[4].mxu1 %vm150_vm0, %v647_v13 }
  0xe9   :  { %v608_v15 = vpop.f32.mrb[0].mxu0  ;;  %v616_v16 = vpop.f32.mrb[0].mxu1 }
  0xea   :  { %v213_v17 = vpop.f32.mrb[1].mxu0  ;;  %v245_v18 = vpop.f32.mrb[1].mxu1  ;;  %v434_v30 = vmul.f32 %v608_v15, %v608_v15  ;;  %v442_v2 = vmul.f32 %v616_v16, %v616_v16 }
  0xeb   :  { %v609_v19 = vpop.f32.mrb[2].mxu0  ;;  %v617_v20 = vpop.f32.mrb[2].mxu1  ;;  %v432_v21 = vmul.f32 %v213_v17, %v213_v17  ;;  %v440_v60 = vmul.f32 %v245_v18, %v245_v18 }
  0xec   :  { %v544_v22 = vpack.c.bf16 %v609_v19, %v608_v15  ;;  %v216_v23 = vpop.f32.mrb[3].mxu0  ;;  %v564_v24 = vpack.c.bf16 %v617_v20, %v616_v16  ;;  %v248_v25 = vpop.f32.mrb[3].mxu1  ;;  %v435_v33 = vmul.f32 %v609_v19, %v609_v19  ;;  %v443_v5 = vmul.f32 %v617_v20, %v617_v20 }
  0xed   :  { %v539_v26 = vpack.c.bf16 %v216_v23, %v213_v17  ;;  %v408_v27 = vadd.f32 %v216_v23, %v213_v17  ;;  %v433_v28 = vmul.f32 %v216_v23, %v216_v23  ;;  %v559_v29 = vpack.c.bf16 %v248_v25, %v245_v18 }
  0xee   :  { %576 = vst [vmem:[%s767_s2 + $0x8] sm:$0xff] %v544_v22   ;;  %580 = vst [vmem:[%s767_s2 + $0x28] sm:$0xff] %v564_v24   ;;  %v441_v1 = vmul.f32 %v248_v25, %v248_v25 }
  0xef   :  { %540 = vst [vmem:[%s767_s2] sm:$0xff] %v539_v26   ;;  %v409_v31 = vadd.f32 %v608_v15, %v408_v27  ;;  %v448_v32 = vadd.f32 %v433_v28, %v432_v21  ;;  %579 = vst [vmem:[%s767_s2 + $0x20] sm:$0xff] %v559_v29  }
  0xf1   :  { %v449_v34 = vadd.f32 %v448_v32, %v434_v30  ;;  %v612_v35 = vpop.f32.mrb[4].mxu0  ;;  %v410_v36 = vadd.f32 %v609_v19, %v409_v31  ;;  %v620_v37 = vpop.f32.mrb[4].mxu1  ;;  %v407_v30 = vld [vmem:[%s765_s3] sm:$0x1] }
  0xf2   :  { %v229_v38 = vpop.f32.mrb[5].mxu0  ;;  %v261_v39 = vpop.f32.mrb[5].mxu1  ;;  %v438_v54 = vmul.f32 %v612_v35, %v612_v35  ;;  %v446_v14 = vmul.f32 %v620_v37, %v620_v37 }
  0xf3   :  { %v411_v40 = vadd.f32 %v410_v36, %v229_v38  ;;  %v436_v41 = vmul.f32 %v229_v38, %v229_v38  ;;  %v450_v42 = vadd.f32 %v449_v34, %v435_v33  ;;  %v613_v43 = vpop.f32.mrb[6].mxu0  ;;  %v621_v44 = vpop.f32.mrb[6].mxu1  ;;  %v444_v8 = vmul.f32 %v261_v39, %v261_v39  ;;  %v431_v33 = vld [vmem:[%s766_s4] sm:$0x1] }
  0xf4   :  { %v554_v45 = vpack.c.bf16 %v613_v43, %v612_v35  ;;  %v232_v46 = vpop.f32.mrb[7].mxu0  ;;  %v574_v47 = vpack.c.bf16 %v621_v44, %v620_v37  ;;  %v264_v48 = vpop.f32.mrb[7].mxu1  ;;  %v439_v57 = vmul.f32 %v613_v43, %v613_v43 }
  0xf5   :  { %v451_v49 = vadd.f32 %v450_v42, %v436_v41  ;;  %v549_v50 = vpack.c.bf16 %v232_v46, %v229_v38  ;;  %v412_v51 = vadd.f32 %v411_v40, %v232_v46  ;;  %v437_v52 = vmul.f32 %v232_v46, %v232_v46 }
  0xf6   :  { %578 = vst [vmem:[%s767_s2 + $0x18] sm:$0xff] %v554_v45   ;;  %582 = vst [vmem:[%s767_s2 + $0x38] sm:$0xff] %v574_v47   ;;  %v569_v53 = vpack.c.bf16 %v264_v48, %v261_v39  ;;  %v445_v13 = vmul.f32 %v264_v48, %v264_v48 }
  0xf7   :  { %577 = vst [vmem:[%s767_s2 + $0x10] sm:$0xff] %v549_v50   ;;  %v413_v55 = vadd.f32 %v612_v35, %v412_v51  ;;  %v452_v56 = vadd.f32 %v451_v49, %v437_v52 }
  0xf8   :  { %581 = vst [vmem:[%s767_s2 + $0x30] sm:$0xff] %v569_v53  }
  0xf9   :  { %v453_v58 = vadd.f32 %v452_v56, %v438_v54  ;;  %v414_v59 = vadd.f32 %v613_v43, %v413_v55 }
  0xfb   :  { %v415_v61 = vadd.f32 %v414_v59, %v245_v18  ;;  %v454_v62 = vadd.f32 %v453_v58, %v439_v57  ;;  %v447_v18 = vmul.f32 %v621_v44, %v621_v44 }
  0xfd   :  { %v455_v63 = vadd.f32 %v454_v62, %v440_v60  ;;  %v416_v0 = vadd.f32 %v415_v61, %v248_v25 }
  0xff   :  { %v417_v3 = vadd.f32 %v616_v16, %v416_v0  ;;  %v456_v4 = vadd.f32 %v455_v63, %v441_v1 }
 0x101   :  { %v457_v6 = vadd.f32 %v456_v4, %v442_v2  ;;  %v418_v7 = vadd.f32 %v617_v20, %v417_v3 }
 0x103   :  { %v419_v9 = vadd.f32 %v418_v7, %v261_v39  ;;  %v458_v10 = vadd.f32 %v457_v6, %v443_v5 }
 0x105   :  { %v459_v11 = vadd.f32 %v458_v10, %v444_v8  ;;  %v420_v12 = vadd.f32 %v419_v9, %v264_v48 }
 0x107   :  { %v421_v15 = vadd.f32 %v620_v37, %v420_v12  ;;  %v460_v17 = vadd.f32 %v459_v11, %v445_v13 }
 0x109   :  { %v422_v19 = vadd.f32 %v621_v44, %v421_v15  ;;  %v461_v21 = vadd.f32 %v460_v17, %v446_v14 }
 0x10b   :  { %v423_v22 = vrot.slane %v422_v19, 4  ;;  %v462_v23 = vadd.f32 %v461_v21, %v447_v18 }
 0x10d   :  { %v424_v24 = vadd.f32 %v423_v22, %v422_v19  ;;  %v463_v16 = vrot.slane %v462_v23, 4 }
 0x10f   :  { %v425_v25 = vrot.slane %v424_v24, 2  ;;  %v464_v26 = vadd.f32 %v463_v16, %v462_v23 }
 0x111   :  { %v426_v27 = vadd.f32 %v425_v25, %v424_v24  ;;  %v465_v20 = vrot.slane %v464_v26, 2 }
 0x113   :  { %v427_v28 = vrot.slane %v426_v27, 1  ;;  %v466_v29 = vadd.f32 %v465_v20, %v464_v26 }
 0x115   :  { %v428_v31 = vadd.f32 %v427_v28, %v426_v27  ;;  %v467_v32 = vrot.slane %v466_v29, 1 }
 0x117   :  { %v429_v34 = vadd.f32 %v428_v31, %v407_v30  ;;  %v468_v35 = vadd.f32 %v467_v32, %v466_v29 }
 0x119   :  { %430 = vst [vmem:[%s765_s3] sm:$0x1] %v429_v34  ;;  %v469_v36 = vadd.f32 %v468_v35, %v431_v33 }
 0x11b   :  { %470 = vst [vmem:[%s766_s4] sm:$0x1] %v469_v36 }

// kernel: encoder_forward.15
= control target key start
LH: loop header
LB: loop body
LE: loop exit
PB: predicated region body
PF: predicated region fallthrough
CT: control target
= control target key end

     0   :  { %s422_s0 = inlined_call_operand.vmem [shape: bf16[128,128], index: 0, kind: input, shape index: {}]   ;;  %s423_s1 = inlined_call_operand.vmem [shape: f32[1,128], index: 1, kind: input, shape index: {}]   ;;  %s424_s2 = inlined_call_operand.vmem [shape: f32[1,128], index: 2, kind: input, shape index: {}]   ;;  %s425_s3 = inlined_call_operand.vmem [shape: bf16[128,128], index: 3, kind: output, shape index: {}]  }
   0x1   :  { %v227_v0 = vld [vmem:[%s422_s0] sm:$0xff]   ;;  %v298_v4 = vld [vmem:[%s422_s0 + $0x8] sm:$0xff]   ;;  %v299_v5 = vld [vmem:[%s422_s0 + $0x10] sm:$0xff]  }
   0x2   :  { %v338_v1 = vld [vmem:[%s423_s1] ss:$0 sm:$0xff]  ;;  %v228_v2 = vunpack.c.l.bf16 %v227_v0  ;;  %v229_v3 = vunpack.c.h.bf16 %v227_v0  ;;  %v300_v6 = vld [vmem:[%s422_s0 + $0x18] sm:$0xff]   ;;  %v232_v8 = vunpack.c.l.bf16 %v298_v4  ;;  %v233_v9 = vunpack.c.h.bf16 %v298_v4  ;;  %v302_v33 = vld [vmem:[%s422_s0 + $0x28] sm:$0xff]  }
   0x3   :  { %v352_v7 = vld [vmem:[%s424_s2] ss:$0 sm:$0xff]  ;;  %v236_v10 = vunpack.c.l.bf16 %v299_v5  ;;  %v237_v11 = vunpack.c.h.bf16 %v299_v5  ;;  %v240_v14 = vunpack.c.l.bf16 %v300_v6  ;;  %v241_v15 = vunpack.c.h.bf16 %v300_v6  ;;  %v303_v38 = vld [vmem:[%s422_s0 + $0x30] sm:$0xff]   ;;  %v304_v43 = vld [vmem:[%s422_s0 + $0x38] sm:$0xff]  }
   0x4   :  { %v53_v12 = vmul.f32 %v228_v2, %v338_v1  ;;  %v54_v13 = vmul.f32 %v229_v3, %v338_v1  ;;  %v55_v16 = vmul.f32 %v232_v8, %v338_v1  ;;  %v56_v17 = vmul.f32 %v233_v9, %v338_v1  ;;  %v301_v28 = vld [vmem:[%s422_s0 + $0x20] sm:$0xff]  }
   0x5   :  { %v57_v18 = vmul.f32 %v236_v10, %v338_v1  ;;  %v58_v19 = vmul.f32 %v237_v11, %v338_v1  ;;  %v59_v22 = vmul.f32 %v240_v14, %v338_v1  ;;  %v60_v23 = vmul.f32 %v241_v15, %v338_v1 }
   0x6   :  { %v76_v20 = vadd.f32 %v352_v7, %v53_v12  ;;  %v77_v21 = vadd.f32 %v352_v7, %v54_v13  ;;  %v78_v24 = vadd.f32 %v352_v7, %v55_v16  ;;  %v79_v25 = vadd.f32 %v352_v7, %v56_v17 }
   0x7   :  { %v80_v26 = vadd.f32 %v352_v7, %v57_v18  ;;  %v81_v27 = vadd.f32 %v352_v7, %v58_v19  ;;  %v82_v31 = vadd.f32 %v352_v7, %v59_v22  ;;  %v83_v32 = vadd.f32 %v352_v7, %v60_v23 }
   0x8   :  { %v92_v29 = vmax.f32 %v76_v20, 0.0  ;;  %v93_v30 = vmax.f32 %v77_v21, 0.0  ;;  %v94_v34 = vmax.f32 %v78_v24, 0.0  ;;  %v95_v35 = vmax.f32 %v79_v25, 0.0 }
   0x9   :  { %v96_v36 = vmax.f32 %v80_v26, 0.0  ;;  %v97_v37 = vmax.f32 %v81_v27, 0.0  ;;  %v98_v40 = vmax.f32 %v82_v31, 0.0  ;;  %v99_v41 = vmax.f32 %v83_v32, 0.0 }
   0xa   :  { %v261_v39 = vpack.c.bf16 %v93_v30, %v92_v29  ;;  %v244_v42 = vunpack.c.l.bf16 %v301_v28  ;;  %v266_v44 = vpack.c.bf16 %v95_v35, %v94_v34  ;;  %v245_v46 = vunpack.c.h.bf16 %v301_v28 }
   0xb   :  { %v271_v45 = vpack.c.bf16 %v97_v37, %v96_v36  ;;  %v248_v47 = vunpack.c.l.bf16 %v302_v33  ;;  %v276_v48 = vpack.c.bf16 %v99_v41, %v98_v40  ;;  %v249_v50 = vunpack.c.h.bf16 %v302_v33 }
   0xc   :  { %262 = vst [vmem:[%s425_s3] sm:$0xff] %v261_v39   ;;  %v61_v49 = vmul.f32 %v244_v42, %v338_v1  ;;  %v252_v51 = vunpack.c.l.bf16 %v303_v38  ;;  %305 = vst [vmem:[%s425_s3 + $0x8] sm:$0xff] %v266_v44   ;;  %v62_v52 = vmul.f32 %v245_v46, %v338_v1  ;;  %v253_v54 = vunpack.c.h.bf16 %v303_v38 }
   0xd   :  { %306 = vst [vmem:[%s425_s3 + $0x10] sm:$0xff] %v271_v45   ;;  %v63_v53 = vmul.f32 %v248_v47, %v338_v1  ;;  %v256_v55 = vunpack.c.l.bf16 %v304_v43  ;;  %307 = vst [vmem:[%s425_s3 + $0x18] sm:$0xff] %v276_v48   ;;  %v64_v57 = vmul.f32 %v249_v50, %v338_v1  ;;  %v257_v59 = vunpack.c.h.bf16 %v304_v43 }
   0xe   :  { %v84_v56 = vadd.f32 %v352_v7, %v61_v49  ;;  %v65_v58 = vmul.f32 %v252_v51, %v338_v1  ;;  %v85_v60 = vadd.f32 %v352_v7, %v62_v52  ;;  %v66_v62 = vmul.f32 %v253_v54, %v338_v1 }
   0xf   :  { %v86_v61 = vadd.f32 %v352_v7, %v63_v53  ;;  %v67_v63 = vmul.f32 %v256_v55, %v338_v1  ;;  %v87_v2 = vadd.f32 %v352_v7, %v64_v57  ;;  %v68_v4 = vmul.f32 %v257_v59, %v338_v1 }
  0x10   :  { %v100_v0 = vmax.f32 %v84_v56, 0.0  ;;  %v88_v3 = vadd.f32 %v352_v7, %v65_v58  ;;  %v101_v5 = vmax.f32 %v85_v60, 0.0  ;;  %v89_v8 = vadd.f32 %v352_v7, %v66_v62 }
  0x11   :  { %v102_v6 = vmax.f32 %v86_v61, 0.0  ;;  %v90_v9 = vadd.f32 %v352_v7, %v67_v63  ;;  %v103_v10 = vmax.f32 %v87_v2, 0.0  ;;  %v91_v12 = vadd.f32 %v352_v7, %v68_v4 }
  0x12   :  { %v104_v11 = vmax.f32 %v88_v3, 0.0  ;;  %v281_v13 = vpack.c.bf16 %v101_v5, %v100_v0  ;;  %v105_v14 = vmax.f32 %v89_v8, 0.0 }
  0x13   :  { %v106_v15 = vmax.f32 %v90_v9, 0.0  ;;  %v286_v16 = vpack.c.bf16 %v103_v10, %v102_v6  ;;  %v107_v17 = vmax.f32 %v91_v12, 0.0 }
  0x14   :  { %308 = vst [vmem:[%s425_s3 + $0x20] sm:$0xff] %v281_v13   ;;  %v291_v1 = vpack.c.bf16 %v105_v14, %v104_v11 }
  0x15   :  { %309 = vst [vmem:[%s425_s3 + $0x28] sm:$0xff] %v286_v16   ;;  %v296_v18 = vpack.c.bf16 %v107_v17, %v106_v15 }
  0x16   :  { %310 = vst [vmem:[%s425_s3 + $0x30] sm:$0xff] %v291_v1  }
  0x17   :  { %311 = vst [vmem:[%s425_s3 + $0x38] sm:$0xff] %v296_v18  }

// kernel: encoder_forward.17
= control target key start
LH: loop header
LB: loop body
LE: loop exit
PB: predicated region body
PF: predicated region fallthrough
CT: control target
= control target key end

     0   :  { %s140_s0 = inlined_call_operand.vmem [shape: bf16[32,128], index: 0, kind: input, shape index: {}]   ;;  %s141_s1 = inlined_call_operand.vmem [shape: f32[1,128], index: 1, kind: input, shape index: {}]   ;;  %s142_s2 = inlined_call_operand.vmem [shape: f32[1,128], index: 2, kind: input, shape index: {}]   ;;  %s143_s3 = inlined_call_operand.vmem [shape: bf16[32,128], index: 3, kind: output, shape index: {}]  }
   0x1   :  { %v83_v0 = vld [vmem:[%s140_s0] sm:$0xff]   ;;  %v100_v4 = vld [vmem:[%s140_s0 + $0x8] sm:$0xff]  }
   0x2   :  { %v72_v1 = vld [vmem:[%s141_s1] ss:$0 sm:$0xff]  ;;  %v84_v2 = vunpack.c.l.bf16 %v83_v0  ;;  %v85_v3 = vunpack.c.h.bf16 %v83_v0  ;;  %v88_v6 = vunpack.c.l.bf16 %v100_v4  ;;  %v89_v7 = vunpack.c.h.bf16 %v100_v4 }
   0x3   :  { %v73_v5 = vld [vmem:[%s142_s2] ss:$0 sm:$0xff] }
   0x4   :  { %v29_v8 = vmul.f32 %v84_v2, %v72_v1  ;;  %v30_v9 = vmul.f32 %v85_v3, %v72_v1  ;;  %v31_v10 = vmul.f32 %v88_v6, %v72_v1  ;;  %v32_v11 = vmul.f32 %v89_v7, %v72_v1 }
   0x6   :  { %v40_v12 = vadd.f32 %v73_v5, %v29_v8  ;;  %v41_v13 = vadd.f32 %v73_v5, %v30_v9  ;;  %v42_v14 = vadd.f32 %v73_v5, %v31_v10  ;;  %v43_v15 = vadd.f32 %v73_v5, %v32_v11 }
   0x8   :  { %v44_v16 = vmax.f32 %v40_v12, 0.0  ;;  %v45_v17 = vmax.f32 %v41_v13, 0.0  ;;  %v46_v18 = vmax.f32 %v42_v14, 0.0  ;;  %v47_v19 = vmax.f32 %v43_v15, 0.0 }
   0xa   :  { %v93_v20 = vpack.c.bf16 %v45_v17, %v44_v16  ;;  %v98_v21 = vpack.c.bf16 %v47_v19, %v46_v18 }
   0xc   :  { %94 = vst [vmem:[%s143_s3] sm:$0xff] %v93_v20   ;;  %101 = vst [vmem:[%s143_s3 + $0x8] sm:$0xff] %v98_v21  }

// kernel: encoder_forward.16
= control target key start
LH: loop header
LB: loop body
LE: loop exit
PB: predicated region body
PF: predicated region fallthrough
CT: control target
= control target key end

     0   :  { %v328_v0 = vmov 0   ;;  %vm128_vm0 = vcmask 130048   ;;  %v329_v14 = vmov 0.0   ;;  %s418_s1 = inlined_call_operand.vmem [shape: bf16[144,128], index: 1, kind: input, shape index: {}]   ;;  %s419_s0 = inlined_call_operand.vmem [shape: bf16[32,144], index: 0, kind: input, shape index: {}]   ;;  %s420_s3 = inlined_call_operand.vmem [shape: f32[1,128], index: 3, kind: output, shape index: {1}]   ;;  %s421_s4 = inlined_call_operand.vmem [shape: f32[1,128], index: 4, kind: output, shape index: {2}]   ;;  %s422_s2 = inlined_call_operand.vmem [shape: bf16[32,128], index: 2, kind: output, shape index: {0}]  }
   0x1   :  { %135 = vmatprep.subr.bf16.mxu0 %v328_v0  ;;  %293 = vmatprep.subr.bf16.mxu1 %v328_v0  ;;  %v313_v1 = vld [vmem:[%s418_s1] sm:$0xff]   ;;  %v314_v2 = vld [vmem:[%s418_s1 + $0x8] sm:$0xff]   ;;  %v315_v3 = vld [vmem:[%s418_s1 + $0x10] sm:$0xff]   ;;  %21 = vst [vmem:[%s420_s3] sm:$0x1] %v329_v14 }
   0x2   :  { %136 = vmatpush1.bf16.msra.mxu0 %v313_v1  ;;  %302 = vmatpush1.bf16.msra.mxu1 %v313_v1  ;;  %v316_v4 = vld [vmem:[%s418_s1 + $0x18] sm:$0xff]   ;;  %v324_v5 = vld [vmem:[%s419_s0 + $0x4] ss:$8 sps:$4 sm:$0xff]   ;;  %v319_v9 = vld [vmem:[%s418_s1 + $0x30] sm:$0xff]   ;;  %22 = vst [vmem:[%s421_s4] sm:$0x1] %v329_v14 }
   0x3   :  { %137 = vmatprep.subr.bf16.mxu0 %v328_v0  ;;  %294 = vmatprep.subr.bf16.mxu1 %v328_v0  ;;  %v327_v6 = vld [vmem:[%s419_s0 + $0x14] ss:$8 sps:$4 sm:$0xff]   ;;  %v317_v7 = vld [vmem:[%s418_s1 + $0x20] sm:$0xff]   ;;  %v318_v8 = vld [vmem:[%s418_s1 + $0x28] sm:$0xff]  }
   0x4   :  { %272 = vmatprep.mubr.msk.bf16.mxu0 %vm128_vm0, %v324_v5  ;;  %273 = vmatprep.mubr.msk.bf16.mxu1 %vm128_vm0, %v327_v6  ;;  %v320_v10 = vld [vmem:[%s418_s1 + $0x38] sm:$0xff]   ;;  %v321_v11 = vld [vmem:[%s418_s1 + $0x40] sm:$0xff]  }
   0x5   :  { %v322_v12 = vld [vmem:[%s419_s0] ss:$8 sps:$4 sm:$0xff]   ;;  %v325_v13 = vld [vmem:[%s419_s0 + $0x10] ss:$8 sps:$4 sm:$0xff]  }
   0x6   :  { %138 = vmatpush1.bf16.msra.mxu0 %v314_v2  ;;  %303 = vmatpush1.bf16.msra.mxu1 %v314_v2 }
   0x7   :  { %139 = vmatprep.subr.bf16.mxu0 %v328_v0  ;;  %295 = vmatprep.subr.bf16.mxu1 %v328_v0 }
   0x8   :  { %v219_v44 = vld [vmem:[%s420_s3] sm:$0x1] }
   0x9   :  { %v231_v47 = vld [vmem:[%s421_s4] sm:$0x1] }
   0xa   :  { %140 = vmatpush1.bf16.msra.mxu0 %v315_v3  ;;  %304 = vmatpush1.bf16.msra.mxu1 %v315_v3 }
   0xb   :  { %141 = vmatprep.subr.bf16.mxu0 %v328_v0  ;;  %296 = vmatprep.subr.bf16.mxu1 %v328_v0 }
   0xe   :  { %142 = vmatpush1.bf16.msra.mxu0 %v316_v4  ;;  %305 = vmatpush1.bf16.msra.mxu1 %v316_v4 }
   0xf   :  { %143 = vmatprep.subr.bf16.mxu0 %v328_v0  ;;  %297 = vmatprep.subr.bf16.mxu1 %v328_v0 }
  0x12   :  { %144 = vmatpush1.bf16.msra.mxu0 %v317_v7  ;;  %306 = vmatpush1.bf16.msra.mxu1 %v317_v7 }
  0x13   :  { %145 = vmatprep.subr.bf16.mxu0 %v328_v0  ;;  %298 = vmatprep.subr.bf16.mxu1 %v328_v0 }
  0x16   :  { %146 = vmatpush1.bf16.msra.mxu0 %v318_v8  ;;  %307 = vmatpush1.bf16.msra.mxu1 %v318_v8 }
  0x17   :  { %147 = vmatprep.subr.bf16.mxu0 %v328_v0  ;;  %299 = vmatprep.subr.bf16.mxu1 %v328_v0 }
  0x1a   :  { %148 = vmatpush1.bf16.msra.mxu0 %v319_v9  ;;  %308 = vmatpush1.bf16.msra.mxu1 %v319_v9 }
  0x1b   :  { %149 = vmatprep.subr.bf16.mxu0 %v328_v0  ;;  %300 = vmatprep.subr.bf16.mxu1 %v328_v0 }
  0x1e   :  { %150 = vmatpush1.bf16.msra.mxu0 %v320_v10  ;;  %309 = vmatpush1.bf16.msra.mxu1 %v320_v10 }
  0x1f   :  { %151 = vmatprep.subr.bf16.mxu0 %v328_v0  ;;  %301 = vmatprep.subr.bf16.mxu1 %v328_v0 }
  0x22   :  { %152 = vmatpush1.bf16.msra.mxu0 %v321_v11  ;;  %310 = vmatpush1.bf16.msra.mxu1 %v321_v11 }
  0x25   :  { %168 = vmatmul.mubr.bf16.vlgmr.msra.gmra.mrb[0].mxu0 %v322_v12  ;;  %176 = vmatmul.mubr.bf16.vlgmr.msra.gmra.mrb[0].mxu1 %v325_v13 }
  0xf8   :  { %v169_v15 = vpop.f32.mrb[0].mxu0  ;;  %v177_v16 = vpop.f32.mrb[0].mxu1 }
  0xf9   :  { %v171_v17 = vpop.f32.mrb[1].mxu0  ;;  %v179_v18 = vpop.f32.mrb[1].mxu1  ;;  %v232_v19 = vmul.f32 %v169_v15, %v169_v15  ;;  %v234_v20 = vmul.f32 %v177_v16, %v177_v16 }
  0xfa   :  { %v172_v21 = vpop.f32.mrb[2].mxu0  ;;  %v180_v22 = vpop.f32.mrb[2].mxu1 }
  0xfb   :  { %v285_v23 = vpack.c.bf16 %v172_v21, %v169_v15  ;;  %v220_v24 = vadd.f32 %v172_v21, %v169_v15  ;;  %v233_v25 = vmul.f32 %v172_v21, %v172_v21  ;;  %v174_v26 = vpop.f32.mrb[3].mxu0  ;;  %v290_v27 = vpack.c.bf16 %v180_v22, %v177_v16  ;;  %v182_v28 = vpop.f32.mrb[3].mxu1 }
  0xfc   :  { %v235_v32 = vmul.f32 %v180_v22, %v180_v22 }
  0xfd   :  { %286 = vst [vmem:[%s422_s2] sm:$0xff] %v285_v23   ;;  %v236_v29 = vadd.f32 %v233_v25, %v232_v19  ;;  %292 = vst [vmem:[%s422_s2 + $0x8] sm:$0xff] %v290_v27   ;;  %v221_v30 = vadd.f32 %v220_v24, %v177_v16 }
  0xff   :  { %v222_v31 = vadd.f32 %v221_v30, %v180_v22  ;;  %v237_v33 = vadd.f32 %v236_v29, %v234_v20 }
 0x101   :  { %v223_v34 = vrot.slane %v222_v31, 4  ;;  %v238_v35 = vadd.f32 %v237_v33, %v235_v32 }
 0x103   :  { %v224_v36 = vadd.f32 %v223_v34, %v222_v31  ;;  %v239_v37 = vrot.slane %v238_v35, 4 }
 0x105   :  { %v225_v38 = vrot.slane %v224_v36, 2  ;;  %v240_v39 = vadd.f32 %v239_v37, %v238_v35 }
 0x107   :  { %v226_v40 = vadd.f32 %v225_v38, %v224_v36  ;;  %v241_v41 = vrot.slane %v240_v39, 2 }
 0x109   :  { %v227_v42 = vrot.slane %v226_v40, 1  ;;  %v242_v43 = vadd.f32 %v241_v41, %v240_v39 }
 0x10b   :  { %v228_v45 = vadd.f32 %v227_v42, %v226_v40  ;;  %v243_v46 = vrot.slane %v242_v43, 1 }
 0x10d   :  { %v229_v48 = vadd.f32 %v228_v45, %v219_v44  ;;  %v244_v49 = vadd.f32 %v243_v46, %v242_v43 }
 0x10f   :  { %230 = vst [vmem:[%s420_s3] sm:$0x1] %v229_v48  ;;  %v245_v50 = vadd.f32 %v244_v49, %v231_v47 }
 0x111   :  { %246 = vst [vmem:[%s421_s4] sm:$0x1] %v245_v50 }

// kernel: squeeze.43
= control target key start
LH: loop header
LB: loop body
LE: loop exit
PB: predicated region body
PF: predicated region fallthrough
CT: control target
= control target key end

     0   :  { %s37_s8 = smov 80   ;;  %vm7_vm0 = vcmask 130048   ;;  %s38_s9 = smov 96   ;;  %s55_s0 = inlined_call_operand.vmem [shape: f32[64], index: 0, kind: input, shape index: {}]   ;;  %s56_s1 = inlined_call_operand.vmem [shape: f32[4,16], index: 1, kind: output, shape index: {}]  }
   0x1   :  { %v4_v0 = vld [vmem:[%s55_s0] sm:$0x1]  ;;  %s36_s0 = smov 112  }
   0x2   :  { %5 = vst [vmem:[#allocation1] sm:$0x1] %v4_v0 }
   0x9   :  { %v9_v1 = vld [vmem:[#allocation1] sm:$0x1]  }
   0xa   :  { %v21_v2 = vld [vmem:[#allocation1] sm:$0x1]   ;;  %10 = vrot.lane.b32.xlu0 %v9_v1, %s36_s0 }
   0xb   :  { %22 = vrot.lane.b32.xlu1 %v21_v2, %s37_s8  ;;  %v6_v3 = vld [vmem:[#allocation1] sm:$0x1]  }
   0xc   :  { %v15_v4 = vld [vmem:[#allocation1] sm:$0x1]   ;;  %8 = vst.msk [vmem:[#allocation0] sm:$0x1] %vm7_vm0, %v6_v3  }
   0xe   :  { %16 = vrot.lane.b32.xlu0 %v15_v4, %s38_s9 }
  0x7c   :  { %v11_v5 = vpop.permute.xlu0 %10  }
  0x7d   :  { %v23_v6 = vpop.permute.xlu1 %22   ;;  %14 = vst.msk [vmem:[#allocation0 + $0x1] sm:$0x1] %vm7_vm0, %v11_v5  }
  0x7e   :  { %26 = vst.msk [vmem:[#allocation0 + $0x3] sm:$0x1] %vm7_vm0, %v23_v6  }
  0x80   :  { %v17_v7 = vpop.permute.xlu0 %16  }
  0x81   :  { %20 = vst.msk [vmem:[#allocation0 + $0x2] sm:$0x1] %vm7_vm0, %v17_v7  }
  0x88   :  { %v30_v8 = vld [vmem:[#allocation0] sm:$0xf] }
  0x89   :  { %32 = vst [vmem:[%s56_s1] sm:$0xf] %v30_v8 }

// kernel: tile.28
= control target key start
LH: loop header
LB: loop body
LE: loop exit
PB: predicated region body
PF: predicated region fallthrough
CT: control target
= control target key end

     0   :  { %s22_s0 = inlined_call_operand.vmem [shape: f32[16], index: 0, kind: input, shape index: {}]   ;;  %s23_s1 = inlined_call_operand.vmem [shape: f32[4,16], index: 1, kind: output, shape index: {}]  }
   0x1   :  { %v4_v0 = vld [vmem:[%s22_s0] ss:$0 sm:$0xff] }
   0x2   :  { %5 = vst [vmem:[%s23_s1] sm:$0xf] %v4_v0 }

// kernel: tile.29
= control target key start
LH: loop header
LB: loop body
LE: loop exit
PB: predicated region body
PF: predicated region fallthrough
CT: control target
= control target key end

     0   :  { %vm7_vm0 = vcmask 130048   ;;  %s37_s8 = smov 16   ;;  %s38_s9 = smov 32   ;;  %vm13_vm1 = vcmask 523648   ;;  %vm19_vm2 = vcmask 392448   ;;  %vm25_vm3 = vcmask 261248   ;;  %s55_s0 = inlined_call_operand.vmem [shape: f32[4,16], index: 0, kind: input, shape index: {}]   ;;  %s56_s1 = inlined_call_operand.vmem [shape: f32[64], index: 1, kind: output, shape index: {}]  }
   0x1   :  { %v4_v0 = vld [vmem:[%s55_s0] sm:$0xf]  ;;  %s36_s0 = smov 48  }
   0x2   :  { %5 = vst [vmem:[#allocation1] sm:$0xf] %v4_v0 }
   0x9   :  { %v10_v1 = vld [vmem:[#allocation1 + $0x3] sm:$0x1]   ;;  %v22_v2 = vld [vmem:[#allocation1 + $0x1] sm:$0x1]   ;;  %v6_v3 = vld [vmem:[#allocation1] sm:$0x1]  }
   0xa   :  { %11 = vrot.lane.b32.xlu0 %v10_v1, %s36_s0  ;;  %23 = vrot.lane.b32.xlu1 %v22_v2, %s37_s8  ;;  %v16_v4 = vld [vmem:[#allocation1 + $0x2] sm:$0x1]   ;;  %8 = vst.msk [vmem:[#allocation0] sm:$0x1] %vm7_vm0, %v6_v3  }
   0xe   :  { %17 = vrot.lane.b32.xlu0 %v16_v4, %s38_s9 }
  0x7c   :  { %v12_v5 = vpop.permute.xlu0 %11   ;;  %v24_v6 = vpop.permute.xlu1 %23  }
  0x7d   :  { %14 = vst.msk [vmem:[#allocation0] sm:$0x1] %vm13_vm1, %v12_v5  }
  0x80   :  { %v18_v7 = vpop.permute.xlu0 %17  }
  0x81   :  { %20 = vst.msk [vmem:[#allocation0] sm:$0x1] %vm19_vm2, %v18_v7  }
  0x82   :  { %26 = vst.msk [vmem:[#allocation0] sm:$0x1] %vm25_vm3, %v24_v6  }
  0x89   :  { %v30_v8 = vld [vmem:[#allocation0] sm:$0x1] }
  0x8a   :  { %32 = vst [vmem:[%s56_s1] sm:$0x1] %v30_v8 }

// kernel: encoder_forward.18
= control target key start
LH: loop header
LB: loop body
LE: loop exit
PB: predicated region body
PF: predicated region fallthrough
CT: control target
= control target key end

     0   :  { %v308_v10 = vmov 0.0   ;;  %s388_s1 = inlined_call_operand.vmem [shape: bf16[128,128], index: 1, kind: input, shape index: {}]   ;;  %s389_s0 = inlined_call_operand.vmem [shape: bf16[32,128], index: 0, kind: input, shape index: {}]   ;;  %s390_s3 = inlined_call_operand.vmem [shape: f32[1,128], index: 3, kind: output, shape index: {1}]   ;;  %s391_s4 = inlined_call_operand.vmem [shape: f32[1,128], index: 4, kind: output, shape index: {2}]   ;;  %s392_s2 = inlined_call_operand.vmem [shape: bf16[32,128], index: 2, kind: output, shape index: {0}]  }
   0x1   :  { %v298_v0 = vld [vmem:[%s388_s1] sm:$0xff]   ;;  %v299_v1 = vld [vmem:[%s388_s1 + $0x8] sm:$0xff]   ;;  %v300_v2 = vld [vmem:[%s388_s1 + $0x10] sm:$0xff]   ;;  %21 = vst [vmem:[%s390_s3] sm:$0x1] %v308_v10 }
   0x2   :  { %277 = vmatprep.subr.bf16.mxu0 %v298_v0  ;;  %v301_v3 = vld [vmem:[%s388_s1 + $0x18] sm:$0xff]   ;;  %v306_v4 = vld [vmem:[%s389_s0] sm:$0xff]   ;;  %v303_v6 = vld [vmem:[%s388_s1 + $0x28] sm:$0xff]   ;;  %22 = vst [vmem:[%s391_s4] sm:$0x1] %v308_v10 }
   0x3   :  { %278 = vmatpush3.bf16.msra.mxu0 %v298_v0  ;;  %293 = vmatprep.mubr.bf16.mxu0 %v306_v4  ;;  %v302_v5 = vld [vmem:[%s388_s1 + $0x20] sm:$0xff]   ;;  %v304_v7 = vld [vmem:[%s388_s1 + $0x30] sm:$0xff]   ;;  %v305_v8 = vld [vmem:[%s388_s1 + $0x38] sm:$0xff]  }
   0x4   :  { %279 = vmatprep.subr.bf16.mxu0 %v299_v1  ;;  %v307_v9 = vld [vmem:[%s389_s0 + $0x8] sm:$0xff]  }
   0x7   :  { %280 = vmatpush3.bf16.msra.mxu0 %v299_v1 }
   0x8   :  { %281 = vmatprep.subr.bf16.mxu0 %v300_v2  ;;  %v198_v36 = vld [vmem:[%s390_s3] sm:$0x1] }
   0x9   :  { %v210_v39 = vld [vmem:[%s391_s4] sm:$0x1] }
   0xb   :  { %282 = vmatpush3.bf16.msra.mxu0 %v300_v2 }
   0xc   :  { %283 = vmatprep.subr.bf16.mxu0 %v301_v3 }
   0xf   :  { %284 = vmatpush3.bf16.msra.mxu0 %v301_v3 }
  0x10   :  { %285 = vmatprep.subr.bf16.mxu0 %v302_v5 }
  0x13   :  { %286 = vmatpush3.bf16.msra.mxu0 %v302_v5 }
  0x14   :  { %287 = vmatprep.subr.bf16.mxu0 %v303_v6 }
  0x17   :  { %288 = vmatpush3.bf16.msra.mxu0 %v303_v6 }
  0x18   :  { %289 = vmatprep.subr.bf16.mxu0 %v304_v7 }
  0x1b   :  { %290 = vmatpush3.bf16.msra.mxu0 %v304_v7 }
  0x1c   :  { %291 = vmatprep.subr.bf16.mxu0 %v305_v8 }
  0x1f   :  { %292 = vmatpush3.bf16.msra.mxu0 %v305_v8 }
  0x22   :  { %294 = vmatmul.mubr.bf16.vlgmr.msra.gmra.mrb[0].mxu0 %v307_v9 }
  0xf5   :  { %v295_v11 = vpop.f32.mrb[0].mxu0 }
  0xf6   :  { %v148_v12 = vpop.f32.mrb[1].mxu0  ;;  %v213_v20 = vmul.f32 %v295_v11, %v295_v11 }
  0xf7   :  { %v296_v13 = vpop.f32.mrb[2].mxu0  ;;  %v211_v16 = vmul.f32 %v148_v12, %v148_v12 }
  0xf8   :  { %v264_v14 = vpack.c.bf16 %v296_v13, %v295_v11  ;;  %v151_v15 = vpop.f32.mrb[3].mxu0  ;;  %v214_v23 = vmul.f32 %v296_v13, %v296_v13 }
  0xf9   :  { %v259_v17 = vpack.c.bf16 %v151_v15, %v148_v12  ;;  %v199_v18 = vadd.f32 %v151_v15, %v148_v12  ;;  %v212_v19 = vmul.f32 %v151_v15, %v151_v15 }
  0xfa   :  { %266 = vst [vmem:[%s392_s2 + $0x8] sm:$0xff] %v264_v14  }
  0xfb   :  { %260 = vst [vmem:[%s392_s2] sm:$0xff] %v259_v17   ;;  %v200_v21 = vadd.f32 %v295_v11, %v199_v18  ;;  %v215_v22 = vadd.f32 %v212_v19, %v211_v16 }
  0xfd   :  { %v201_v24 = vadd.f32 %v296_v13, %v200_v21  ;;  %v216_v25 = vadd.f32 %v215_v22, %v213_v20 }
  0xff   :  { %v202_v26 = vrot.slane %v201_v24, 4  ;;  %v217_v27 = vadd.f32 %v216_v25, %v214_v23 }
 0x101   :  { %v203_v28 = vadd.f32 %v202_v26, %v201_v24  ;;  %v218_v29 = vrot.slane %v217_v27, 4 }
 0x103   :  { %v204_v30 = vrot.slane %v203_v28, 2  ;;  %v219_v31 = vadd.f32 %v218_v29, %v217_v27 }
 0x105   :  { %v205_v32 = vadd.f32 %v204_v30, %v203_v28  ;;  %v220_v33 = vrot.slane %v219_v31, 2 }
 0x107   :  { %v206_v34 = vrot.slane %v205_v32, 1  ;;  %v221_v35 = vadd.f32 %v220_v33, %v219_v31 }
 0x109   :  { %v207_v37 = vadd.f32 %v206_v34, %v205_v32  ;;  %v222_v38 = vrot.slane %v221_v35, 1 }
 0x10b   :  { %v208_v40 = vadd.f32 %v207_v37, %v198_v36  ;;  %v223_v41 = vadd.f32 %v222_v38, %v221_v35 }
 0x10d   :  { %209 = vst [vmem:[%s390_s3] sm:$0x1] %v208_v40  ;;  %v224_v42 = vadd.f32 %v223_v41, %v210_v39 }
 0x10f   :  { %225 = vst [vmem:[%s391_s4] sm:$0x1] %v224_v42 }

// kernel: squeeze.54
= control target key start
LH: loop header
LB: loop body
LE: loop exit
PB: predicated region body
PF: predicated region fallthrough
CT: control target
= control target key end

     0   :  { %s37_s8 = smov 104   ;;  %vm7_vm0 = vcmask 64512   ;;  %s38_s9 = smov 112   ;;  %s55_s0 = inlined_call_operand.vmem [shape: f32[32], index: 0, kind: input, shape index: {}]   ;;  %s56_s1 = inlined_call_operand.vmem [shape: f32[4,8], index: 1, kind: output, shape index: {}]  }
   0x1   :  { %v4_v0 = vld [vmem:[%s55_s0] sm:$0x1]  ;;  %s36_s0 = smov 120  }
   0x2   :  { %5 = vst [vmem:[#allocation1] sm:$0x1] %v4_v0 }
   0x9   :  { %v9_v1 = vld [vmem:[#allocation1] sm:$0x1]  }
   0xa   :  { %v21_v2 = vld [vmem:[#allocation1] sm:$0x1]   ;;  %10 = vrot.lane.b32.xlu0 %v9_v1, %s36_s0 }
   0xb   :  { %22 = vrot.lane.b32.xlu1 %v21_v2, %s37_s8  ;;  %v6_v3 = vld [vmem:[#allocation1] sm:$0x1]  }
   0xc   :  { %v15_v4 = vld [vmem:[#allocation1] sm:$0x1]   ;;  %8 = vst.msk [vmem:[#allocation0] sm:$0x1] %vm7_vm0, %v6_v3  }
   0xe   :  { %16 = vrot.lane.b32.xlu0 %v15_v4, %s38_s9 }
  0x7c   :  { %v11_v5 = vpop.permute.xlu0 %10  }
  0x7d   :  { %v23_v6 = vpop.permute.xlu1 %22   ;;  %14 = vst.msk [vmem:[#allocation0 + $0x1] sm:$0x1] %vm7_vm0, %v11_v5  }
  0x7e   :  { %26 = vst.msk [vmem:[#allocation0 + $0x3] sm:$0x1] %vm7_vm0, %v23_v6  }
  0x80   :  { %v17_v7 = vpop.permute.xlu0 %16  }
  0x81   :  { %20 = vst.msk [vmem:[#allocation0 + $0x2] sm:$0x1] %vm7_vm0, %v17_v7  }
  0x88   :  { %v30_v8 = vld [vmem:[#allocation0] sm:$0xf] }
  0x89   :  { %32 = vst [vmem:[%s56_s1] sm:$0xf] %v30_v8 }

// kernel: tile.38
= control target key start
LH: loop header
LB: loop body
LE: loop exit
PB: predicated region body
PF: predicated region fallthrough
CT: control target
= control target key end

     0   :  { %s22_s0 = inlined_call_operand.vmem [shape: f32[8], index: 0, kind: input, shape index: {}]   ;;  %s23_s1 = inlined_call_operand.vmem [shape: f32[4,8], index: 1, kind: output, shape index: {}]  }
   0x1   :  { %v4_v0 = vld [vmem:[%s22_s0] ss:$0 sm:$0xff] }
   0x2   :  { %5 = vst [vmem:[%s23_s1] sm:$0xf] %v4_v0 }

// kernel: tile.39
= control target key start
LH: loop header
LB: loop body
LE: loop exit
PB: predicated region body
PF: predicated region fallthrough
CT: control target
= control target key end

     0   :  { %vm7_vm0 = vcmask 64512   ;;  %s37_s8 = smov 8   ;;  %s38_s9 = smov 16   ;;  %vm13_vm1 = vcmask 261312   ;;  %vm19_vm2 = vcmask 195712   ;;  %vm25_vm3 = vcmask 130112   ;;  %s55_s0 = inlined_call_operand.vmem [shape: f32[4,8], index: 0, kind: input, shape index: {}]   ;;  %s56_s1 = inlined_call_operand.vmem [shape: f32[32], index: 1, kind: output, shape index: {}]  }
   0x1   :  { %v4_v0 = vld [vmem:[%s55_s0] sm:$0xf]  ;;  %s36_s0 = smov 24  }
   0x2   :  { %5 = vst [vmem:[#allocation1] sm:$0xf] %v4_v0 }
   0x9   :  { %v10_v1 = vld [vmem:[#allocation1 + $0x3] sm:$0x1]   ;;  %v22_v2 = vld [vmem:[#allocation1 + $0x1] sm:$0x1]   ;;  %v6_v3 = vld [vmem:[#allocation1] sm:$0x1]  }
   0xa   :  { %11 = vrot.lane.b32.xlu0 %v10_v1, %s36_s0  ;;  %23 = vrot.lane.b32.xlu1 %v22_v2, %s37_s8  ;;  %v16_v4 = vld [vmem:[#allocation1 + $0x2] sm:$0x1]   ;;  %8 = vst.msk [vmem:[#allocation0] sm:$0x1] %vm7_vm0, %v6_v3  }
   0xe   :  { %17 = vrot.lane.b32.xlu0 %v16_v4, %s38_s9 }
  0x7c   :  { %v12_v5 = vpop.permute.xlu0 %11   ;;  %v24_v6 = vpop.permute.xlu1 %23  }
  0x7d   :  { %14 = vst.msk [vmem:[#allocation0] sm:$0x1] %vm13_vm1, %v12_v5  }
  0x80   :  { %v18_v7 = vpop.permute.xlu0 %17  }
  0x81   :  { %20 = vst.msk [vmem:[#allocation0] sm:$0x1] %vm19_vm2, %v18_v7  }
  0x82   :  { %26 = vst.msk [vmem:[#allocation0] sm:$0x1] %vm25_vm3, %v24_v6  }
  0x89   :  { %v30_v8 = vld [vmem:[#allocation0] sm:$0x1] }
  0x8a   :  { %32 = vst [vmem:[%s56_s1] sm:$0x1] %v30_v8 }

// kernel: encoder_forward.20
= control target key start
LH: loop header
LB: loop body
LE: loop exit
PB: predicated region body
PF: predicated region fallthrough
CT: control target
= control target key end

     0   :  { %vm146_vm0 = vcmask 523264   ;;  %v631_v12 = vmov 0.0   ;;  %s743_s1 = inlined_call_operand.vmem [shape: bf16[64,128], index: 1, kind: input, shape index: {}]   ;;  %s744_s0 = inlined_call_operand.vmem [shape: bf16[128,64], index: 0, kind: input, shape index: {}]   ;;  %s745_s3 = inlined_call_operand.vmem [shape: f32[1,128], index: 3, kind: output, shape index: {1}]   ;;  %s746_s4 = inlined_call_operand.vmem [shape: f32[1,128], index: 4, kind: output, shape index: {2}]   ;;  %s747_s2 = inlined_call_operand.vmem [shape: bf16[128,128], index: 2, kind: output, shape index: {0}]  }
   0x1   :  { %v619_v0 = vld [vmem:[%s743_s1] sm:$0xff]   ;;  %v620_v1 = vld [vmem:[%s743_s1 + $0x8] sm:$0xff]   ;;  %v621_v2 = vld [vmem:[%s743_s1 + $0x10] sm:$0xff]   ;;  %21 = vst [vmem:[%s745_s3] sm:$0x1] %v631_v12 }
   0x2   :  { %586 = vmatprep.subr.bf16.mxu0 %v619_v0  ;;  %610 = vmatprep.subr.bf16.mxu1 %v619_v0  ;;  %v623_v3 = vld [vmem:[%s744_s0] sm:$0xff]   ;;  %v622_v4 = vld [vmem:[%s743_s1 + $0x18] sm:$0xff]   ;;  %v624_v6 = vld [vmem:[%s744_s0 + $0x8] sm:$0xff]   ;;  %22 = vst [vmem:[%s746_s4] sm:$0x1] %v631_v12 }
   0x3   :  { %587 = vmatpush3.bf16.msra.mxu0 %v619_v0  ;;  %614 = vmatpush3.bf16.msra.mxu1 %v619_v0  ;;  %v627_v5 = vld [vmem:[%s744_s0 + $0x20] sm:$0xff]   ;;  %v628_v7 = vld [vmem:[%s744_s0 + $0x28] sm:$0xff]   ;;  %v625_v8 = vld [vmem:[%s744_s0 + $0x10] sm:$0xff]  }
   0x4   :  { %588 = vmatprep.subr.bf16.mxu0 %v620_v1  ;;  %611 = vmatprep.subr.bf16.mxu1 %v620_v1  ;;  %v629_v9 = vld [vmem:[%s744_s0 + $0x30] sm:$0xff]   ;;  %v626_v10 = vld [vmem:[%s744_s0 + $0x18] sm:$0xff]  }
   0x5   :  { %594 = vmatprep.mubr.msk.bf16.mxu0 %vm146_vm0, %v623_v3  ;;  %602 = vmatprep.mubr.msk.bf16.mxu1 %vm146_vm0, %v627_v5  ;;  %v630_v11 = vld [vmem:[%s744_s0 + $0x38] sm:$0xff]  }
   0x7   :  { %589 = vmatpush3.bf16.msra.mxu0 %v620_v1  ;;  %615 = vmatpush3.bf16.msra.mxu1 %v620_v1 }
   0x8   :  { %590 = vmatprep.subr.bf16.mxu0 %v621_v2  ;;  %612 = vmatprep.subr.bf16.mxu1 %v621_v2 }
   0xb   :  { %591 = vmatpush3.bf16.msra.mxu0 %v621_v2  ;;  %616 = vmatpush3.bf16.msra.mxu1 %v621_v2 }
   0xc   :  { %592 = vmatprep.subr.bf16.mxu0 %v622_v4  ;;  %613 = vmatprep.subr.bf16.mxu1 %v622_v4 }
   0xf   :  { %593 = vmatpush3.bf16.msra.mxu0 %v622_v4  ;;  %617 = vmatpush3.bf16.msra.mxu1 %v622_v4 }
  0x12   :  { %595 = vmatmul.mubr.msk.bf16.vlgmr.msra.gmra.mrb[0].mxu0 %vm146_vm0, %v624_v6  ;;  %603 = vmatmul.mubr.msk.bf16.vlgmr.msra.gmra.mrb[0].mxu1 %vm146_vm0, %v628_v7 }
  0x13   :  { %598 = vmatprep.mubr.msk.bf16.mxu0 %vm146_vm0, %v625_v8  ;;  %606 = vmatprep.mubr.msk.bf16.mxu1 %vm146_vm0, %v629_v9 }
  0x1a   :  { %599 = vmatmul.mubr.msk.bf16.gmra.mrb[4].mxu0 %vm146_vm0, %v626_v10  ;;  %607 = vmatmul.mubr.msk.bf16.gmra.mrb[4].mxu1 %vm146_vm0, %v630_v11 }
  0xe5   :  { %v596_v13 = vpop.f32.mrb[0].mxu0  ;;  %v604_v14 = vpop.f32.mrb[0].mxu1 }
  0xe6   :  { %v205_v15 = vpop.f32.mrb[1].mxu0  ;;  %v237_v16 = vpop.f32.mrb[1].mxu1  ;;  %v426_v28 = vmul.f32 %v596_v13, %v596_v13  ;;  %v434_v0 = vmul.f32 %v604_v14, %v604_v14 }
  0xe7   :  { %v597_v17 = vpop.f32.mrb[2].mxu0  ;;  %v605_v18 = vpop.f32.mrb[2].mxu1  ;;  %v424_v19 = vmul.f32 %v205_v15, %v205_v15  ;;  %v432_v58 = vmul.f32 %v237_v16, %v237_v16 }
  0xe8   :  { %v535_v20 = vpack.c.bf16 %v597_v17, %v596_v13  ;;  %v208_v21 = vpop.f32.mrb[3].mxu0  ;;  %v555_v22 = vpack.c.bf16 %v605_v18, %v604_v14  ;;  %v240_v23 = vpop.f32.mrb[3].mxu1  ;;  %v427_v31 = vmul.f32 %v597_v17, %v597_v17  ;;  %v435_v3 = vmul.f32 %v605_v18, %v605_v18 }
  0xe9   :  { %v530_v24 = vpack.c.bf16 %v208_v21, %v205_v15  ;;  %v400_v25 = vadd.f32 %v208_v21, %v205_v15  ;;  %v425_v26 = vmul.f32 %v208_v21, %v208_v21  ;;  %v550_v27 = vpack.c.bf16 %v240_v23, %v237_v16 }
  0xea   :  { %567 = vst [vmem:[%s747_s2 + $0x8] sm:$0xff] %v535_v20   ;;  %571 = vst [vmem:[%s747_s2 + $0x28] sm:$0xff] %v555_v22   ;;  %v433_v63 = vmul.f32 %v240_v23, %v240_v23 }
  0xeb   :  { %531 = vst [vmem:[%s747_s2] sm:$0xff] %v530_v24   ;;  %v401_v29 = vadd.f32 %v596_v13, %v400_v25  ;;  %v440_v30 = vadd.f32 %v425_v26, %v424_v19  ;;  %570 = vst [vmem:[%s747_s2 + $0x20] sm:$0xff] %v550_v27  }
  0xed   :  { %v441_v32 = vadd.f32 %v440_v30, %v426_v28  ;;  %v600_v33 = vpop.f32.mrb[4].mxu0  ;;  %v402_v34 = vadd.f32 %v597_v17, %v401_v29  ;;  %v608_v35 = vpop.f32.mrb[4].mxu1  ;;  %v399_v28 = vld [vmem:[%s745_s3] sm:$0x1] }
  0xee   :  { %v221_v36 = vpop.f32.mrb[5].mxu0  ;;  %v253_v37 = vpop.f32.mrb[5].mxu1  ;;  %v430_v52 = vmul.f32 %v600_v33, %v600_v33  ;;  %v438_v12 = vmul.f32 %v608_v35, %v608_v35 }
  0xef   :  { %v403_v38 = vadd.f32 %v402_v34, %v221_v36  ;;  %v428_v39 = vmul.f32 %v221_v36, %v221_v36  ;;  %v442_v40 = vadd.f32 %v441_v32, %v427_v31  ;;  %v601_v41 = vpop.f32.mrb[6].mxu0  ;;  %v609_v42 = vpop.f32.mrb[6].mxu1  ;;  %v436_v6 = vmul.f32 %v253_v37, %v253_v37  ;;  %v423_v31 = vld [vmem:[%s746_s4] sm:$0x1] }
  0xf0   :  { %v545_v43 = vpack.c.bf16 %v601_v41, %v600_v33  ;;  %v224_v44 = vpop.f32.mrb[7].mxu0  ;;  %v565_v45 = vpack.c.bf16 %v609_v42, %v608_v35  ;;  %v256_v46 = vpop.f32.mrb[7].mxu1  ;;  %v431_v55 = vmul.f32 %v601_v41, %v601_v41 }
  0xf1   :  { %v443_v47 = vadd.f32 %v442_v40, %v428_v39  ;;  %v540_v48 = vpack.c.bf16 %v224_v44, %v221_v36  ;;  %v404_v49 = vadd.f32 %v403_v38, %v224_v44  ;;  %v429_v50 = vmul.f32 %v224_v44, %v224_v44 }
  0xf2   :  { %569 = vst [vmem:[%s747_s2 + $0x18] sm:$0xff] %v545_v43   ;;  %573 = vst [vmem:[%s747_s2 + $0x38] sm:$0xff] %v565_v45   ;;  %v560_v51 = vpack.c.bf16 %v256_v46, %v253_v37  ;;  %v437_v11 = vmul.f32 %v256_v46, %v256_v46 }
  0xf3   :  { %568 = vst [vmem:[%s747_s2 + $0x10] sm:$0xff] %v540_v48   ;;  %v405_v53 = vadd.f32 %v600_v33, %v404_v49  ;;  %v444_v54 = vadd.f32 %v443_v47, %v429_v50 }
  0xf4   :  { %572 = vst [vmem:[%s747_s2 + $0x30] sm:$0xff] %v560_v51  }
  0xf5   :  { %v445_v56 = vadd.f32 %v444_v54, %v430_v52  ;;  %v406_v57 = vadd.f32 %v601_v41, %v405_v53 }
  0xf7   :  { %v407_v59 = vadd.f32 %v406_v57, %v237_v16  ;;  %v446_v60 = vadd.f32 %v445_v56, %v431_v55  ;;  %v439_v16 = vmul.f32 %v609_v42, %v609_v42 }
  0xf9   :  { %v447_v61 = vadd.f32 %v446_v60, %v432_v58  ;;  %v408_v62 = vadd.f32 %v407_v59, %v240_v23 }
  0xfb   :  { %v409_v1 = vadd.f32 %v604_v14, %v408_v62  ;;  %v448_v2 = vadd.f32 %v447_v61, %v433_v63 }
  0xfd   :  { %v449_v4 = vadd.f32 %v448_v2, %v434_v0  ;;  %v410_v5 = vadd.f32 %v605_v18, %v409_v1 }
  0xff   :  { %v411_v7 = vadd.f32 %v410_v5, %v253_v37  ;;  %v450_v8 = vadd.f32 %v449_v4, %v435_v3 }
 0x101   :  { %v451_v9 = vadd.f32 %v450_v8, %v436_v6  ;;  %v412_v10 = vadd.f32 %v411_v7, %v256_v46 }
 0x103   :  { %v413_v13 = vadd.f32 %v608_v35, %v412_v10  ;;  %v452_v15 = vadd.f32 %v451_v9, %v437_v11 }
 0x105   :  { %v414_v17 = vadd.f32 %v609_v42, %v413_v13  ;;  %v453_v19 = vadd.f32 %v452_v15, %v438_v12 }
 0x107   :  { %v415_v20 = vrot.slane %v414_v17, 4  ;;  %v454_v21 = vadd.f32 %v453_v19, %v439_v16 }
 0x109   :  { %v416_v22 = vadd.f32 %v415_v20, %v414_v17  ;;  %v455_v14 = vrot.slane %v454_v21, 4 }
 0x10b   :  { %v417_v23 = vrot.slane %v416_v22, 2  ;;  %v456_v24 = vadd.f32 %v455_v14, %v454_v21 }
 0x10d   :  { %v418_v25 = vadd.f32 %v417_v23, %v416_v22  ;;  %v457_v18 = vrot.slane %v456_v24, 2 }
 0x10f   :  { %v419_v26 = vrot.slane %v418_v25, 1  ;;  %v458_v27 = vadd.f32 %v457_v18, %v456_v24 }
 0x111   :  { %v420_v29 = vadd.f32 %v419_v26, %v418_v25  ;;  %v459_v30 = vrot.slane %v458_v27, 1 }
 0x113   :  { %v421_v32 = vadd.f32 %v420_v29, %v399_v28  ;;  %v460_v33 = vadd.f32 %v459_v30, %v458_v27 }
 0x115   :  { %422 = vst [vmem:[%s745_s3] sm:$0x1] %v421_v32  ;;  %v461_v34 = vadd.f32 %v460_v33, %v423_v31 }
 0x117   :  { %462 = vst [vmem:[%s746_s4] sm:$0x1] %v461_v34 }

// kernel: encoder_forward.22
= control target key start
LH: loop header
LB: loop body
LE: loop exit
PB: predicated region body
PF: predicated region fallthrough
CT: control target
= control target key end

     0   :  { %11 = vsyncpa [#allocation4], 0  ;;  %v2988_v1 = vmov 0   ;;  %vm1091_vm0 = vcmask 64512   ;;  %vm1188_vm1 = vcmask 1043456   ;;  %s3950_s0 = inlined_call_operand.vmem [shape: bf16[512,392], index: 0, kind: input, shape index: {}]   ;;  %s3951_s1 = inlined_call_operand.vmem [shape: bf16[392,128], index: 1, kind: input, shape index: {}]   ;;  %s3952_s2 = inlined_call_operand.vmem [shape: f32[1,128], index: 2, kind: input, shape index: {}]   ;;  %s3953_s3 = inlined_call_operand.vmem [shape: f32[512,128], index: 3, kind: output, shape index: {0}]   ;;  %s3954_s4 = inlined_call_operand.hbm [shape: f32[1,128], index: 4, kind: output, shape index: {1}]   ;;  %s3955_s5 = inlined_call_operand.hbm [shape: f32[1,128], index: 5, kind: output, shape index: {2}]  }
   0x1   :  { %v2594_v0 = vld [vmem:[%s3951_s1] sm:$0xff]   ;;  %1192 = vmatprep.subr.bf16.mxu0 %v2988_v1  ;;  %1481 = vmatprep.subr.bf16.mxu1 %v2988_v1  ;;  %v2595_v2 = vld [vmem:[%s3951_s1 + $0x8] sm:$0xff]   ;;  %v2596_v3 = vld [vmem:[%s3951_s1 + $0x10] sm:$0xff]  }
   0x2   :  { %1193 = vmatpush1.bf16.msra.mxu0 %v2594_v0  ;;  %v2601_v4 = vld [vmem:[%s3951_s1 + $0x80] sm:$0xff]   ;;  %v2603_v5 = vld [vmem:[%s3951_s1 + $0x88] sm:$0xff]   ;;  %v2597_v6 = vld [vmem:[%s3951_s1 + $0x18] sm:$0xff]  }
   0x3   :  { %1194 = vmatprep.subr.bf16.mxu0 %v2988_v1  ;;  %1482 = vmatpush1.bf16.msra.mxu1 %v2601_v4  ;;  %v2605_v7 = vld [vmem:[%s3951_s1 + $0x90] sm:$0xff]   ;;  %v2598_v8 = vld [vmem:[%s3951_s1 + $0x20] sm:$0xff]   ;;  %v2607_v9 = vld [vmem:[%s3951_s1 + $0x98] sm:$0xff]  }
   0x4   :  { %1483 = vmatprep.subr.bf16.mxu1 %v2988_v1  ;;  %v2599_v10 = vld [vmem:[%s3951_s1 + $0x28] sm:$0xff]   ;;  %v2609_v11 = vld [vmem:[%s3951_s1 + $0xa0] sm:$0xff]   ;;  %v2600_v12 = vld [vmem:[%s3951_s1 + $0x30] sm:$0xff]  }
   0x5   :  { %v2620_v13 = vld [vmem:[%s3950_s0 + $0xc] ss:$16 sps:$4 sm:$0xff]   ;;  %v2624_v16 = vld [vmem:[%s3950_s0 + $0x4] ss:$16 sps:$4 sm:$0xff]   ;;  %v2617_v21 = vld [vmem:[%s3951_s1 + $0xc0] ss:$0 sps:$4 sm:$0xff]  }
   0x6   :  { %1195 = vmatpush1.bf16.msra.mxu0 %v2595_v2  ;;  %v2611_v14 = vld [vmem:[%s3951_s1 + $0xa8] sm:$0xff]   ;;  %v2602_v15 = vld [vmem:[%s3951_s1 + $0x38] sm:$0xff]   ;;  %2557 = vmatprep.mubr.msk.bf16.mxu1 %vm1091_vm0, %v2620_v13  ;;  %v2613_v17 = vld [vmem:[%s3951_s1 + $0xb0] sm:$0xff]   ;;  %v1190_v23 = vsel %vm1188_vm1, %v2617_v21, 0 }
   0x7   :  { %1196 = vmatprep.subr.bf16.mxu0 %v2988_v1  ;;  %1484 = vmatpush1.bf16.msra.mxu1 %v2603_v5  ;;  %v2604_v18 = vld [vmem:[%s3951_s1 + $0x40] sm:$0xff]   ;;  %v2606_v19 = vld [vmem:[%s3951_s1 + $0x48] sm:$0xff]   ;;  %v2615_v20 = vld [vmem:[%s3951_s1 + $0xb8] sm:$0xff]  }
   0x8   :  { %1485 = vmatprep.subr.bf16.mxu1 %v2988_v1  ;;  %1224 = vmatprep.mubr.bf16.mxu0 %v2624_v16  ;;  %v2608_v22 = vld [vmem:[%s3951_s1 + $0x50] sm:$0xff]   ;;  %v2618_v24 = vld [vmem:[%s3950_s0 + $0x8] ss:$16 sps:$4 sm:$0xff]   ;;  %v2625_v25 = vld [vmem:[%s3950_s0 + $0x2c] ss:$16 sps:$4 sm:$0xff]  }
   0x9   :  { %v2610_v26 = vld [vmem:[%s3951_s1 + $0x58] sm:$0xff]   ;;  %v2612_v27 = vld [vmem:[%s3951_s1 + $0x60] sm:$0xff]   ;;  %v2614_v30 = vld [vmem:[%s3951_s1 + $0x68] sm:$0xff]  }
   0xa   :  { %1197 = vmatpush1.bf16.msra.mxu0 %v2596_v3  ;;  %v2627_v28 = vld [vmem:[%s3950_s0 + $0x28] ss:$16 sps:$4 sm:$0xff]   ;;  %v2631_v29 = vld [vmem:[%s3950_s0 + $0x4c] ss:$16 sps:$4 sm:$0xff]   ;;  %v2616_v31 = vld [vmem:[%s3951_s1 + $0x70] sm:$0xff]  }
   0xb   :  { %1198 = vmatprep.subr.bf16.mxu0 %v2988_v1  ;;  %1486 = vmatpush1.bf16.msra.mxu1 %v2605_v7  ;;  %v2633_v32 = vld [vmem:[%s3950_s0 + $0x48] ss:$16 sps:$4 sm:$0xff]   ;;  %v2637_v33 = vld [vmem:[%s3950_s0 + $0x6c] ss:$16 sps:$4 sm:$0xff]   ;;  %v2622_v35 = vld [vmem:[%s3950_s0] ss:$16 sps:$4 sm:$0xff]  }
   0xc   :  { %1487 = vmatprep.subr.bf16.mxu1 %v2988_v1  ;;  %v2621_v34 = vld [vmem:[%s3951_s1 + $0x78] sm:$0xff]   ;;  %v2628_v36 = vld [vmem:[%s3950_s0 + $0x24] ss:$16 sps:$4 sm:$0xff]   ;;  %v2630_v39 = vld [vmem:[%s3950_s0 + $0x20] ss:$16 sps:$4 sm:$0xff]  }
   0xd   :  { %v2639_v37 = vld [vmem:[%s3950_s0 + $0x68] ss:$16 sps:$4 sm:$0xff]   ;;  %v2643_v38 = vld [vmem:[%s3950_s0 + $0x8c] ss:$16 sps:$4 sm:$0xff]   ;;  %v2634_v40 = vld [vmem:[%s3950_s0 + $0x44] ss:$16 sps:$4 sm:$0xff]  }
   0xe   :  { %1199 = vmatpush1.bf16.msra.mxu0 %v2597_v6  ;;  %v2645_v41 = vld [vmem:[%s3950_s0 + $0x88] ss:$16 sps:$4 sm:$0xff]   ;;  %v2649_v42 = vld [vmem:[%s3950_s0 + $0xac] ss:$16 sps:$4 sm:$0xff]   ;;  %v2636_v43 = vld [vmem:[%s3950_s0 + $0x40] ss:$16 sps:$4 sm:$0xff]  }
   0xf   :  { %1200 = vmatprep.subr.bf16.mxu0 %v2988_v1  ;;  %1488 = vmatpush1.bf16.msra.mxu1 %v2607_v9  ;;  %v2640_v44 = vld [vmem:[%s3950_s0 + $0x64] ss:$16 sps:$4 sm:$0xff]   ;;  %v2651_v45 = vld [vmem:[%s3950_s0 + $0xa8] ss:$16 sps:$4 sm:$0xff]   ;;  %v2655_v46 = vld [vmem:[%s3950_s0 + $0xcc] ss:$16 sps:$4 sm:$0xff]  }
  0x10   :  { %1489 = vmatprep.subr.bf16.mxu1 %v2988_v1  ;;  %v2642_v47 = vld [vmem:[%s3950_s0 + $0x60] ss:$16 sps:$4 sm:$0xff]   ;;  %v2646_v48 = vld [vmem:[%s3950_s0 + $0x84] ss:$16 sps:$4 sm:$0xff]   ;;  %v2657_v49 = vld [vmem:[%s3950_s0 + $0xc8] ss:$16 sps:$4 sm:$0xff]  }
  0x11   :  { %v2661_v50 = vld [vmem:[%s3950_s0 + $0xec] ss:$16 sps:$4 sm:$0xff]   ;;  %v2648_v51 = vld [vmem:[%s3950_s0 + $0x80] ss:$16 sps:$4 sm:$0xff]   ;;  %v2652_v52 = vld [vmem:[%s3950_s0 + $0xa4] ss:$16 sps:$4 sm:$0xff]  }
  0x12   :  { %1201 = vmatpush1.bf16.msra.mxu0 %v2598_v8 }
  0x13   :  { %1202 = vmatprep.subr.bf16.mxu0 %v2988_v1  ;;  %1490 = vmatpush1.bf16.msra.mxu1 %v2609_v11 }
  0x14   :  { %1491 = vmatprep.subr.bf16.mxu1 %v2988_v1 }
  0x16   :  { %1203 = vmatpush1.bf16.msra.mxu0 %v2599_v10 }
  0x17   :  { %1204 = vmatprep.subr.bf16.mxu0 %v2988_v1  ;;  %1492 = vmatpush1.bf16.msra.mxu1 %v2611_v14 }
  0x18   :  { %1493 = vmatprep.subr.bf16.mxu1 %v2988_v1 }
  0x1a   :  { %1205 = vmatpush1.bf16.msra.mxu0 %v2600_v12 }
  0x1b   :  { %1206 = vmatprep.subr.bf16.mxu0 %v2988_v1  ;;  %1494 = vmatpush1.bf16.msra.mxu1 %v2613_v17 }
  0x1c   :  { %1495 = vmatprep.subr.bf16.mxu1 %v2988_v1 }
  0x1e   :  { %1207 = vmatpush1.bf16.msra.mxu0 %v2602_v15 }
  0x1f   :  { %1208 = vmatprep.subr.bf16.mxu0 %v2988_v1  ;;  %1496 = vmatpush1.bf16.msra.mxu1 %v2615_v20 }
  0x20   :  { %1497 = vmatprep.subr.bf16.mxu1 %v2988_v1 }
  0x22   :  { %1209 = vmatpush1.bf16.msra.mxu0 %v2604_v18 }
  0x23   :  { %1210 = vmatprep.subr.bf16.mxu0 %v2988_v1  ;;  %1498 = vmatpush1.bf16.msra.mxu1 %v1190_v23 }
  0x26   :  { %1211 = vmatpush1.bf16.msra.mxu0 %v2606_v19  ;;  %1514 = vmatmul.mubr.bf16.vlgmr.msra.gmra.mrb[0].mxu1 %v2618_v24 }
  0x27   :  { %1212 = vmatprep.subr.bf16.mxu0 %v2988_v1  ;;  %2558 = vmatprep.mubr.msk.bf16.mxu1 %vm1091_vm0, %v2625_v25 }
  0x2a   :  { %1213 = vmatpush1.bf16.msra.mxu0 %v2608_v22 }
  0x2b   :  { %1214 = vmatprep.subr.bf16.mxu0 %v2988_v1 }
  0x2e   :  { %1215 = vmatpush1.bf16.msra.mxu0 %v2610_v26  ;;  %1522 = vmatmul.mubr.bf16.gmra.mrb[4].mxu1 %v2627_v28 }
  0x2f   :  { %1216 = vmatprep.subr.bf16.mxu0 %v2988_v1  ;;  %2559 = vmatprep.mubr.msk.bf16.mxu1 %vm1091_vm0, %v2631_v29 }
  0x32   :  { %1217 = vmatpush1.bf16.msra.mxu0 %v2612_v27 }
  0x33   :  { %1218 = vmatprep.subr.bf16.mxu0 %v2988_v1 }
  0x36   :  { %1219 = vmatpush1.bf16.msra.mxu0 %v2614_v30  ;;  %1530 = vmatmul.mubr.bf16.gmra.mrb[8].mxu1 %v2633_v32 }
  0x37   :  { %1220 = vmatprep.subr.bf16.mxu0 %v2988_v1  ;;  %2560 = vmatprep.mubr.msk.bf16.mxu1 %vm1091_vm0, %v2637_v33 }
  0x3a   :  { %1221 = vmatpush1.bf16.msra.mxu0 %v2616_v31 }
  0x3b   :  { %1222 = vmatprep.subr.bf16.mxu0 %v2988_v1 }
  0x3e   :  { %1223 = vmatpush1.bf16.msra.mxu0 %v2621_v34  ;;  %1538 = vmatmul.mubr.bf16.gmra.mrb[12].mxu1 %v2639_v37 }
  0x3f   :  { %2561 = vmatprep.mubr.msk.bf16.mxu1 %vm1091_vm0, %v2643_v38 }
  0x41   :  { %1225 = vmatmul.mubr.bf16.vlgmr.msra.gmra.mrb[0].mxu0 %v2622_v35 }
  0x42   :  { %1232 = vmatprep.mubr.bf16.mxu0 %v2628_v36 }
  0x46   :  { %1546 = vmatmul.mubr.bf16.gmra.mrb[16].mxu1 %v2645_v41 }
  0x47   :  { %2562 = vmatprep.mubr.msk.bf16.mxu1 %vm1091_vm0, %v2649_v42 }
  0x49   :  { %1233 = vmatmul.mubr.bf16.gmra.mrb[4].mxu0 %v2630_v39 }
  0x4a   :  { %1240 = vmatprep.mubr.bf16.mxu0 %v2634_v40 }
  0x4e   :  { %1554 = vmatmul.mubr.bf16.gmra.mrb[20].mxu1 %v2651_v45 }
  0x4f   :  { %2563 = vmatprep.mubr.msk.bf16.mxu1 %vm1091_vm0, %v2655_v46 }
  0x51   :  { %1241 = vmatmul.mubr.bf16.gmra.mrb[8].mxu0 %v2636_v43 }
  0x52   :  { %1248 = vmatprep.mubr.bf16.mxu0 %v2640_v44 }
  0x56   :  { %1562 = vmatmul.mubr.bf16.gmra.mrb[24].mxu1 %v2657_v49 }
  0x57   :  { %2564 = vmatprep.mubr.msk.bf16.mxu1 %vm1091_vm0, %v2661_v50 }
  0x59   :  { %1249 = vmatmul.mubr.bf16.gmra.mrb[12].mxu0 %v2642_v47 }
  0x5a   :  { %1256 = vmatprep.mubr.bf16.mxu0 %v2646_v48 }
  0x5b   :  { %12 = vsyncpa [#allocation6], 0  ;;  %v2663_v53 = vld [vmem:[%s3950_s0 + $0xe8] ss:$16 sps:$4 sm:$0xff]   ;;  %v2667_v54 = vld [vmem:[%s3950_s0 + $0x10c] ss:$16 sps:$4 sm:$0xff]  }
  0x5c   :  { %v2654_v55 = vld [vmem:[%s3950_s0 + $0xa0] ss:$16 sps:$4 sm:$0xff]   ;;  %v2658_v56 = vld [vmem:[%s3950_s0 + $0xc4] ss:$16 sps:$4 sm:$0xff]   ;;  %v2669_v57 = vld [vmem:[%s3950_s0 + $0x108] ss:$16 sps:$4 sm:$0xff]  }
  0x5d   :  { %v2673_v58 = vld [vmem:[%s3950_s0 + $0x12c] ss:$16 sps:$4 sm:$0xff]   ;;  %v2660_v59 = vld [vmem:[%s3950_s0 + $0xc0] ss:$16 sps:$4 sm:$0xff]   ;;  %v2664_v60 = vld [vmem:[%s3950_s0 + $0xe4] ss:$16 sps:$4 sm:$0xff]  }
  0x5e   :  { %1570 = vmatmul.mubr.bf16.gmra.mrb[28].mxu1 %v2663_v53  ;;  %v2675_v61 = vld [vmem:[%s3950_s0 + $0x128] ss:$16 sps:$4 sm:$0xff]   ;;  %v2679_v62 = vld [vmem:[%s3950_s0 + $0x14c] ss:$16 sps:$4 sm:$0xff]   ;;  %v2666_v63 = vld [vmem:[%s3950_s0 + $0xe0] ss:$16 sps:$4 sm:$0xff]  }
  0x5f   :  { %2565 = vmatprep.mubr.msk.bf16.mxu1 %vm1091_vm0, %v2667_v54  ;;  %v2670_v0 = vld [vmem:[%s3950_s0 + $0x104] ss:$16 sps:$4 sm:$0xff]   ;;  %v2681_v1 = vld [vmem:[%s3950_s0 + $0x148] ss:$16 sps:$4 sm:$0xff]   ;;  %v2685_v2 = vld [vmem:[%s3950_s0 + $0x16c] ss:$16 sps:$4 sm:$0xff]  }
  0x60   :  { %v2672_v3 = vld [vmem:[%s3950_s0 + $0x100] ss:$16 sps:$4 sm:$0xff]   ;;  %v2676_v4 = vld [vmem:[%s3950_s0 + $0x124] ss:$16 sps:$4 sm:$0xff]   ;;  %v2687_v5 = vld [vmem:[%s3950_s0 + $0x168] ss:$16 sps:$4 sm:$0xff]  }
  0x61   :  { %1257 = vmatmul.mubr.bf16.gmra.mrb[16].mxu0 %v2648_v51  ;;  %v2691_v6 = vld [vmem:[%s3950_s0 + $0x18c] ss:$16 sps:$4 sm:$0xff]   ;;  %v2678_v7 = vld [vmem:[%s3950_s0 + $0x120] ss:$16 sps:$4 sm:$0xff]   ;;  %v2682_v8 = vld [vmem:[%s3950_s0 + $0x144] ss:$16 sps:$4 sm:$0xff]  }
  0x62   :  { %1264 = vmatprep.mubr.bf16.mxu0 %v2652_v52  ;;  %v2693_v9 = vld [vmem:[%s3950_s0 + $0x188] ss:$16 sps:$4 sm:$0xff]   ;;  %v2697_v10 = vld [vmem:[%s3950_s0 + $0x1ac] ss:$16 sps:$4 sm:$0xff]   ;;  %v2684_v11 = vld [vmem:[%s3950_s0 + $0x140] ss:$16 sps:$4 sm:$0xff]  }
  0x63   :  { %v2688_v12 = vld [vmem:[%s3950_s0 + $0x164] ss:$16 sps:$4 sm:$0xff]   ;;  %v2699_v13 = vld [vmem:[%s3950_s0 + $0x1a8] ss:$16 sps:$4 sm:$0xff]   ;;  %v2703_v14 = vld [vmem:[%s3950_s0 + $0x1cc] ss:$16 sps:$4 sm:$0xff]  }
  0x64   :  { %v2690_v15 = vld [vmem:[%s3950_s0 + $0x160] ss:$16 sps:$4 sm:$0xff]   ;;  %v2694_v16 = vld [vmem:[%s3950_s0 + $0x184] ss:$16 sps:$4 sm:$0xff]   ;;  %v2705_v17 = vld [vmem:[%s3950_s0 + $0x1c8] ss:$16 sps:$4 sm:$0xff]  }
  0x65   :  { %v2709_v18 = vld [vmem:[%s3950_s0 + $0x1ec] ss:$16 sps:$4 sm:$0xff]   ;;  %v2696_v19 = vld [vmem:[%s3950_s0 + $0x180] ss:$16 sps:$4 sm:$0xff]   ;;  %v2700_v20 = vld [vmem:[%s3950_s0 + $0x1a4] ss:$16 sps:$4 sm:$0xff]  }
  0x66   :  { %1578 = vmatmul.mubr.bf16.gmra.mrb[32].mxu1 %v2669_v57  ;;  %v2711_v21 = vld [vmem:[%s3950_s0 + $0x1e8] ss:$16 sps:$4 sm:$0xff]   ;;  %v2715_v22 = vld [vmem:[%s3950_s0 + $0x20c] ss:$16 sps:$4 sm:$0xff]   ;;  %v2702_v23 = vld [vmem:[%s3950_s0 + $0x1a0] ss:$16 sps:$4 sm:$0xff]  }
  0x67   :  { %2566 = vmatprep.mubr.msk.bf16.mxu1 %vm1091_vm0, %v2673_v58  ;;  %v2706_v24 = vld [vmem:[%s3950_s0 + $0x1c4] ss:$16 sps:$4 sm:$0xff]   ;;  %v2717_v25 = vld [vmem:[%s3950_s0 + $0x208] ss:$16 sps:$4 sm:$0xff]   ;;  %v2721_v26 = vld [vmem:[%s3950_s0 + $0x22c] ss:$16 sps:$4 sm:$0xff]  }
  0x68   :  { %v2708_v27 = vld [vmem:[%s3950_s0 + $0x1c0] ss:$16 sps:$4 sm:$0xff]   ;;  %v2712_v28 = vld [vmem:[%s3950_s0 + $0x1e4] ss:$16 sps:$4 sm:$0xff]   ;;  %v2723_v29 = vld [vmem:[%s3950_s0 + $0x228] ss:$16 sps:$4 sm:$0xff]  }
  0x69   :  { %1265 = vmatmul.mubr.bf16.gmra.mrb[20].mxu0 %v2654_v55  ;;  %v2727_v30 = vld [vmem:[%s3950_s0 + $0x24c] ss:$16 sps:$4 sm:$0xff]   ;;  %v2714_v31 = vld [vmem:[%s3950_s0 + $0x1e0] ss:$16 sps:$4 sm:$0xff]   ;;  %v2718_v32 = vld [vmem:[%s3950_s0 + $0x204] ss:$16 sps:$4 sm:$0xff]  }
  0x6a   :  { %1272 = vmatprep.mubr.bf16.mxu0 %v2658_v56  ;;  %v2729_v33 = vld [vmem:[%s3950_s0 + $0x248] ss:$16 sps:$4 sm:$0xff]   ;;  %v2733_v34 = vld [vmem:[%s3950_s0 + $0x26c] ss:$16 sps:$4 sm:$0xff]   ;;  %v2720_v35 = vld [vmem:[%s3950_s0 + $0x200] ss:$16 sps:$4 sm:$0xff]  }
  0x6b   :  { %v2724_v36 = vld [vmem:[%s3950_s0 + $0x224] ss:$16 sps:$4 sm:$0xff]   ;;  %v2735_v37 = vld [vmem:[%s3950_s0 + $0x268] ss:$16 sps:$4 sm:$0xff]   ;;  %v2739_v38 = vld [vmem:[%s3950_s0 + $0x28c] ss:$16 sps:$4 sm:$0xff]  }
  0x6c   :  { %v2726_v39 = vld [vmem:[%s3950_s0 + $0x220] ss:$16 sps:$4 sm:$0xff]   ;;  %v2730_v40 = vld [vmem:[%s3950_s0 + $0x244] ss:$16 sps:$4 sm:$0xff]   ;;  %v2741_v41 = vld [vmem:[%s3950_s0 + $0x288] ss:$16 sps:$4 sm:$0xff]  }
  0x6d   :  { %v2745_v42 = vld [vmem:[%s3950_s0 + $0x2ac] ss:$16 sps:$4 sm:$0xff]   ;;  %v2732_v43 = vld [vmem:[%s3950_s0 + $0x240] ss:$16 sps:$4 sm:$0xff]   ;;  %v2736_v44 = vld [vmem:[%s3950_s0 + $0x264] ss:$16 sps:$4 sm:$0xff]  }
  0x6e   :  { %1586 = vmatmul.mubr.bf16.gmra.mrb[36].mxu1 %v2675_v61  ;;  %v2747_v45 = vld [vmem:[%s3950_s0 + $0x2a8] ss:$16 sps:$4 sm:$0xff]   ;;  %v2751_v46 = vld [vmem:[%s3950_s0 + $0x2cc] ss:$16 sps:$4 sm:$0xff]   ;;  %v2738_v47 = vld [vmem:[%s3950_s0 + $0x260] ss:$16 sps:$4 sm:$0xff]  }
  0x6f   :  { %2567 = vmatprep.mubr.msk.bf16.mxu1 %vm1091_vm0, %v2679_v62  ;;  %v2742_v48 = vld [vmem:[%s3950_s0 + $0x284] ss:$16 sps:$4 sm:$0xff]   ;;  %v2753_v49 = vld [vmem:[%s3950_s0 + $0x2c8] ss:$16 sps:$4 sm:$0xff]   ;;  %v2757_v50 = vld [vmem:[%s3950_s0 + $0x2ec] ss:$16 sps:$4 sm:$0xff]  }
  0x70   :  { %v2744_v51 = vld [vmem:[%s3950_s0 + $0x280] ss:$16 sps:$4 sm:$0xff]   ;;  %v2748_v52 = vld [vmem:[%s3950_s0 + $0x2a4] ss:$16 sps:$4 sm:$0xff]   ;;  %v2759_v53 = vld [vmem:[%s3950_s0 + $0x2e8] ss:$16 sps:$4 sm:$0xff]  }
  0x71   :  { %1273 = vmatmul.mubr.bf16.gmra.mrb[24].mxu0 %v2660_v59  ;;  %v2763_v54 = vld [vmem:[%s3950_s0 + $0x30c] ss:$16 sps:$4 sm:$0xff]   ;;  %v2750_v55 = vld [vmem:[%s3950_s0 + $0x2a0] ss:$16 sps:$4 sm:$0xff]   ;;  %v2754_v56 = vld [vmem:[%s3950_s0 + $0x2c4] ss:$16 sps:$4 sm:$0xff]  }
  0x72   :  { %1280 = vmatprep.mubr.bf16.mxu0 %v2664_v60  ;;  %v2765_v57 = vld [vmem:[%s3950_s0 + $0x308] ss:$16 sps:$4 sm:$0xff]   ;;  %v2769_v58 = vld [vmem:[%s3950_s0 + $0x32c] ss:$16 sps:$4 sm:$0xff]   ;;  %v2756_v59 = vld [vmem:[%s3950_s0 + $0x2c0] ss:$16 sps:$4 sm:$0xff]  }
  0x73   :  { %v2760_v60 = vld [vmem:[%s3950_s0 + $0x2e4] ss:$16 sps:$4 sm:$0xff]   ;;  %v2771_v61 = vld [vmem:[%s3950_s0 + $0x328] ss:$16 sps:$4 sm:$0xff]   ;;  %v2775_v62 = vld [vmem:[%s3950_s0 + $0x34c] ss:$16 sps:$4 sm:$0xff]  }
  0x74   :  { %s2990_s10 = smov [#allocation3]  }
  0x75   :  { %s2380_s11 = sshll.u32 %s2990_s10, 4  ;;  %s2381_s11 = int_to_ptr.vmem [resolvable:$true] %s2380_s11 }
  0x76   :  { %1594 = vmatmul.mubr.bf16.gmra.mrb[40].mxu1 %v2681_v1  ;;  %v2777_v1 = vld [vmem:[%s3950_s0 + $0x348] ss:$16 sps:$4 sm:$0xff]   ;;  %s2940_s13 = scalar_lea.vmem %s2381_s11, 16  ;;  %s2944_s14 = scalar_lea.vmem %s2381_s11, 32 }
  0x77   :  { %2568 = vmatprep.mubr.msk.bf16.mxu1 %vm1091_vm0, %v2685_v2  ;;  %v2781_v2 = vld [vmem:[%s3950_s0 + $0x36c] ss:$16 sps:$4 sm:$0xff]   ;;  %p2941_p0 = scmp.ne.s32.totalorder %s2381_s11, %s2940_s13  ;;  %p2945_p1 = scmp.lt.s32.totalorder %s2381_s11, %s2381_s11 }
  0x78   :  { %p2946_p2 = scmp.lt.s32.totalorder %s2944_s14, %s2940_s13 }
  0x79   :  { %1281 = vmatmul.mubr.bf16.gmra.mrb[28].mxu0 %v2666_v63  ;;  %v2762_v63 = vld [vmem:[%s3950_s0 + $0x2e0] ss:$16 sps:$4 sm:$0xff]  }
  0x7a   :  { %1288 = vmatprep.mubr.bf16.mxu0 %v2670_v0  ;;  %v2766_v0 = vld [vmem:[%s3950_s0 + $0x304] ss:$16 sps:$4 sm:$0xff]   ;;  %p2947_p3 = por %p2946_p2, %p2945_p1 }
  0x7c   :  { %p2948_p4 = pnand %p2947_p3, %p2941_p0 }
  0x7e   :  { %1602 = vmatmul.mubr.bf16.gmra.mrb[44].mxu1 %v2687_v5 }
  0x7f   :  { %2569 = vmatprep.mubr.msk.bf16.mxu1 %vm1091_vm0, %v2691_v6 }
  0x81   :  { %1289 = vmatmul.mubr.bf16.gmra.mrb[32].mxu0 %v2672_v3  ;;  %v2768_v3 = vld [vmem:[%s3950_s0 + $0x300] ss:$16 sps:$4 sm:$0xff]  }
  0x82   :  { %1296 = vmatprep.mubr.bf16.mxu0 %v2676_v4  ;;  %v2772_v4 = vld [vmem:[%s3950_s0 + $0x324] ss:$16 sps:$4 sm:$0xff]  }
  0x86   :  { %1610 = vmatmul.mubr.bf16.gmra.mrb[48].mxu1 %v2693_v9  ;;  %v2787_v9 = vld [vmem:[%s3950_s0 + $0x38c] ss:$16 sps:$4 sm:$0xff]  }
  0x87   :  { %2570 = vmatprep.mubr.msk.bf16.mxu1 %vm1091_vm0, %v2697_v10 }
  0x89   :  { %1297 = vmatmul.mubr.bf16.gmra.mrb[36].mxu0 %v2678_v7  ;;  %v2783_v7 = vld [vmem:[%s3950_s0 + $0x368] ss:$16 sps:$4 sm:$0xff]  }
  0x8a   :  { %1304 = vmatprep.mubr.bf16.mxu0 %v2682_v8 }
  0x8e   :  { %1618 = vmatmul.mubr.bf16.gmra.mrb[52].mxu1 %v2699_v13 }
  0x8f   :  { %2571 = vmatprep.mubr.msk.bf16.mxu1 %vm1091_vm0, %v2703_v14 }
  0x91   :  { %1305 = vmatmul.mubr.bf16.gmra.mrb[40].mxu0 %v2684_v11  ;;  %v2774_v11 = vld [vmem:[%s3950_s0 + $0x320] ss:$16 sps:$4 sm:$0xff]  }
  0x92   :  { %1312 = vmatprep.mubr.bf16.mxu0 %v2688_v12  ;;  %v2778_v12 = vld [vmem:[%s3950_s0 + $0x344] ss:$16 sps:$4 sm:$0xff]  }
  0x96   :  { %1626 = vmatmul.mubr.bf16.gmra.mrb[56].mxu1 %v2705_v17  ;;  %v2793_v17 = vld [vmem:[%s3950_s0 + $0x3ac] ss:$16 sps:$4 sm:$0xff]  }
  0x97   :  { %2572 = vmatprep.mubr.msk.bf16.mxu1 %vm1091_vm0, %v2709_v18 }
  0x99   :  { %1313 = vmatmul.mubr.bf16.gmra.mrb[44].mxu0 %v2690_v15  ;;  %v2789_v15 = vld [vmem:[%s3950_s0 + $0x388] ss:$16 sps:$4 sm:$0xff]  }
  0x9a   :  { %1320 = vmatprep.mubr.bf16.mxu0 %v2694_v16 }
  0x9e   :  { %1634 = vmatmul.mubr.bf16.gmra.mrb[60].mxu1 %v2711_v21 }
  0x9f   :  { %2573 = vmatprep.mubr.msk.bf16.mxu1 %vm1091_vm0, %v2715_v22 }
  0xa1   :  { %1321 = vmatmul.mubr.bf16.gmra.mrb[48].mxu0 %v2696_v19  ;;  %v2780_v19 = vld [vmem:[%s3950_s0 + $0x340] ss:$16 sps:$4 sm:$0xff]  }
  0xa2   :  { %1328 = vmatprep.mubr.bf16.mxu0 %v2700_v20  ;;  %v2784_v20 = vld [vmem:[%s3950_s0 + $0x364] ss:$16 sps:$4 sm:$0xff]  }
  0xa6   :  { %1642 = vmatmul.mubr.bf16.gmra.mrb[64].mxu1 %v2717_v25  ;;  %v2799_v25 = vld [vmem:[%s3950_s0 + $0x3cc] ss:$16 sps:$4 sm:$0xff]  }
  0xa7   :  { %2574 = vmatprep.mubr.msk.bf16.mxu1 %vm1091_vm0, %v2721_v26 }
  0xa9   :  { %1329 = vmatmul.mubr.bf16.gmra.mrb[52].mxu0 %v2702_v23  ;;  %v2795_v23 = vld [vmem:[%s3950_s0 + $0x3a8] ss:$16 sps:$4 sm:$0xff]  }
  0xaa   :  { %1336 = vmatprep.mubr.bf16.mxu0 %v2706_v24 }
  0xae   :  { %1650 = vmatmul.mubr.bf16.gmra.mrb[68].mxu1 %v2723_v29 }
  0xaf   :  { %2575 = vmatprep.mubr.msk.bf16.mxu1 %vm1091_vm0, %v2727_v30 }
  0xb1   :  { %1337 = vmatmul.mubr.bf16.gmra.mrb[56].mxu0 %v2708_v27 }
  0xb2   :  { %1344 = vmatprep.mubr.bf16.mxu0 %v2712_v28  ;;  %v3505_v28 = vld [vmem:[%s3952_s2] ss:$0 sm:$0xff] }
  0xb6   :  { %1658 = vmatmul.mubr.bf16.gmra.mrb[72].mxu1 %v2729_v33  ;;  %v2790_v33 = vld [vmem:[%s3950_s0 + $0x384] ss:$16 sps:$4 sm:$0xff]  }
  0xb7   :  { %2576 = vmatprep.mubr.msk.bf16.mxu1 %vm1091_vm0, %v2733_v34 }
  0xb9   :  { %1345 = vmatmul.mubr.bf16.gmra.mrb[60].mxu0 %v2714_v31  ;;  %v2786_v31 = vld [vmem:[%s3950_s0 + $0x360] ss:$16 sps:$4 sm:$0xff]  }
  0xba   :  { %1352 = vmatprep.mubr.bf16.mxu0 %v2718_v32 }
  0xbe   :  { %1666 = vmatmul.mubr.bf16.gmra.mrb[76].mxu1 %v2735_v37 }
  0xbf   :  { %2577 = vmatprep.mubr.msk.bf16.mxu1 %vm1091_vm0, %v2739_v38 }
  0xc1   :  { %1353 = vmatmul.mubr.bf16.gmra.mrb[64].mxu0 %v2720_v35 }
  0xc2   :  { %1360 = vmatprep.mubr.bf16.mxu0 %v2724_v36 }
  0xc6   :  { %1674 = vmatmul.mubr.bf16.gmra.mrb[80].mxu1 %v2741_v41 }
  0xc7   :  { %2578 = vmatprep.mubr.msk.bf16.mxu1 %vm1091_vm0, %v2745_v42  ;;  %v2805_v42 = vld [vmem:[%s3950_s0 + $0x3ec] ss:$16 sps:$4 sm:$0xff]  }
  0xc9   :  { %1361 = vmatmul.mubr.bf16.gmra.mrb[68].mxu0 %v2726_v39  ;;  %v2801_v39 = vld [vmem:[%s3950_s0 + $0x3c8] ss:$16 sps:$4 sm:$0xff]  }
  0xca   :  { %1368 = vmatprep.mubr.bf16.mxu0 %v2730_v40 }
  0xce   :  { %1682 = vmatmul.mubr.bf16.gmra.mrb[84].mxu1 %v2747_v45 }
  0xcf   :  { %2579 = vmatprep.mubr.msk.bf16.mxu1 %vm1091_vm0, %v2751_v46 }
  0xd1   :  { %1369 = vmatmul.mubr.bf16.gmra.mrb[72].mxu0 %v2732_v43 }
  0xd2   :  { %1376 = vmatprep.mubr.bf16.mxu0 %v2736_v44 }
  0xd6   :  { %1690 = vmatmul.mubr.bf16.gmra.mrb[88].mxu1 %v2753_v49  ;;  %v2796_v49 = vld [vmem:[%s3950_s0 + $0x3a4] ss:$16 sps:$4 sm:$0xff]  }
  0xd7   :  { %2580 = vmatprep.mubr.msk.bf16.mxu1 %vm1091_vm0, %v2757_v50 }
  0xd9   :  { %1377 = vmatmul.mubr.bf16.gmra.mrb[76].mxu0 %v2738_v47  ;;  %v2792_v47 = vld [vmem:[%s3950_s0 + $0x380] ss:$16 sps:$4 sm:$0xff]  }
  0xda   :  { %1384 = vmatprep.mubr.bf16.mxu0 %v2742_v48 }
  0xde   :  { %1698 = vmatmul.mubr.bf16.gmra.mrb[92].mxu1 %v2759_v53 }
  0xdf   :  { %2581 = vmatprep.mubr.msk.bf16.mxu1 %vm1091_vm0, %v2763_v54 }
  0xe1   :  { %1385 = vmatmul.mubr.bf16.gmra.mrb[80].mxu0 %v2744_v51 }
  0xe2   :  { %1392 = vmatprep.mubr.bf16.mxu0 %v2748_v52 }
  0xe6   :  { %1706 = vmatmul.mubr.bf16.gmra.mrb[96].mxu1 %v2765_v57 }
  0xe7   :  { %2582 = vmatprep.mubr.msk.bf16.mxu1 %vm1091_vm0, %v2769_v58 }
  0xe9   :  { %1393 = vmatmul.mubr.bf16.gmra.mrb[84].mxu0 %v2750_v55  ;;  %v2807_v55 = vld [vmem:[%s3950_s0 + $0x3e8] ss:$16 sps:$4 sm:$0xff]  }
  0xea   :  { %1400 = vmatprep.mubr.bf16.mxu0 %v2754_v56 }
  0xee   :  { %1714 = vmatmul.mubr.bf16.gmra.mrb[100].mxu1 %v2771_v61 }
  0xef   :  { %2583 = vmatprep.mubr.msk.bf16.mxu1 %vm1091_vm0, %v2775_v62 }
  0xf1   :  { %1401 = vmatmul.mubr.bf16.gmra.mrb[88].mxu0 %v2756_v59 }
  0xf2   :  { %1408 = vmatprep.mubr.bf16.mxu0 %v2760_v60 }
  0xf6   :  { %1722 = vmatmul.mubr.bf16.gmra.mrb[104].mxu1 %v2777_v1 }
  0xf7   :  { %2584 = vmatprep.mubr.msk.bf16.mxu1 %vm1091_vm0, %v2781_v2 }
  0xf9   :  { %1409 = vmatmul.mubr.bf16.gmra.mrb[92].mxu0 %v2762_v63  ;;  %v1515_v5 = vpop.f32.mrb[0].mxu1 }
  0xfa   :  { %1416 = vmatprep.mubr.bf16.mxu0 %v2766_v0  ;;  %v1517_v6 = vpop.f32.mrb[1].mxu1  ;;  %v2798_v0 = vld [vmem:[%s3950_s0 + $0x3a0] ss:$16 sps:$4 sm:$0xff]  }
  0xfb   :  { %v1518_v8 = vpop.f32.mrb[2].mxu1 }
  0xfc   :  { %v1520_v10 = vpop.f32.mrb[3].mxu1 }
  0xfe   :  { %1730 = vmatmul.mubr.bf16.gmra.mrb[108].mxu1 %v2783_v7 }
  0xff   :  { %2585 = vmatprep.mubr.msk.bf16.mxu1 %vm1091_vm0, %v2787_v9 }
 0x101   :  { %1417 = vmatmul.mubr.bf16.gmra.mrb[96].mxu0 %v2768_v3  ;;  %v1523_v13 = vpop.f32.mrb[4].mxu1 }
 0x102   :  { %1424 = vmatprep.mubr.bf16.mxu0 %v2772_v4  ;;  %v1525_v14 = vpop.f32.mrb[5].mxu1 }
 0x103   :  { %v1526_v16 = vpop.f32.mrb[6].mxu1 }
 0x104   :  { %v1528_v18 = vpop.f32.mrb[7].mxu1 }
 0x106   :  { %1738 = vmatmul.mubr.bf16.gmra.mrb[112].mxu1 %v2789_v15 }
 0x107   :  { %2586 = vmatprep.mubr.msk.bf16.mxu1 %vm1091_vm0, %v2793_v17 }
 0x109   :  { %1425 = vmatmul.mubr.bf16.gmra.mrb[100].mxu0 %v2774_v11  ;;  %v1531_v21 = vpop.f32.mrb[8].mxu1 }
 0x10a   :  { %1432 = vmatprep.mubr.bf16.mxu0 %v2778_v12  ;;  %v1533_v22 = vpop.f32.mrb[9].mxu1 }
 0x10b   :  { %v3497_v24 = vpop.f32.mrb[10].mxu1  ;;  %v2804_v22 = vld [vmem:[%s3950_s0 + $0x3c0] ss:$16 sps:$4 sm:$0xff]  }
 0x10c   :  { %v1536_v26 = vpop.f32.mrb[11].mxu1 }
 0x10e   :  { %1746 = vmatmul.mubr.bf16.gmra.mrb[116].mxu1 %v2795_v23 }
 0x10f   :  { %2587 = vmatprep.mubr.msk.bf16.mxu1 %vm1091_vm0, %v2799_v25 }
 0x111   :  { %1433 = vmatmul.mubr.bf16.gmra.mrb[104].mxu0 %v2780_v19  ;;  %v3515_v37 = vpop.f32.mrb[12].mxu1 }
 0x112   :  { %1440 = vmatprep.mubr.bf16.mxu0 %v2784_v20  ;;  %v1541_v38 = vpop.f32.mrb[13].mxu1 }
 0x113   :  { %v3521_v41 = vpop.f32.mrb[14].mxu1 }
 0x114   :  { %v1226_v27 = vpop.f32.mrb[0].mxu0  ;;  %v1544_v43 = vpop.f32.mrb[15].mxu1 }
 0x115   :  { %v1516_v29 = vadd.f32 %v1515_v5, %v1226_v27  ;;  %v1228_v30 = vpop.f32.mrb[1].mxu0  ;;  %v2802_v5 = vld [vmem:[%s3950_s0 + $0x3c4] ss:$16 sps:$4 sm:$0xff]  }
 0x116   :  { %v1229_v32 = vpop.f32.mrb[2].mxu0  ;;  %1754 = vmatmul.mubr.bf16.gmra.mrb[120].mxu1 %v2801_v39  ;;  %v2808_v27 = vld [vmem:[%s3950_s0 + $0x3e4] ss:$16 sps:$4 sm:$0xff]  }
 0x117   :  { %v1972_v34 = vadd.f32 %v3505_v28, %v1516_v29  ;;  %v1519_v35 = vadd.f32 %v1518_v8, %v1229_v32  ;;  %v1231_v36 = vpop.f32.mrb[3].mxu0  ;;  %2588 = vmatprep.mubr.msk.bf16.mxu1 %vm1091_vm0, %v2805_v42 }
 0x119   :  { %2811 = vtanh.f32 %v1972_v34  ;;  %v1973_v40 = vadd.f32 %v3505_v28, %v1519_v35  ;;  %1441 = vmatmul.mubr.bf16.gmra.mrb[108].mxu0 %v2786_v31  ;;  %v3534_v53 = vpop.f32.mrb[16].mxu1 }
 0x11a   :  { %1448 = vmatprep.mubr.bf16.mxu0 %v2790_v33  ;;  %v1549_v54 = vpop.f32.mrb[17].mxu1 }
 0x11b   :  { %2813 = vtanh.f32 %v1973_v40  ;;  %v3540_v57 = vpop.f32.mrb[18].mxu1 }
 0x11c   :  { %v1234_v44 = vpop.f32.mrb[4].mxu0  ;;  %v1552_v58 = vpop.f32.mrb[19].mxu1 }
 0x11d   :  { %v1524_v45 = vadd.f32 %v1523_v13, %v1234_v44  ;;  %v1236_v46 = vpop.f32.mrb[5].mxu0 }
 0x11e   :  { %v1237_v48 = vpop.f32.mrb[6].mxu0  ;;  %1762 = vmatmul.mubr.bf16.gmra.mrb[124].mxu1 %v2807_v55 }
 0x11f   :  { %v1974_v50 = vadd.f32 %v3505_v28, %v1524_v45  ;;  %v1527_v51 = vadd.f32 %v1526_v16, %v1237_v48  ;;  %v1239_v52 = vpop.f32.mrb[7].mxu0  ;;  %v2810_v45 = vld [vmem:[%s3950_s0 + $0x3e0] ss:$16 sps:$4 sm:$0xff]  }
 0x121   :  { %2815 = vtanh.f32 %v1974_v50  ;;  %v1975_v56 = vadd.f32 %v3505_v28, %v1527_v51  ;;  %1449 = vmatmul.mubr.bf16.gmra.mrb[112].mxu0 %v2792_v47  ;;  %v3556_v9 = vpop.f32.mrb[20].mxu1 }
 0x122   :  { %1456 = vmatprep.mubr.bf16.mxu0 %v2796_v49  ;;  %v1557_v11 = vpop.f32.mrb[21].mxu1 }
 0x123   :  { %v2812_v59 = vpop.eup %2811  ;;  %2817 = vtanh.f32 %v1975_v56  ;;  %v3559_v13 = vpop.f32.mrb[22].mxu1 }
 0x124   :  { %2100 = vst [vmem:[%s3953_s3] sm:$0xff] %v2812_v59  ;;  %v1242_v60 = vpop.f32.mrb[8].mxu0  ;;  %v2237_v1 = vmul.f32 %v2812_v59, %v2812_v59  ;;  %v1560_v14 = vpop.f32.mrb[23].mxu1 }
 0x125   :  { %v2814_v61 = vpop.eup %2813  ;;  %v1532_v62 = vadd.f32 %v1531_v21, %v1242_v60  ;;  %v1244_v63 = vpop.f32.mrb[9].mxu0 }
 0x126   :  { %2101 = vst [vmem:[%s3953_s3 + $0x8] sm:$0xff] %v2814_v61  ;;  %v2165_v2 = vadd.f32 %v2814_v61, %v2812_v59  ;;  %v2238_v3 = vmul.f32 %v2814_v61, %v2814_v61  ;;  %v1245_v4 = vpop.f32.mrb[10].mxu0 }
 0x127   :  { %v1976_v6 = vadd.f32 %v3505_v28, %v1532_v62  ;;  %v1535_v7 = vadd.f32 %v3497_v24, %v1245_v4  ;;  %v1247_v8 = vpop.f32.mrb[11].mxu0 }
 0x128   :  { %v2301_v10 = vadd.f32 %v2238_v3, %v2237_v1 }
 0x129   :  { %2819 = vtanh.f32 %v1976_v6  ;;  %v1977_v12 = vadd.f32 %v3505_v28, %v1535_v7  ;;  %1457 = vmatmul.mubr.bf16.gmra.mrb[116].mxu0 %v2798_v0  ;;  %v3576_v32 = vpop.f32.mrb[24].mxu1 }
 0x12a   :  { %1464 = vmatprep.mubr.bf16.mxu0 %v2802_v5  ;;  %v1565_v34 = vpop.f32.mrb[25].mxu1 }
 0x12b   :  { %v2816_v15 = vpop.eup %2815  ;;  %2821 = vtanh.f32 %v1977_v12  ;;  %v3579_v36 = vpop.f32.mrb[26].mxu1 }
 0x12c   :  { %2102 = vst [vmem:[%s3953_s3 + $0x10] sm:$0xff] %v2816_v15  ;;  %v2166_v16 = vadd.f32 %v2816_v15, %v2165_v2  ;;  %v2239_v17 = vmul.f32 %v2816_v15, %v2816_v15  ;;  %v1250_v18 = vpop.f32.mrb[12].mxu0 }
 0x12d   :  { %v2818_v19 = vpop.eup %2817  ;;  %v1540_v20 = vadd.f32 %v3515_v37, %v1250_v18  ;;  %v1252_v21 = vpop.f32.mrb[13].mxu0 }
 0x12e   :  { %v2302_v23 = vadd.f32 %v2301_v10, %v2239_v17  ;;  %2103 = vst [vmem:[%s3953_s3 + $0x18] sm:$0xff] %v2818_v19  ;;  %v2167_v24 = vadd.f32 %v2818_v19, %v2166_v16  ;;  %v2240_v25 = vmul.f32 %v2818_v19, %v2818_v19  ;;  %v1253_v26 = vpop.f32.mrb[14].mxu0  ;;  %v1568_v37 = vpop.f32.mrb[27].mxu1 }
 0x12f   :  { %v1978_v29 = vadd.f32 %v3505_v28, %v1540_v20  ;;  %v1543_v30 = vadd.f32 %v3521_v41, %v1253_v26  ;;  %v1255_v31 = vpop.f32.mrb[15].mxu0 }
 0x130   :  { %v2303_v33 = vadd.f32 %v2302_v23, %v2240_v25 }
 0x131   :  { %2823 = vtanh.f32 %v1978_v29  ;;  %v1979_v35 = vadd.f32 %v3505_v28, %v1543_v30  ;;  %1465 = vmatmul.mubr.bf16.gmra.mrb[120].mxu0 %v2804_v22  ;;  %v3593_v54 = vpop.f32.mrb[28].mxu1 }
 0x132   :  { %1472 = vmatprep.mubr.bf16.mxu0 %v2808_v27  ;;  %v1573_v55 = vpop.f32.mrb[29].mxu1 }
 0x133   :  { %v2820_v38 = vpop.eup %2819  ;;  %2825 = vtanh.f32 %v1979_v35  ;;  %v3596_v58 = vpop.f32.mrb[30].mxu1 }
 0x134   :  { %2104 = vst [vmem:[%s3953_s3 + $0x20] sm:$0xff] %v2820_v38  ;;  %v2168_v39 = vadd.f32 %v2820_v38, %v2167_v24  ;;  %v2241_v40 = vmul.f32 %v2820_v38, %v2820_v38  ;;  %v1258_v41 = vpop.f32.mrb[16].mxu0  ;;  %v1576_v59 = vpop.f32.mrb[31].mxu1 }
 0x135   :  { %v2822_v42 = vpop.eup %2821  ;;  %v1548_v43 = vadd.f32 %v3534_v53, %v1258_v41  ;;  %v1260_v44 = vpop.f32.mrb[17].mxu0 }
 0x136   :  { %v2304_v46 = vadd.f32 %v2303_v33, %v2241_v40  ;;  %2105 = vst [vmem:[%s3953_s3 + $0x28] sm:$0xff] %v2822_v42  ;;  %v2169_v47 = vadd.f32 %v2822_v42, %v2168_v39  ;;  %v2242_v48 = vmul.f32 %v2822_v42, %v2822_v42  ;;  %v1261_v49 = vpop.f32.mrb[18].mxu0 }
 0x137   :  { %v1980_v50 = vadd.f32 %v3505_v28, %v1548_v43  ;;  %v1551_v51 = vadd.f32 %v3540_v57, %v1261_v49  ;;  %v1263_v52 = vpop.f32.mrb[19].mxu0 }
 0x138   :  { %v2305_v53 = vadd.f32 %v2304_v46, %v2242_v48 }
 0x139   :  { %2827 = vtanh.f32 %v1980_v50  ;;  %v1981_v56 = vadd.f32 %v3505_v28, %v1551_v51  ;;  %1473 = vmatmul.mubr.bf16.gmra.mrb[124].mxu0 %v2810_v45  ;;  %v1579_v10 = vpop.f32.mrb[32].mxu1 }
 0x13a   :  { %v1581_v12 = vpop.f32.mrb[33].mxu1 }
 0x13b   :  { %v2824_v60 = vpop.eup %2823  ;;  %2829 = vtanh.f32 %v1981_v56  ;;  %v3608_v14 = vpop.f32.mrb[34].mxu1 }
 0x13c   :  { %2106 = vst [vmem:[%s3953_s3 + $0x30] sm:$0xff] %v2824_v60  ;;  %v2170_v61 = vadd.f32 %v2824_v60, %v2169_v47  ;;  %v2243_v57 = vmul.f32 %v2824_v60, %v2824_v60  ;;  %v1266_v62 = vpop.f32.mrb[20].mxu0  ;;  %v1584_v15 = vpop.f32.mrb[35].mxu1 }
 0x13d   :  { %v2826_v63 = vpop.eup %2825  ;;  %v1556_v0 = vadd.f32 %v3556_v9, %v1266_v62  ;;  %v1268_v1 = vpop.f32.mrb[21].mxu0 }
 0x13e   :  { %v2306_v2 = vadd.f32 %v2305_v53, %v2243_v57  ;;  %2107 = vst [vmem:[%s3953_s3 + $0x38] sm:$0xff] %v2826_v63  ;;  %v2171_v3 = vadd.f32 %v2826_v63, %v2170_v61  ;;  %v2244_v4 = vmul.f32 %v2826_v63, %v2826_v63  ;;  %v1269_v5 = vpop.f32.mrb[22].mxu0 }
 0x13f   :  { %v1982_v6 = vadd.f32 %v3505_v28, %v1556_v0  ;;  %v1559_v7 = vadd.f32 %v3559_v13, %v1269_v5  ;;  %v1271_v8 = vpop.f32.mrb[23].mxu0 }
 0x140   :  { %v2307_v11 = vadd.f32 %v2306_v2, %v2244_v4 }
 0x141   :  { %2831 = vtanh.f32 %v1982_v6  ;;  %v1983_v9 = vadd.f32 %v3505_v28, %v1559_v7  ;;  %v1587_v30 = vpop.f32.mrb[36].mxu1 }
 0x142   :  { %v1589_v33 = vpop.f32.mrb[37].mxu1 }
 0x143   :  { %v2828_v16 = vpop.eup %2827  ;;  %2833 = vtanh.f32 %v1983_v9  ;;  %v3620_v34 = vpop.f32.mrb[38].mxu1 }
 0x144   :  { %2108 = vst [vmem:[%s3953_s3 + $0x40] sm:$0xff] %v2828_v16  ;;  %v2172_v17 = vadd.f32 %v2828_v16, %v2171_v3  ;;  %v2245_v18 = vmul.f32 %v2828_v16, %v2828_v16  ;;  %v1274_v19 = vpop.f32.mrb[24].mxu0  ;;  %v1592_v35 = vpop.f32.mrb[39].mxu1 }
 0x145   :  { %v2830_v13 = vpop.eup %2829  ;;  %v1564_v20 = vadd.f32 %v3576_v32, %v1274_v19  ;;  %v1276_v21 = vpop.f32.mrb[25].mxu0 }
 0x146   :  { %v2308_v22 = vadd.f32 %v2307_v11, %v2245_v18  ;;  %2109 = vst [vmem:[%s3953_s3 + $0x48] sm:$0xff] %v2830_v13  ;;  %v2173_v23 = vadd.f32 %v2830_v13, %v2172_v17  ;;  %v2246_v24 = vmul.f32 %v2830_v13, %v2830_v13  ;;  %v1277_v25 = vpop.f32.mrb[26].mxu0 }
 0x147   :  { %v1984_v26 = vadd.f32 %v3505_v28, %v1564_v20  ;;  %v1567_v27 = vadd.f32 %v3579_v36, %v1277_v25  ;;  %v1279_v29 = vpop.f32.mrb[27].mxu0 }
 0x148   :  { %v2309_v31 = vadd.f32 %v2308_v22, %v2246_v24 }
 0x149   :  { %2835 = vtanh.f32 %v1984_v26  ;;  %v1985_v32 = vadd.f32 %v3505_v28, %v1567_v27  ;;  %v1595_v50 = vpop.f32.mrb[40].mxu1 }
 0x14a   :  { %v1597_v52 = vpop.f32.mrb[41].mxu1 }
 0x14b   :  { %v2832_v37 = vpop.eup %2831  ;;  %2837 = vtanh.f32 %v1985_v32  ;;  %v3632_v53 = vpop.f32.mrb[42].mxu1 }
 0x14c   :  { %2110 = vst [vmem:[%s3953_s3 + $0x50] sm:$0xff] %v2832_v37  ;;  %v2174_v38 = vadd.f32 %v2832_v37, %v2173_v23  ;;  %v2247_v39 = vmul.f32 %v2832_v37, %v2832_v37  ;;  %v1282_v40 = vpop.f32.mrb[28].mxu0  ;;  %v1600_v55 = vpop.f32.mrb[43].mxu1 }
 0x14d   :  { %v2834_v36 = vpop.eup %2833  ;;  %v1572_v41 = vadd.f32 %v3593_v54, %v1282_v40  ;;  %v1284_v42 = vpop.f32.mrb[29].mxu0 }
 0x14e   :  { %v2310_v43 = vadd.f32 %v2309_v31, %v2247_v39  ;;  %2111 = vst [vmem:[%s3953_s3 + $0x58] sm:$0xff] %v2834_v36  ;;  %v2175_v44 = vadd.f32 %v2834_v36, %v2174_v38  ;;  %v2248_v45 = vmul.f32 %v2834_v36, %v2834_v36  ;;  %v1285_v46 = vpop.f32.mrb[30].mxu0 }
 0x14f   :  { %v1986_v47 = vadd.f32 %v3505_v28, %v1572_v41  ;;  %v1575_v48 = vadd.f32 %v3596_v58, %v1285_v46  ;;  %v1287_v49 = vpop.f32.mrb[31].mxu0 }
 0x150   :  { %v2311_v51 = vadd.f32 %v2310_v43, %v2248_v45 }
 0x151   :  { %2839 = vtanh.f32 %v1986_v47  ;;  %v1987_v54 = vadd.f32 %v3505_v28, %v1575_v48  ;;  %v1603_v6 = vpop.f32.mrb[44].mxu1 }
 0x152   :  { %v1605_v8 = vpop.f32.mrb[45].mxu1 }
 0x153   :  { %v2836_v56 = vpop.eup %2835  ;;  %2841 = vtanh.f32 %v1987_v54  ;;  %v3643_v11 = vpop.f32.mrb[46].mxu1 }
 0x154   :  { %2112 = vst [vmem:[%s3953_s3 + $0x60] sm:$0xff] %v2836_v56  ;;  %v2176_v59 = vadd.f32 %v2836_v56, %v2175_v44  ;;  %v2249_v60 = vmul.f32 %v2836_v56, %v2836_v56  ;;  %v1290_v61 = vpop.f32.mrb[32].mxu0  ;;  %v1608_v12 = vpop.f32.mrb[47].mxu1 }
 0x155   :  { %v2838_v58 = vpop.eup %2837  ;;  %v1580_v57 = vadd.f32 %v1579_v10, %v1290_v61  ;;  %v1292_v62 = vpop.f32.mrb[33].mxu0 }
 0x156   :  { %v2312_v63 = vadd.f32 %v2311_v51, %v2249_v60  ;;  %2113 = vst [vmem:[%s3953_s3 + $0x68] sm:$0xff] %v2838_v58  ;;  %v2177_v0 = vadd.f32 %v2838_v58, %v2176_v59  ;;  %v2250_v1 = vmul.f32 %v2838_v58, %v2838_v58  ;;  %v1293_v2 = vpop.f32.mrb[34].mxu0 }
 0x157   :  { %v1988_v3 = vadd.f32 %v3505_v28, %v1580_v57  ;;  %v1583_v4 = vadd.f32 %v3608_v14, %v1293_v2  ;;  %v1295_v5 = vpop.f32.mrb[35].mxu0 }
 0x158   :  { %v2313_v7 = vadd.f32 %v2312_v63, %v2250_v1 }
 0x159   :  { %2843 = vtanh.f32 %v1988_v3  ;;  %v1989_v10 = vadd.f32 %v3505_v28, %v1583_v4  ;;  %v1611_v26 = vpop.f32.mrb[48].mxu1 }
 0x15a   :  { %v1613_v29 = vpop.f32.mrb[49].mxu1 }
 0x15b   :  { %v2840_v9 = vpop.eup %2839  ;;  %2845 = vtanh.f32 %v1989_v10  ;;  %v3654_v31 = vpop.f32.mrb[50].mxu1 }
 0x15c   :  { %2114 = vst [vmem:[%s3953_s3 + $0x70] sm:$0xff] %v2840_v9  ;;  %v2178_v15 = vadd.f32 %v2840_v9, %v2177_v0  ;;  %v2251_v16 = vmul.f32 %v2840_v9, %v2840_v9  ;;  %v1298_v17 = vpop.f32.mrb[36].mxu0  ;;  %v1616_v33 = vpop.f32.mrb[51].mxu1 }
 0x15d   :  { %v2842_v14 = vpop.eup %2841  ;;  %v1588_v18 = vadd.f32 %v1587_v30, %v1298_v17  ;;  %v1300_v19 = vpop.f32.mrb[37].mxu0 }
 0x15e   :  { %v2314_v13 = vadd.f32 %v2313_v7, %v2251_v16  ;;  %2115 = vst [vmem:[%s3953_s3 + $0x78] sm:$0xff] %v2842_v14  ;;  %v2179_v20 = vadd.f32 %v2842_v14, %v2178_v15  ;;  %v2252_v21 = vmul.f32 %v2842_v14, %v2842_v14  ;;  %v1301_v22 = vpop.f32.mrb[38].mxu0 }
 0x15f   :  { %v1990_v23 = vadd.f32 %v3505_v28, %v1588_v18  ;;  %v1591_v24 = vadd.f32 %v3620_v34, %v1301_v22  ;;  %v1303_v25 = vpop.f32.mrb[39].mxu0 }
 0x160   :  { %v2315_v27 = vadd.f32 %v2314_v13, %v2252_v21 }
 0x161   :  { %2847 = vtanh.f32 %v1990_v23  ;;  %v1991_v30 = vadd.f32 %v3505_v28, %v1591_v24  ;;  %v1619_v47 = vpop.f32.mrb[52].mxu1 }
 0x162   :  { %v1621_v49 = vpop.f32.mrb[53].mxu1 }
 0x163   :  { %v2844_v32 = vpop.eup %2843  ;;  %2849 = vtanh.f32 %v1991_v30  ;;  %v3665_v51 = vpop.f32.mrb[54].mxu1 }
 0x164   :  { %2116 = vst [vmem:[%s3953_s3 + $0x80] sm:$0xff] %v2844_v32  ;;  %v2180_v35 = vadd.f32 %v2844_v32, %v2179_v20  ;;  %v2253_v37 = vmul.f32 %v2844_v32, %v2844_v32  ;;  %v1306_v38 = vpop.f32.mrb[40].mxu0  ;;  %v1624_v52 = vpop.f32.mrb[55].mxu1 }
 0x165   :  { %v2846_v34 = vpop.eup %2845  ;;  %v1596_v39 = vadd.f32 %v1595_v50, %v1306_v38  ;;  %v1308_v40 = vpop.f32.mrb[41].mxu0 }
 0x166   :  { %v2316_v36 = vadd.f32 %v2315_v27, %v2253_v37  ;;  %2117 = vst [vmem:[%s3953_s3 + $0x88] sm:$0xff] %v2846_v34  ;;  %v2181_v41 = vadd.f32 %v2846_v34, %v2180_v35  ;;  %v2254_v42 = vmul.f32 %v2846_v34, %v2846_v34  ;;  %v1309_v43 = vpop.f32.mrb[42].mxu0 }
 0x167   :  { %v1992_v44 = vadd.f32 %v3505_v28, %v1596_v39  ;;  %v1599_v45 = vadd.f32 %v3632_v53, %v1309_v43  ;;  %v1311_v46 = vpop.f32.mrb[43].mxu0 }
 0x168   :  { %v2317_v48 = vadd.f32 %v2316_v36, %v2254_v42 }
 0x169   :  { %2851 = vtanh.f32 %v1992_v44  ;;  %v1993_v50 = vadd.f32 %v3505_v28, %v1599_v45  ;;  %v1627_v3 = vpop.f32.mrb[56].mxu1 }
 0x16a   :  { %v1629_v5 = vpop.f32.mrb[57].mxu1 }
 0x16b   :  { %v2848_v54 = vpop.eup %2847  ;;  %2853 = vtanh.f32 %v1993_v50  ;;  %v3676_v7 = vpop.f32.mrb[58].mxu1 }
 0x16c   :  { %2118 = vst [vmem:[%s3953_s3 + $0x90] sm:$0xff] %v2848_v54  ;;  %v2182_v55 = vadd.f32 %v2848_v54, %v2181_v41  ;;  %v2255_v56 = vmul.f32 %v2848_v54, %v2848_v54  ;;  %v1314_v59 = vpop.f32.mrb[44].mxu0  ;;  %v1632_v8 = vpop.f32.mrb[59].mxu1 }
 0x16d   :  { %v2850_v53 = vpop.eup %2849  ;;  %v1604_v60 = vadd.f32 %v1603_v6, %v1314_v59  ;;  %v1316_v61 = vpop.f32.mrb[45].mxu0 }
 0x16e   :  { %v2318_v58 = vadd.f32 %v2317_v48, %v2255_v56  ;;  %2119 = vst [vmem:[%s3953_s3 + $0x98] sm:$0xff] %v2850_v53  ;;  %v2183_v57 = vadd.f32 %v2850_v53, %v2182_v55  ;;  %v2256_v62 = vmul.f32 %v2850_v53, %v2850_v53  ;;  %v1317_v63 = vpop.f32.mrb[46].mxu0 }
 0x16f   :  { %v1994_v0 = vadd.f32 %v3505_v28, %v1604_v60  ;;  %v1607_v1 = vadd.f32 %v3643_v11, %v1317_v63  ;;  %v1319_v2 = vpop.f32.mrb[47].mxu0 }
 0x170   :  { %v2319_v4 = vadd.f32 %v2318_v58, %v2256_v62 }
 0x171   :  { %2855 = vtanh.f32 %v1994_v0  ;;  %v1995_v6 = vadd.f32 %v3505_v28, %v1607_v1  ;;  %v1635_v23 = vpop.f32.mrb[60].mxu1 }
 0x172   :  { %v1637_v25 = vpop.f32.mrb[61].mxu1 }
 0x173   :  { %v2852_v10 = vpop.eup %2851  ;;  %2857 = vtanh.f32 %v1995_v6  ;;  %v3687_v27 = vpop.f32.mrb[62].mxu1 }
 0x174   :  { %2120 = vst [vmem:[%s3953_s3 + $0xa0] sm:$0xff] %v2852_v10  ;;  %v2184_v12 = vadd.f32 %v2852_v10, %v2183_v57  ;;  %v2257_v9 = vmul.f32 %v2852_v10, %v2852_v10  ;;  %v1322_v15 = vpop.f32.mrb[48].mxu0  ;;  %v1640_v29 = vpop.f32.mrb[63].mxu1 }
 0x175   :  { %v2854_v11 = vpop.eup %2853  ;;  %v1612_v16 = vadd.f32 %v1611_v26, %v1322_v15  ;;  %v1324_v17 = vpop.f32.mrb[49].mxu0 }
 0x176   :  { %v2320_v14 = vadd.f32 %v2319_v4, %v2257_v9  ;;  %2121 = vst [vmem:[%s3953_s3 + $0xa8] sm:$0xff] %v2854_v11  ;;  %v2185_v18 = vadd.f32 %v2854_v11, %v2184_v12  ;;  %v2258_v19 = vmul.f32 %v2854_v11, %v2854_v11  ;;  %v1325_v13 = vpop.f32.mrb[50].mxu0 }
 0x177   :  { %v1996_v20 = vadd.f32 %v3505_v28, %v1612_v16  ;;  %v1615_v21 = vadd.f32 %v3654_v31, %v1325_v13  ;;  %v1327_v22 = vpop.f32.mrb[51].mxu0 }
 0x178   :  { %v2321_v24 = vadd.f32 %v2320_v14, %v2258_v19 }
 0x179   :  { %2859 = vtanh.f32 %v1996_v20  ;;  %v1997_v26 = vadd.f32 %v3505_v28, %v1615_v21  ;;  %v1643_v44 = vpop.f32.mrb[64].mxu1 }
 0x17a   :  { %v1645_v46 = vpop.f32.mrb[65].mxu1 }
 0x17b   :  { %v2856_v30 = vpop.eup %2855  ;;  %2861 = vtanh.f32 %v1997_v26  ;;  %v3698_v48 = vpop.f32.mrb[66].mxu1 }
 0x17c   :  { %2122 = vst [vmem:[%s3953_s3 + $0xb0] sm:$0xff] %v2856_v30  ;;  %v2186_v33 = vadd.f32 %v2856_v30, %v2185_v18  ;;  %v2259_v32 = vmul.f32 %v2856_v30, %v2856_v30  ;;  %v1330_v35 = vpop.f32.mrb[52].mxu0  ;;  %v1648_v49 = vpop.f32.mrb[67].mxu1 }
 0x17d   :  { %v2858_v31 = vpop.eup %2857  ;;  %v1620_v37 = vadd.f32 %v1619_v47, %v1330_v35  ;;  %v1332_v38 = vpop.f32.mrb[53].mxu0 }
 0x17e   :  { %v2322_v34 = vadd.f32 %v2321_v24, %v2259_v32  ;;  %2123 = vst [vmem:[%s3953_s3 + $0xb8] sm:$0xff] %v2858_v31  ;;  %v2187_v39 = vadd.f32 %v2858_v31, %v2186_v33  ;;  %v2260_v40 = vmul.f32 %v2858_v31, %v2858_v31  ;;  %v1333_v36 = vpop.f32.mrb[54].mxu0 }
 0x17f   :  { %v1998_v41 = vadd.f32 %v3505_v28, %v1620_v37  ;;  %v1623_v42 = vadd.f32 %v3665_v51, %v1333_v36  ;;  %v1335_v43 = vpop.f32.mrb[55].mxu0 }
 0x180   :  { %v2323_v45 = vadd.f32 %v2322_v34, %v2260_v40 }
 0x181   :  { %2863 = vtanh.f32 %v1998_v41  ;;  %v1999_v47 = vadd.f32 %v3505_v28, %v1623_v42  ;;  %v1651_v0 = vpop.f32.mrb[68].mxu1 }
 0x182   :  { %v1653_v2 = vpop.f32.mrb[69].mxu1 }
 0x183   :  { %v2860_v50 = vpop.eup %2859  ;;  %2865 = vtanh.f32 %v1999_v47  ;;  %v3709_v4 = vpop.f32.mrb[70].mxu1 }
 0x184   :  { %2124 = vst [vmem:[%s3953_s3 + $0xc0] sm:$0xff] %v2860_v50  ;;  %v2188_v52 = vadd.f32 %v2860_v50, %v2187_v39  ;;  %v2261_v54 = vmul.f32 %v2860_v50, %v2860_v50  ;;  %v1338_v55 = vpop.f32.mrb[56].mxu0  ;;  %v1656_v5 = vpop.f32.mrb[71].mxu1 }
 0x185   :  { %v2862_v51 = vpop.eup %2861  ;;  %v1628_v56 = vadd.f32 %v1627_v3, %v1338_v55  ;;  %v1340_v59 = vpop.f32.mrb[57].mxu0 }
 0x186   :  { %v2324_v53 = vadd.f32 %v2323_v45, %v2261_v54  ;;  %2125 = vst [vmem:[%s3953_s3 + $0xc8] sm:$0xff] %v2862_v51  ;;  %v2189_v60 = vadd.f32 %v2862_v51, %v2188_v52  ;;  %v2262_v61 = vmul.f32 %v2862_v51, %v2862_v51  ;;  %v1341_v58 = vpop.f32.mrb[58].mxu0 }
 0x187   :  { %v2000_v57 = vadd.f32 %v3505_v28, %v1628_v56  ;;  %v1631_v62 = vadd.f32 %v3676_v7, %v1341_v58  ;;  %v1343_v63 = vpop.f32.mrb[59].mxu0 }
 0x188   :  { %v2325_v1 = vadd.f32 %v2324_v53, %v2262_v61 }
 0x189   :  { %2867 = vtanh.f32 %v2000_v57  ;;  %v2001_v3 = vadd.f32 %v3505_v28, %v1631_v62  ;;  %v3719_v20 = vpop.f32.mrb[72].mxu1  ;;  %v2989_v62 = vmov 0.0  }
 0x18a   :  { %v1661_v22 = vpop.f32.mrb[73].mxu1  ;;  %26 = vst [vmem:[#allocation3] sm:$0x1] %v2989_v62  ;;  %27 = vst [vmem:[#allocation5] sm:$0x1] %v2989_v62 }
 0x18b   :  { %v2864_v6 = vpop.eup %2863  ;;  %2869 = vtanh.f32 %v2001_v3  ;;  %v3722_v24 = vpop.f32.mrb[74].mxu1 }
 0x18c   :  { %2126 = vst [vmem:[%s3953_s3 + $0xd0] sm:$0xff] %v2864_v6  ;;  %v2190_v8 = vadd.f32 %v2864_v6, %v2189_v60  ;;  %v2263_v10 = vmul.f32 %v2864_v6, %v2864_v6  ;;  %v1346_v12 = vpop.f32.mrb[60].mxu0  ;;  %v1664_v25 = vpop.f32.mrb[75].mxu1 }
 0x18d   :  { %v2866_v7 = vpop.eup %2865  ;;  %v1636_v9 = vadd.f32 %v1635_v23, %v1346_v12  ;;  %v1348_v15 = vpop.f32.mrb[61].mxu0 }
 0x18e   :  { %v2326_v11 = vadd.f32 %v2325_v1, %v2263_v10  ;;  %2127 = vst [vmem:[%s3953_s3 + $0xd8] sm:$0xff] %v2866_v7  ;;  %v2191_v16 = vadd.f32 %v2866_v7, %v2190_v8  ;;  %v2264_v17 = vmul.f32 %v2866_v7, %v2866_v7  ;;  %v1349_v14 = vpop.f32.mrb[62].mxu0 }
 0x18f   :  { %v2002_v18 = vadd.f32 %v3505_v28, %v1636_v9  ;;  %v1639_v19 = vadd.f32 %v3687_v27, %v1349_v14  ;;  %v1351_v13 = vpop.f32.mrb[63].mxu0 }
 0x190   :  { %v2327_v21 = vadd.f32 %v2326_v11, %v2264_v17 }
 0x191   :  { %2871 = vtanh.f32 %v2002_v18  ;;  %v2003_v23 = vadd.f32 %v3505_v28, %v1639_v19  ;;  %v3732_v41 = vpop.f32.mrb[76].mxu1 }
 0x192   :  { %v1669_v43 = vpop.f32.mrb[77].mxu1 }
 0x193   :  { %v2868_v26 = vpop.eup %2867  ;;  %2873 = vtanh.f32 %v2003_v23  ;;  %v3735_v45 = vpop.f32.mrb[78].mxu1 }
 0x194   :  { %2128 = vst [vmem:[%s3953_s3 + $0xe0] sm:$0xff] %v2868_v26  ;;  %v2192_v29 = vadd.f32 %v2868_v26, %v2191_v16  ;;  %v2265_v30 = vmul.f32 %v2868_v26, %v2868_v26  ;;  %v1354_v27 = vpop.f32.mrb[64].mxu0  ;;  %v1672_v46 = vpop.f32.mrb[79].mxu1 }
 0x195   :  { %v2870_v33 = vpop.eup %2869  ;;  %v1644_v32 = vadd.f32 %v1643_v44, %v1354_v27  ;;  %v1356_v35 = vpop.f32.mrb[65].mxu0 }
 0x196   :  { %v2328_v31 = vadd.f32 %v2327_v21, %v2265_v30  ;;  %2129 = vst [vmem:[%s3953_s3 + $0xe8] sm:$0xff] %v2870_v33  ;;  %v2193_v37 = vadd.f32 %v2870_v33, %v2192_v29  ;;  %v2266_v38 = vmul.f32 %v2870_v33, %v2870_v33  ;;  %v1357_v34 = vpop.f32.mrb[66].mxu0 }
 0x197   :  { %v2004_v39 = vadd.f32 %v3505_v28, %v1644_v32  ;;  %v1647_v40 = vadd.f32 %v3698_v48, %v1357_v34  ;;  %v1359_v36 = vpop.f32.mrb[67].mxu0 }
 0x198   :  { %v2329_v42 = vadd.f32 %v2328_v31, %v2266_v38 }
 0x199   :  { %2875 = vtanh.f32 %v2004_v39  ;;  %v2005_v44 = vadd.f32 %v3505_v28, %v1647_v40  ;;  %v3745_v57 = vpop.f32.mrb[80].mxu1 }
 0x19b   :  { %v2872_v47 = vpop.eup %2871  ;;  %2877 = vtanh.f32 %v2005_v44 }
 0x19c   :  { %2130 = vst [vmem:[%s3953_s3 + $0xf0] sm:$0xff] %v2872_v47  ;;  %v2194_v49 = vadd.f32 %v2872_v47, %v2193_v37  ;;  %v2267_v50 = vmul.f32 %v2872_v47, %v2872_v47  ;;  %v1362_v48 = vpop.f32.mrb[68].mxu0 }
 0x19d   :  { %v2874_v52 = vpop.eup %2873  ;;  %v1652_v54 = vadd.f32 %v1651_v0, %v1362_v48  ;;  %v1364_v55 = vpop.f32.mrb[69].mxu0 }
 0x19e   :  { %v2330_v51 = vadd.f32 %v2329_v42, %v2267_v50  ;;  %2131 = vst [vmem:[%s3953_s3 + $0xf8] sm:$0xff] %v2874_v52  ;;  %v2195_v56 = vadd.f32 %v2874_v52, %v2194_v49  ;;  %v2268_v59 = vmul.f32 %v2874_v52, %v2874_v52  ;;  %v1365_v53 = vpop.f32.mrb[70].mxu0  ;;  %v1677_v0 = vpop.f32.mrb[81].mxu1 }
 0x19f   :  { %v2006_v60 = vadd.f32 %v3505_v28, %v1652_v54  ;;  %v1655_v61 = vadd.f32 %v3709_v4, %v1365_v53  ;;  %v1367_v58 = vpop.f32.mrb[71].mxu0  ;;  %v3748_v2 = vpop.f32.mrb[82].mxu1 }
 0x1a0   :  { %v2331_v63 = vadd.f32 %v2330_v51, %v2268_v59  ;;  %v1680_v3 = vpop.f32.mrb[83].mxu1 }
 0x1a1   :  { %2879 = vtanh.f32 %v2006_v60  ;;  %v2007_v1 = vadd.f32 %v3505_v28, %v1655_v61  ;;  %v1683_v19 = vpop.f32.mrb[84].mxu1 }
 0x1a2   :  { %v1685_v21 = vpop.f32.mrb[85].mxu1 }
 0x1a3   :  { %v2876_v5 = vpop.eup %2875  ;;  %2881 = vtanh.f32 %v2007_v1  ;;  %v3760_v22 = vpop.f32.mrb[86].mxu1 }
 0x1a4   :  { %2132 = vst [vmem:[%s3953_s3 + $0x100] sm:$0xff] %v2876_v5  ;;  %v2196_v4 = vadd.f32 %v2876_v5, %v2195_v56  ;;  %v2269_v6 = vmul.f32 %v2876_v5, %v2876_v5  ;;  %v1370_v8 = vpop.f32.mrb[72].mxu0  ;;  %v1688_v23 = vpop.f32.mrb[87].mxu1 }
 0x1a5   :  { %v2878_v10 = vpop.eup %2877  ;;  %v1660_v12 = vadd.f32 %v3719_v20, %v1370_v8  ;;  %v1372_v7 = vpop.f32.mrb[73].mxu0 }
 0x1a6   :  { %v2332_v9 = vadd.f32 %v2331_v63, %v2269_v6  ;;  %2133 = vst [vmem:[%s3953_s3 + $0x108] sm:$0xff] %v2878_v10  ;;  %v2197_v15 = vadd.f32 %v2878_v10, %v2196_v4  ;;  %v2270_v11 = vmul.f32 %v2878_v10, %v2878_v10  ;;  %v1373_v16 = vpop.f32.mrb[74].mxu0 }
 0x1a7   :  { %v2008_v17 = vadd.f32 %v3505_v28, %v1660_v12  ;;  %v1663_v14 = vadd.f32 %v3722_v24, %v1373_v16  ;;  %v1375_v18 = vpop.f32.mrb[75].mxu0 }
 0x1a8   :  { %v2333_v13 = vadd.f32 %v2332_v9, %v2270_v11  ;;  %v3799_v9 = vld [vmem:[%s3952_s2] ss:$0 sm:$0xff] }
 0x1a9   :  { %2883 = vtanh.f32 %v2008_v17  ;;  %v2009_v20 = vadd.f32 %v3505_v28, %v1663_v14  ;;  %v3771_v40 = vpop.f32.mrb[88].mxu1 }
 0x1aa   :  { %v1693_v42 = vpop.f32.mrb[89].mxu1 }
 0x1ab   :  { %v2880_v25 = vpop.eup %2879  ;;  %2885 = vtanh.f32 %v2009_v20  ;;  %v3774_v43 = vpop.f32.mrb[90].mxu1 }
 0x1ac   :  { %2134 = vst [vmem:[%s3953_s3 + $0x110] sm:$0xff] %v2880_v25  ;;  %v2198_v26 = vadd.f32 %v2880_v25, %v2197_v15  ;;  %v2271_v29 = vmul.f32 %v2880_v25, %v2880_v25  ;;  %v1378_v30 = vpop.f32.mrb[76].mxu0  ;;  %v1696_v44 = vpop.f32.mrb[91].mxu1 }
 0x1ad   :  { %v2882_v24 = vpop.eup %2881  ;;  %v1668_v27 = vadd.f32 %v3732_v41, %v1378_v30  ;;  %v1380_v33 = vpop.f32.mrb[77].mxu0 }
 0x1ae   :  { %v2334_v32 = vadd.f32 %v2333_v13, %v2271_v29  ;;  %2135 = vst [vmem:[%s3953_s3 + $0x118] sm:$0xff] %v2882_v24  ;;  %v2199_v35 = vadd.f32 %v2882_v24, %v2198_v26  ;;  %v2272_v31 = vmul.f32 %v2882_v24, %v2882_v24  ;;  %v1381_v37 = vpop.f32.mrb[78].mxu0 }
 0x1af   :  { %v2010_v38 = vadd.f32 %v3505_v28, %v1668_v27  ;;  %v1671_v34 = vadd.f32 %v3735_v45, %v1381_v37  ;;  %v1383_v39 = vpop.f32.mrb[79].mxu0 }
 0x1b0   :  { %v2335_v36 = vadd.f32 %v2334_v32, %v2272_v31 }
 0x1b1   :  { %2887 = vtanh.f32 %v2010_v38  ;;  %v2011_v41 = vadd.f32 %v3505_v28, %v1671_v34  ;;  %v3785_v61 = vpop.f32.mrb[92].mxu1 }
 0x1b2   :  { %v1701_v62 = vpop.f32.mrb[93].mxu1 }
 0x1b3   :  { %v2884_v46 = vpop.eup %2883  ;;  %2889 = vtanh.f32 %v2011_v41  ;;  %v3788_v63 = vpop.f32.mrb[94].mxu1 }
 0x1b4   :  { %2136 = vst [vmem:[%s3953_s3 + $0x120] sm:$0xff] %v2884_v46  ;;  %v2200_v47 = vadd.f32 %v2884_v46, %v2199_v35  ;;  %v2273_v49 = vmul.f32 %v2884_v46, %v2884_v46  ;;  %v1386_v45 = vpop.f32.mrb[80].mxu0  ;;  %v1704_v0 = vpop.f32.mrb[95].mxu1 }
 0x1b5   :  { %v2886_v50 = vpop.eup %2885  ;;  %v1676_v48 = vadd.f32 %v3745_v57, %v1386_v45  ;;  %v1388_v52 = vpop.f32.mrb[81].mxu0 }
 0x1b6   :  { %v2336_v54 = vadd.f32 %v2335_v36, %v2273_v49  ;;  %2137 = vst [vmem:[%s3953_s3 + $0x128] sm:$0xff] %v2886_v50  ;;  %v2201_v55 = vadd.f32 %v2886_v50, %v2200_v47  ;;  %v2274_v51 = vmul.f32 %v2886_v50, %v2886_v50  ;;  %v1389_v56 = vpop.f32.mrb[82].mxu0 }
 0x1b7   :  { %v2012_v59 = vadd.f32 %v3505_v28, %v1676_v48  ;;  %v1679_v53 = vadd.f32 %v3748_v2, %v1389_v56  ;;  %v1391_v60 = vpop.f32.mrb[83].mxu0 }
 0x1b8   :  { %v2337_v58 = vadd.f32 %v2336_v54, %v2274_v51 }
 0x1b9   :  { %2891 = vtanh.f32 %v2012_v59  ;;  %v2013_v57 = vadd.f32 %v3505_v28, %v1679_v53  ;;  %v1707_v17 = vpop.f32.mrb[96].mxu1 }
 0x1ba   :  { %v1709_v18 = vpop.f32.mrb[97].mxu1 }
 0x1bb   :  { %v2888_v1 = vpop.eup %2887  ;;  %2893 = vtanh.f32 %v2013_v57  ;;  %v3804_v13 = vpop.f32.mrb[98].mxu1 }
 0x1bc   :  { %2138 = vst [vmem:[%s3953_s3 + $0x130] sm:$0xff] %v2888_v1  ;;  %v2202_v3 = vadd.f32 %v2888_v1, %v2201_v55  ;;  %v2275_v5 = vmul.f32 %v2888_v1, %v2888_v1  ;;  %v1394_v2 = vpop.f32.mrb[84].mxu0  ;;  %v1712_v21 = vpop.f32.mrb[99].mxu1 }
 0x1bd   :  { %v2890_v4 = vpop.eup %2889  ;;  %v1684_v6 = vadd.f32 %v1683_v19, %v1394_v2  ;;  %v1396_v8 = vpop.f32.mrb[85].mxu0 }
 0x1be   :  { %v2338_v10 = vadd.f32 %v2337_v58, %v2275_v5  ;;  %2139 = vst [vmem:[%s3953_s3 + $0x138] sm:$0xff] %v2890_v4  ;;  %v2203_v28 = vadd.f32 %v2890_v4, %v2202_v3  ;;  %v2276_v12 = vmul.f32 %v2890_v4, %v2890_v4  ;;  %v1397_v7 = vpop.f32.mrb[86].mxu0 }
 0x1bf   :  { %v2014_v15 = vadd.f32 %v3799_v9, %v1684_v6  ;;  %v1687_v11 = vadd.f32 %v3760_v22, %v1397_v7  ;;  %v1399_v16 = vpop.f32.mrb[87].mxu0 }
 0x1c0   :  { %v2339_v14 = vadd.f32 %v2338_v10, %v2276_v12 }
 0x1c1   :  { %2895 = vtanh.f32 %v2014_v15  ;;  %v2015_v19 = vadd.f32 %v3799_v9, %v1687_v11  ;;  %v1715_v38 = vpop.f32.mrb[100].mxu1 }
 0x1c2   :  { %v1717_v39 = vpop.f32.mrb[101].mxu1 }
 0x1c3   :  { %v2892_v20 = vpop.eup %2891  ;;  %2897 = vtanh.f32 %v2015_v19  ;;  %v3816_v36 = vpop.f32.mrb[102].mxu1 }
 0x1c4   :  { %2140 = vst [vmem:[%s3953_s3 + $0x140] sm:$0xff] %v2892_v20  ;;  %v2204_v23 = vadd.f32 %v2892_v20, %v2203_v28  ;;  %v2277_v25 = vmul.f32 %v2892_v20, %v2892_v20  ;;  %v1402_v26 = vpop.f32.mrb[88].mxu0  ;;  %v1720_v42 = vpop.f32.mrb[103].mxu1 }
 0x1c5   :  { %v2894_v22 = vpop.eup %2893  ;;  %v1692_v29 = vadd.f32 %v3771_v40, %v1402_v26  ;;  %v1404_v30 = vpop.f32.mrb[89].mxu0 }
 0x1c6   :  { %v2340_v24 = vadd.f32 %v2339_v14, %v2277_v25  ;;  %2141 = vst [vmem:[%s3953_s3 + $0x148] sm:$0xff] %v2894_v22  ;;  %v2205_v27 = vadd.f32 %v2894_v22, %v2204_v23  ;;  %v2278_v33 = vmul.f32 %v2894_v22, %v2894_v22  ;;  %v1405_v32 = vpop.f32.mrb[90].mxu0 }
 0x1c7   :  { %v2016_v35 = vadd.f32 %v3799_v9, %v1692_v29  ;;  %v1695_v31 = vadd.f32 %v3774_v43, %v1405_v32  ;;  %v1407_v37 = vpop.f32.mrb[91].mxu0 }
 0x1c8   :  { %v2341_v34 = vadd.f32 %v2340_v24, %v2278_v33 }
 0x1c9   :  { %2899 = vtanh.f32 %v2016_v35  ;;  %v2017_v40 = vadd.f32 %v3799_v9, %v1695_v31  ;;  %v1723_v59 = vpop.f32.mrb[104].mxu1 }
 0x1ca   :  { %v1725_v60 = vpop.f32.mrb[105].mxu1 }
 0x1cb   :  { %v2896_v41 = vpop.eup %2895  ;;  %2901 = vtanh.f32 %v2017_v40  ;;  %v3828_v58 = vpop.f32.mrb[106].mxu1 }
 0x1cc   :  { %2142 = vst [vmem:[%s3953_s3 + $0x150] sm:$0xff] %v2896_v41  ;;  %v2206_v44 = vadd.f32 %v2896_v41, %v2205_v27  ;;  %v2279_v46 = vmul.f32 %v2896_v41, %v2896_v41  ;;  %v1410_v47 = vpop.f32.mrb[92].mxu0  ;;  %v1728_v62 = vpop.f32.mrb[107].mxu1 }
 0x1cd   :  { %v2898_v43 = vpop.eup %2897  ;;  %v1700_v49 = vadd.f32 %v3785_v61, %v1410_v47  ;;  %v1412_v45 = vpop.f32.mrb[93].mxu0 }
 0x1ce   :  { %v2342_v50 = vadd.f32 %v2341_v34, %v2279_v46  ;;  %2143 = vst [vmem:[%s3953_s3 + $0x158] sm:$0xff] %v2898_v43  ;;  %v2207_v48 = vadd.f32 %v2898_v43, %v2206_v44  ;;  %v2280_v52 = vmul.f32 %v2898_v43, %v2898_v43  ;;  %v1413_v54 = vpop.f32.mrb[94].mxu0 }
 0x1cf   :  { %v2018_v55 = vadd.f32 %v3799_v9, %v1700_v49  ;;  %v1703_v51 = vadd.f32 %v3788_v63, %v1413_v54  ;;  %v1415_v56 = vpop.f32.mrb[95].mxu0 }
 0x1d0   :  { %v2343_v53 = vadd.f32 %v2342_v50, %v2280_v52 }
 0x1d1   :  { %2903 = vtanh.f32 %v2018_v55  ;;  %v2019_v61 = vadd.f32 %v3799_v9, %v1703_v51  ;;  %v1731_v15 = vpop.f32.mrb[108].mxu1 }
 0x1d2   :  { %v1733_v16 = vpop.f32.mrb[109].mxu1 }
 0x1d3   :  { %v2900_v57 = vpop.eup %2899  ;;  %2905 = vtanh.f32 %v2019_v61  ;;  %v3839_v14 = vpop.f32.mrb[110].mxu1 }
 0x1d4   :  { %2144 = vst [vmem:[%s3953_s3 + $0x160] sm:$0xff] %v2900_v57  ;;  %v2208_v0 = vadd.f32 %v2900_v57, %v2207_v48  ;;  %v2281_v1 = vmul.f32 %v2900_v57, %v2900_v57  ;;  %v1418_v3 = vpop.f32.mrb[96].mxu0  ;;  %v1736_v18 = vpop.f32.mrb[111].mxu1 }
 0x1d5   :  { %v2902_v63 = vpop.eup %2901  ;;  %v1708_v5 = vadd.f32 %v1707_v17, %v1418_v3  ;;  %v1420_v2 = vpop.f32.mrb[97].mxu0 }
 0x1d6   :  { %v2344_v4 = vadd.f32 %v2343_v53, %v2281_v1  ;;  %2145 = vst [vmem:[%s3953_s3 + $0x168] sm:$0xff] %v2902_v63  ;;  %v2209_v6 = vadd.f32 %v2902_v63, %v2208_v0  ;;  %v2282_v8 = vmul.f32 %v2902_v63, %v2902_v63  ;;  %v1421_v10 = vpop.f32.mrb[98].mxu0 }
 0x1d7   :  { %v2020_v28 = vadd.f32 %v3799_v9, %v1708_v5  ;;  %v1711_v12 = vadd.f32 %v3804_v13, %v1421_v10  ;;  %v1423_v7 = vpop.f32.mrb[99].mxu0 }
 0x1d8   :  { %v2345_v11 = vadd.f32 %v2344_v4, %v2282_v8 }
 0x1d9   :  { %2907 = vtanh.f32 %v2020_v28  ;;  %v2021_v17 = vadd.f32 %v3799_v9, %v1711_v12  ;;  %v1739_v35 = vpop.f32.mrb[112].mxu1 }
 0x1da   :  { %v1741_v37 = vpop.f32.mrb[113].mxu1 }
 0x1db   :  { %v2904_v19 = vpop.eup %2903  ;;  %2909 = vtanh.f32 %v2021_v17  ;;  %v3850_v34 = vpop.f32.mrb[114].mxu1 }
 0x1dc   :  { %2146 = vst [vmem:[%s3953_s3 + $0x170] sm:$0xff] %v2904_v19  ;;  %v2210_v21 = vadd.f32 %v2904_v19, %v2209_v6  ;;  %v2283_v20 = vmul.f32 %v2904_v19, %v2904_v19  ;;  %v1426_v23 = vpop.f32.mrb[100].mxu0  ;;  %v1744_v39 = vpop.f32.mrb[115].mxu1 }
 0x1dd   :  { %v2906_v13 = vpop.eup %2905  ;;  %v1716_v25 = vadd.f32 %v1715_v38, %v1426_v23  ;;  %v1428_v26 = vpop.f32.mrb[101].mxu0 }
 0x1de   :  { %v2346_v22 = vadd.f32 %v2345_v11, %v2283_v20  ;;  %2147 = vst [vmem:[%s3953_s3 + $0x178] sm:$0xff] %v2906_v13  ;;  %v2211_v29 = vadd.f32 %v2906_v13, %v2210_v21  ;;  %v2284_v30 = vmul.f32 %v2906_v13, %v2906_v13  ;;  %v1429_v24 = vpop.f32.mrb[102].mxu0 }
 0x1df   :  { %v2022_v27 = vadd.f32 %v3799_v9, %v1716_v25  ;;  %v1719_v33 = vadd.f32 %v3816_v36, %v1429_v24  ;;  %v1431_v32 = vpop.f32.mrb[103].mxu0 }
 0x1e0   :  { %v2347_v31 = vadd.f32 %v2346_v22, %v2284_v30 }
 0x1e1   :  { %2911 = vtanh.f32 %v2022_v27  ;;  %v2023_v38 = vadd.f32 %v3799_v9, %v1719_v33  ;;  %v1747_v55 = vpop.f32.mrb[116].mxu1 }
 0x1e2   :  { %v1749_v56 = vpop.f32.mrb[117].mxu1 }
 0x1e3   :  { %v2908_v40 = vpop.eup %2907  ;;  %2913 = vtanh.f32 %v2023_v38  ;;  %v3861_v53 = vpop.f32.mrb[118].mxu1 }
 0x1e4   :  { %2148 = vst [vmem:[%s3953_s3 + $0x180] sm:$0xff] %v2908_v40  ;;  %v2212_v42 = vadd.f32 %v2908_v40, %v2211_v29  ;;  %v2285_v41 = vmul.f32 %v2908_v40, %v2908_v40  ;;  %v1434_v44 = vpop.f32.mrb[104].mxu0  ;;  %v1752_v60 = vpop.f32.mrb[119].mxu1 }
 0x1e5   :  { %v2910_v36 = vpop.eup %2909  ;;  %v1724_v46 = vadd.f32 %v1723_v59, %v1434_v44  ;;  %v1436_v47 = vpop.f32.mrb[105].mxu0 }
 0x1e6   :  { %v2348_v43 = vadd.f32 %v2347_v31, %v2285_v41  ;;  %2149 = vst [vmem:[%s3953_s3 + $0x188] sm:$0xff] %v2910_v36  ;;  %v2213_v49 = vadd.f32 %v2910_v36, %v2212_v42  ;;  %v2286_v45 = vmul.f32 %v2910_v36, %v2910_v36  ;;  %v1437_v50 = vpop.f32.mrb[106].mxu0 }
 0x1e7   :  { %v2024_v48 = vadd.f32 %v3799_v9, %v1724_v46  ;;  %v1727_v52 = vadd.f32 %v3828_v58, %v1437_v50  ;;  %v1439_v54 = vpop.f32.mrb[107].mxu0 }
 0x1e8   :  { %v2349_v51 = vadd.f32 %v2348_v43, %v2286_v45 }
 0x1e9   :  { %2915 = vtanh.f32 %v2024_v48  ;;  %v2025_v59 = vadd.f32 %v3799_v9, %v1727_v52  ;;  %v1755_v28 = vpop.f32.mrb[120].mxu1 }
 0x1ea   :  { %v1757_v7 = vpop.f32.mrb[121].mxu1 }
 0x1eb   :  { %v2912_v61 = vpop.eup %2911  ;;  %2917 = vtanh.f32 %v2025_v59  ;;  %v1758_v11 = vpop.f32.mrb[122].mxu1 }
 0x1ec   :  { %2150 = vst [vmem:[%s3953_s3 + $0x190] sm:$0xff] %v2912_v61  ;;  %v2214_v62 = vadd.f32 %v2912_v61, %v2213_v49  ;;  %v2287_v57 = vmul.f32 %v2912_v61, %v2912_v61  ;;  %v1442_v0 = vpop.f32.mrb[108].mxu0  ;;  %v1760_v16 = vpop.f32.mrb[123].mxu1 }
 0x1ed   :  { %v2914_v58 = vpop.eup %2913  ;;  %v1732_v1 = vadd.f32 %v1731_v15, %v1442_v0  ;;  %v1444_v3 = vpop.f32.mrb[109].mxu0 }
 0x1ee   :  { %v2350_v63 = vadd.f32 %v2349_v51, %v2287_v57  ;;  %2151 = vst [vmem:[%s3953_s3 + $0x198] sm:$0xff] %v2914_v58  ;;  %v2215_v5 = vadd.f32 %v2914_v58, %v2214_v62  ;;  %v2288_v2 = vmul.f32 %v2914_v58, %v2914_v58  ;;  %v1445_v4 = vpop.f32.mrb[110].mxu0 }
 0x1ef   :  { %v2026_v6 = vadd.f32 %v3799_v9, %v1732_v1  ;;  %v1735_v8 = vadd.f32 %v3839_v14, %v1445_v4  ;;  %v1447_v10 = vpop.f32.mrb[111].mxu0 }
 0x1f0   :  { %v2351_v12 = vadd.f32 %v2350_v63, %v2288_v2 }
 0x1f1   :  { %2919 = vtanh.f32 %v2026_v6  ;;  %v2027_v15 = vadd.f32 %v3799_v9, %v1735_v8  ;;  %v1763_v27 = vpop.f32.mrb[124].mxu1 }
 0x1f2   :  { %v1765_v32 = vpop.f32.mrb[125].mxu1 }
 0x1f3   :  { %v2916_v17 = vpop.eup %2915  ;;  %2921 = vtanh.f32 %v2027_v15  ;;  %v1766_v31 = vpop.f32.mrb[126].mxu1 }
 0x1f4   :  { %2152 = vst [vmem:[%s3953_s3 + $0x1a0] sm:$0xff] %v2916_v17  ;;  %v2216_v18 = vadd.f32 %v2916_v17, %v2215_v5  ;;  %v2289_v19 = vmul.f32 %v2916_v17, %v2916_v17  ;;  %v1450_v21 = vpop.f32.mrb[112].mxu0  ;;  %v1768_v37 = vpop.f32.mrb[127].mxu1 }
 0x1f5   :  { %v2918_v20 = vpop.eup %2917  ;;  %v1740_v14 = vadd.f32 %v1739_v35, %v1450_v21  ;;  %v1452_v23 = vpop.f32.mrb[113].mxu0 }
 0x1f6   :  { %v2352_v13 = vadd.f32 %v2351_v12, %v2289_v19  ;;  %2153 = vst [vmem:[%s3953_s3 + $0x1a8] sm:$0xff] %v2918_v20  ;;  %v2217_v25 = vadd.f32 %v2918_v20, %v2216_v18  ;;  %v2290_v26 = vmul.f32 %v2918_v20, %v2918_v20  ;;  %v1453_v22 = vpop.f32.mrb[114].mxu0 }
 0x1f7   :  { %v2028_v29 = vadd.f32 %v3799_v9, %v1740_v14  ;;  %v1743_v30 = vadd.f32 %v3850_v34, %v1453_v22  ;;  %v1455_v24 = vpop.f32.mrb[115].mxu0 }
 0x1f8   :  { %v2353_v33 = vadd.f32 %v2352_v13, %v2290_v26 }
 0x1f9   :  { %2923 = vtanh.f32 %v2028_v29  ;;  %v2029_v35 = vadd.f32 %v3799_v9, %v1743_v30 }
 0x1fb   :  { %v2920_v38 = vpop.eup %2919  ;;  %2925 = vtanh.f32 %v2029_v35 }
 0x1fc   :  { %2154 = vst [vmem:[%s3953_s3 + $0x1b0] sm:$0xff] %v2920_v38  ;;  %v2218_v39 = vadd.f32 %v2920_v38, %v2217_v25  ;;  %v2291_v40 = vmul.f32 %v2920_v38, %v2920_v38  ;;  %v1458_v42 = vpop.f32.mrb[116].mxu0 }
 0x1fd   :  { %v2922_v41 = vpop.eup %2921  ;;  %v1748_v34 = vadd.f32 %v1747_v55, %v1458_v42  ;;  %v1460_v44 = vpop.f32.mrb[117].mxu0 }
 0x1fe   :  { %v2354_v36 = vadd.f32 %v2353_v33, %v2291_v40  ;;  %2155 = vst [vmem:[%s3953_s3 + $0x1b8] sm:$0xff] %v2922_v41  ;;  %v2292_v46 = vmul.f32 %v2922_v41, %v2922_v41  ;;  %v1461_v47 = vpop.f32.mrb[118].mxu0  ;;  %v2219_v43 = vadd.f32 %v2922_v41, %v2218_v39 }
 0x1ff   :  { %v2030_v49 = vadd.f32 %v3799_v9, %v1748_v34  ;;  %v1751_v45 = vadd.f32 %v3861_v53, %v1461_v47  ;;  %v1463_v50 = vpop.f32.mrb[119].mxu0  ;;  %v2164_v47 = vld [vmem:[#allocation3] sm:$0x1] }
 0x200   :  { %v2355_v48 = vadd.f32 %v2354_v36, %v2292_v46 }
 0x201   :  { %2927 = vtanh.f32 %v2030_v49  ;;  %v2031_v52 = vadd.f32 %v3799_v9, %v1751_v45  ;;  %v2236_v45 = vld [vmem:[#allocation5] sm:$0x1] }
 0x203   :  { %v2924_v54 = vpop.eup %2923  ;;  %2929 = vtanh.f32 %v2031_v52 }
 0x204   :  { %2156 = vst [vmem:[%s3953_s3 + $0x1c0] sm:$0xff] %v2924_v54  ;;  %v2293_v55 = vmul.f32 %v2924_v54, %v2924_v54  ;;  %v1466_v51 = vpop.f32.mrb[120].mxu0  ;;  %v2220_v56 = vadd.f32 %v2924_v54, %v2219_v43 }
 0x205   :  { %v2926_v59 = vpop.eup %2925  ;;  %v1756_v60 = vadd.f32 %v1755_v28, %v1466_v51  ;;  %v1468_v61 = vpop.f32.mrb[121].mxu0 }
 0x206   :  { %2157 = vst [vmem:[%s3953_s3 + $0x1c8] sm:$0xff] %v2926_v59  ;;  %v1469_v53 = vpop.f32.mrb[122].mxu0  ;;  %v2221_v62 = vadd.f32 %v2926_v59, %v2220_v56  ;;  %v2294_v57 = vmul.f32 %v2926_v59, %v2926_v59  ;;  %v2356_v0 = vadd.f32 %v2355_v48, %v2293_v55 }
 0x207   :  { %v2032_v58 = vadd.f32 %v3799_v9, %v1756_v60  ;;  %v1759_v1 = vadd.f32 %v1758_v11, %v1469_v53  ;;  %v1471_v3 = vpop.f32.mrb[123].mxu0 }
 0x208   :  { %v2357_v63 = vadd.f32 %v2356_v0, %v2294_v57 }
 0x209   :  { %2931 = vtanh.f32 %v2032_v58  ;;  %v2033_v5 = vadd.f32 %v3799_v9, %v1759_v1 }
 0x20b   :  { %v2928_v2 = vpop.eup %2927  ;;  %2933 = vtanh.f32 %v2033_v5 }
 0x20c   :  { %2158 = vst [vmem:[%s3953_s3 + $0x1d0] sm:$0xff] %v2928_v2  ;;  %v1474_v4 = vpop.f32.mrb[124].mxu0  ;;  %v2222_v6 = vadd.f32 %v2928_v2, %v2221_v62  ;;  %v2295_v8 = vmul.f32 %v2928_v2, %v2928_v2 }
 0x20d   :  { %v2930_v10 = vpop.eup %2929  ;;  %v1764_v28 = vadd.f32 %v1763_v27, %v1474_v4  ;;  %v1476_v12 = vpop.f32.mrb[125].mxu0 }
 0x20e   :  { %2159 = vst [vmem:[%s3953_s3 + $0x1d8] sm:$0xff] %v2930_v10  ;;  %v1477_v7 = vpop.f32.mrb[126].mxu0  ;;  %v2223_v15 = vadd.f32 %v2930_v10, %v2222_v6  ;;  %v2296_v11 = vmul.f32 %v2930_v10, %v2930_v10  ;;  %v2358_v16 = vadd.f32 %v2357_v63, %v2295_v8 }
 0x20f   :  { %v2034_v17 = vadd.f32 %v3799_v9, %v1764_v28  ;;  %v1767_v18 = vadd.f32 %v1766_v31, %v1477_v7  ;;  %v1479_v19 = vpop.f32.mrb[127].mxu0 }
 0x210   :  { %v2359_v21 = vadd.f32 %v2358_v16, %v2296_v11 }
 0x211   :  { %2935 = vtanh.f32 %v2034_v17  ;;  %v2035_v20 = vadd.f32 %v3799_v9, %v1767_v18 }
 0x213   :  { %v2932_v14 = vpop.eup %2931  ;;  %2937 = vtanh.f32 %v2035_v20 }
 0x214   :  { %2160 = vst [vmem:[%s3953_s3 + $0x1e0] sm:$0xff] %v2932_v14  ;;  %v2224_v23 = vadd.f32 %v2932_v14, %v2223_v15  ;;  %v2297_v13 = vmul.f32 %v2932_v14, %v2932_v14 }
 0x215   :  { %v2934_v25 = vpop.eup %2933 }
 0x216   :  { %2161 = vst [vmem:[%s3953_s3 + $0x1e8] sm:$0xff] %v2934_v25  ;;  %v2225_v26 = vadd.f32 %v2934_v25, %v2224_v23  ;;  %v2298_v22 = vmul.f32 %v2934_v25, %v2934_v25  ;;  %v2360_v29 = vadd.f32 %v2359_v21, %v2297_v13 }
 0x218   :  { %v2361_v30 = vadd.f32 %v2360_v29, %v2298_v22 }
 0x21b   :  { %v2936_v24 = vpop.eup %2935 }
 0x21c   :  { %2162 = vst [vmem:[%s3953_s3 + $0x1f0] sm:$0xff] %v2936_v24  ;;  %v2226_v9 = vadd.f32 %v2936_v24, %v2225_v26  ;;  %v2299_v27 = vmul.f32 %v2936_v24, %v2936_v24 }
 0x21d   :  { %v2938_v33 = vpop.eup %2937 }
 0x21e   :  { %2163 = vst [vmem:[%s3953_s3 + $0x1f8] sm:$0xff] %v2938_v33  ;;  %v2227_v32 = vadd.f32 %v2938_v33, %v2226_v9  ;;  %v2300_v35 = vmul.f32 %v2938_v33, %v2938_v33  ;;  %v2362_v31 = vadd.f32 %v2361_v30, %v2299_v27  ;;  %s2991_s3 = smov [#allocation5]  }
 0x21f   :  { %s2390_s12 = sshll.u32 %s2991_s3, 4  ;;  %s3918_s12 = int_to_ptr.vmem [resolvable:$true] %s2390_s12 }
 0x220   :  { %v2228_v37 = vrot.slane %v2227_v32, 4  ;;  %v2363_v38 = vadd.f32 %v2362_v31, %v2300_v35 }
 0x222   :  { %v2229_v39 = vadd.f32 %v2228_v37, %v2227_v32  ;;  %v2364_v40 = vrot.slane %v2363_v38, 4 }
 0x224   :  { %v2230_v42 = vrot.slane %v2229_v39, 2  ;;  %v2365_v41 = vadd.f32 %v2364_v40, %v2363_v38 }
 0x226   :  { %v2231_v34 = vadd.f32 %v2230_v42, %v2229_v39  ;;  %v2366_v44 = vrot.slane %v2365_v41, 2 }
 0x228   :  { %v2232_v36 = vrot.slane %v2231_v34, 1  ;;  %v2367_v46 = vadd.f32 %v2366_v44, %v2365_v41 }
 0x22a   :  { %v2233_v43 = vadd.f32 %v2232_v36, %v2231_v34  ;;  %v2368_v49 = vrot.slane %v2367_v46, 1 }
 0x22c   :  { %v2234_v50 = vadd.f32 %v2233_v43, %v2164_v47  ;;  %v2369_v48 = vadd.f32 %v2368_v49, %v2367_v46 }
 0x22e   :  { %2235 = vst [vmem:[#allocation3] sm:$0x1] %v2234_v50  ;;  %v2370_v52 = vadd.f32 %v2369_v48, %v2236_v45 }
 0x22f   :  { %2951 = shalt.err (!%p2948_p4)
}
 0x230   :  { %s2952_s16 = scalar_lea.hbm %s3954_s4, 16 }
 0x231   :  { %p2953_p5 = scmp.ne.s32.totalorder %s3954_s4, %s2952_s16  ;;  %p2956_p6 = scmp.lt.u32.totalorder %s2952_s16, %s3954_s4 }
 0x233   :  { %p2958_p7 = pnand %p2956_p6, %p2953_p5 }
 0x235   :  { %2961 = shalt.err (!%p2958_p7)
}
 0x236   :  { %2383 = dma.vmem_to_hbm [thread:$0]  %s2381_s11, 16, %s3954_s4, [#allocation4]   ;;  %2371 = vst [vmem:[#allocation5] sm:$0x1] %v2370_v52 }
 0x237   :  { %s2962_s22 = scalar_lea.vmem %s3918_s12, 16  ;;  %s2966_s23 = scalar_lea.vmem %s3918_s12, 32 }
 0x238   :  { %p2963_p8 = scmp.ne.s32.totalorder %s3918_s12, %s2962_s22  ;;  %p2967_p9 = scmp.lt.s32.totalorder %s3918_s12, %s3918_s12 }
 0x239   :  { %p2968_p10 = scmp.lt.s32.totalorder %s2966_s23, %s2962_s22 }
 0x23b   :  { %p2969_p11 = por %p2968_p10, %p2967_p9 }
 0x23d   :  { %p2970_p12 = pnand %p2969_p11, %p2963_p8 }
 0x23f   :  { %2973 = shalt.err (!%p2970_p12)
}
 0x240   :  { %s2974_s26 = scalar_lea.hbm %s3955_s5, 16 }
 0x241   :  { %p2975_p13 = scmp.ne.s32.totalorder %s3955_s5, %s2974_s26  ;;  %p2978_p0 = scmp.lt.u32.totalorder %s2974_s26, %s3955_s5 }
 0x243   :  { %p2980_p1 = pnand %p2978_p0, %p2975_p13 }
 0x245   :  { %2983 = shalt.err (!%p2980_p1)
}
 0x246   :  { %2393 = dma.vmem_to_hbm [thread:$0]  %s3918_s12, 16, %s3955_s5, [#allocation6]  }
 0x247   :  { %2984 = dma.done.wait [#allocation4], 16  }
 0x248   :  { %2985 = vsyncadd [#allocation4], 4294967280 }
 0x249   :  { %2986 = dma.done.wait [#allocation6], 16  }
 0x24a   :  { %2987 = vsyncadd [#allocation6], 4294967280 }
 0x24b   :  { %2402 = vsyncpa [#allocation4], 1 }
 0x24c   :  { %2403 = vsyncpa [#allocation6], 1 }

// kernel: encoder_forward.23
= control target key start
LH: loop header
LB: loop body
LE: loop exit
PB: predicated region body
PF: predicated region fallthrough
CT: control target
= control target key end

     0   :  { %s1238_s12 = smov 0   ;;  %s1240_s13 = smov 0   ;;  %s1704_s0 = inlined_call_operand.vmem [shape: s32[2,256,1], index: 0, kind: input, shape index: {}]   ;;  %s1705_s1 = inlined_call_operand.vmem [shape: s32[2,1,256], index: 1, kind: input, shape index: {}]   ;;  %s1706_s2 = inlined_call_operand.vmem [shape: f32[2,3,256], index: 2, kind: input, shape index: {}]   ;;  %s1707_s3 = inlined_call_operand.vmem [shape: f32[2,3,256], index: 3, kind: output, shape index: {}]  }
   0x1   :  { %s1242_s14 = smov 0  }
   0x2 LB: > { %s32_s15 = sadd.s32 1, %s1208_s13  ;;  %p952_p0 = scmp.ge.s32.totalorder %s1212_s14, 1  ;;  %s1212_s14 = sphi %s1242_s14, %s13_s14   ;;  %s1208_s13 = sphi %s1240_s13, %s1711_s13   ;;  %s1204_s12 = sphi %s1238_s12, %s1710_s12  }
   0x3   : > { %p34_p1 = scmp.ge.s32.totalorder %s32_s15, 2  ;;  %p198_p2 = scmp.lt.s32.totalorder %s1212_s14, 3 }
   0x5   : > { %s1713_s15 = smov (%p34_p1, %s32_s15), 0  ;;  %p199_p3 = pnand %p952_p0, %p198_p2 }
   0x6   : > { %p248_p4 = scmp.lt.s32.totalorder (!%p199_p3), %s1204_s12, 1  ;;  %v1214_v0 = vmov (!%p199_p3), 0   ;;  %v1215_v1 = vmov (!%p199_p3), 0.0   ;;  %v291_v34 = vlaneseq (!%p199_p3)  ;;  %v1216_v60 = vmov (!%p199_p3), 1.0|1.0  }
   0x7   : > { %202 = sbr.rel (%p199_p3) target bundleno = 444 (0x1bc), region = 32  ;;  %1186 = vset.pattern.permute.xlu1 (!%p199_p3), %v1214_v0  ;;  %1185 = vset.pattern.permute.xlu0 (!%p199_p3), %v1214_v0  ;;  %290 = vst [vmem:[#allocation2] sm:$0x77] (!%p199_p3), %v1215_v1 }
   0x8   : > { %vm1297_vm0 = vcmp.lt.s32.totalorder (!%p199_p3), %v291_v34, 256  ;;  %v1315_v38 = vshrl.u32 (!%p199_p3), %v291_v34, 7 }
   0x9   : > { %295 = vst.msk [vmem:[#allocation3] sm:$0x3] (!%p199_p3), %vm1297_vm0, %v1215_v1 }
   0xa   : > { %v427_v39 = vsub.s32 (!%p199_p3), 0, %v1315_v38  ;;  %v431_v40 = vsub.s32 (!%p199_p3), 1, %v1315_v38 }
   0xe   : > { %s1715_s12 = smov (!%p248_p4, %s1204_s12), 1 }
   0xf   : > { %s1090_s16 = sshll.u32 %s1715_s12, 8  ;;  %s1091_s20 = sshll.u32 %s1715_s12, 3 }
  0x10   : > { %s1263_s19 = scalar_lea.vmem %s1704_s0, %s1090_s16  ;;  %s274_s23 = scalar_lea.vmem %s1706_s2, %s1091_s20 }
  0x11   : > { %v298_v2 = vld [vmem:[%s1263_s19 + $0x10] sm:$0xff]  ;;  %v296_v3 = vld [vmem:[%s1263_s19] sm:$0xff]  ;;  %v299_v4 = vld [vmem:[%s1263_s19 + $0x18] sm:$0xff]  ;;  %s955_s24 = sshll.u32 %s1715_s12, 1  ;;  %s284_s30 = scalar_lea.vmem %s1707_s3, %s1091_s20 }
  0x12   : > { %336 = vperm.xlu1 %1186, %v298_v2   ;;  %330 = vperm.xlu0 %1185, %v296_v3   ;;  %v297_v5 = vld [vmem:[%s1263_s19 + $0x8] sm:$0xff]  ;;  %v300_v7 = vld [vmem:[%s1263_s19 + $0x20] sm:$0xff]  ;;  %v303_v8 = vld [vmem:[%s1263_s19 + $0x38] sm:$0xff]  ;;  %s264_s27 = scalar_lea.vmem %s1705_s1, %s955_s24 }
  0x13   : > { %v301_v6 = vld [vmem:[%s1263_s19 + $0x28] sm:$0xff]  ;;  %v302_v9 = vld [vmem:[%s1263_s19 + $0x30] sm:$0xff]  ;;  %v304_v11 = vld [vmem:[%s1263_s19 + $0x40] sm:$0xff] }
  0x14   : > { %v305_v10 = vld [vmem:[%s1263_s19 + $0x48] sm:$0xff]  ;;  %v307_v12 = vld [vmem:[%s1263_s19 + $0x58] sm:$0xff]  ;;  %v306_v13 = vld [vmem:[%s1263_s19 + $0x50] sm:$0xff] }
  0x15   : > { %v309_v14 = vld [vmem:[%s1263_s19 + $0x68] sm:$0xff]  ;;  %v308_v15 = vld [vmem:[%s1263_s19 + $0x60] sm:$0xff]  ;;  %v311_v16 = vld [vmem:[%s1263_s19 + $0x78] sm:$0xff] }
  0x16   : > { %339 = vperm.xlu1 %1186, %v299_v4   ;;  %333 = vperm.xlu0 %1185, %v297_v5   ;;  %v310_v17 = vld [vmem:[%s1263_s19 + $0x70] sm:$0xff]  ;;  %v313_v18 = vld [vmem:[%s1263_s19 + $0x88] sm:$0xff]  ;;  %v312_v19 = vld [vmem:[%s1263_s19 + $0x80] sm:$0xff] }
  0x17   : > { %v315_v20 = vld [vmem:[%s1263_s19 + $0x98] sm:$0xff]  ;;  %v314_v21 = vld [vmem:[%s1263_s19 + $0x90] sm:$0xff]  ;;  %v317_v22 = vld [vmem:[%s1263_s19 + $0xa8] sm:$0xff] }
  0x18   : > { %v316_v23 = vld [vmem:[%s1263_s19 + $0xa0] sm:$0xff]  ;;  %v319_v24 = vld [vmem:[%s1263_s19 + $0xb8] sm:$0xff]  ;;  %v318_v25 = vld [vmem:[%s1263_s19 + $0xb0] sm:$0xff] }
  0x19   : > { %v321_v26 = vld [vmem:[%s1263_s19 + $0xc8] sm:$0xff]  ;;  %v320_v27 = vld [vmem:[%s1263_s19 + $0xc0] sm:$0xff]  ;;  %v323_v28 = vld [vmem:[%s1263_s19 + $0xd8] sm:$0xff] }
  0x1a   : > { %345 = vperm.xlu1 %1186, %v301_v6   ;;  %342 = vperm.xlu0 %1185, %v300_v7   ;;  %v322_v29 = vld [vmem:[%s1263_s19 + $0xd0] sm:$0xff]  ;;  %v325_v30 = vld [vmem:[%s1263_s19 + $0xe8] sm:$0xff]  ;;  %v324_v31 = vld [vmem:[%s1263_s19 + $0xe0] sm:$0xff] }
  0x1b   : > { %v327_v32 = vld [vmem:[%s1263_s19 + $0xf8] sm:$0xff]  ;;  %v326_v33 = vld [vmem:[%s1263_s19 + $0xf0] sm:$0xff]  ;;  %v1310_v36 = vld [vmem:[%s274_s23] sm:$0x77] }
  0x1c   : > { %v727_v37 = vcombine.high %v1310_v36, %v1310_v36  ;;  %v328_v41 = vld [vmem:[%s264_s27] sm:$0x3] }
  0x1d   : > { %v1324_v42 = vrot.slane %v328_v41, %v427_v39  ;;  %v1328_v43 = vrot.slane %v328_v41, %v431_v40 }
  0x1e   : > { %351 = vperm.xlu1 %1186, %v303_v8   ;;  %348 = vperm.xlu0 %1185, %v302_v9  }
  0x1f   : > { %793 = vmatprep.mubr.f32.mxu0 %v727_v37 }
  0x22   : > { %357 = vperm.xlu1 %1186, %v305_v10   ;;  %354 = vperm.xlu0 %1185, %v304_v11  }
  0x26   : > { %363 = vperm.xlu1 %1186, %v307_v12   ;;  %360 = vperm.xlu0 %1185, %v306_v13  }
  0x2a   : > { %369 = vperm.xlu1 %1186, %v309_v14   ;;  %366 = vperm.xlu0 %1185, %v308_v15  }
  0x2e   : > { %375 = vperm.xlu1 %1186, %v311_v16   ;;  %372 = vperm.xlu0 %1185, %v310_v17  }
  0x32   : > { %381 = vperm.xlu1 %1186, %v313_v18   ;;  %378 = vperm.xlu0 %1185, %v312_v19  }
  0x36   : > { %387 = vperm.xlu1 %1186, %v315_v20   ;;  %384 = vperm.xlu0 %1185, %v314_v21  }
  0x3a   : > { %393 = vperm.xlu1 %1186, %v317_v22   ;;  %390 = vperm.xlu0 %1185, %v316_v23  }
  0x3e   : > { %399 = vperm.xlu1 %1186, %v319_v24   ;;  %396 = vperm.xlu0 %1185, %v318_v25  }
  0x42   : > { %405 = vperm.xlu1 %1186, %v321_v26   ;;  %402 = vperm.xlu0 %1185, %v320_v27  }
  0x46   : > { %411 = vperm.xlu1 %1186, %v323_v28   ;;  %408 = vperm.xlu0 %1185, %v322_v29  }
  0x4a   : > { %417 = vperm.xlu1 %1186, %v325_v30   ;;  %414 = vperm.xlu0 %1185, %v324_v31  }
  0x4e   : > { %423 = vperm.xlu1 %1186, %v327_v32   ;;  %420 = vperm.xlu0 %1185, %v326_v33  }
  0x91   : > { %v337_v44 = vpop.permute.xlu1 %336  ;;  %v331_v45 = vpop.permute.xlu0 %330 }
  0x92   : > { %vm433_vm1 = vcmp.eq.s32.totalorder %v331_v45, %v1324_v42  ;;  %vm434_vm2 = vcmp.eq.s32.totalorder %v331_v45, %v1328_v43  ;;  %vm437_vm3 = vcmp.eq.s32.totalorder %v337_v44, %v1324_v42  ;;  %vm438_vm4 = vcmp.eq.s32.totalorder %v337_v44, %v1328_v43 }
  0x93   : > { %v960_v48 = vsel %vm433_vm1, 1.0, %v1215_v1  ;;  %v961_v50 = vsel %vm434_vm2, 1.0, %v1215_v1  ;;  %v964_v54 = vsel %vm437_vm3, 1.0, %v1215_v1  ;;  %v965_v55 = vsel %vm438_vm4, 1.0, %v1215_v1 }
  0x95   : > { %v340_v46 = vpop.permute.xlu1 %339  ;;  %v334_v47 = vpop.permute.xlu0 %333 }
  0x96   : > { %vm435_vm5 = vcmp.eq.s32.totalorder %v334_v47, %v1324_v42  ;;  %vm436_vm6 = vcmp.eq.s32.totalorder %v334_v47, %v1328_v43  ;;  %vm439_vm7 = vcmp.eq.s32.totalorder %v340_v46, %v1324_v42  ;;  %vm440_vm8 = vcmp.eq.s32.totalorder %v340_v46, %v1328_v43 }
  0x97   : > { %v962_v49 = vsel %vm435_vm5, 1.0, %v1215_v1  ;;  %v963_v51 = vsel %vm436_vm6, 1.0, %v1215_v1  ;;  %vm1093_vm9 = vmpackc.low %vm436_vm6, %vm434_vm2  ;;  %v966_v61 = vsel %vm439_vm7, 1.0, %v1215_v1  ;;  %v967_v62 = vsel %vm440_vm8, 1.0, %v1215_v1 }
  0x98   : > { %v626_v52 = vadd.f32 %v962_v49, %v960_v48  ;;  %v663_v53 = vadd.f32 %v963_v51, %v961_v50  ;;  %1094 = vmatprep.subr.msk.bf16.mxu0 %vm1093_vm9, %v1216_v60  ;;  %vm1095_vm10 = vmpackc.low %vm435_vm5, %vm433_vm1 }
  0x99   : > { %v346_v56 = vpop.permute.xlu1 %345  ;;  %v343_v57 = vpop.permute.xlu0 %342  ;;  %vm1097_vm11 = vmpackc.low %vm440_vm8, %vm438_vm4  ;;  %1096 = vmatpush1.bf16.msk.msra.mxu0 %vm1095_vm10, %v1216_v60 }
  0x9a   : > { %v627_v58 = vadd.f32 %v964_v54, %v626_v52  ;;  %v664_v59 = vadd.f32 %v965_v55, %v663_v53  ;;  %vm441_vm12 = vcmp.eq.s32.totalorder %v343_v57, %v1324_v42  ;;  %vm442_vm13 = vcmp.eq.s32.totalorder %v343_v57, %v1328_v43  ;;  %1098 = vmatprep.subr.msk.bf16.mxu0 %vm1097_vm11, %v1216_v60  ;;  %vm1099_vm1 = vmpackc.low %vm439_vm7, %vm437_vm3 }
  0x9b   : > { %vm443_vm14 = vcmp.eq.s32.totalorder %v346_v56, %v1324_v42  ;;  %vm444_vm15 = vcmp.eq.s32.totalorder %v346_v56, %v1328_v43  ;;  %v968_v2 = vsel %vm441_vm12, 1.0, %v1215_v1  ;;  %v969_v3 = vsel %vm442_vm13, 1.0, %v1215_v1 }
  0x9c   : > { %v628_v63 = vadd.f32 %v966_v61, %v627_v58  ;;  %v665_v0 = vadd.f32 %v967_v62, %v664_v59  ;;  %v970_v8 = vsel %vm443_vm14, 1.0, %v1215_v1  ;;  %v971_v9 = vsel %vm444_vm15, 1.0, %v1215_v1  ;;  %vm1101_vm2 = vmpackc.low %vm444_vm15, %vm442_vm13 }
  0x9d   : > { %v352_v4 = vpop.permute.xlu1 %351  ;;  %v349_v5 = vpop.permute.xlu0 %348  ;;  %1100 = vmatpush1.bf16.msk.msra.mxu0 %vm1099_vm1, %v1216_v60  ;;  %vm1103_vm7 = vmpackc.low %vm443_vm14, %vm441_vm12 }
  0x9e   : > { %v629_v6 = vadd.f32 %v968_v2, %v628_v63  ;;  %v666_v7 = vadd.f32 %v969_v3, %v665_v0  ;;  %vm445_vm4 = vcmp.eq.s32.totalorder %v349_v5, %v1324_v42  ;;  %vm446_vm5 = vcmp.eq.s32.totalorder %v349_v5, %v1328_v43  ;;  %1102 = vmatprep.subr.msk.bf16.mxu0 %vm1101_vm2, %v1216_v60 }
  0x9f   : > { %vm447_vm6 = vcmp.eq.s32.totalorder %v352_v4, %v1324_v42  ;;  %vm448_vm3 = vcmp.eq.s32.totalorder %v352_v4, %v1328_v43  ;;  %v972_v12 = vsel %vm445_vm4, 1.0, %v1215_v1  ;;  %v973_v13 = vsel %vm446_vm5, 1.0, %v1215_v1 }
  0xa0   : > { %v630_v10 = vadd.f32 %v970_v8, %v629_v6  ;;  %v667_v11 = vadd.f32 %v971_v9, %v666_v7  ;;  %v974_v18 = vsel %vm447_vm6, 1.0, %v1215_v1  ;;  %v975_v19 = vsel %vm448_vm3, 1.0, %v1215_v1  ;;  %vm1105_vm8 = vmpackc.low %vm448_vm3, %vm446_vm5 }
  0xa1   : > { %v358_v14 = vpop.permute.xlu1 %357  ;;  %v355_v15 = vpop.permute.xlu0 %354  ;;  %1104 = vmatpush1.bf16.msk.msra.mxu0 %vm1103_vm7, %v1216_v60  ;;  %vm1107_vm13 = vmpackc.low %vm447_vm6, %vm445_vm4 }
  0xa2   : > { %v631_v16 = vadd.f32 %v972_v12, %v630_v10  ;;  %v668_v17 = vadd.f32 %v973_v13, %v667_v11  ;;  %vm449_vm9 = vcmp.eq.s32.totalorder %v355_v15, %v1324_v42  ;;  %vm450_vm10 = vcmp.eq.s32.totalorder %v355_v15, %v1328_v43  ;;  %1106 = vmatprep.subr.msk.bf16.mxu0 %vm1105_vm8, %v1216_v60 }
  0xa3   : > { %vm451_vm11 = vcmp.eq.s32.totalorder %v358_v14, %v1324_v42  ;;  %vm452_vm12 = vcmp.eq.s32.totalorder %v358_v14, %v1328_v43  ;;  %v976_v22 = vsel %vm449_vm9, 1.0, %v1215_v1  ;;  %v977_v23 = vsel %vm450_vm10, 1.0, %v1215_v1 }
  0xa4   : > { %v632_v20 = vadd.f32 %v974_v18, %v631_v16  ;;  %v669_v21 = vadd.f32 %v975_v19, %v668_v17  ;;  %v978_v28 = vsel %vm451_vm11, 1.0, %v1215_v1  ;;  %v979_v29 = vsel %vm452_vm12, 1.0, %v1215_v1  ;;  %vm1109_vm14 = vmpackc.low %vm452_vm12, %vm450_vm10 }
  0xa5   : > { %v364_v24 = vpop.permute.xlu1 %363  ;;  %v361_v25 = vpop.permute.xlu0 %360  ;;  %1108 = vmatpush1.bf16.msk.msra.mxu0 %vm1107_vm13, %v1216_v60  ;;  %vm1111_vm5 = vmpackc.low %vm451_vm11, %vm449_vm9 }
  0xa6   : > { %v633_v26 = vadd.f32 %v976_v22, %v632_v20  ;;  %v670_v27 = vadd.f32 %v977_v23, %v669_v21  ;;  %vm453_vm15 = vcmp.eq.s32.totalorder %v361_v25, %v1324_v42  ;;  %vm454_vm1 = vcmp.eq.s32.totalorder %v361_v25, %v1328_v43  ;;  %1110 = vmatprep.subr.msk.bf16.mxu0 %vm1109_vm14, %v1216_v60 }
  0xa7   : > { %vm455_vm2 = vcmp.eq.s32.totalorder %v364_v24, %v1324_v42  ;;  %vm456_vm4 = vcmp.eq.s32.totalorder %v364_v24, %v1328_v43  ;;  %v980_v32 = vsel %vm453_vm15, 1.0, %v1215_v1  ;;  %v981_v33 = vsel %vm454_vm1, 1.0, %v1215_v1 }
  0xa8   : > { %v634_v30 = vadd.f32 %v978_v28, %v633_v26  ;;  %v671_v31 = vadd.f32 %v979_v29, %v670_v27  ;;  %v982_v45 = vsel %vm455_vm2, 1.0, %v1215_v1  ;;  %v983_v46 = vsel %vm456_vm4, 1.0, %v1215_v1  ;;  %vm1113_vm6 = vmpackc.low %vm456_vm4, %vm454_vm1 }
  0xa9   : > { %v370_v34 = vpop.permute.xlu1 %369  ;;  %v367_v37 = vpop.permute.xlu0 %366  ;;  %1112 = vmatpush1.bf16.msk.msra.mxu0 %vm1111_vm5, %v1216_v60  ;;  %vm1115_vm10 = vmpackc.low %vm455_vm2, %vm453_vm15 }
  0xaa   : > { %v635_v41 = vadd.f32 %v980_v32, %v634_v30  ;;  %v672_v44 = vadd.f32 %v981_v33, %v671_v31  ;;  %vm457_vm3 = vcmp.eq.s32.totalorder %v367_v37, %v1324_v42  ;;  %vm458_vm7 = vcmp.eq.s32.totalorder %v367_v37, %v1328_v43  ;;  %1114 = vmatprep.subr.msk.bf16.mxu0 %vm1113_vm6, %v1216_v60 }
  0xab   : > { %vm459_vm8 = vcmp.eq.s32.totalorder %v370_v34, %v1324_v42  ;;  %vm460_vm9 = vcmp.eq.s32.totalorder %v370_v34, %v1328_v43  ;;  %v984_v49 = vsel %vm457_vm3, 1.0, %v1215_v1  ;;  %v985_v50 = vsel %vm458_vm7, 1.0, %v1215_v1 }
  0xac   : > { %v636_v47 = vadd.f32 %v982_v45, %v635_v41  ;;  %v673_v48 = vadd.f32 %v983_v46, %v672_v44  ;;  %v986_v55 = vsel %vm459_vm8, 1.0, %v1215_v1  ;;  %v987_v56 = vsel %vm460_vm9, 1.0, %v1215_v1  ;;  %vm1117_vm11 = vmpackc.low %vm460_vm9, %vm458_vm7 }
  0xad   : > { %v376_v51 = vpop.permute.xlu1 %375  ;;  %v373_v52 = vpop.permute.xlu0 %372  ;;  %1116 = vmatpush1.bf16.msk.msra.mxu0 %vm1115_vm10, %v1216_v60  ;;  %vm1119_vm1 = vmpackc.low %vm459_vm8, %vm457_vm3 }
  0xae   : > { %v637_v53 = vadd.f32 %v984_v49, %v636_v47  ;;  %v674_v54 = vadd.f32 %v985_v50, %v673_v48  ;;  %vm461_vm12 = vcmp.eq.s32.totalorder %v373_v52, %v1324_v42  ;;  %vm462_vm13 = vcmp.eq.s32.totalorder %v373_v52, %v1328_v43  ;;  %1118 = vmatprep.subr.msk.bf16.mxu0 %vm1117_vm11, %v1216_v60 }
  0xaf   : > { %vm463_vm14 = vcmp.eq.s32.totalorder %v376_v51, %v1324_v42  ;;  %vm464_vm15 = vcmp.eq.s32.totalorder %v376_v51, %v1328_v43  ;;  %v988_v59 = vsel %vm461_vm12, 1.0, %v1215_v1  ;;  %v989_v61 = vsel %vm462_vm13, 1.0, %v1215_v1 }
  0xb0   : > { %v638_v57 = vadd.f32 %v986_v55, %v637_v53  ;;  %v675_v58 = vadd.f32 %v987_v56, %v674_v54  ;;  %v990_v3 = vsel %vm463_vm14, 1.0, %v1215_v1  ;;  %v991_v4 = vsel %vm464_vm15, 1.0, %v1215_v1  ;;  %vm1121_vm2 = vmpackc.low %vm464_vm15, %vm462_vm13 }
  0xb1   : > { %v382_v62 = vpop.permute.xlu1 %381  ;;  %v379_v63 = vpop.permute.xlu0 %378  ;;  %1120 = vmatpush1.bf16.msk.msra.mxu0 %vm1119_vm1, %v1216_v60  ;;  %vm1123_vm7 = vmpackc.low %vm463_vm14, %vm461_vm12 }
  0xb2   : > { %v639_v0 = vadd.f32 %v988_v59, %v638_v57  ;;  %v676_v2 = vadd.f32 %v989_v61, %v675_v58  ;;  %vm465_vm4 = vcmp.eq.s32.totalorder %v379_v63, %v1324_v42  ;;  %vm466_vm5 = vcmp.eq.s32.totalorder %v379_v63, %v1328_v43  ;;  %1122 = vmatprep.subr.msk.bf16.mxu0 %vm1121_vm2, %v1216_v60 }
  0xb3   : > { %vm467_vm6 = vcmp.eq.s32.totalorder %v382_v62, %v1324_v42  ;;  %vm468_vm3 = vcmp.eq.s32.totalorder %v382_v62, %v1328_v43  ;;  %v992_v7 = vsel %vm465_vm4, 1.0, %v1215_v1  ;;  %v993_v8 = vsel %vm466_vm5, 1.0, %v1215_v1 }
  0xb4   : > { %v640_v5 = vadd.f32 %v990_v3, %v639_v0  ;;  %v677_v6 = vadd.f32 %v991_v4, %v676_v2  ;;  %v994_v13 = vsel %vm467_vm6, 1.0, %v1215_v1  ;;  %v995_v14 = vsel %vm468_vm3, 1.0, %v1215_v1  ;;  %vm1125_vm8 = vmpackc.low %vm468_vm3, %vm466_vm5 }
  0xb5   : > { %v388_v9 = vpop.permute.xlu1 %387  ;;  %v385_v10 = vpop.permute.xlu0 %384  ;;  %1124 = vmatpush1.bf16.msk.msra.mxu0 %vm1123_vm7, %v1216_v60  ;;  %vm1127_vm13 = vmpackc.low %vm467_vm6, %vm465_vm4 }
  0xb6   : > { %v641_v11 = vadd.f32 %v992_v7, %v640_v5  ;;  %v678_v12 = vadd.f32 %v993_v8, %v677_v6  ;;  %vm469_vm9 = vcmp.eq.s32.totalorder %v385_v10, %v1324_v42  ;;  %vm470_vm10 = vcmp.eq.s32.totalorder %v385_v10, %v1328_v43  ;;  %1126 = vmatprep.subr.msk.bf16.mxu0 %vm1125_vm8, %v1216_v60 }
  0xb7   : > { %vm471_vm11 = vcmp.eq.s32.totalorder %v388_v9, %v1324_v42  ;;  %vm472_vm12 = vcmp.eq.s32.totalorder %v388_v9, %v1328_v43  ;;  %v996_v17 = vsel %vm469_vm9, 1.0, %v1215_v1  ;;  %v997_v18 = vsel %vm470_vm10, 1.0, %v1215_v1 }
  0xb8   : > { %v642_v15 = vadd.f32 %v994_v13, %v641_v11  ;;  %v679_v16 = vadd.f32 %v995_v14, %v678_v12  ;;  %v998_v23 = vsel %vm471_vm11, 1.0, %v1215_v1  ;;  %v999_v24 = vsel %vm472_vm12, 1.0, %v1215_v1  ;;  %vm1129_vm14 = vmpackc.low %vm472_vm12, %vm470_vm10 }
  0xb9   : > { %v394_v19 = vpop.permute.xlu1 %393  ;;  %v391_v20 = vpop.permute.xlu0 %390  ;;  %1128 = vmatpush1.bf16.msk.msra.mxu0 %vm1127_vm13, %v1216_v60  ;;  %vm1131_vm5 = vmpackc.low %vm471_vm11, %vm469_vm9 }
  0xba   : > { %v643_v21 = vadd.f32 %v996_v17, %v642_v15  ;;  %v680_v22 = vadd.f32 %v997_v18, %v679_v16  ;;  %vm473_vm15 = vcmp.eq.s32.totalorder %v391_v20, %v1324_v42  ;;  %vm474_vm1 = vcmp.eq.s32.totalorder %v391_v20, %v1328_v43  ;;  %1130 = vmatprep.subr.msk.bf16.mxu0 %vm1129_vm14, %v1216_v60 }
  0xbb   : > { %vm475_vm2 = vcmp.eq.s32.totalorder %v394_v19, %v1324_v42  ;;  %vm476_vm4 = vcmp.eq.s32.totalorder %v394_v19, %v1328_v43  ;;  %v1000_v27 = vsel %vm473_vm15, 1.0, %v1215_v1  ;;  %v1001_v28 = vsel %vm474_vm1, 1.0, %v1215_v1 }
  0xbc   : > { %v644_v25 = vadd.f32 %v998_v23, %v643_v21  ;;  %v681_v26 = vadd.f32 %v999_v24, %v680_v22  ;;  %v1002_v33 = vsel %vm475_vm2, 1.0, %v1215_v1  ;;  %v1003_v34 = vsel %vm476_vm4, 1.0, %v1215_v1  ;;  %vm1133_vm6 = vmpackc.low %vm476_vm4, %vm474_vm1 }
  0xbd   : > { %v400_v29 = vpop.permute.xlu1 %399  ;;  %v397_v30 = vpop.permute.xlu0 %396  ;;  %1132 = vmatpush1.bf16.msk.msra.mxu0 %vm1131_vm5, %v1216_v60  ;;  %vm1135_vm10 = vmpackc.low %vm475_vm2, %vm473_vm15 }
  0xbe   : > { %v645_v31 = vadd.f32 %v1000_v27, %v644_v25  ;;  %v682_v32 = vadd.f32 %v1001_v28, %v681_v26  ;;  %vm477_vm3 = vcmp.eq.s32.totalorder %v397_v30, %v1324_v42  ;;  %vm478_vm7 = vcmp.eq.s32.totalorder %v397_v30, %v1328_v43  ;;  %1134 = vmatprep.subr.msk.bf16.mxu0 %vm1133_vm6, %v1216_v60 }
  0xbf   : > { %vm479_vm8 = vcmp.eq.s32.totalorder %v400_v29, %v1324_v42  ;;  %vm480_vm9 = vcmp.eq.s32.totalorder %v400_v29, %v1328_v43  ;;  %v1004_v44 = vsel %vm477_vm3, 1.0, %v1215_v1  ;;  %v1005_v45 = vsel %vm478_vm7, 1.0, %v1215_v1 }
  0xc0   : > { %v646_v37 = vadd.f32 %v1002_v33, %v645_v31  ;;  %v683_v41 = vadd.f32 %v1003_v34, %v682_v32  ;;  %v1006_v50 = vsel %vm479_vm8, 1.0, %v1215_v1  ;;  %v1007_v51 = vsel %vm480_vm9, 1.0, %v1215_v1  ;;  %vm1137_vm11 = vmpackc.low %vm480_vm9, %vm478_vm7 }
  0xc1   : > { %v406_v46 = vpop.permute.xlu1 %405  ;;  %v403_v47 = vpop.permute.xlu0 %402  ;;  %1136 = vmatpush1.bf16.msk.msra.mxu0 %vm1135_vm10, %v1216_v60  ;;  %vm1139_vm1 = vmpackc.low %vm479_vm8, %vm477_vm3  ;;  %v1217_v31 = vmov 1966171168  }
  0xc2   : > { %v647_v48 = vadd.f32 %v1004_v44, %v646_v37  ;;  %v684_v49 = vadd.f32 %v1005_v45, %v683_v41  ;;  %vm481_vm12 = vcmp.eq.s32.totalorder %v403_v47, %v1324_v42  ;;  %vm482_vm13 = vcmp.eq.s32.totalorder %v403_v47, %v1328_v43  ;;  %1138 = vmatprep.subr.msk.bf16.mxu0 %vm1137_vm11, %v1216_v60 }
  0xc3   : > { %vm483_vm14 = vcmp.eq.s32.totalorder %v406_v46, %v1324_v42  ;;  %vm484_vm15 = vcmp.eq.s32.totalorder %v406_v46, %v1328_v43  ;;  %v1008_v54 = vsel %vm481_vm12, 1.0, %v1215_v1  ;;  %v1009_v55 = vsel %vm482_vm13, 1.0, %v1215_v1 }
  0xc4   : > { %v648_v52 = vadd.f32 %v1006_v50, %v647_v48  ;;  %v685_v53 = vadd.f32 %v1007_v51, %v684_v49  ;;  %v1010_v61 = vsel %vm483_vm14, 1.0, %v1215_v1  ;;  %v1011_v62 = vsel %vm484_vm15, 1.0, %v1215_v1  ;;  %vm1141_vm2 = vmpackc.low %vm484_vm15, %vm482_vm13 }
  0xc5   : > { %v412_v56 = vpop.permute.xlu1 %411  ;;  %v409_v57 = vpop.permute.xlu0 %408  ;;  %1140 = vmatpush1.bf16.msk.msra.mxu0 %vm1139_vm1, %v1216_v60  ;;  %vm1143_vm7 = vmpackc.low %vm483_vm14, %vm481_vm12  ;;  %v704_v32 = vunpack.c.l.s4 %v1217_v31 }
  0xc6   : > { %v649_v58 = vadd.f32 %v1008_v54, %v648_v52  ;;  %v686_v59 = vadd.f32 %v1009_v55, %v685_v53  ;;  %vm485_vm4 = vcmp.eq.s32.totalorder %v409_v57, %v1324_v42  ;;  %vm486_vm5 = vcmp.eq.s32.totalorder %v409_v57, %v1328_v43  ;;  %1142 = vmatprep.subr.msk.bf16.mxu0 %vm1141_vm2, %v1216_v60 }
  0xc7   : > { %vm487_vm6 = vcmp.eq.s32.totalorder %v412_v56, %v1324_v42  ;;  %vm488_vm3 = vcmp.eq.s32.totalorder %v412_v56, %v1328_v43  ;;  %v1012_v2 = vsel %vm485_vm4, 1.0, %v1215_v1  ;;  %v1013_v3 = vsel %vm486_vm5, 1.0, %v1215_v1 }
  0xc8   : > { %v650_v63 = vadd.f32 %v1010_v61, %v649_v58  ;;  %v687_v0 = vadd.f32 %v1011_v62, %v686_v59  ;;  %v1014_v8 = vsel %vm487_vm6, 1.0, %v1215_v1  ;;  %v1015_v9 = vsel %vm488_vm3, 1.0, %v1215_v1  ;;  %vm1145_vm8 = vmpackc.low %vm488_vm3, %vm486_vm5  ;;  %v724_v58 = vld [vmem:[#allocation2] sm:$0x77] }
  0xc9   : > { %v418_v4 = vpop.permute.xlu1 %417  ;;  %v415_v5 = vpop.permute.xlu0 %414  ;;  %1144 = vmatpush1.bf16.msk.msra.mxu0 %vm1143_vm7, %v1216_v60  ;;  %vm1147_vm13 = vmpackc.low %vm487_vm6, %vm485_vm4  ;;  %v705_v41 = vunpack.c.0.s8 %v704_v32 }
  0xca   : > { %v651_v6 = vadd.f32 %v1012_v2, %v650_v63  ;;  %v688_v7 = vadd.f32 %v1013_v3, %v687_v0  ;;  %vm489_vm9 = vcmp.eq.s32.totalorder %v415_v5, %v1324_v42  ;;  %vm490_vm10 = vcmp.eq.s32.totalorder %v415_v5, %v1328_v43  ;;  %1146 = vmatprep.subr.msk.bf16.mxu0 %vm1145_vm8, %v1216_v60 }
  0xcb   : > { %vm491_vm11 = vcmp.eq.s32.totalorder %v418_v4, %v1324_v42  ;;  %vm492_vm12 = vcmp.eq.s32.totalorder %v418_v4, %v1328_v43  ;;  %v1016_v12 = vsel %vm489_vm9, 1.0, %v1215_v1  ;;  %v1017_v13 = vsel %vm490_vm10, 1.0, %v1215_v1 }
  0xcc   : > { %v652_v10 = vadd.f32 %v1014_v8, %v651_v6  ;;  %v689_v11 = vadd.f32 %v1015_v9, %v688_v7  ;;  %v1018_v18 = vsel %vm491_vm11, 1.0, %v1215_v1  ;;  %v1019_v19 = vsel %vm492_vm12, 1.0, %v1215_v1  ;;  %vm1149_vm14 = vmpackc.low %vm492_vm12, %vm490_vm10 }
  0xcd   : > { %v424_v14 = vpop.permute.xlu1 %423  ;;  %v421_v15 = vpop.permute.xlu0 %420  ;;  %1148 = vmatpush1.bf16.msk.msra.mxu0 %vm1147_vm13, %v1216_v60  ;;  %vm1151_vm5 = vmpackc.low %vm491_vm11, %vm489_vm9  ;;  %v708_v48 = vsub.s32 %v705_v41, %v1315_v38 }
  0xce   : > { %v653_v16 = vadd.f32 %v1016_v12, %v652_v10  ;;  %v690_v17 = vadd.f32 %v1017_v13, %v689_v11  ;;  %vm493_vm15 = vcmp.eq.s32.totalorder %v421_v15, %v1324_v42  ;;  %vm494_vm1 = vcmp.eq.s32.totalorder %v421_v15, %v1328_v43  ;;  %1150 = vmatprep.subr.msk.bf16.mxu0 %vm1149_vm14, %v1216_v60 }
  0xcf   : > { %vm495_vm2 = vcmp.eq.s32.totalorder %v424_v14, %v1324_v42  ;;  %vm496_vm4 = vcmp.eq.s32.totalorder %v424_v14, %v1328_v43  ;;  %v1020_v22 = vsel %vm493_vm15, 1.0, %v1215_v1  ;;  %v1021_v23 = vsel %vm494_vm1, 1.0, %v1215_v1 }
  0xd0   : > { %v654_v20 = vadd.f32 %v1018_v18, %v653_v16  ;;  %v691_v21 = vadd.f32 %v1019_v19, %v690_v17  ;;  %v1022_v43 = vsel %vm495_vm2, 1.0, %v1215_v1  ;;  %v1023_v26 = vsel %vm496_vm4, 1.0, %v1215_v1  ;;  %vm1153_vm6 = vmpackc.low %vm496_vm4, %vm494_vm1 }
  0xd1   : > { %1152 = vmatpush1.bf16.msk.msra.mxu0 %vm1151_vm5, %v1216_v60  ;;  %vm1155_vm3 = vmpackc.low %vm495_vm2, %vm493_vm15 }
  0xd2   : > { %v655_v24 = vadd.f32 %v1020_v22, %v654_v20  ;;  %v692_v25 = vadd.f32 %v1021_v23, %v691_v21  ;;  %1154 = vmatprep.subr.msk.bf16.mxu0 %vm1153_vm6, %v1216_v60 }
  0xd4   : > { %v656_v27 = vadd.f32 %v1022_v43, %v655_v24  ;;  %v693_v28 = vadd.f32 %v1023_v26, %v692_v25 }
  0xd5   : > { %1156 = vmatpush1.bf16.msk.msra.mxu0 %vm1155_vm3, %v1216_v60  ;;  %v625_v60 = vld [vmem:[#allocation3] sm:$0x3] }
  0xd6   : > { %v657_v29 = vrot.slane %v656_v27, 4  ;;  %v694_v30 = vrot.slane %v693_v28, 4 }
  0xd8   : > { %v658_v33 = vadd.f32 %v657_v29, %v656_v27  ;;  %v695_v1 = vadd.f32 %v694_v30, %v693_v28  ;;  %794 = vmatmul.mubr.f32.vlgmr.msra.gmra.mrb[0].mxu0 %v1310_v36 }
  0xda   : > { %v659_v34 = vrot.slane %v658_v33, 2  ;;  %v696_v37 = vrot.slane %v695_v1, 2 }
  0xdc   : > { %v660_v44 = vadd.f32 %v659_v34, %v658_v33  ;;  %v697_v45 = vadd.f32 %v696_v37, %v695_v1 }
  0xde   : > { %v661_v46 = vrot.slane %v660_v44, 1  ;;  %v698_v47 = vrot.slane %v697_v45, 1 }
  0xe0   : > { %v662_v49 = vadd.f32 %v661_v46, %v660_v44  ;;  %v699_v42 = vadd.f32 %v698_v47, %v697_v45 }
  0xe2   : > { %v702_v50 = vcombine.low %v662_v49, %v699_v42 }
  0xe4   : > { %v709_v51 = vrot.slane %v702_v50, %v708_v48 }
  0xe6   : > { %v716_v52 = vrot.slane %v709_v51, %v708_v48 }
  0xe8   : > { %v718_v53 = vadd.f32 %v716_v52, %v625_v60 }
  0xea   : > { %723 = vst.msk [vmem:[#allocation3] sm:$0x3] %vm1297_vm0, %v718_v53 }
  0xf1   : > { %v810_v54 = vld [vmem:[#allocation3] sm:$0x3] }
  0xf2   : > { %v815_v36 = vrot.slane %v810_v54, %v427_v39  ;;  %v819_v55 = vrot.slane %v810_v54, %v431_v40 }
  0xf4   : > { %v820_v56 = vcombine.low %v815_v36, %v819_v55 }
  0xf6   : > { %1188 = vrcp.f32 %v820_v56 }
 0x100   : > { %v1189_v63 = vpop.eup %1188 }
 0x1ab   : > { %v795_v57 = vpop.f32.mrb[0].mxu0 }
 0x1ac   : > { %v797_v59 = vpop.f32.mrb[1].mxu0 }
 0x1ad   : > { %v802_v61 = vcombine.low %v795_v57, %v797_v59 }
 0x1af   : > { %v804_v62 = vadd.f32 %v802_v61, %v724_v58 }
 0x1b1   : > { %805 = vst [vmem:[#allocation2] sm:$0x77] %v804_v62 }
 0x1b8   : > { %v809_v35 = vld [vmem:[#allocation2] sm:$0x77] }
 0x1b9   : > { %v823_v0 = vmul.f32 %v1189_v63, %v809_v35 }
 0x1bb   : > { %824 = vst [vmem:[%s284_s30] sm:$0x77] %v823_v0 }
 0x1bc PF: > { %s13_s14 = sadd.s32 1, %s1212_s14   ;;  %s1710_s12 = smov %s1208_s13 }
 0x1bd   : > { %p10_p5 = scmp.ge.s32.totalorder %s13_s14, 4   ;;  %s1711_s13 = smov %s1713_s15 }
 0x1bf   :  { %12 = sbr.rel (!%p10_p5) target bundleno = 2 (0x2), region = 76 }

</bundles_post_ra>
